<compile_context>
chip_gen: v7x
topology: tpu7x:2x2x1
jax: 0.10.0
libtpu: 0.0.40
codegen_flags: <defaults>
</compile_context>

<pallas_src>
import functools

import jax
import jax.numpy as jnp
from jax import lax
from jax.experimental import pallas as pl
from jax.experimental.pallas import tpu as pltpu

_LANE = 128        # every gate / hidden width padded to one full vreg lane width
_BATCH_TILE = 16   # batch rows padded to a bf16 sublane tile (16,128)


def _round_up(n, m):
    return (n + m - 1) // m * m


def _vmem_bytes(shape, dtype):
    """VMEM footprint of an array with Mosaic's (sublane, 128-lane) tiling."""
    itemsize = jnp.dtype(dtype).itemsize
    sub = max(1, 32 // itemsize)
    dims = list(shape)
    dims[-1] = _round_up(dims[-1], _LANE)
    dims[-2] = _round_up(dims[-2], sub)
    size = itemsize
    for d in dims:
        size *= d
    return size


# -----------------------------------------------------------------------------
# Fused kernel: 4 GRU layers + fc, single invocation, everything VMEM-resident.
# PyTorch GRU semantics (gate order r, z, n):
#   r = sigmoid(W_ir x + b_ir + W_hr h + b_hr)
#   z = sigmoid(W_iz x + b_iz + W_hz h + b_hz)
#   n = tanh  (W_in x + b_in + r * (W_hn h + b_hn))
#   h' = (1 - z) * n + z * h
# -----------------------------------------------------------------------------
def _gru_ae_kernel(x_ref, wih0_ref, wih_ref, whh_ref, bcomb_ref, bhn_ref,
                   fcw_ref, fcb_ref, y_ref, seq_a, seq_b, gi_scr,
                   *, seq_len, chunk, batch_pad, hp, n_feat):
    S, C, Bp, HP = seq_len, chunk, batch_pad, hp
    NC = S // C
    unroll = int(min(C, 8))

    def run_layer(layer, gi_chunk_fn, out_ref):
        w_hh = whh_ref[layer]                       # (HP, 3HP) bf16
        b_hn = bhn_ref[layer]                       # (1, HP)   f32

        def chunk_body(c, h):
            # Hoisted input-side GEMM for this chunk of C time steps.
            gi = gi_chunk_fn(c)                                     # (C*Bp, 3HP) f32
            gi_scr[...] = gi.reshape(C, Bp, 3 * HP).astype(jnp.bfloat16)

            def step(t, h):
                gi_t = gi_scr[t].astype(jnp.float32)                # (Bp, 3HP)
                gh = jnp.dot(h.astype(jnp.bfloat16), w_hh,
                             preferred_element_type=jnp.float32)    # (Bp, 3HP)
                # gate slices fall on 128-lane vreg boundaries (HP = 128)
                r = jax.nn.sigmoid(gi_t[:, 0:HP] + gh[:, 0:HP])
                z = jax.nn.sigmoid(gi_t[:, HP:2 * HP] + gh[:, HP:2 * HP])
                n = jnp.tanh(gi_t[:, 2 * HP:3 * HP]
                             + r * (gh[:, 2 * HP:3 * HP] + b_hn))
                h_new = (1.0 - z) * n + z * h
                out_ref[c * C + t] = h_new.astype(out_ref.dtype)
                return h_new

            return lax.fori_loop(0, C, step, h, unroll=unroll)

        h0 = jnp.zeros((Bp, HP), jnp.float32)
        if NC == 1:
            chunk_body(0, h0)
        else:
            lax.fori_loop(0, NC, chunk_body, h0)

    # Layer 0 reads the raw (S, Bp, F) input; contraction dim is the real F.
    def gi_layer0(c):
        xc = x_ref[pl.ds(c * C, C)].reshape(C * Bp, n_feat)          # f32
        gi = jnp.dot(xc.astype(jnp.bfloat16), wih0_ref[...],
                     preferred_element_type=jnp.float32)             # (C*Bp, 3HP)
        return gi + bcomb_ref[0]

    # Layers 1..3 read the bf16 hidden-state sequence written by the previous
    # layer (HP-wide, padded lanes are exactly zero).
    def gi_hidden(layer, in_ref):
        def fn(c):
            xc = in_ref[pl.ds(c * C, C)].reshape(C * Bp, HP)          # bf16
            gi = jnp.dot(xc, wih_ref[layer - 1],
                         preferred_element_type=jnp.float32)
            return gi + bcomb_ref[layer]
        return fn

    # Encoder: GRU(F -> 2E), GRU(2E -> E); Decoder: GRU(E -> E), GRU(E -> 2E)
    run_layer(0, gi_layer0, seq_a)
    run_layer(1, gi_hidden(1, seq_a), seq_b)
    run_layer(2, gi_hidden(2, seq_b), seq_a)
    run_layer(3, gi_hidden(3, seq_a), seq_b)

    # fc: one GEMM over the whole (S*Bp) slab; only the real F lanes emitted.
    h_all = seq_b[...].reshape(S * Bp, HP)                            # bf16
    y = jnp.dot(h_all, fcw_ref[...], preferred_element_type=jnp.float32)
    y = y + fcb_ref[...]
    y_ref[...] = y.reshape(S, Bp, n_feat)


# -----------------------------------------------------------------------------
# Weight packing: transpose to (in, 3H), pad each gate's columns to 128 lanes,
# optionally pad the input-row dim to 128; combine b_ih + b_hh for r/z gates.
# Weights are stored in bf16 (MXU operands); biases stay f32.
# -----------------------------------------------------------------------------
def _pack_gru_layer(p, hid, hp, pad_rows_to=None):
    w_ih = p["w_ih"].astype(jnp.float32)     # (3h, in_dim)  PyTorch layout
    w_hh = p["w_hh"].astype(jnp.float32)     # (3h, h)
    b_ih = p["b_ih"].astype(jnp.float32)     # (3h,)
    b_hh = p["b_hh"].astype(jnp.float32)     # (3h,)

    def pad_cols_per_gate(w_t):              # (rows, 3h) -> (rows, 3*hp)
        gates = [jnp.pad(w_t[:, g * hid:(g + 1) * hid], ((0, 0), (0, hp - hid)))
                 for g in range(3)]
        return jnp.concatenate(gates, axis=1)

    wih_p = pad_cols_per_gate(w_ih.T)                              # (in_dim, 3hp)
    if pad_rows_to is not None:
        wih_p = jnp.pad(wih_p, ((0, pad_rows_to - wih_p.shape[0]), (0, 0)))
    whh_p = pad_cols_per_gate(w_hh.T)                              # (h, 3hp)
    whh_p = jnp.pad(whh_p, ((0, hp - hid), (0, 0)))                # (hp, 3hp)

    def pad_vec(v):
        return jnp.pad(v, (0, hp - hid))

    b_ir, b_iz, b_in = (b_ih[g * hid:(g + 1) * hid] for g in range(3))
    b_hr, b_hz, b_hn = (b_hh[g * hid:(g + 1) * hid] for g in range(3))
    bcomb = jnp.concatenate([pad_vec(b_ir + b_hr),
                             pad_vec(b_iz + b_hz),
                             pad_vec(b_in)]).reshape(1, 3 * hp)
    bhn = pad_vec(b_hn).reshape(1, hp)
    return (wih_p.astype(jnp.bfloat16), whh_p.astype(jnp.bfloat16), bcomb, bhn)


# -----------------------------------------------------------------------------
# Forward pass (PyTorch batch_first layout at the boundary).
# -----------------------------------------------------------------------------
@jax.jit
def gru_autoencoder_forward(params, x_bsf):
    """x_bsf: (batch, seq, n_features) -> (batch, seq, n_features)."""
    B, S, F = x_bsf.shape
    embedding_dim = params["enc_gru2"]["w_hh"].shape[1]
    hidden_dim = 2 * embedding_dim
    HP = _LANE
    assert hidden_dim <= HP, "packing assumes 2*embedding_dim <= 128"
    assert F <= HP, "packing assumes n_features <= 128"

    Bp = _round_up(max(B, _BATCH_TILE), _BATCH_TILE)
    # Time-chunk for the hoisted input GEMM (largest divisor of S, <= 64).
    C = next(c for c in range(min(S, 64), 0, -1) if S % c == 0)

    p0 = _pack_gru_layer(params["enc_gru1"], hidden_dim, HP, pad_rows_to=None)
    p1 = _pack_gru_layer(params["enc_gru2"], embedding_dim, HP, pad_rows_to=HP)
    p2 = _pack_gru_layer(params["dec_gru1"], embedding_dim, HP, pad_rows_to=HP)
    p3 = _pack_gru_layer(params["dec_gru2"], hidden_dim, HP, pad_rows_to=HP)

    wih0 = p0[0]                                                # (F, 3HP)  bf16
    wih_rest = jnp.stack([p1[0], p2[0], p3[0]])                 # (3, HP, 3HP)
    whh_all = jnp.stack([p[1] for p in (p0, p1, p2, p3)])       # (4, HP, 3HP)
    bcomb_all = jnp.stack([p[2] for p in (p0, p1, p2, p3)])     # (4, 1, 3HP) f32
    bhn_all = jnp.stack([p[3] for p in (p0, p1, p2, p3)])       # (4, 1, HP)  f32

    fc_w = params["fc_w"].astype(jnp.float32)                   # (F, hidden)
    fc_b = params["fc_b"].astype(jnp.float32)                   # (F,)
    fcw_p = jnp.pad(fc_w.T, ((0, HP - hidden_dim), (0, 0))).astype(jnp.bfloat16)  # (HP, F)
    fcb_p = fc_b.reshape(1, F)

    # (B,S,F) -> (S,B,F); pad batch to Bp rows only (no 128-lane padding in HBM).
    x = jnp.transpose(x_bsf.astype(jnp.float32), (1, 0, 2))
    x = jnp.pad(x, ((0, 0), (0, Bp - B), (0, 0)))               # (S, Bp, F)

    # Explicit scoped-VMEM budget (resident footprint + headroom).
    est = (_vmem_bytes((S, Bp, F), jnp.float32)                 # x
           + _vmem_bytes((S, Bp, F), jnp.float32)               # y
           + _vmem_bytes((F, 3 * HP), jnp.bfloat16)             # wih0
           + 3 * _vmem_bytes((HP, 3 * HP), jnp.bfloat16)        # wih_rest
           + 4 * _vmem_bytes((HP, 3 * HP), jnp.bfloat16)        # whh
           + 4 * _vmem_bytes((1, 3 * HP), jnp.float32)
           + 4 * _vmem_bytes((1, HP), jnp.float32)
           + _vmem_bytes((HP, F), jnp.bfloat16)
           + _vmem_bytes((1, F), jnp.float32)
           + 2 * _vmem_bytes((S, Bp, HP), jnp.bfloat16)         # seq ping/pong
           + _vmem_bytes((C, Bp, 3 * HP), jnp.bfloat16))        # gi chunk scratch
    vmem_limit = int(max(32 * 2**20, min(96 * 2**20, 2 * est)))

    kernel = functools.partial(_gru_ae_kernel, seq_len=S, chunk=C,
                               batch_pad=Bp, hp=HP, n_feat=F)
    vspec = pl.BlockSpec(memory_space=pltpu.MemorySpace.VMEM)
    y_pad = pl.pallas_call(
        kernel,
        out_shape=jax.ShapeDtypeStruct((S, Bp, F), jnp.float32),
        in_specs=[vspec] * 8,
        out_specs=vspec,
        scratch_shapes=[
            pltpu.VMEM((S, Bp, HP), jnp.bfloat16),       # seq ping buffer
            pltpu.VMEM((S, Bp, HP), jnp.bfloat16),       # seq pong buffer
            pltpu.VMEM((C, Bp, 3 * HP), jnp.bfloat16),   # chunked input-gate GEMM
        ],
        compiler_params=pltpu.CompilerParams(vmem_limit_bytes=vmem_limit),
    )(x, wih0, wih_rest, whh_all, bcomb_all, bhn_all, fcw_p, fcb_p)

    y = y_pad[:, :B, :]                                  # drop batch padding
    return jnp.transpose(y, (1, 0, 2))                   # back to (B, S, F)


# -----------------------------------------------------------------------------
# Pure-JAX reference (exact PyTorch GRU semantics) for correctness check.
# -----------------------------------------------------------------------------
def _gru_layer_ref(x_tbf, w_ih, w_hh, b_ih, b_hh):
    S, B, _ = x_tbf.shape
    H = w_hh.shape[1]

    def step(h, x_t):
        gi = x_t @ w_ih.T + b_ih
        gh = h @ w_hh.T + b_hh
        i_r, i_z, i_n = gi[:, :H], gi[:, H:2 * H], gi[:, 2 * H:]
        h_r, h_z, h_n = gh[:, :H], gh[:, H:2 * H], gh[:, 2 * H:]
        r = jax.nn.sigmoid(i_r + h_r)
        z = jax.nn.sigmoid(i_z + h_z)
        n = jnp.tanh(i_n + r * h_n)
        h_new = (1.0 - z) * n + z * h
        return h_new, h_new

    _, ys = jax.lax.scan(step, jnp.zeros((B, H), jnp.float32), x_tbf)
    return ys


def gru_autoencoder_ref(params, x_bsf):
    x = jnp.transpose(x_bsf.astype(jnp.float32), (1, 0, 2))
    for name in ("enc_gru1", "enc_gru2", "dec_gru1", "dec_gru2"):
        p = params[name]
        x = _gru_layer_ref(x, p["w_ih"], p["w_hh"], p["b_ih"], p["b_hh"])
    y = x @ params["fc_w"].T + params["fc_b"]
    return jnp.transpose(y, (1, 0, 2))


# -----------------------------------------------------------------------------
# Parameter init (PyTorch shapes, U(-1/sqrt(H), 1/sqrt(H))).
# -----------------------------------------------------------------------------
def init_params(key, seq_len, n_features, embedding_dim=32):
    hidden_dim = embedding_dim * 2

    def gru_params(key, in_dim, hid):
        k = 1.0 / jnp.sqrt(hid)
        ks = jax.random.split(key, 4)
        return dict(
            w_ih=jax.random.uniform(ks[0], (3 * hid, in_dim), jnp.float32, -k, k),
            w_hh=jax.random.uniform(ks[1], (3 * hid, hid), jnp.float32, -k, k),
            b_ih=jax.random.uniform(ks[2], (3 * hid,), jnp.float32, -k, k),
            b_hh=jax.random.uniform(ks[3], (3 * hid,), jnp.float32, -k, k),
        )

    keys = jax.random.split(key, 6)
    params = {
        "enc_gru1": gru_params(keys[0], n_features, hidden_dim),
        "enc_gru2": gru_params(keys[1], hidden_dim, embedding_dim),
        "dec_gru1": gru_params(keys[2], embedding_dim, embedding_dim),
        "dec_gru2": gru_params(keys[3], embedding_dim, hidden_dim),
    }
    k_fc = 1.0 / jnp.sqrt(hidden_dim)
    params["fc_w"] = jax.random.uniform(keys[4], (n_features, hidden_dim),
                                        jnp.float32, -k_fc, k_fc)
    params["fc_b"] = jax.random.uniform(keys[5], (n_features,),
                                        jnp.float32, -k_fc, k_fc)
    return params


if __name__ == "__main__":
    key = jax.random.PRNGKey(0)
    batch, seq_len, n_features, embedding_dim = 2, 8, 4, 32

    k_param, k_x = jax.random.split(key)
    params = init_params(k_param, seq_len, n_features, embedding_dim)
    x = jax.random.normal(k_x, (batch, seq_len, n_features), dtype=jnp.float32)

    out = gru_autoencoder_forward(params, x)
    jax.block_until_ready(out)
    assert out.shape == (batch, seq_len, n_features)

    ref = gru_autoencoder_ref(params, x)
    # bf16 MXU operands / bf16 VMEM scratch -> relaxed tolerance vs f32 reference.
    assert jnp.allclose(out, ref, atol=5e-2, rtol=5e-2), "mismatch vs JAX reference"

    print("KERNEL_OK")
</pallas_src>

<mosaic_0001>
module attributes {stable_mosaic.version = 11 : i64} {
  func.func @_gru_ae_kernel(%arg0: memref<8x16x4xf32, #tpu.memory_space<vmem>>, %arg1: memref<4x384xbf16, #tpu.memory_space<vmem>>, %arg2: memref<3x128x384xbf16, #tpu.memory_space<vmem>>, %arg3: memref<4x128x384xbf16, #tpu.memory_space<vmem>>, %arg4: memref<4x1x384xf32, #tpu.memory_space<vmem>>, %arg5: memref<4x1x128xf32, #tpu.memory_space<vmem>>, %arg6: memref<128x4xbf16, #tpu.memory_space<vmem>>, %arg7: memref<1x4xf32, #tpu.memory_space<vmem>>, %arg8: memref<8x16x4xf32, #tpu.memory_space<vmem>>, %arg9: memref<8x16x128xbf16, #tpu.memory_space<vmem>>, %arg10: memref<8x16x128xbf16, #tpu.memory_space<vmem>>, %arg11: memref<8x16x384xbf16, #tpu.memory_space<vmem>>) attributes {dimension_semantics = [], scalar_prefetch = 0 : i64, scratch_operands = 3 : i64, tpu.core_type = #tpu.core_type<tc>} {
    %c0 = arith.constant 0 : index
    %c0_0 = arith.constant 0 : index
    %c0_1 = arith.constant 0 : index
    %0 = vector.load %arg3[%c0, %c0_0, %c0_1] : memref<4x128x384xbf16, #tpu.memory_space<vmem>>, vector<1x128x384xbf16>
    %1 = vector.shape_cast %0 : vector<1x128x384xbf16> to vector<128x384xbf16>
    %c0_2 = arith.constant 0 : index
    %c0_3 = arith.constant 0 : index
    %c0_4 = arith.constant 0 : index
    %2 = vector.load %arg5[%c0_2, %c0_3, %c0_4] : memref<4x1x128xf32, #tpu.memory_space<vmem>>, vector<1x1x128xf32>
    %3 = vector.shape_cast %2 : vector<1x1x128xf32> to vector<1x128xf32>
    %cst = arith.constant 0.000000e+00 : f32
    %4 = vector.broadcast %cst : f32 to vector<16x128xf32>
    %c0_5 = arith.constant 0 : index
    %c0_6 = arith.constant 0 : index
    %c0_7 = arith.constant 0 : index
    %5 = vector.load %arg0[%c0_5, %c0_6, %c0_7] : memref<8x16x4xf32, #tpu.memory_space<vmem>>, vector<8x16x4xf32>
    %6 = vector.shape_cast %5 : vector<8x16x4xf32> to vector<128x4xf32>
    %7 = arith.truncf %6 : vector<128x4xf32> to vector<128x4xbf16>
    %c0_8 = arith.constant 0 : index
    %c0_9 = arith.constant 0 : index
    %8 = vector.load %arg1[%c0_8, %c0_9] : memref<4x384xbf16, #tpu.memory_space<vmem>>, vector<4x384xbf16>
    %cst_10 = arith.constant dense<0.000000e+00> : vector<128x384xf32>
    %9 = tpu.matmul %7, %8, %cst_10 {dimension_numbers = #tpu.dot_dimension_numbers<[1], [0], [0], [1], [0, 0, 1, 1], [], []>} : vector<128x4xbf16>, vector<4x384xbf16>, vector<128x384xf32> -> vector<128x384xf32>
    %c0_11 = arith.constant 0 : index
    %c0_12 = arith.constant 0 : index
    %c0_13 = arith.constant 0 : index
    %10 = vector.load %arg4[%c0_11, %c0_12, %c0_13] : memref<4x1x384xf32, #tpu.memory_space<vmem>>, vector<1x1x384xf32>
    %11 = vector.shape_cast %10 : vector<1x1x384xf32> to vector<1x384xf32>
    %12 = vector.broadcast %11 : vector<1x384xf32> to vector<128x384xf32>
    %13 = arith.addf %9, %12 : vector<128x384xf32>
    %14 = vector.shape_cast %13 : vector<128x384xf32> to vector<8x16x384xf32>
    %15 = arith.truncf %14 : vector<8x16x384xf32> to vector<8x16x384xbf16>
    %c0_14 = arith.constant 0 : index
    %c0_15 = arith.constant 0 : index
    %c0_16 = arith.constant 0 : index
    %16 = vector.load %arg11[%c0_14, %c0_15, %c0_16] : memref<8x16x384xbf16, #tpu.memory_space<vmem>>, vector<8x16x384xbf16>
    tpu.vector_store %arg11[%c0_14, %c0_15, %c0_16], %15 {strides = array<i32>} : memref<8x16x384xbf16, #tpu.memory_space<vmem>>, vector<8x16x384xbf16>,
    %c0_i32 = arith.constant 0 : i32
    %17 = arith.index_cast %c0_i32 : i32 to index
    %c0_17 = arith.constant 0 : index
    %c0_18 = arith.constant 0 : index
    %18 = vector.load %arg11[%17, %c0_17, %c0_18] : memref<8x16x384xbf16, #tpu.memory_space<vmem>>, vector<1x16x384xbf16>
    %19 = vector.shape_cast %18 : vector<1x16x384xbf16> to vector<16x384xbf16>
    %20 = arith.extf %19 : vector<16x384xbf16> to vector<16x384xf32>
    %21 = arith.truncf %4 : vector<16x128xf32> to vector<16x128xbf16>
    %cst_19 = arith.constant dense<0.000000e+00> : vector<16x384xf32>
    %22 = tpu.matmul %21, %1, %cst_19 {dimension_numbers = #tpu.dot_dimension_numbers<[1], [0], [0], [1], [0, 0, 1, 1], [], []>} : vector<16x128xbf16>, vector<128x384xbf16>, vector<16x384xf32> -> vector<16x384xf32>
    %23 = vector.extract_strided_slice %20 {offsets = [0, 0], sizes = [16, 128], strides = [1, 1]} : vector<16x384xf32> to vector<16x128xf32>
    %24 = vector.extract_strided_slice %22 {offsets = [0, 0], sizes = [16, 128], strides = [1, 1]} : vector<16x384xf32> to vector<16x128xf32>
    %25 = arith.addf %23, %24 : vector<16x128xf32>
    %26 = arith.negf %25 : vector<16x128xf32>
    %27 = math.exp %26 : vector<16x128xf32>
    %cst_20 = arith.constant 1.000000e+00 : f32
    %28 = vector.broadcast %cst_20 : f32 to vector<16x128xf32>
    %29 = arith.addf %28, %27 : vector<16x128xf32>
    %30 = arith.divf %28, %29 : vector<16x128xf32>
    %31 = vector.extract_strided_slice %20 {offsets = [0, 128], sizes = [16, 128], strides = [1, 1]} : vector<16x384xf32> to vector<16x128xf32>
    %32 = vector.extract_strided_slice %22 {offsets = [0, 128], sizes = [16, 128], strides = [1, 1]} : vector<16x384xf32> to vector<16x128xf32>
    %33 = arith.addf %31, %32 : vector<16x128xf32>
    %34 = arith.negf %33 : vector<16x128xf32>
    %35 = math.exp %34 : vector<16x128xf32>
    %cst_21 = arith.constant 1.000000e+00 : f32
    %36 = vector.broadcast %cst_21 : f32 to vector<16x128xf32>
    %37 = arith.addf %36, %35 : vector<16x128xf32>
    %38 = arith.divf %36, %37 : vector<16x128xf32>
    %39 = vector.extract_strided_slice %20 {offsets = [0, 256], sizes = [16, 128], strides = [1, 1]} : vector<16x384xf32> to vector<16x128xf32>
    %40 = vector.extract_strided_slice %22 {offsets = [0, 256], sizes = [16, 128], strides = [1, 1]} : vector<16x384xf32> to vector<16x128xf32>
    %41 = vector.broadcast %3 : vector<1x128xf32> to vector<16x128xf32>
    %42 = arith.addf %40, %41 : vector<16x128xf32>
    %43 = arith.mulf %30, %42 : vector<16x128xf32>
    %44 = arith.addf %39, %43 : vector<16x128xf32>
    %45 = math.tanh %44 : vector<16x128xf32>
    %cst_22 = arith.constant 1.000000e+00 : f32
    %46 = vector.broadcast %cst_22 : f32 to vector<16x128xf32>
    %47 = arith.subf %46, %38 : vector<16x128xf32>
    %48 = arith.mulf %47, %45 : vector<16x128xf32>
    %49 = arith.mulf %38, %4 : vector<16x128xf32>
    %50 = arith.addf %48, %49 : vector<16x128xf32>
    %51 = arith.truncf %50 : vector<16x128xf32> to vector<16x128xbf16>
    %c0_i32_23 = arith.constant 0 : i32
    %52 = arith.addi %c0_i32_23, %c0_i32 : i32
    %53 = arith.index_cast %52 : i32 to index
    %c0_24 = arith.constant 0 : index
    %c0_25 = arith.constant 0 : index
    %54 = vector.load %arg9[%53, %c0_24, %c0_25] : memref<8x16x128xbf16, #tpu.memory_space<vmem>>, vector<1x16x128xbf16>
    %55 = vector.shape_cast %54 : vector<1x16x128xbf16> to vector<16x128xbf16>
    %56 = vector.shape_cast %51 : vector<16x128xbf16> to vector<1x16x128xbf16>
    tpu.vector_store %arg9[%53, %c0_24, %c0_25], %56 {strides = array<i32>} : memref<8x16x128xbf16, #tpu.memory_space<vmem>>, vector<1x16x128xbf16>,
    %c1_i32 = arith.constant 1 : i32
    %57 = arith.index_cast %c1_i32 : i32 to index
    %c0_26 = arith.constant 0 : index
    %c0_27 = arith.constant 0 : index
    %58 = vector.load %arg11[%57, %c0_26, %c0_27] : memref<8x16x384xbf16, #tpu.memory_space<vmem>>, vector<1x16x384xbf16>
    %59 = vector.shape_cast %58 : vector<1x16x384xbf16> to vector<16x384xbf16>
    %60 = arith.extf %59 : vector<16x384xbf16> to vector<16x384xf32>
    %61 = arith.truncf %50 : vector<16x128xf32> to vector<16x128xbf16>
    %cst_28 = arith.constant dense<0.000000e+00> : vector<16x384xf32>
    %62 = tpu.matmul %61, %1, %cst_28 {dimension_numbers = #tpu.dot_dimension_numbers<[1], [0], [0], [1], [0, 0, 1, 1], [], []>} : vector<16x128xbf16>, vector<128x384xbf16>, vector<16x384xf32> -> vector<16x384xf32>
    %63 = vector.extract_strided_slice %60 {offsets = [0, 0], sizes = [16, 128], strides = [1, 1]} : vector<16x384xf32> to vector<16x128xf32>
    %64 = vector.extract_strided_slice %62 {offsets = [0, 0], sizes = [16, 128], strides = [1, 1]} : vector<16x384xf32> to vector<16x128xf32>
    %65 = arith.addf %63, %64 : vector<16x128xf32>
    %66 = arith.negf %65 : vector<16x128xf32>
    %67 = math.exp %66 : vector<16x128xf32>
    %cst_29 = arith.constant 1.000000e+00 : f32
    %68 = vector.broadcast %cst_29 : f32 to vector<16x128xf32>
    %69 = arith.addf %68, %67 : vector<16x128xf32>
    %70 = arith.divf %68, %69 : vector<16x128xf32>
    %71 = vector.extract_strided_slice %60 {offsets = [0, 128], sizes = [16, 128], strides = [1, 1]} : vector<16x384xf32> to vector<16x128xf32>
    %72 = vector.extract_strided_slice %62 {offsets = [0, 128], sizes = [16, 128], strides = [1, 1]} : vector<16x384xf32> to vector<16x128xf32>
    %73 = arith.addf %71, %72 : vector<16x128xf32>
    %74 = arith.negf %73 : vector<16x128xf32>
    %75 = math.exp %74 : vector<16x128xf32>
    %cst_30 = arith.constant 1.000000e+00 : f32
    %76 = vector.broadcast %cst_30 : f32 to vector<16x128xf32>
    %77 = arith.addf %76, %75 : vector<16x128xf32>
    %78 = arith.divf %76, %77 : vector<16x128xf32>
    %79 = vector.extract_strided_slice %60 {offsets = [0, 256], sizes = [16, 128], strides = [1, 1]} : vector<16x384xf32> to vector<16x128xf32>
    %80 = vector.extract_strided_slice %62 {offsets = [0, 256], sizes = [16, 128], strides = [1, 1]} : vector<16x384xf32> to vector<16x128xf32>
    %81 = vector.broadcast %3 : vector<1x128xf32> to vector<16x128xf32>
    %82 = arith.addf %80, %81 : vector<16x128xf32>
    %83 = arith.mulf %70, %82 : vector<16x128xf32>
    %84 = arith.addf %79, %83 : vector<16x128xf32>
    %85 = math.tanh %84 : vector<16x128xf32>
    %cst_31 = arith.constant 1.000000e+00 : f32
    %86 = vector.broadcast %cst_31 : f32 to vector<16x128xf32>
    %87 = arith.subf %86, %78 : vector<16x128xf32>
    %88 = arith.mulf %87, %85 : vector<16x128xf32>
    %89 = arith.mulf %78, %50 : vector<16x128xf32>
    %90 = arith.addf %88, %89 : vector<16x128xf32>
    %91 = arith.truncf %90 : vector<16x128xf32> to vector<16x128xbf16>
    %c0_i32_32 = arith.constant 0 : i32
    %92 = arith.addi %c0_i32_32, %c1_i32 : i32
    %93 = arith.index_cast %92 : i32 to index
    %c0_33 = arith.constant 0 : index
    %c0_34 = arith.constant 0 : index
    %94 = vector.load %arg9[%93, %c0_33, %c0_34] : memref<8x16x128xbf16, #tpu.memory_space<vmem>>, vector<1x16x128xbf16>
    %95 = vector.shape_cast %94 : vector<1x16x128xbf16> to vector<16x128xbf16>
    %96 = vector.shape_cast %91 : vector<16x128xbf16> to vector<1x16x128xbf16>
    tpu.vector_store %arg9[%93, %c0_33, %c0_34], %96 {strides = array<i32>} : memref<8x16x128xbf16, #tpu.memory_space<vmem>>, vector<1x16x128xbf16>,
    %c2_i32 = arith.constant 2 : i32
    %97 = arith.index_cast %c2_i32 : i32 to index
    %c0_35 = arith.constant 0 : index
    %c0_36 = arith.constant 0 : index
    %98 = vector.load %arg11[%97, %c0_35, %c0_36] : memref<8x16x384xbf16, #tpu.memory_space<vmem>>, vector<1x16x384xbf16>
    %99 = vector.shape_cast %98 : vector<1x16x384xbf16> to vector<16x384xbf16>
    %100 = arith.extf %99 : vector<16x384xbf16> to vector<16x384xf32>
    %101 = arith.truncf %90 : vector<16x128xf32> to vector<16x128xbf16>
    %cst_37 = arith.constant dense<0.000000e+00> : vector<16x384xf32>
    %102 = tpu.matmul %101, %1, %cst_37 {dimension_numbers = #tpu.dot_dimension_numbers<[1], [0], [0], [1], [0, 0, 1, 1], [], []>} : vector<16x128xbf16>, vector<128x384xbf16>, vector<16x384xf32> -> vector<16x384xf32>
    %103 = vector.extract_strided_slice %100 {offsets = [0, 0], sizes = [16, 128], strides = [1, 1]} : vector<16x384xf32> to vector<16x128xf32>
    %104 = vector.extract_strided_slice %102 {offsets = [0, 0], sizes = [16, 128], strides = [1, 1]} : vector<16x384xf32> to vector<16x128xf32>
    %105 = arith.addf %103, %104 : vector<16x128xf32>
    %106 = arith.negf %105 : vector<16x128xf32>
    %107 = math.exp %106 : vector<16x128xf32>
    %cst_38 = arith.constant 1.000000e+00 : f32
    %108 = vector.broadcast %cst_38 : f32 to vector<16x128xf32>
    %109 = arith.addf %108, %107 : vector<16x128xf32>
    %110 = arith.divf %108, %109 : vector<16x128xf32>
    %111 = vector.extract_strided_slice %100 {offsets = [0, 128], sizes = [16, 128], strides = [1, 1]} : vector<16x384xf32> to vector<16x128xf32>
    %112 = vector.extract_strided_slice %102 {offsets = [0, 128], sizes = [16, 128], strides = [1, 1]} : vector<16x384xf32> to vector<16x128xf32>
    %113 = arith.addf %111, %112 : vector<16x128xf32>
    %114 = arith.negf %113 : vector<16x128xf32>
    %115 = math.exp %114 : vector<16x128xf32>
    %cst_39 = arith.constant 1.000000e+00 : f32
    %116 = vector.broadcast %cst_39 : f32 to vector<16x128xf32>
    %117 = arith.addf %116, %115 : vector<16x128xf32>
    %118 = arith.divf %116, %117 : vector<16x128xf32>
    %119 = vector.extract_strided_slice %100 {offsets = [0, 256], sizes = [16, 128], strides = [1, 1]} : vector<16x384xf32> to vector<16x128xf32>
    %120 = vector.extract_strided_slice %102 {offsets = [0, 256], sizes = [16, 128], strides = [1, 1]} : vector<16x384xf32> to vector<16x128xf32>
    %121 = vector.broadcast %3 : vector<1x128xf32> to vector<16x128xf32>
    %122 = arith.addf %120, %121 : vector<16x128xf32>
    %123 = arith.mulf %110, %122 : vector<16x128xf32>
    %124 = arith.addf %119, %123 : vector<16x128xf32>
    %125 = math.tanh %124 : vector<16x128xf32>
    %cst_40 = arith.constant 1.000000e+00 : f32
    %126 = vector.broadcast %cst_40 : f32 to vector<16x128xf32>
    %127 = arith.subf %126, %118 : vector<16x128xf32>
    %128 = arith.mulf %127, %125 : vector<16x128xf32>
    %129 = arith.mulf %118, %90 : vector<16x128xf32>
    %130 = arith.addf %128, %129 : vector<16x128xf32>
    %131 = arith.truncf %130 : vector<16x128xf32> to vector<16x128xbf16>
    %c0_i32_41 = arith.constant 0 : i32
    %132 = arith.addi %c0_i32_41, %c2_i32 : i32
    %133 = arith.index_cast %132 : i32 to index
    %c0_42 = arith.constant 0 : index
    %c0_43 = arith.constant 0 : index
    %134 = vector.load %arg9[%133, %c0_42, %c0_43] : memref<8x16x128xbf16, #tpu.memory_space<vmem>>, vector<1x16x128xbf16>
    %135 = vector.shape_cast %134 : vector<1x16x128xbf16> to vector<16x128xbf16>
    %136 = vector.shape_cast %131 : vector<16x128xbf16> to vector<1x16x128xbf16>
    tpu.vector_store %arg9[%133, %c0_42, %c0_43], %136 {strides = array<i32>} : memref<8x16x128xbf16, #tpu.memory_space<vmem>>, vector<1x16x128xbf16>,
    %c3_i32 = arith.constant 3 : i32
    %137 = arith.index_cast %c3_i32 : i32 to index
    %c0_44 = arith.constant 0 : index
    %c0_45 = arith.constant 0 : index
    %138 = vector.load %arg11[%137, %c0_44, %c0_45] : memref<8x16x384xbf16, #tpu.memory_space<vmem>>, vector<1x16x384xbf16>
    %139 = vector.shape_cast %138 : vector<1x16x384xbf16> to vector<16x384xbf16>
    %140 = arith.extf %139 : vector<16x384xbf16> to vector<16x384xf32>
    %141 = arith.truncf %130 : vector<16x128xf32> to vector<16x128xbf16>
    %cst_46 = arith.constant dense<0.000000e+00> : vector<16x384xf32>
    %142 = tpu.matmul %141, %1, %cst_46 {dimension_numbers = #tpu.dot_dimension_numbers<[1], [0], [0], [1], [0, 0, 1, 1], [], []>} : vector<16x128xbf16>, vector<128x384xbf16>, vector<16x384xf32> -> vector<16x384xf32>
    %143 = vector.extract_strided_slice %140 {offsets = [0, 0], sizes = [16, 128], strides = [1, 1]} : vector<16x384xf32> to vector<16x128xf32>
    %144 = vector.extract_strided_slice %142 {offsets = [0, 0], sizes = [16, 128], strides = [1, 1]} : vector<16x384xf32> to vector<16x128xf32>
    %145 = arith.addf %143, %144 : vector<16x128xf32>
    %146 = arith.negf %145 : vector<16x128xf32>
    %147 = math.exp %146 : vector<16x128xf32>
    %cst_47 = arith.constant 1.000000e+00 : f32
    %148 = vector.broadcast %cst_47 : f32 to vector<16x128xf32>
    %149 = arith.addf %148, %147 : vector<16x128xf32>
    %150 = arith.divf %148, %149 : vector<16x128xf32>
    %151 = vector.extract_strided_slice %140 {offsets = [0, 128], sizes = [16, 128], strides = [1, 1]} : vector<16x384xf32> to vector<16x128xf32>
    %152 = vector.extract_strided_slice %142 {offsets = [0, 128], sizes = [16, 128], strides = [1, 1]} : vector<16x384xf32> to vector<16x128xf32>
    %153 = arith.addf %151, %152 : vector<16x128xf32>
    %154 = arith.negf %153 : vector<16x128xf32>
    %155 = math.exp %154 : vector<16x128xf32>
    %cst_48 = arith.constant 1.000000e+00 : f32
    %156 = vector.broadcast %cst_48 : f32 to vector<16x128xf32>
    %157 = arith.addf %156, %155 : vector<16x128xf32>
    %158 = arith.divf %156, %157 : vector<16x128xf32>
    %159 = vector.extract_strided_slice %140 {offsets = [0, 256], sizes = [16, 128], strides = [1, 1]} : vector<16x384xf32> to vector<16x128xf32>
    %160 = vector.extract_strided_slice %142 {offsets = [0, 256], sizes = [16, 128], strides = [1, 1]} : vector<16x384xf32> to vector<16x128xf32>
    %161 = vector.broadcast %3 : vector<1x128xf32> to vector<16x128xf32>
    %162 = arith.addf %160, %161 : vector<16x128xf32>
    %163 = arith.mulf %150, %162 : vector<16x128xf32>
    %164 = arith.addf %159, %163 : vector<16x128xf32>
    %165 = math.tanh %164 : vector<16x128xf32>
    %cst_49 = arith.constant 1.000000e+00 : f32
    %166 = vector.broadcast %cst_49 : f32 to vector<16x128xf32>
    %167 = arith.subf %166, %158 : vector<16x128xf32>
    %168 = arith.mulf %167, %165 : vector<16x128xf32>
    %169 = arith.mulf %158, %130 : vector<16x128xf32>
    %170 = arith.addf %168, %169 : vector<16x128xf32>
    %171 = arith.truncf %170 : vector<16x128xf32> to vector<16x128xbf16>
    %c0_i32_50 = arith.constant 0 : i32
    %172 = arith.addi %c0_i32_50, %c3_i32 : i32
    %173 = arith.index_cast %172 : i32 to index
    %c0_51 = arith.constant 0 : index
    %c0_52 = arith.constant 0 : index
    %174 = vector.load %arg9[%173, %c0_51, %c0_52] : memref<8x16x128xbf16, #tpu.memory_space<vmem>>, vector<1x16x128xbf16>
    %175 = vector.shape_cast %174 : vector<1x16x128xbf16> to vector<16x128xbf16>
    %176 = vector.shape_cast %171 : vector<16x128xbf16> to vector<1x16x128xbf16>
    tpu.vector_store %arg9[%173, %c0_51, %c0_52], %176 {strides = array<i32>} : memref<8x16x128xbf16, #tpu.memory_space<vmem>>, vector<1x16x128xbf16>,
    %c4_i32 = arith.constant 4 : i32
    %177 = arith.index_cast %c4_i32 : i32 to index
    %c0_53 = arith.constant 0 : index
    %c0_54 = arith.constant 0 : index
    %178 = vector.load %arg11[%177, %c0_53, %c0_54] : memref<8x16x384xbf16, #tpu.memory_space<vmem>>, vector<1x16x384xbf16>
    %179 = vector.shape_cast %178 : vector<1x16x384xbf16> to vector<16x384xbf16>
    %180 = arith.extf %179 : vector<16x384xbf16> to vector<16x384xf32>
    %181 = arith.truncf %170 : vector<16x128xf32> to vector<16x128xbf16>
    %cst_55 = arith.constant dense<0.000000e+00> : vector<16x384xf32>
    %182 = tpu.matmul %181, %1, %cst_55 {dimension_numbers = #tpu.dot_dimension_numbers<[1], [0], [0], [1], [0, 0, 1, 1], [], []>} : vector<16x128xbf16>, vector<128x384xbf16>, vector<16x384xf32> -> vector<16x384xf32>
    %183 = vector.extract_strided_slice %180 {offsets = [0, 0], sizes = [16, 128], strides = [1, 1]} : vector<16x384xf32> to vector<16x128xf32>
    %184 = vector.extract_strided_slice %182 {offsets = [0, 0], sizes = [16, 128], strides = [1, 1]} : vector<16x384xf32> to vector<16x128xf32>
    %185 = arith.addf %183, %184 : vector<16x128xf32>
    %186 = arith.negf %185 : vector<16x128xf32>
    %187 = math.exp %186 : vector<16x128xf32>
    %cst_56 = arith.constant 1.000000e+00 : f32
    %188 = vector.broadcast %cst_56 : f32 to vector<16x128xf32>
    %189 = arith.addf %188, %187 : vector<16x128xf32>
    %190 = arith.divf %188, %189 : vector<16x128xf32>
    %191 = vector.extract_strided_slice %180 {offsets = [0, 128], sizes = [16, 128], strides = [1, 1]} : vector<16x384xf32> to vector<16x128xf32>
    %192 = vector.extract_strided_slice %182 {offsets = [0, 128], sizes = [16, 128], strides = [1, 1]} : vector<16x384xf32> to vector<16x128xf32>
    %193 = arith.addf %191, %192 : vector<16x128xf32>
    %194 = arith.negf %193 : vector<16x128xf32>
    %195 = math.exp %194 : vector<16x128xf32>
    %cst_57 = arith.constant 1.000000e+00 : f32
    %196 = vector.broadcast %cst_57 : f32 to vector<16x128xf32>
    %197 = arith.addf %196, %195 : vector<16x128xf32>
    %198 = arith.divf %196, %197 : vector<16x128xf32>
    %199 = vector.extract_strided_slice %180 {offsets = [0, 256], sizes = [16, 128], strides = [1, 1]} : vector<16x384xf32> to vector<16x128xf32>
    %200 = vector.extract_strided_slice %182 {offsets = [0, 256], sizes = [16, 128], strides = [1, 1]} : vector<16x384xf32> to vector<16x128xf32>
    %201 = vector.broadcast %3 : vector<1x128xf32> to vector<16x128xf32>
    %202 = arith.addf %200, %201 : vector<16x128xf32>
    %203 = arith.mulf %190, %202 : vector<16x128xf32>
    %204 = arith.addf %199, %203 : vector<16x128xf32>
    %205 = math.tanh %204 : vector<16x128xf32>
    %cst_58 = arith.constant 1.000000e+00 : f32
    %206 = vector.broadcast %cst_58 : f32 to vector<16x128xf32>
    %207 = arith.subf %206, %198 : vector<16x128xf32>
    %208 = arith.mulf %207, %205 : vector<16x128xf32>
    %209 = arith.mulf %198, %170 : vector<16x128xf32>
    %210 = arith.addf %208, %209 : vector<16x128xf32>
    %211 = arith.truncf %210 : vector<16x128xf32> to vector<16x128xbf16>
    %c0_i32_59 = arith.constant 0 : i32
    %212 = arith.addi %c0_i32_59, %c4_i32 : i32
    %213 = arith.index_cast %212 : i32 to index
    %c0_60 = arith.constant 0 : index
    %c0_61 = arith.constant 0 : index
    %214 = vector.load %arg9[%213, %c0_60, %c0_61] : memref<8x16x128xbf16, #tpu.memory_space<vmem>>, vector<1x16x128xbf16>
    %215 = vector.shape_cast %214 : vector<1x16x128xbf16> to vector<16x128xbf16>
    %216 = vector.shape_cast %211 : vector<16x128xbf16> to vector<1x16x128xbf16>
    tpu.vector_store %arg9[%213, %c0_60, %c0_61], %216 {strides = array<i32>} : memref<8x16x128xbf16, #tpu.memory_space<vmem>>, vector<1x16x128xbf16>,
    %c5_i32 = arith.constant 5 : i32
    %217 = arith.index_cast %c5_i32 : i32 to index
    %c0_62 = arith.constant 0 : index
    %c0_63 = arith.constant 0 : index
    %218 = vector.load %arg11[%217, %c0_62, %c0_63] : memref<8x16x384xbf16, #tpu.memory_space<vmem>>, vector<1x16x384xbf16>
    %219 = vector.shape_cast %218 : vector<1x16x384xbf16> to vector<16x384xbf16>
    %220 = arith.extf %219 : vector<16x384xbf16> to vector<16x384xf32>
    %221 = arith.truncf %210 : vector<16x128xf32> to vector<16x128xbf16>
    %cst_64 = arith.constant dense<0.000000e+00> : vector<16x384xf32>
    %222 = tpu.matmul %221, %1, %cst_64 {dimension_numbers = #tpu.dot_dimension_numbers<[1], [0], [0], [1], [0, 0, 1, 1], [], []>} : vector<16x128xbf16>, vector<128x384xbf16>, vector<16x384xf32> -> vector<16x384xf32>
    %223 = vector.extract_strided_slice %220 {offsets = [0, 0], sizes = [16, 128], strides = [1, 1]} : vector<16x384xf32> to vector<16x128xf32>
    %224 = vector.extract_strided_slice %222 {offsets = [0, 0], sizes = [16, 128], strides = [1, 1]} : vector<16x384xf32> to vector<16x128xf32>
    %225 = arith.addf %223, %224 : vector<16x128xf32>
    %226 = arith.negf %225 : vector<16x128xf32>
    %227 = math.exp %226 : vector<16x128xf32>
    %cst_65 = arith.constant 1.000000e+00 : f32
    %228 = vector.broadcast %cst_65 : f32 to vector<16x128xf32>
    %229 = arith.addf %228, %227 : vector<16x128xf32>
    %230 = arith.divf %228, %229 : vector<16x128xf32>
    %231 = vector.extract_strided_slice %220 {offsets = [0, 128], sizes = [16, 128], strides = [1, 1]} : vector<16x384xf32> to vector<16x128xf32>
    %232 = vector.extract_strided_slice %222 {offsets = [0, 128], sizes = [16, 128], strides = [1, 1]} : vector<16x384xf32> to vector<16x128xf32>
    %233 = arith.addf %231, %232 : vector<16x128xf32>
    %234 = arith.negf %233 : vector<16x128xf32>
    %235 = math.exp %234 : vector<16x128xf32>
    %cst_66 = arith.constant 1.000000e+00 : f32
    %236 = vector.broadcast %cst_66 : f32 to vector<16x128xf32>
    %237 = arith.addf %236, %235 : vector<16x128xf32>
    %238 = arith.divf %236, %237 : vector<16x128xf32>
    %239 = vector.extract_strided_slice %220 {offsets = [0, 256], sizes = [16, 128], strides = [1, 1]} : vector<16x384xf32> to vector<16x128xf32>
    %240 = vector.extract_strided_slice %222 {offsets = [0, 256], sizes = [16, 128], strides = [1, 1]} : vector<16x384xf32> to vector<16x128xf32>
    %241 = vector.broadcast %3 : vector<1x128xf32> to vector<16x128xf32>
    %242 = arith.addf %240, %241 : vector<16x128xf32>
    %243 = arith.mulf %230, %242 : vector<16x128xf32>
    %244 = arith.addf %239, %243 : vector<16x128xf32>
    %245 = math.tanh %244 : vector<16x128xf32>
    %cst_67 = arith.constant 1.000000e+00 : f32
    %246 = vector.broadcast %cst_67 : f32 to vector<16x128xf32>
    %247 = arith.subf %246, %238 : vector<16x128xf32>
    %248 = arith.mulf %247, %245 : vector<16x128xf32>
    %249 = arith.mulf %238, %210 : vector<16x128xf32>
    %250 = arith.addf %248, %249 : vector<16x128xf32>
    %251 = arith.truncf %250 : vector<16x128xf32> to vector<16x128xbf16>
    %c0_i32_68 = arith.constant 0 : i32
    %252 = arith.addi %c0_i32_68, %c5_i32 : i32
    %253 = arith.index_cast %252 : i32 to index
    %c0_69 = arith.constant 0 : index
    %c0_70 = arith.constant 0 : index
    %254 = vector.load %arg9[%253, %c0_69, %c0_70] : memref<8x16x128xbf16, #tpu.memory_space<vmem>>, vector<1x16x128xbf16>
    %255 = vector.shape_cast %254 : vector<1x16x128xbf16> to vector<16x128xbf16>
    %256 = vector.shape_cast %251 : vector<16x128xbf16> to vector<1x16x128xbf16>
    tpu.vector_store %arg9[%253, %c0_69, %c0_70], %256 {strides = array<i32>} : memref<8x16x128xbf16, #tpu.memory_space<vmem>>, vector<1x16x128xbf16>,
    %c6_i32 = arith.constant 6 : i32
    %257 = arith.index_cast %c6_i32 : i32 to index
    %c0_71 = arith.constant 0 : index
    %c0_72 = arith.constant 0 : index
    %258 = vector.load %arg11[%257, %c0_71, %c0_72] : memref<8x16x384xbf16, #tpu.memory_space<vmem>>, vector<1x16x384xbf16>
    %259 = vector.shape_cast %258 : vector<1x16x384xbf16> to vector<16x384xbf16>
    %260 = arith.extf %259 : vector<16x384xbf16> to vector<16x384xf32>
    %261 = arith.truncf %250 : vector<16x128xf32> to vector<16x128xbf16>
    %cst_73 = arith.constant dense<0.000000e+00> : vector<16x384xf32>
    %262 = tpu.matmul %261, %1, %cst_73 {dimension_numbers = #tpu.dot_dimension_numbers<[1], [0], [0], [1], [0, 0, 1, 1], [], []>} : vector<16x128xbf16>, vector<128x384xbf16>, vector<16x384xf32> -> vector<16x384xf32>
    %263 = vector.extract_strided_slice %260 {offsets = [0, 0], sizes = [16, 128], strides = [1, 1]} : vector<16x384xf32> to vector<16x128xf32>
    %264 = vector.extract_strided_slice %262 {offsets = [0, 0], sizes = [16, 128], strides = [1, 1]} : vector<16x384xf32> to vector<16x128xf32>
    %265 = arith.addf %263, %264 : vector<16x128xf32>
    %266 = arith.negf %265 : vector<16x128xf32>
    %267 = math.exp %266 : vector<16x128xf32>
    %cst_74 = arith.constant 1.000000e+00 : f32
    %268 = vector.broadcast %cst_74 : f32 to vector<16x128xf32>
    %269 = arith.addf %268, %267 : vector<16x128xf32>
    %270 = arith.divf %268, %269 : vector<16x128xf32>
    %271 = vector.extract_strided_slice %260 {offsets = [0, 128], sizes = [16, 128], strides = [1, 1]} : vector<16x384xf32> to vector<16x128xf32>
    %272 = vector.extract_strided_slice %262 {offsets = [0, 128], sizes = [16, 128], strides = [1, 1]} : vector<16x384xf32> to vector<16x128xf32>
    %273 = arith.addf %271, %272 : vector<16x128xf32>
    %274 = arith.negf %273 : vector<16x128xf32>
    %275 = math.exp %274 : vector<16x128xf32>
    %cst_75 = arith.constant 1.000000e+00 : f32
    %276 = vector.broadcast %cst_75 : f32 to vector<16x128xf32>
    %277 = arith.addf %276, %275 : vector<16x128xf32>
    %278 = arith.divf %276, %277 : vector<16x128xf32>
    %279 = vector.extract_strided_slice %260 {offsets = [0, 256], sizes = [16, 128], strides = [1, 1]} : vector<16x384xf32> to vector<16x128xf32>
    %280 = vector.extract_strided_slice %262 {offsets = [0, 256], sizes = [16, 128], strides = [1, 1]} : vector<16x384xf32> to vector<16x128xf32>
    %281 = vector.broadcast %3 : vector<1x128xf32> to vector<16x128xf32>
    %282 = arith.addf %280, %281 : vector<16x128xf32>
    %283 = arith.mulf %270, %282 : vector<16x128xf32>
    %284 = arith.addf %279, %283 : vector<16x128xf32>
    %285 = math.tanh %284 : vector<16x128xf32>
    %cst_76 = arith.constant 1.000000e+00 : f32
    %286 = vector.broadcast %cst_76 : f32 to vector<16x128xf32>
    %287 = arith.subf %286, %278 : vector<16x128xf32>
    %288 = arith.mulf %287, %285 : vector<16x128xf32>
    %289 = arith.mulf %278, %250 : vector<16x128xf32>
    %290 = arith.addf %288, %289 : vector<16x128xf32>
    %291 = arith.truncf %290 : vector<16x128xf32> to vector<16x128xbf16>
    %c0_i32_77 = arith.constant 0 : i32
    %292 = arith.addi %c0_i32_77, %c6_i32 : i32
    %293 = arith.index_cast %292 : i32 to index
    %c0_78 = arith.constant 0 : index
    %c0_79 = arith.constant 0 : index
    %294 = vector.load %arg9[%293, %c0_78, %c0_79] : memref<8x16x128xbf16, #tpu.memory_space<vmem>>, vector<1x16x128xbf16>
    %295 = vector.shape_cast %294 : vector<1x16x128xbf16> to vector<16x128xbf16>
    %296 = vector.shape_cast %291 : vector<16x128xbf16> to vector<1x16x128xbf16>
    tpu.vector_store %arg9[%293, %c0_78, %c0_79], %296 {strides = array<i32>} : memref<8x16x128xbf16, #tpu.memory_space<vmem>>, vector<1x16x128xbf16>,
    %c7_i32 = arith.constant 7 : i32
    %297 = arith.index_cast %c7_i32 : i32 to index
    %c0_80 = arith.constant 0 : index
    %c0_81 = arith.constant 0 : index
    %298 = vector.load %arg11[%297, %c0_80, %c0_81] : memref<8x16x384xbf16, #tpu.memory_space<vmem>>, vector<1x16x384xbf16>
    %299 = vector.shape_cast %298 : vector<1x16x384xbf16> to vector<16x384xbf16>
    %300 = arith.extf %299 : vector<16x384xbf16> to vector<16x384xf32>
    %301 = arith.truncf %290 : vector<16x128xf32> to vector<16x128xbf16>
    %cst_82 = arith.constant dense<0.000000e+00> : vector<16x384xf32>
    %302 = tpu.matmul %301, %1, %cst_82 {dimension_numbers = #tpu.dot_dimension_numbers<[1], [0], [0], [1], [0, 0, 1, 1], [], []>} : vector<16x128xbf16>, vector<128x384xbf16>, vector<16x384xf32> -> vector<16x384xf32>
    %303 = vector.extract_strided_slice %300 {offsets = [0, 0], sizes = [16, 128], strides = [1, 1]} : vector<16x384xf32> to vector<16x128xf32>
    %304 = vector.extract_strided_slice %302 {offsets = [0, 0], sizes = [16, 128], strides = [1, 1]} : vector<16x384xf32> to vector<16x128xf32>
    %305 = arith.addf %303, %304 : vector<16x128xf32>
    %306 = arith.negf %305 : vector<16x128xf32>
    %307 = math.exp %306 : vector<16x128xf32>
    %cst_83 = arith.constant 1.000000e+00 : f32
    %308 = vector.broadcast %cst_83 : f32 to vector<16x128xf32>
    %309 = arith.addf %308, %307 : vector<16x128xf32>
    %310 = arith.divf %308, %309 : vector<16x128xf32>
    %311 = vector.extract_strided_slice %300 {offsets = [0, 128], sizes = [16, 128], strides = [1, 1]} : vector<16x384xf32> to vector<16x128xf32>
    %312 = vector.extract_strided_slice %302 {offsets = [0, 128], sizes = [16, 128], strides = [1, 1]} : vector<16x384xf32> to vector<16x128xf32>
    %313 = arith.addf %311, %312 : vector<16x128xf32>
    %314 = arith.negf %313 : vector<16x128xf32>
    %315 = math.exp %314 : vector<16x128xf32>
    %cst_84 = arith.constant 1.000000e+00 : f32
    %316 = vector.broadcast %cst_84 : f32 to vector<16x128xf32>
    %317 = arith.addf %316, %315 : vector<16x128xf32>
    %318 = arith.divf %316, %317 : vector<16x128xf32>
    %319 = vector.extract_strided_slice %300 {offsets = [0, 256], sizes = [16, 128], strides = [1, 1]} : vector<16x384xf32> to vector<16x128xf32>
    %320 = vector.extract_strided_slice %302 {offsets = [0, 256], sizes = [16, 128], strides = [1, 1]} : vector<16x384xf32> to vector<16x128xf32>
    %321 = vector.broadcast %3 : vector<1x128xf32> to vector<16x128xf32>
    %322 = arith.addf %320, %321 : vector<16x128xf32>
    %323 = arith.mulf %310, %322 : vector<16x128xf32>
    %324 = arith.addf %319, %323 : vector<16x128xf32>
    %325 = math.tanh %324 : vector<16x128xf32>
    %cst_85 = arith.constant 1.000000e+00 : f32
    %326 = vector.broadcast %cst_85 : f32 to vector<16x128xf32>
    %327 = arith.subf %326, %318 : vector<16x128xf32>
    %328 = arith.mulf %327, %325 : vector<16x128xf32>
    %329 = arith.mulf %318, %290 : vector<16x128xf32>
    %330 = arith.addf %328, %329 : vector<16x128xf32>
    %331 = arith.truncf %330 : vector<16x128xf32> to vector<16x128xbf16>
    %c0_i32_86 = arith.constant 0 : i32
    %332 = arith.addi %c0_i32_86, %c7_i32 : i32
    %333 = arith.index_cast %332 : i32 to index
    %c0_87 = arith.constant 0 : index
    %c0_88 = arith.constant 0 : index
    %334 = vector.load %arg9[%333, %c0_87, %c0_88] : memref<8x16x128xbf16, #tpu.memory_space<vmem>>, vector<1x16x128xbf16>
    %335 = vector.shape_cast %334 : vector<1x16x128xbf16> to vector<16x128xbf16>
    %336 = vector.shape_cast %331 : vector<16x128xbf16> to vector<1x16x128xbf16>
    tpu.vector_store %arg9[%333, %c0_87, %c0_88], %336 {strides = array<i32>} : memref<8x16x128xbf16, #tpu.memory_space<vmem>>, vector<1x16x128xbf16>,
    %c8_i32 = arith.constant 8 : i32
    %c1 = arith.constant 1 : index
    %c0_89 = arith.constant 0 : index
    %c0_90 = arith.constant 0 : index
    %337 = vector.load %arg3[%c1, %c0_89, %c0_90] : memref<4x128x384xbf16, #tpu.memory_space<vmem>>, vector<1x128x384xbf16>
    %338 = vector.shape_cast %337 : vector<1x128x384xbf16> to vector<128x384xbf16>
    %c1_91 = arith.constant 1 : index
    %c0_92 = arith.constant 0 : index
    %c0_93 = arith.constant 0 : index
    %339 = vector.load %arg5[%c1_91, %c0_92, %c0_93] : memref<4x1x128xf32, #tpu.memory_space<vmem>>, vector<1x1x128xf32>
    %340 = vector.shape_cast %339 : vector<1x1x128xf32> to vector<1x128xf32>
    %cst_94 = arith.constant 0.000000e+00 : f32
    %341 = vector.broadcast %cst_94 : f32 to vector<16x128xf32>
    %c0_95 = arith.constant 0 : index
    %c0_96 = arith.constant 0 : index
    %c0_97 = arith.constant 0 : index
    %342 = vector.load %arg9[%c0_95, %c0_96, %c0_97] : memref<8x16x128xbf16, #tpu.memory_space<vmem>>, vector<8x16x128xbf16>
    %343 = vector.shape_cast %342 : vector<8x16x128xbf16> to vector<128x128xbf16>
    %c0_98 = arith.constant 0 : index
    %c0_99 = arith.constant 0 : index
    %c0_100 = arith.constant 0 : index
    %344 = vector.load %arg2[%c0_98, %c0_99, %c0_100] : memref<3x128x384xbf16, #tpu.memory_space<vmem>>, vector<1x128x384xbf16>
    %345 = vector.shape_cast %344 : vector<1x128x384xbf16> to vector<128x384xbf16>
    %cst_101 = arith.constant dense<0.000000e+00> : vector<128x384xf32>
    %346 = tpu.matmul %343, %345, %cst_101 {dimension_numbers = #tpu.dot_dimension_numbers<[1], [0], [0], [1], [0, 0, 1, 1], [], []>} : vector<128x128xbf16>, vector<128x384xbf16>, vector<128x384xf32> -> vector<128x384xf32>
    %c1_102 = arith.constant 1 : index
    %c0_103 = arith.constant 0 : index
    %c0_104 = arith.constant 0 : index
    %347 = vector.load %arg4[%c1_102, %c0_103, %c0_104] : memref<4x1x384xf32, #tpu.memory_space<vmem>>, vector<1x1x384xf32>
    %348 = vector.shape_cast %347 : vector<1x1x384xf32> to vector<1x384xf32>
    %349 = vector.broadcast %348 : vector<1x384xf32> to vector<128x384xf32>
    %350 = arith.addf %346, %349 : vector<128x384xf32>
    %351 = vector.shape_cast %350 : vector<128x384xf32> to vector<8x16x384xf32>
    %352 = arith.truncf %351 : vector<8x16x384xf32> to vector<8x16x384xbf16>
    %c0_105 = arith.constant 0 : index
    %c0_106 = arith.constant 0 : index
    %c0_107 = arith.constant 0 : index
    %353 = vector.load %arg11[%c0_105, %c0_106, %c0_107] : memref<8x16x384xbf16, #tpu.memory_space<vmem>>, vector<8x16x384xbf16>
    tpu.vector_store %arg11[%c0_105, %c0_106, %c0_107], %352 {strides = array<i32>} : memref<8x16x384xbf16, #tpu.memory_space<vmem>>, vector<8x16x384xbf16>,
    %c0_i32_108 = arith.constant 0 : i32
    %354 = arith.index_cast %c0_i32_108 : i32 to index
    %c0_109 = arith.constant 0 : index
    %c0_110 = arith.constant 0 : index
    %355 = vector.load %arg11[%354, %c0_109, %c0_110] : memref<8x16x384xbf16, #tpu.memory_space<vmem>>, vector<1x16x384xbf16>
    %356 = vector.shape_cast %355 : vector<1x16x384xbf16> to vector<16x384xbf16>
    %357 = arith.extf %356 : vector<16x384xbf16> to vector<16x384xf32>
    %358 = arith.truncf %341 : vector<16x128xf32> to vector<16x128xbf16>
    %cst_111 = arith.constant dense<0.000000e+00> : vector<16x384xf32>
    %359 = tpu.matmul %358, %338, %cst_111 {dimension_numbers = #tpu.dot_dimension_numbers<[1], [0], [0], [1], [0, 0, 1, 1], [], []>} : vector<16x128xbf16>, vector<128x384xbf16>, vector<16x384xf32> -> vector<16x384xf32>
    %360 = vector.extract_strided_slice %357 {offsets = [0, 0], sizes = [16, 128], strides = [1, 1]} : vector<16x384xf32> to vector<16x128xf32>
    %361 = vector.extract_strided_slice %359 {offsets = [0, 0], sizes = [16, 128], strides = [1, 1]} : vector<16x384xf32> to vector<16x128xf32>
    %362 = arith.addf %360, %361 : vector<16x128xf32>
    %363 = arith.negf %362 : vector<16x128xf32>
    %364 = math.exp %363 : vector<16x128xf32>
    %cst_112 = arith.constant 1.000000e+00 : f32
    %365 = vector.broadcast %cst_112 : f32 to vector<16x128xf32>
    %366 = arith.addf %365, %364 : vector<16x128xf32>
    %367 = arith.divf %365, %366 : vector<16x128xf32>
    %368 = vector.extract_strided_slice %357 {offsets = [0, 128], sizes = [16, 128], strides = [1, 1]} : vector<16x384xf32> to vector<16x128xf32>
    %369 = vector.extract_strided_slice %359 {offsets = [0, 128], sizes = [16, 128], strides = [1, 1]} : vector<16x384xf32> to vector<16x128xf32>
    %370 = arith.addf %368, %369 : vector<16x128xf32>
    %371 = arith.negf %370 : vector<16x128xf32>
    %372 = math.exp %371 : vector<16x128xf32>
    %cst_113 = arith.constant 1.000000e+00 : f32
    %373 = vector.broadcast %cst_113 : f32 to vector<16x128xf32>
    %374 = arith.addf %373, %372 : vector<16x128xf32>
    %375 = arith.divf %373, %374 : vector<16x128xf32>
    %376 = vector.extract_strided_slice %357 {offsets = [0, 256], sizes = [16, 128], strides = [1, 1]} : vector<16x384xf32> to vector<16x128xf32>
    %377 = vector.extract_strided_slice %359 {offsets = [0, 256], sizes = [16, 128], strides = [1, 1]} : vector<16x384xf32> to vector<16x128xf32>
    %378 = vector.broadcast %340 : vector<1x128xf32> to vector<16x128xf32>
    %379 = arith.addf %377, %378 : vector<16x128xf32>
    %380 = arith.mulf %367, %379 : vector<16x128xf32>
    %381 = arith.addf %376, %380 : vector<16x128xf32>
    %382 = math.tanh %381 : vector<16x128xf32>
    %cst_114 = arith.constant 1.000000e+00 : f32
    %383 = vector.broadcast %cst_114 : f32 to vector<16x128xf32>
    %384 = arith.subf %383, %375 : vector<16x128xf32>
    %385 = arith.mulf %384, %382 : vector<16x128xf32>
    %386 = arith.mulf %375, %341 : vector<16x128xf32>
    %387 = arith.addf %385, %386 : vector<16x128xf32>
    %388 = arith.truncf %387 : vector<16x128xf32> to vector<16x128xbf16>
    %c0_i32_115 = arith.constant 0 : i32
    %389 = arith.addi %c0_i32_115, %c0_i32_108 : i32
    %390 = arith.index_cast %389 : i32 to index
    %c0_116 = arith.constant 0 : index
    %c0_117 = arith.constant 0 : index
    %391 = vector.load %arg10[%390, %c0_116, %c0_117] : memref<8x16x128xbf16, #tpu.memory_space<vmem>>, vector<1x16x128xbf16>
    %392 = vector.shape_cast %391 : vector<1x16x128xbf16> to vector<16x128xbf16>
    %393 = vector.shape_cast %388 : vector<16x128xbf16> to vector<1x16x128xbf16>
    tpu.vector_store %arg10[%390, %c0_116, %c0_117], %393 {strides = array<i32>} : memref<8x16x128xbf16, #tpu.memory_space<vmem>>, vector<1x16x128xbf16>,
    %c1_i32_118 = arith.constant 1 : i32
    %394 = arith.index_cast %c1_i32_118 : i32 to index
    %c0_119 = arith.constant 0 : index
    %c0_120 = arith.constant 0 : index
    %395 = vector.load %arg11[%394, %c0_119, %c0_120] : memref<8x16x384xbf16, #tpu.memory_space<vmem>>, vector<1x16x384xbf16>
    %396 = vector.shape_cast %395 : vector<1x16x384xbf16> to vector<16x384xbf16>
    %397 = arith.extf %396 : vector<16x384xbf16> to vector<16x384xf32>
    %398 = arith.truncf %387 : vector<16x128xf32> to vector<16x128xbf16>
    %cst_121 = arith.constant dense<0.000000e+00> : vector<16x384xf32>
    %399 = tpu.matmul %398, %338, %cst_121 {dimension_numbers = #tpu.dot_dimension_numbers<[1], [0], [0], [1], [0, 0, 1, 1], [], []>} : vector<16x128xbf16>, vector<128x384xbf16>, vector<16x384xf32> -> vector<16x384xf32>
    %400 = vector.extract_strided_slice %397 {offsets = [0, 0], sizes = [16, 128], strides = [1, 1]} : vector<16x384xf32> to vector<16x128xf32>
    %401 = vector.extract_strided_slice %399 {offsets = [0, 0], sizes = [16, 128], strides = [1, 1]} : vector<16x384xf32> to vector<16x128xf32>
    %402 = arith.addf %400, %401 : vector<16x128xf32>
    %403 = arith.negf %402 : vector<16x128xf32>
    %404 = math.exp %403 : vector<16x128xf32>
    %cst_122 = arith.constant 1.000000e+00 : f32
    %405 = vector.broadcast %cst_122 : f32 to vector<16x128xf32>
    %406 = arith.addf %405, %404 : vector<16x128xf32>
    %407 = arith.divf %405, %406 : vector<16x128xf32>
    %408 = vector.extract_strided_slice %397 {offsets = [0, 128], sizes = [16, 128], strides = [1, 1]} : vector<16x384xf32> to vector<16x128xf32>
    %409 = vector.extract_strided_slice %399 {offsets = [0, 128], sizes = [16, 128], strides = [1, 1]} : vector<16x384xf32> to vector<16x128xf32>
    %410 = arith.addf %408, %409 : vector<16x128xf32>
    %411 = arith.negf %410 : vector<16x128xf32>
    %412 = math.exp %411 : vector<16x128xf32>
    %cst_123 = arith.constant 1.000000e+00 : f32
    %413 = vector.broadcast %cst_123 : f32 to vector<16x128xf32>
    %414 = arith.addf %413, %412 : vector<16x128xf32>
    %415 = arith.divf %413, %414 : vector<16x128xf32>
    %416 = vector.extract_strided_slice %397 {offsets = [0, 256], sizes = [16, 128], strides = [1, 1]} : vector<16x384xf32> to vector<16x128xf32>
    %417 = vector.extract_strided_slice %399 {offsets = [0, 256], sizes = [16, 128], strides = [1, 1]} : vector<16x384xf32> to vector<16x128xf32>
    %418 = vector.broadcast %340 : vector<1x128xf32> to vector<16x128xf32>
    %419 = arith.addf %417, %418 : vector<16x128xf32>
    %420 = arith.mulf %407, %419 : vector<16x128xf32>
    %421 = arith.addf %416, %420 : vector<16x128xf32>
    %422 = math.tanh %421 : vector<16x128xf32>
    %cst_124 = arith.constant 1.000000e+00 : f32
    %423 = vector.broadcast %cst_124 : f32 to vector<16x128xf32>
    %424 = arith.subf %423, %415 : vector<16x128xf32>
    %425 = arith.mulf %424, %422 : vector<16x128xf32>
    %426 = arith.mulf %415, %387 : vector<16x128xf32>
    %427 = arith.addf %425, %426 : vector<16x128xf32>
    %428 = arith.truncf %427 : vector<16x128xf32> to vector<16x128xbf16>
    %c0_i32_125 = arith.constant 0 : i32
    %429 = arith.addi %c0_i32_125, %c1_i32_118 : i32
    %430 = arith.index_cast %429 : i32 to index
    %c0_126 = arith.constant 0 : index
    %c0_127 = arith.constant 0 : index
    %431 = vector.load %arg10[%430, %c0_126, %c0_127] : memref<8x16x128xbf16, #tpu.memory_space<vmem>>, vector<1x16x128xbf16>
    %432 = vector.shape_cast %431 : vector<1x16x128xbf16> to vector<16x128xbf16>
    %433 = vector.shape_cast %428 : vector<16x128xbf16> to vector<1x16x128xbf16>
    tpu.vector_store %arg10[%430, %c0_126, %c0_127], %433 {strides = array<i32>} : memref<8x16x128xbf16, #tpu.memory_space<vmem>>, vector<1x16x128xbf16>,
    %c2_i32_128 = arith.constant 2 : i32
    %434 = arith.index_cast %c2_i32_128 : i32 to index
    %c0_129 = arith.constant 0 : index
    %c0_130 = arith.constant 0 : index
    %435 = vector.load %arg11[%434, %c0_129, %c0_130] : memref<8x16x384xbf16, #tpu.memory_space<vmem>>, vector<1x16x384xbf16>
    %436 = vector.shape_cast %435 : vector<1x16x384xbf16> to vector<16x384xbf16>
    %437 = arith.extf %436 : vector<16x384xbf16> to vector<16x384xf32>
    %438 = arith.truncf %427 : vector<16x128xf32> to vector<16x128xbf16>
    %cst_131 = arith.constant dense<0.000000e+00> : vector<16x384xf32>
    %439 = tpu.matmul %438, %338, %cst_131 {dimension_numbers = #tpu.dot_dimension_numbers<[1], [0], [0], [1], [0, 0, 1, 1], [], []>} : vector<16x128xbf16>, vector<128x384xbf16>, vector<16x384xf32> -> vector<16x384xf32>
    %440 = vector.extract_strided_slice %437 {offsets = [0, 0], sizes = [16, 128], strides = [1, 1]} : vector<16x384xf32> to vector<16x128xf32>
    %441 = vector.extract_strided_slice %439 {offsets = [0, 0], sizes = [16, 128], strides = [1, 1]} : vector<16x384xf32> to vector<16x128xf32>
    %442 = arith.addf %440, %441 : vector<16x128xf32>
    %443 = arith.negf %442 : vector<16x128xf32>
    %444 = math.exp %443 : vector<16x128xf32>
    %cst_132 = arith.constant 1.000000e+00 : f32
    %445 = vector.broadcast %cst_132 : f32 to vector<16x128xf32>
    %446 = arith.addf %445, %444 : vector<16x128xf32>
    %447 = arith.divf %445, %446 : vector<16x128xf32>
    %448 = vector.extract_strided_slice %437 {offsets = [0, 128], sizes = [16, 128], strides = [1, 1]} : vector<16x384xf32> to vector<16x128xf32>
    %449 = vector.extract_strided_slice %439 {offsets = [0, 128], sizes = [16, 128], strides = [1, 1]} : vector<16x384xf32> to vector<16x128xf32>
    %450 = arith.addf %448, %449 : vector<16x128xf32>
    %451 = arith.negf %450 : vector<16x128xf32>
    %452 = math.exp %451 : vector<16x128xf32>
    %cst_133 = arith.constant 1.000000e+00 : f32
    %453 = vector.broadcast %cst_133 : f32 to vector<16x128xf32>
    %454 = arith.addf %453, %452 : vector<16x128xf32>
    %455 = arith.divf %453, %454 : vector<16x128xf32>
    %456 = vector.extract_strided_slice %437 {offsets = [0, 256], sizes = [16, 128], strides = [1, 1]} : vector<16x384xf32> to vector<16x128xf32>
    %457 = vector.extract_strided_slice %439 {offsets = [0, 256], sizes = [16, 128], strides = [1, 1]} : vector<16x384xf32> to vector<16x128xf32>
    %458 = vector.broadcast %340 : vector<1x128xf32> to vector<16x128xf32>
    %459 = arith.addf %457, %458 : vector<16x128xf32>
    %460 = arith.mulf %447, %459 : vector<16x128xf32>
    %461 = arith.addf %456, %460 : vector<16x128xf32>
    %462 = math.tanh %461 : vector<16x128xf32>
    %cst_134 = arith.constant 1.000000e+00 : f32
    %463 = vector.broadcast %cst_134 : f32 to vector<16x128xf32>
    %464 = arith.subf %463, %455 : vector<16x128xf32>
    %465 = arith.mulf %464, %462 : vector<16x128xf32>
    %466 = arith.mulf %455, %427 : vector<16x128xf32>
    %467 = arith.addf %465, %466 : vector<16x128xf32>
    %468 = arith.truncf %467 : vector<16x128xf32> to vector<16x128xbf16>
    %c0_i32_135 = arith.constant 0 : i32
    %469 = arith.addi %c0_i32_135, %c2_i32_128 : i32
    %470 = arith.index_cast %469 : i32 to index
    %c0_136 = arith.constant 0 : index
    %c0_137 = arith.constant 0 : index
    %471 = vector.load %arg10[%470, %c0_136, %c0_137] : memref<8x16x128xbf16, #tpu.memory_space<vmem>>, vector<1x16x128xbf16>
    %472 = vector.shape_cast %471 : vector<1x16x128xbf16> to vector<16x128xbf16>
    %473 = vector.shape_cast %468 : vector<16x128xbf16> to vector<1x16x128xbf16>
    tpu.vector_store %arg10[%470, %c0_136, %c0_137], %473 {strides = array<i32>} : memref<8x16x128xbf16, #tpu.memory_space<vmem>>, vector<1x16x128xbf16>,
    %c3_i32_138 = arith.constant 3 : i32
    %474 = arith.index_cast %c3_i32_138 : i32 to index
    %c0_139 = arith.constant 0 : index
    %c0_140 = arith.constant 0 : index
    %475 = vector.load %arg11[%474, %c0_139, %c0_140] : memref<8x16x384xbf16, #tpu.memory_space<vmem>>, vector<1x16x384xbf16>
    %476 = vector.shape_cast %475 : vector<1x16x384xbf16> to vector<16x384xbf16>
    %477 = arith.extf %476 : vector<16x384xbf16> to vector<16x384xf32>
    %478 = arith.truncf %467 : vector<16x128xf32> to vector<16x128xbf16>
    %cst_141 = arith.constant dense<0.000000e+00> : vector<16x384xf32>
    %479 = tpu.matmul %478, %338, %cst_141 {dimension_numbers = #tpu.dot_dimension_numbers<[1], [0], [0], [1], [0, 0, 1, 1], [], []>} : vector<16x128xbf16>, vector<128x384xbf16>, vector<16x384xf32> -> vector<16x384xf32>
    %480 = vector.extract_strided_slice %477 {offsets = [0, 0], sizes = [16, 128], strides = [1, 1]} : vector<16x384xf32> to vector<16x128xf32>
    %481 = vector.extract_strided_slice %479 {offsets = [0, 0], sizes = [16, 128], strides = [1, 1]} : vector<16x384xf32> to vector<16x128xf32>
    %482 = arith.addf %480, %481 : vector<16x128xf32>
    %483 = arith.negf %482 : vector<16x128xf32>
    %484 = math.exp %483 : vector<16x128xf32>
    %cst_142 = arith.constant 1.000000e+00 : f32
    %485 = vector.broadcast %cst_142 : f32 to vector<16x128xf32>
    %486 = arith.addf %485, %484 : vector<16x128xf32>
    %487 = arith.divf %485, %486 : vector<16x128xf32>
    %488 = vector.extract_strided_slice %477 {offsets = [0, 128], sizes = [16, 128], strides = [1, 1]} : vector<16x384xf32> to vector<16x128xf32>
    %489 = vector.extract_strided_slice %479 {offsets = [0, 128], sizes = [16, 128], strides = [1, 1]} : vector<16x384xf32> to vector<16x128xf32>
    %490 = arith.addf %488, %489 : vector<16x128xf32>
    %491 = arith.negf %490 : vector<16x128xf32>
    %492 = math.exp %491 : vector<16x128xf32>
    %cst_143 = arith.constant 1.000000e+00 : f32
    %493 = vector.broadcast %cst_143 : f32 to vector<16x128xf32>
    %494 = arith.addf %493, %492 : vector<16x128xf32>
    %495 = arith.divf %493, %494 : vector<16x128xf32>
    %496 = vector.extract_strided_slice %477 {offsets = [0, 256], sizes = [16, 128], strides = [1, 1]} : vector<16x384xf32> to vector<16x128xf32>
    %497 = vector.extract_strided_slice %479 {offsets = [0, 256], sizes = [16, 128], strides = [1, 1]} : vector<16x384xf32> to vector<16x128xf32>
    %498 = vector.broadcast %340 : vector<1x128xf32> to vector<16x128xf32>
    %499 = arith.addf %497, %498 : vector<16x128xf32>
    %500 = arith.mulf %487, %499 : vector<16x128xf32>
    %501 = arith.addf %496, %500 : vector<16x128xf32>
    %502 = math.tanh %501 : vector<16x128xf32>
    %cst_144 = arith.constant 1.000000e+00 : f32
    %503 = vector.broadcast %cst_144 : f32 to vector<16x128xf32>
    %504 = arith.subf %503, %495 : vector<16x128xf32>
    %505 = arith.mulf %504, %502 : vector<16x128xf32>
    %506 = arith.mulf %495, %467 : vector<16x128xf32>
    %507 = arith.addf %505, %506 : vector<16x128xf32>
    %508 = arith.truncf %507 : vector<16x128xf32> to vector<16x128xbf16>
    %c0_i32_145 = arith.constant 0 : i32
    %509 = arith.addi %c0_i32_145, %c3_i32_138 : i32
    %510 = arith.index_cast %509 : i32 to index
    %c0_146 = arith.constant 0 : index
    %c0_147 = arith.constant 0 : index
    %511 = vector.load %arg10[%510, %c0_146, %c0_147] : memref<8x16x128xbf16, #tpu.memory_space<vmem>>, vector<1x16x128xbf16>
    %512 = vector.shape_cast %511 : vector<1x16x128xbf16> to vector<16x128xbf16>
    %513 = vector.shape_cast %508 : vector<16x128xbf16> to vector<1x16x128xbf16>
    tpu.vector_store %arg10[%510, %c0_146, %c0_147], %513 {strides = array<i32>} : memref<8x16x128xbf16, #tpu.memory_space<vmem>>, vector<1x16x128xbf16>,
    %c4_i32_148 = arith.constant 4 : i32
    %514 = arith.index_cast %c4_i32_148 : i32 to index
    %c0_149 = arith.constant 0 : index
    %c0_150 = arith.constant 0 : index
    %515 = vector.load %arg11[%514, %c0_149, %c0_150] : memref<8x16x384xbf16, #tpu.memory_space<vmem>>, vector<1x16x384xbf16>
    %516 = vector.shape_cast %515 : vector<1x16x384xbf16> to vector<16x384xbf16>
    %517 = arith.extf %516 : vector<16x384xbf16> to vector<16x384xf32>
    %518 = arith.truncf %507 : vector<16x128xf32> to vector<16x128xbf16>
    %cst_151 = arith.constant dense<0.000000e+00> : vector<16x384xf32>
    %519 = tpu.matmul %518, %338, %cst_151 {dimension_numbers = #tpu.dot_dimension_numbers<[1], [0], [0], [1], [0, 0, 1, 1], [], []>} : vector<16x128xbf16>, vector<128x384xbf16>, vector<16x384xf32> -> vector<16x384xf32>
    %520 = vector.extract_strided_slice %517 {offsets = [0, 0], sizes = [16, 128], strides = [1, 1]} : vector<16x384xf32> to vector<16x128xf32>
    %521 = vector.extract_strided_slice %519 {offsets = [0, 0], sizes = [16, 128], strides = [1, 1]} : vector<16x384xf32> to vector<16x128xf32>
    %522 = arith.addf %520, %521 : vector<16x128xf32>
    %523 = arith.negf %522 : vector<16x128xf32>
    %524 = math.exp %523 : vector<16x128xf32>
    %cst_152 = arith.constant 1.000000e+00 : f32
    %525 = vector.broadcast %cst_152 : f32 to vector<16x128xf32>
    %526 = arith.addf %525, %524 : vector<16x128xf32>
    %527 = arith.divf %525, %526 : vector<16x128xf32>
    %528 = vector.extract_strided_slice %517 {offsets = [0, 128], sizes = [16, 128], strides = [1, 1]} : vector<16x384xf32> to vector<16x128xf32>
    %529 = vector.extract_strided_slice %519 {offsets = [0, 128], sizes = [16, 128], strides = [1, 1]} : vector<16x384xf32> to vector<16x128xf32>
    %530 = arith.addf %528, %529 : vector<16x128xf32>
    %531 = arith.negf %530 : vector<16x128xf32>
    %532 = math.exp %531 : vector<16x128xf32>
    %cst_153 = arith.constant 1.000000e+00 : f32
    %533 = vector.broadcast %cst_153 : f32 to vector<16x128xf32>
    %534 = arith.addf %533, %532 : vector<16x128xf32>
    %535 = arith.divf %533, %534 : vector<16x128xf32>
    %536 = vector.extract_strided_slice %517 {offsets = [0, 256], sizes = [16, 128], strides = [1, 1]} : vector<16x384xf32> to vector<16x128xf32>
    %537 = vector.extract_strided_slice %519 {offsets = [0, 256], sizes = [16, 128], strides = [1, 1]} : vector<16x384xf32> to vector<16x128xf32>
    %538 = vector.broadcast %340 : vector<1x128xf32> to vector<16x128xf32>
    %539 = arith.addf %537, %538 : vector<16x128xf32>
    %540 = arith.mulf %527, %539 : vector<16x128xf32>
    %541 = arith.addf %536, %540 : vector<16x128xf32>
    %542 = math.tanh %541 : vector<16x128xf32>
    %cst_154 = arith.constant 1.000000e+00 : f32
    %543 = vector.broadcast %cst_154 : f32 to vector<16x128xf32>
    %544 = arith.subf %543, %535 : vector<16x128xf32>
    %545 = arith.mulf %544, %542 : vector<16x128xf32>
    %546 = arith.mulf %535, %507 : vector<16x128xf32>
    %547 = arith.addf %545, %546 : vector<16x128xf32>
    %548 = arith.truncf %547 : vector<16x128xf32> to vector<16x128xbf16>
    %c0_i32_155 = arith.constant 0 : i32
    %549 = arith.addi %c0_i32_155, %c4_i32_148 : i32
    %550 = arith.index_cast %549 : i32 to index
    %c0_156 = arith.constant 0 : index
    %c0_157 = arith.constant 0 : index
    %551 = vector.load %arg10[%550, %c0_156, %c0_157] : memref<8x16x128xbf16, #tpu.memory_space<vmem>>, vector<1x16x128xbf16>
    %552 = vector.shape_cast %551 : vector<1x16x128xbf16> to vector<16x128xbf16>
    %553 = vector.shape_cast %548 : vector<16x128xbf16> to vector<1x16x128xbf16>
    tpu.vector_store %arg10[%550, %c0_156, %c0_157], %553 {strides = array<i32>} : memref<8x16x128xbf16, #tpu.memory_space<vmem>>, vector<1x16x128xbf16>,
    %c5_i32_158 = arith.constant 5 : i32
    %554 = arith.index_cast %c5_i32_158 : i32 to index
    %c0_159 = arith.constant 0 : index
    %c0_160 = arith.constant 0 : index
    %555 = vector.load %arg11[%554, %c0_159, %c0_160] : memref<8x16x384xbf16, #tpu.memory_space<vmem>>, vector<1x16x384xbf16>
    %556 = vector.shape_cast %555 : vector<1x16x384xbf16> to vector<16x384xbf16>
    %557 = arith.extf %556 : vector<16x384xbf16> to vector<16x384xf32>
    %558 = arith.truncf %547 : vector<16x128xf32> to vector<16x128xbf16>
    %cst_161 = arith.constant dense<0.000000e+00> : vector<16x384xf32>
    %559 = tpu.matmul %558, %338, %cst_161 {dimension_numbers = #tpu.dot_dimension_numbers<[1], [0], [0], [1], [0, 0, 1, 1], [], []>} : vector<16x128xbf16>, vector<128x384xbf16>, vector<16x384xf32> -> vector<16x384xf32>
    %560 = vector.extract_strided_slice %557 {offsets = [0, 0], sizes = [16, 128], strides = [1, 1]} : vector<16x384xf32> to vector<16x128xf32>
    %561 = vector.extract_strided_slice %559 {offsets = [0, 0], sizes = [16, 128], strides = [1, 1]} : vector<16x384xf32> to vector<16x128xf32>
    %562 = arith.addf %560, %561 : vector<16x128xf32>
    %563 = arith.negf %562 : vector<16x128xf32>
    %564 = math.exp %563 : vector<16x128xf32>
    %cst_162 = arith.constant 1.000000e+00 : f32
    %565 = vector.broadcast %cst_162 : f32 to vector<16x128xf32>
    %566 = arith.addf %565, %564 : vector<16x128xf32>
    %567 = arith.divf %565, %566 : vector<16x128xf32>
    %568 = vector.extract_strided_slice %557 {offsets = [0, 128], sizes = [16, 128], strides = [1, 1]} : vector<16x384xf32> to vector<16x128xf32>
    %569 = vector.extract_strided_slice %559 {offsets = [0, 128], sizes = [16, 128], strides = [1, 1]} : vector<16x384xf32> to vector<16x128xf32>
    %570 = arith.addf %568, %569 : vector<16x128xf32>
    %571 = arith.negf %570 : vector<16x128xf32>
    %572 = math.exp %571 : vector<16x128xf32>
    %cst_163 = arith.constant 1.000000e+00 : f32
    %573 = vector.broadcast %cst_163 : f32 to vector<16x128xf32>
    %574 = arith.addf %573, %572 : vector<16x128xf32>
    %575 = arith.divf %573, %574 : vector<16x128xf32>
    %576 = vector.extract_strided_slice %557 {offsets = [0, 256], sizes = [16, 128], strides = [1, 1]} : vector<16x384xf32> to vector<16x128xf32>
    %577 = vector.extract_strided_slice %559 {offsets = [0, 256], sizes = [16, 128], strides = [1, 1]} : vector<16x384xf32> to vector<16x128xf32>
    %578 = vector.broadcast %340 : vector<1x128xf32> to vector<16x128xf32>
    %579 = arith.addf %577, %578 : vector<16x128xf32>
    %580 = arith.mulf %567, %579 : vector<16x128xf32>
    %581 = arith.addf %576, %580 : vector<16x128xf32>
    %582 = math.tanh %581 : vector<16x128xf32>
    %cst_164 = arith.constant 1.000000e+00 : f32
    %583 = vector.broadcast %cst_164 : f32 to vector<16x128xf32>
    %584 = arith.subf %583, %575 : vector<16x128xf32>
    %585 = arith.mulf %584, %582 : vector<16x128xf32>
    %586 = arith.mulf %575, %547 : vector<16x128xf32>
    %587 = arith.addf %585, %586 : vector<16x128xf32>
    %588 = arith.truncf %587 : vector<16x128xf32> to vector<16x128xbf16>
    %c0_i32_165 = arith.constant 0 : i32
    %589 = arith.addi %c0_i32_165, %c5_i32_158 : i32
    %590 = arith.index_cast %589 : i32 to index
    %c0_166 = arith.constant 0 : index
    %c0_167 = arith.constant 0 : index
    %591 = vector.load %arg10[%590, %c0_166, %c0_167] : memref<8x16x128xbf16, #tpu.memory_space<vmem>>, vector<1x16x128xbf16>
    %592 = vector.shape_cast %591 : vector<1x16x128xbf16> to vector<16x128xbf16>
    %593 = vector.shape_cast %588 : vector<16x128xbf16> to vector<1x16x128xbf16>
    tpu.vector_store %arg10[%590, %c0_166, %c0_167], %593 {strides = array<i32>} : memref<8x16x128xbf16, #tpu.memory_space<vmem>>, vector<1x16x128xbf16>,
    %c6_i32_168 = arith.constant 6 : i32
    %594 = arith.index_cast %c6_i32_168 : i32 to index
    %c0_169 = arith.constant 0 : index
    %c0_170 = arith.constant 0 : index
    %595 = vector.load %arg11[%594, %c0_169, %c0_170] : memref<8x16x384xbf16, #tpu.memory_space<vmem>>, vector<1x16x384xbf16>
    %596 = vector.shape_cast %595 : vector<1x16x384xbf16> to vector<16x384xbf16>
    %597 = arith.extf %596 : vector<16x384xbf16> to vector<16x384xf32>
    %598 = arith.truncf %587 : vector<16x128xf32> to vector<16x128xbf16>
    %cst_171 = arith.constant dense<0.000000e+00> : vector<16x384xf32>
    %599 = tpu.matmul %598, %338, %cst_171 {dimension_numbers = #tpu.dot_dimension_numbers<[1], [0], [0], [1], [0, 0, 1, 1], [], []>} : vector<16x128xbf16>, vector<128x384xbf16>, vector<16x384xf32> -> vector<16x384xf32>
    %600 = vector.extract_strided_slice %597 {offsets = [0, 0], sizes = [16, 128], strides = [1, 1]} : vector<16x384xf32> to vector<16x128xf32>
    %601 = vector.extract_strided_slice %599 {offsets = [0, 0], sizes = [16, 128], strides = [1, 1]} : vector<16x384xf32> to vector<16x128xf32>
    %602 = arith.addf %600, %601 : vector<16x128xf32>
    %603 = arith.negf %602 : vector<16x128xf32>
    %604 = math.exp %603 : vector<16x128xf32>
    %cst_172 = arith.constant 1.000000e+00 : f32
    %605 = vector.broadcast %cst_172 : f32 to vector<16x128xf32>
    %606 = arith.addf %605, %604 : vector<16x128xf32>
    %607 = arith.divf %605, %606 : vector<16x128xf32>
    %608 = vector.extract_strided_slice %597 {offsets = [0, 128], sizes = [16, 128], strides = [1, 1]} : vector<16x384xf32> to vector<16x128xf32>
    %609 = vector.extract_strided_slice %599 {offsets = [0, 128], sizes = [16, 128], strides = [1, 1]} : vector<16x384xf32> to vector<16x128xf32>
    %610 = arith.addf %608, %609 : vector<16x128xf32>
    %611 = arith.negf %610 : vector<16x128xf32>
    %612 = math.exp %611 : vector<16x128xf32>
    %cst_173 = arith.constant 1.000000e+00 : f32
    %613 = vector.broadcast %cst_173 : f32 to vector<16x128xf32>
    %614 = arith.addf %613, %612 : vector<16x128xf32>
    %615 = arith.divf %613, %614 : vector<16x128xf32>
    %616 = vector.extract_strided_slice %597 {offsets = [0, 256], sizes = [16, 128], strides = [1, 1]} : vector<16x384xf32> to vector<16x128xf32>
    %617 = vector.extract_strided_slice %599 {offsets = [0, 256], sizes = [16, 128], strides = [1, 1]} : vector<16x384xf32> to vector<16x128xf32>
    %618 = vector.broadcast %340 : vector<1x128xf32> to vector<16x128xf32>
    %619 = arith.addf %617, %618 : vector<16x128xf32>
    %620 = arith.mulf %607, %619 : vector<16x128xf32>
    %621 = arith.addf %616, %620 : vector<16x128xf32>
    %622 = math.tanh %621 : vector<16x128xf32>
    %cst_174 = arith.constant 1.000000e+00 : f32
    %623 = vector.broadcast %cst_174 : f32 to vector<16x128xf32>
    %624 = arith.subf %623, %615 : vector<16x128xf32>
    %625 = arith.mulf %624, %622 : vector<16x128xf32>
    %626 = arith.mulf %615, %587 : vector<16x128xf32>
    %627 = arith.addf %625, %626 : vector<16x128xf32>
    %628 = arith.truncf %627 : vector<16x128xf32> to vector<16x128xbf16>
    %c0_i32_175 = arith.constant 0 : i32
    %629 = arith.addi %c0_i32_175, %c6_i32_168 : i32
    %630 = arith.index_cast %629 : i32 to index
    %c0_176 = arith.constant 0 : index
    %c0_177 = arith.constant 0 : index
    %631 = vector.load %arg10[%630, %c0_176, %c0_177] : memref<8x16x128xbf16, #tpu.memory_space<vmem>>, vector<1x16x128xbf16>
    %632 = vector.shape_cast %631 : vector<1x16x128xbf16> to vector<16x128xbf16>
    %633 = vector.shape_cast %628 : vector<16x128xbf16> to vector<1x16x128xbf16>
    tpu.vector_store %arg10[%630, %c0_176, %c0_177], %633 {strides = array<i32>} : memref<8x16x128xbf16, #tpu.memory_space<vmem>>, vector<1x16x128xbf16>,
    %c7_i32_178 = arith.constant 7 : i32
    %634 = arith.index_cast %c7_i32_178 : i32 to index
    %c0_179 = arith.constant 0 : index
    %c0_180 = arith.constant 0 : index
    %635 = vector.load %arg11[%634, %c0_179, %c0_180] : memref<8x16x384xbf16, #tpu.memory_space<vmem>>, vector<1x16x384xbf16>
    %636 = vector.shape_cast %635 : vector<1x16x384xbf16> to vector<16x384xbf16>
    %637 = arith.extf %636 : vector<16x384xbf16> to vector<16x384xf32>
    %638 = arith.truncf %627 : vector<16x128xf32> to vector<16x128xbf16>
    %cst_181 = arith.constant dense<0.000000e+00> : vector<16x384xf32>
    %639 = tpu.matmul %638, %338, %cst_181 {dimension_numbers = #tpu.dot_dimension_numbers<[1], [0], [0], [1], [0, 0, 1, 1], [], []>} : vector<16x128xbf16>, vector<128x384xbf16>, vector<16x384xf32> -> vector<16x384xf32>
    %640 = vector.extract_strided_slice %637 {offsets = [0, 0], sizes = [16, 128], strides = [1, 1]} : vector<16x384xf32> to vector<16x128xf32>
    %641 = vector.extract_strided_slice %639 {offsets = [0, 0], sizes = [16, 128], strides = [1, 1]} : vector<16x384xf32> to vector<16x128xf32>
    %642 = arith.addf %640, %641 : vector<16x128xf32>
    %643 = arith.negf %642 : vector<16x128xf32>
    %644 = math.exp %643 : vector<16x128xf32>
    %cst_182 = arith.constant 1.000000e+00 : f32
    %645 = vector.broadcast %cst_182 : f32 to vector<16x128xf32>
    %646 = arith.addf %645, %644 : vector<16x128xf32>
    %647 = arith.divf %645, %646 : vector<16x128xf32>
    %648 = vector.extract_strided_slice %637 {offsets = [0, 128], sizes = [16, 128], strides = [1, 1]} : vector<16x384xf32> to vector<16x128xf32>
    %649 = vector.extract_strided_slice %639 {offsets = [0, 128], sizes = [16, 128], strides = [1, 1]} : vector<16x384xf32> to vector<16x128xf32>
    %650 = arith.addf %648, %649 : vector<16x128xf32>
    %651 = arith.negf %650 : vector<16x128xf32>
    %652 = math.exp %651 : vector<16x128xf32>
    %cst_183 = arith.constant 1.000000e+00 : f32
    %653 = vector.broadcast %cst_183 : f32 to vector<16x128xf32>
    %654 = arith.addf %653, %652 : vector<16x128xf32>
    %655 = arith.divf %653, %654 : vector<16x128xf32>
    %656 = vector.extract_strided_slice %637 {offsets = [0, 256], sizes = [16, 128], strides = [1, 1]} : vector<16x384xf32> to vector<16x128xf32>
    %657 = vector.extract_strided_slice %639 {offsets = [0, 256], sizes = [16, 128], strides = [1, 1]} : vector<16x384xf32> to vector<16x128xf32>
    %658 = vector.broadcast %340 : vector<1x128xf32> to vector<16x128xf32>
    %659 = arith.addf %657, %658 : vector<16x128xf32>
    %660 = arith.mulf %647, %659 : vector<16x128xf32>
    %661 = arith.addf %656, %660 : vector<16x128xf32>
    %662 = math.tanh %661 : vector<16x128xf32>
    %cst_184 = arith.constant 1.000000e+00 : f32
    %663 = vector.broadcast %cst_184 : f32 to vector<16x128xf32>
    %664 = arith.subf %663, %655 : vector<16x128xf32>
    %665 = arith.mulf %664, %662 : vector<16x128xf32>
    %666 = arith.mulf %655, %627 : vector<16x128xf32>
    %667 = arith.addf %665, %666 : vector<16x128xf32>
    %668 = arith.truncf %667 : vector<16x128xf32> to vector<16x128xbf16>
    %c0_i32_185 = arith.constant 0 : i32
    %669 = arith.addi %c0_i32_185, %c7_i32_178 : i32
    %670 = arith.index_cast %669 : i32 to index
    %c0_186 = arith.constant 0 : index
    %c0_187 = arith.constant 0 : index
    %671 = vector.load %arg10[%670, %c0_186, %c0_187] : memref<8x16x128xbf16, #tpu.memory_space<vmem>>, vector<1x16x128xbf16>
    %672 = vector.shape_cast %671 : vector<1x16x128xbf16> to vector<16x128xbf16>
    %673 = vector.shape_cast %668 : vector<16x128xbf16> to vector<1x16x128xbf16>
    tpu.vector_store %arg10[%670, %c0_186, %c0_187], %673 {strides = array<i32>} : memref<8x16x128xbf16, #tpu.memory_space<vmem>>, vector<1x16x128xbf16>,
    %c8_i32_188 = arith.constant 8 : i32
    %c2 = arith.constant 2 : index
    %c0_189 = arith.constant 0 : index
    %c0_190 = arith.constant 0 : index
    %674 = vector.load %arg3[%c2, %c0_189, %c0_190] : memref<4x128x384xbf16, #tpu.memory_space<vmem>>, vector<1x128x384xbf16>
    %675 = vector.shape_cast %674 : vector<1x128x384xbf16> to vector<128x384xbf16>
    %c2_191 = arith.constant 2 : index
    %c0_192 = arith.constant 0 : index
    %c0_193 = arith.constant 0 : index
    %676 = vector.load %arg5[%c2_191, %c0_192, %c0_193] : memref<4x1x128xf32, #tpu.memory_space<vmem>>, vector<1x1x128xf32>
    %677 = vector.shape_cast %676 : vector<1x1x128xf32> to vector<1x128xf32>
    %cst_194 = arith.constant 0.000000e+00 : f32
    %678 = vector.broadcast %cst_194 : f32 to vector<16x128xf32>
    %c0_195 = arith.constant 0 : index
    %c0_196 = arith.constant 0 : index
    %c0_197 = arith.constant 0 : index
    %679 = vector.load %arg10[%c0_195, %c0_196, %c0_197] : memref<8x16x128xbf16, #tpu.memory_space<vmem>>, vector<8x16x128xbf16>
    %680 = vector.shape_cast %679 : vector<8x16x128xbf16> to vector<128x128xbf16>
    %c1_198 = arith.constant 1 : index
    %c0_199 = arith.constant 0 : index
    %c0_200 = arith.constant 0 : index
    %681 = vector.load %arg2[%c1_198, %c0_199, %c0_200] : memref<3x128x384xbf16, #tpu.memory_space<vmem>>, vector<1x128x384xbf16>
    %682 = vector.shape_cast %681 : vector<1x128x384xbf16> to vector<128x384xbf16>
    %cst_201 = arith.constant dense<0.000000e+00> : vector<128x384xf32>
    %683 = tpu.matmul %680, %682, %cst_201 {dimension_numbers = #tpu.dot_dimension_numbers<[1], [0], [0], [1], [0, 0, 1, 1], [], []>} : vector<128x128xbf16>, vector<128x384xbf16>, vector<128x384xf32> -> vector<128x384xf32>
    %c2_202 = arith.constant 2 : index
    %c0_203 = arith.constant 0 : index
    %c0_204 = arith.constant 0 : index
    %684 = vector.load %arg4[%c2_202, %c0_203, %c0_204] : memref<4x1x384xf32, #tpu.memory_space<vmem>>, vector<1x1x384xf32>
    %685 = vector.shape_cast %684 : vector<1x1x384xf32> to vector<1x384xf32>
    %686 = vector.broadcast %685 : vector<1x384xf32> to vector<128x384xf32>
    %687 = arith.addf %683, %686 : vector<128x384xf32>
    %688 = vector.shape_cast %687 : vector<128x384xf32> to vector<8x16x384xf32>
    %689 = arith.truncf %688 : vector<8x16x384xf32> to vector<8x16x384xbf16>
    %c0_205 = arith.constant 0 : index
    %c0_206 = arith.constant 0 : index
    %c0_207 = arith.constant 0 : index
    %690 = vector.load %arg11[%c0_205, %c0_206, %c0_207] : memref<8x16x384xbf16, #tpu.memory_space<vmem>>, vector<8x16x384xbf16>
    tpu.vector_store %arg11[%c0_205, %c0_206, %c0_207], %689 {strides = array<i32>} : memref<8x16x384xbf16, #tpu.memory_space<vmem>>, vector<8x16x384xbf16>,
    %c0_i32_208 = arith.constant 0 : i32
    %691 = arith.index_cast %c0_i32_208 : i32 to index
    %c0_209 = arith.constant 0 : index
    %c0_210 = arith.constant 0 : index
    %692 = vector.load %arg11[%691, %c0_209, %c0_210] : memref<8x16x384xbf16, #tpu.memory_space<vmem>>, vector<1x16x384xbf16>
    %693 = vector.shape_cast %692 : vector<1x16x384xbf16> to vector<16x384xbf16>
    %694 = arith.extf %693 : vector<16x384xbf16> to vector<16x384xf32>
    %695 = arith.truncf %678 : vector<16x128xf32> to vector<16x128xbf16>
    %cst_211 = arith.constant dense<0.000000e+00> : vector<16x384xf32>
    %696 = tpu.matmul %695, %675, %cst_211 {dimension_numbers = #tpu.dot_dimension_numbers<[1], [0], [0], [1], [0, 0, 1, 1], [], []>} : vector<16x128xbf16>, vector<128x384xbf16>, vector<16x384xf32> -> vector<16x384xf32>
    %697 = vector.extract_strided_slice %694 {offsets = [0, 0], sizes = [16, 128], strides = [1, 1]} : vector<16x384xf32> to vector<16x128xf32>
    %698 = vector.extract_strided_slice %696 {offsets = [0, 0], sizes = [16, 128], strides = [1, 1]} : vector<16x384xf32> to vector<16x128xf32>
    %699 = arith.addf %697, %698 : vector<16x128xf32>
    %700 = arith.negf %699 : vector<16x128xf32>
    %701 = math.exp %700 : vector<16x128xf32>
    %cst_212 = arith.constant 1.000000e+00 : f32
    %702 = vector.broadcast %cst_212 : f32 to vector<16x128xf32>
    %703 = arith.addf %702, %701 : vector<16x128xf32>
    %704 = arith.divf %702, %703 : vector<16x128xf32>
    %705 = vector.extract_strided_slice %694 {offsets = [0, 128], sizes = [16, 128], strides = [1, 1]} : vector<16x384xf32> to vector<16x128xf32>
    %706 = vector.extract_strided_slice %696 {offsets = [0, 128], sizes = [16, 128], strides = [1, 1]} : vector<16x384xf32> to vector<16x128xf32>
    %707 = arith.addf %705, %706 : vector<16x128xf32>
    %708 = arith.negf %707 : vector<16x128xf32>
    %709 = math.exp %708 : vector<16x128xf32>
    %cst_213 = arith.constant 1.000000e+00 : f32
    %710 = vector.broadcast %cst_213 : f32 to vector<16x128xf32>
    %711 = arith.addf %710, %709 : vector<16x128xf32>
    %712 = arith.divf %710, %711 : vector<16x128xf32>
    %713 = vector.extract_strided_slice %694 {offsets = [0, 256], sizes = [16, 128], strides = [1, 1]} : vector<16x384xf32> to vector<16x128xf32>
    %714 = vector.extract_strided_slice %696 {offsets = [0, 256], sizes = [16, 128], strides = [1, 1]} : vector<16x384xf32> to vector<16x128xf32>
    %715 = vector.broadcast %677 : vector<1x128xf32> to vector<16x128xf32>
    %716 = arith.addf %714, %715 : vector<16x128xf32>
    %717 = arith.mulf %704, %716 : vector<16x128xf32>
    %718 = arith.addf %713, %717 : vector<16x128xf32>
    %719 = math.tanh %718 : vector<16x128xf32>
    %cst_214 = arith.constant 1.000000e+00 : f32
    %720 = vector.broadcast %cst_214 : f32 to vector<16x128xf32>
    %721 = arith.subf %720, %712 : vector<16x128xf32>
    %722 = arith.mulf %721, %719 : vector<16x128xf32>
    %723 = arith.mulf %712, %678 : vector<16x128xf32>
    %724 = arith.addf %722, %723 : vector<16x128xf32>
    %725 = arith.truncf %724 : vector<16x128xf32> to vector<16x128xbf16>
    %c0_i32_215 = arith.constant 0 : i32
    %726 = arith.addi %c0_i32_215, %c0_i32_208 : i32
    %727 = arith.index_cast %726 : i32 to index
    %c0_216 = arith.constant 0 : index
    %c0_217 = arith.constant 0 : index
    %728 = vector.load %arg9[%727, %c0_216, %c0_217] : memref<8x16x128xbf16, #tpu.memory_space<vmem>>, vector<1x16x128xbf16>
    %729 = vector.shape_cast %728 : vector<1x16x128xbf16> to vector<16x128xbf16>
    %730 = vector.shape_cast %725 : vector<16x128xbf16> to vector<1x16x128xbf16>
    tpu.vector_store %arg9[%727, %c0_216, %c0_217], %730 {strides = array<i32>} : memref<8x16x128xbf16, #tpu.memory_space<vmem>>, vector<1x16x128xbf16>,
    %c1_i32_218 = arith.constant 1 : i32
    %731 = arith.index_cast %c1_i32_218 : i32 to index
    %c0_219 = arith.constant 0 : index
    %c0_220 = arith.constant 0 : index
    %732 = vector.load %arg11[%731, %c0_219, %c0_220] : memref<8x16x384xbf16, #tpu.memory_space<vmem>>, vector<1x16x384xbf16>
    %733 = vector.shape_cast %732 : vector<1x16x384xbf16> to vector<16x384xbf16>
    %734 = arith.extf %733 : vector<16x384xbf16> to vector<16x384xf32>
    %735 = arith.truncf %724 : vector<16x128xf32> to vector<16x128xbf16>
    %cst_221 = arith.constant dense<0.000000e+00> : vector<16x384xf32>
    %736 = tpu.matmul %735, %675, %cst_221 {dimension_numbers = #tpu.dot_dimension_numbers<[1], [0], [0], [1], [0, 0, 1, 1], [], []>} : vector<16x128xbf16>, vector<128x384xbf16>, vector<16x384xf32> -> vector<16x384xf32>
    %737 = vector.extract_strided_slice %734 {offsets = [0, 0], sizes = [16, 128], strides = [1, 1]} : vector<16x384xf32> to vector<16x128xf32>
    %738 = vector.extract_strided_slice %736 {offsets = [0, 0], sizes = [16, 128], strides = [1, 1]} : vector<16x384xf32> to vector<16x128xf32>
    %739 = arith.addf %737, %738 : vector<16x128xf32>
    %740 = arith.negf %739 : vector<16x128xf32>
    %741 = math.exp %740 : vector<16x128xf32>
    %cst_222 = arith.constant 1.000000e+00 : f32
    %742 = vector.broadcast %cst_222 : f32 to vector<16x128xf32>
    %743 = arith.addf %742, %741 : vector<16x128xf32>
    %744 = arith.divf %742, %743 : vector<16x128xf32>
    %745 = vector.extract_strided_slice %734 {offsets = [0, 128], sizes = [16, 128], strides = [1, 1]} : vector<16x384xf32> to vector<16x128xf32>
    %746 = vector.extract_strided_slice %736 {offsets = [0, 128], sizes = [16, 128], strides = [1, 1]} : vector<16x384xf32> to vector<16x128xf32>
    %747 = arith.addf %745, %746 : vector<16x128xf32>
    %748 = arith.negf %747 : vector<16x128xf32>
    %749 = math.exp %748 : vector<16x128xf32>
    %cst_223 = arith.constant 1.000000e+00 : f32
    %750 = vector.broadcast %cst_223 : f32 to vector<16x128xf32>
    %751 = arith.addf %750, %749 : vector<16x128xf32>
    %752 = arith.divf %750, %751 : vector<16x128xf32>
    %753 = vector.extract_strided_slice %734 {offsets = [0, 256], sizes = [16, 128], strides = [1, 1]} : vector<16x384xf32> to vector<16x128xf32>
    %754 = vector.extract_strided_slice %736 {offsets = [0, 256], sizes = [16, 128], strides = [1, 1]} : vector<16x384xf32> to vector<16x128xf32>
    %755 = vector.broadcast %677 : vector<1x128xf32> to vector<16x128xf32>
    %756 = arith.addf %754, %755 : vector<16x128xf32>
    %757 = arith.mulf %744, %756 : vector<16x128xf32>
    %758 = arith.addf %753, %757 : vector<16x128xf32>
    %759 = math.tanh %758 : vector<16x128xf32>
    %cst_224 = arith.constant 1.000000e+00 : f32
    %760 = vector.broadcast %cst_224 : f32 to vector<16x128xf32>
    %761 = arith.subf %760, %752 : vector<16x128xf32>
    %762 = arith.mulf %761, %759 : vector<16x128xf32>
    %763 = arith.mulf %752, %724 : vector<16x128xf32>
    %764 = arith.addf %762, %763 : vector<16x128xf32>
    %765 = arith.truncf %764 : vector<16x128xf32> to vector<16x128xbf16>
    %c0_i32_225 = arith.constant 0 : i32
    %766 = arith.addi %c0_i32_225, %c1_i32_218 : i32
    %767 = arith.index_cast %766 : i32 to index
    %c0_226 = arith.constant 0 : index
    %c0_227 = arith.constant 0 : index
    %768 = vector.load %arg9[%767, %c0_226, %c0_227] : memref<8x16x128xbf16, #tpu.memory_space<vmem>>, vector<1x16x128xbf16>
    %769 = vector.shape_cast %768 : vector<1x16x128xbf16> to vector<16x128xbf16>
    %770 = vector.shape_cast %765 : vector<16x128xbf16> to vector<1x16x128xbf16>
    tpu.vector_store %arg9[%767, %c0_226, %c0_227], %770 {strides = array<i32>} : memref<8x16x128xbf16, #tpu.memory_space<vmem>>, vector<1x16x128xbf16>,
    %c2_i32_228 = arith.constant 2 : i32
    %771 = arith.index_cast %c2_i32_228 : i32 to index
    %c0_229 = arith.constant 0 : index
    %c0_230 = arith.constant 0 : index
    %772 = vector.load %arg11[%771, %c0_229, %c0_230] : memref<8x16x384xbf16, #tpu.memory_space<vmem>>, vector<1x16x384xbf16>
    %773 = vector.shape_cast %772 : vector<1x16x384xbf16> to vector<16x384xbf16>
    %774 = arith.extf %773 : vector<16x384xbf16> to vector<16x384xf32>
    %775 = arith.truncf %764 : vector<16x128xf32> to vector<16x128xbf16>
    %cst_231 = arith.constant dense<0.000000e+00> : vector<16x384xf32>
    %776 = tpu.matmul %775, %675, %cst_231 {dimension_numbers = #tpu.dot_dimension_numbers<[1], [0], [0], [1], [0, 0, 1, 1], [], []>} : vector<16x128xbf16>, vector<128x384xbf16>, vector<16x384xf32> -> vector<16x384xf32>
    %777 = vector.extract_strided_slice %774 {offsets = [0, 0], sizes = [16, 128], strides = [1, 1]} : vector<16x384xf32> to vector<16x128xf32>
    %778 = vector.extract_strided_slice %776 {offsets = [0, 0], sizes = [16, 128], strides = [1, 1]} : vector<16x384xf32> to vector<16x128xf32>
    %779 = arith.addf %777, %778 : vector<16x128xf32>
    %780 = arith.negf %779 : vector<16x128xf32>
    %781 = math.exp %780 : vector<16x128xf32>
    %cst_232 = arith.constant 1.000000e+00 : f32
    %782 = vector.broadcast %cst_232 : f32 to vector<16x128xf32>
    %783 = arith.addf %782, %781 : vector<16x128xf32>
    %784 = arith.divf %782, %783 : vector<16x128xf32>
    %785 = vector.extract_strided_slice %774 {offsets = [0, 128], sizes = [16, 128], strides = [1, 1]} : vector<16x384xf32> to vector<16x128xf32>
    %786 = vector.extract_strided_slice %776 {offsets = [0, 128], sizes = [16, 128], strides = [1, 1]} : vector<16x384xf32> to vector<16x128xf32>
    %787 = arith.addf %785, %786 : vector<16x128xf32>
    %788 = arith.negf %787 : vector<16x128xf32>
    %789 = math.exp %788 : vector<16x128xf32>
    %cst_233 = arith.constant 1.000000e+00 : f32
    %790 = vector.broadcast %cst_233 : f32 to vector<16x128xf32>
    %791 = arith.addf %790, %789 : vector<16x128xf32>
    %792 = arith.divf %790, %791 : vector<16x128xf32>
    %793 = vector.extract_strided_slice %774 {offsets = [0, 256], sizes = [16, 128], strides = [1, 1]} : vector<16x384xf32> to vector<16x128xf32>
    %794 = vector.extract_strided_slice %776 {offsets = [0, 256], sizes = [16, 128], strides = [1, 1]} : vector<16x384xf32> to vector<16x128xf32>
    %795 = vector.broadcast %677 : vector<1x128xf32> to vector<16x128xf32>
    %796 = arith.addf %794, %795 : vector<16x128xf32>
    %797 = arith.mulf %784, %796 : vector<16x128xf32>
    %798 = arith.addf %793, %797 : vector<16x128xf32>
    %799 = math.tanh %798 : vector<16x128xf32>
    %cst_234 = arith.constant 1.000000e+00 : f32
    %800 = vector.broadcast %cst_234 : f32 to vector<16x128xf32>
    %801 = arith.subf %800, %792 : vector<16x128xf32>
    %802 = arith.mulf %801, %799 : vector<16x128xf32>
    %803 = arith.mulf %792, %764 : vector<16x128xf32>
    %804 = arith.addf %802, %803 : vector<16x128xf32>
    %805 = arith.truncf %804 : vector<16x128xf32> to vector<16x128xbf16>
    %c0_i32_235 = arith.constant 0 : i32
    %806 = arith.addi %c0_i32_235, %c2_i32_228 : i32
    %807 = arith.index_cast %806 : i32 to index
    %c0_236 = arith.constant 0 : index
    %c0_237 = arith.constant 0 : index
    %808 = vector.load %arg9[%807, %c0_236, %c0_237] : memref<8x16x128xbf16, #tpu.memory_space<vmem>>, vector<1x16x128xbf16>
    %809 = vector.shape_cast %808 : vector<1x16x128xbf16> to vector<16x128xbf16>
    %810 = vector.shape_cast %805 : vector<16x128xbf16> to vector<1x16x128xbf16>
    tpu.vector_store %arg9[%807, %c0_236, %c0_237], %810 {strides = array<i32>} : memref<8x16x128xbf16, #tpu.memory_space<vmem>>, vector<1x16x128xbf16>,
    %c3_i32_238 = arith.constant 3 : i32
    %811 = arith.index_cast %c3_i32_238 : i32 to index
    %c0_239 = arith.constant 0 : index
    %c0_240 = arith.constant 0 : index
    %812 = vector.load %arg11[%811, %c0_239, %c0_240] : memref<8x16x384xbf16, #tpu.memory_space<vmem>>, vector<1x16x384xbf16>
    %813 = vector.shape_cast %812 : vector<1x16x384xbf16> to vector<16x384xbf16>
    %814 = arith.extf %813 : vector<16x384xbf16> to vector<16x384xf32>
    %815 = arith.truncf %804 : vector<16x128xf32> to vector<16x128xbf16>
    %cst_241 = arith.constant dense<0.000000e+00> : vector<16x384xf32>
    %816 = tpu.matmul %815, %675, %cst_241 {dimension_numbers = #tpu.dot_dimension_numbers<[1], [0], [0], [1], [0, 0, 1, 1], [], []>} : vector<16x128xbf16>, vector<128x384xbf16>, vector<16x384xf32> -> vector<16x384xf32>
    %817 = vector.extract_strided_slice %814 {offsets = [0, 0], sizes = [16, 128], strides = [1, 1]} : vector<16x384xf32> to vector<16x128xf32>
    %818 = vector.extract_strided_slice %816 {offsets = [0, 0], sizes = [16, 128], strides = [1, 1]} : vector<16x384xf32> to vector<16x128xf32>
    %819 = arith.addf %817, %818 : vector<16x128xf32>
    %820 = arith.negf %819 : vector<16x128xf32>
    %821 = math.exp %820 : vector<16x128xf32>
    %cst_242 = arith.constant 1.000000e+00 : f32
    %822 = vector.broadcast %cst_242 : f32 to vector<16x128xf32>
    %823 = arith.addf %822, %821 : vector<16x128xf32>
    %824 = arith.divf %822, %823 : vector<16x128xf32>
    %825 = vector.extract_strided_slice %814 {offsets = [0, 128], sizes = [16, 128], strides = [1, 1]} : vector<16x384xf32> to vector<16x128xf32>
    %826 = vector.extract_strided_slice %816 {offsets = [0, 128], sizes = [16, 128], strides = [1, 1]} : vector<16x384xf32> to vector<16x128xf32>
    %827 = arith.addf %825, %826 : vector<16x128xf32>
    %828 = arith.negf %827 : vector<16x128xf32>
    %829 = math.exp %828 : vector<16x128xf32>
    %cst_243 = arith.constant 1.000000e+00 : f32
    %830 = vector.broadcast %cst_243 : f32 to vector<16x128xf32>
    %831 = arith.addf %830, %829 : vector<16x128xf32>
    %832 = arith.divf %830, %831 : vector<16x128xf32>
    %833 = vector.extract_strided_slice %814 {offsets = [0, 256], sizes = [16, 128], strides = [1, 1]} : vector<16x384xf32> to vector<16x128xf32>
    %834 = vector.extract_strided_slice %816 {offsets = [0, 256], sizes = [16, 128], strides = [1, 1]} : vector<16x384xf32> to vector<16x128xf32>
    %835 = vector.broadcast %677 : vector<1x128xf32> to vector<16x128xf32>
    %836 = arith.addf %834, %835 : vector<16x128xf32>
    %837 = arith.mulf %824, %836 : vector<16x128xf32>
    %838 = arith.addf %833, %837 : vector<16x128xf32>
    %839 = math.tanh %838 : vector<16x128xf32>
    %cst_244 = arith.constant 1.000000e+00 : f32
    %840 = vector.broadcast %cst_244 : f32 to vector<16x128xf32>
    %841 = arith.subf %840, %832 : vector<16x128xf32>
    %842 = arith.mulf %841, %839 : vector<16x128xf32>
    %843 = arith.mulf %832, %804 : vector<16x128xf32>
    %844 = arith.addf %842, %843 : vector<16x128xf32>
    %845 = arith.truncf %844 : vector<16x128xf32> to vector<16x128xbf16>
    %c0_i32_245 = arith.constant 0 : i32
    %846 = arith.addi %c0_i32_245, %c3_i32_238 : i32
    %847 = arith.index_cast %846 : i32 to index
    %c0_246 = arith.constant 0 : index
    %c0_247 = arith.constant 0 : index
    %848 = vector.load %arg9[%847, %c0_246, %c0_247] : memref<8x16x128xbf16, #tpu.memory_space<vmem>>, vector<1x16x128xbf16>
    %849 = vector.shape_cast %848 : vector<1x16x128xbf16> to vector<16x128xbf16>
    %850 = vector.shape_cast %845 : vector<16x128xbf16> to vector<1x16x128xbf16>
    tpu.vector_store %arg9[%847, %c0_246, %c0_247], %850 {strides = array<i32>} : memref<8x16x128xbf16, #tpu.memory_space<vmem>>, vector<1x16x128xbf16>,
    %c4_i32_248 = arith.constant 4 : i32
    %851 = arith.index_cast %c4_i32_248 : i32 to index
    %c0_249 = arith.constant 0 : index
    %c0_250 = arith.constant 0 : index
    %852 = vector.load %arg11[%851, %c0_249, %c0_250] : memref<8x16x384xbf16, #tpu.memory_space<vmem>>, vector<1x16x384xbf16>
    %853 = vector.shape_cast %852 : vector<1x16x384xbf16> to vector<16x384xbf16>
    %854 = arith.extf %853 : vector<16x384xbf16> to vector<16x384xf32>
    %855 = arith.truncf %844 : vector<16x128xf32> to vector<16x128xbf16>
    %cst_251 = arith.constant dense<0.000000e+00> : vector<16x384xf32>
    %856 = tpu.matmul %855, %675, %cst_251 {dimension_numbers = #tpu.dot_dimension_numbers<[1], [0], [0], [1], [0, 0, 1, 1], [], []>} : vector<16x128xbf16>, vector<128x384xbf16>, vector<16x384xf32> -> vector<16x384xf32>
    %857 = vector.extract_strided_slice %854 {offsets = [0, 0], sizes = [16, 128], strides = [1, 1]} : vector<16x384xf32> to vector<16x128xf32>
    %858 = vector.extract_strided_slice %856 {offsets = [0, 0], sizes = [16, 128], strides = [1, 1]} : vector<16x384xf32> to vector<16x128xf32>
    %859 = arith.addf %857, %858 : vector<16x128xf32>
    %860 = arith.negf %859 : vector<16x128xf32>
    %861 = math.exp %860 : vector<16x128xf32>
    %cst_252 = arith.constant 1.000000e+00 : f32
    %862 = vector.broadcast %cst_252 : f32 to vector<16x128xf32>
    %863 = arith.addf %862, %861 : vector<16x128xf32>
    %864 = arith.divf %862, %863 : vector<16x128xf32>
    %865 = vector.extract_strided_slice %854 {offsets = [0, 128], sizes = [16, 128], strides = [1, 1]} : vector<16x384xf32> to vector<16x128xf32>
    %866 = vector.extract_strided_slice %856 {offsets = [0, 128], sizes = [16, 128], strides = [1, 1]} : vector<16x384xf32> to vector<16x128xf32>
    %867 = arith.addf %865, %866 : vector<16x128xf32>
    %868 = arith.negf %867 : vector<16x128xf32>
    %869 = math.exp %868 : vector<16x128xf32>
    %cst_253 = arith.constant 1.000000e+00 : f32
    %870 = vector.broadcast %cst_253 : f32 to vector<16x128xf32>
    %871 = arith.addf %870, %869 : vector<16x128xf32>
    %872 = arith.divf %870, %871 : vector<16x128xf32>
    %873 = vector.extract_strided_slice %854 {offsets = [0, 256], sizes = [16, 128], strides = [1, 1]} : vector<16x384xf32> to vector<16x128xf32>
    %874 = vector.extract_strided_slice %856 {offsets = [0, 256], sizes = [16, 128], strides = [1, 1]} : vector<16x384xf32> to vector<16x128xf32>
    %875 = vector.broadcast %677 : vector<1x128xf32> to vector<16x128xf32>
    %876 = arith.addf %874, %875 : vector<16x128xf32>
    %877 = arith.mulf %864, %876 : vector<16x128xf32>
    %878 = arith.addf %873, %877 : vector<16x128xf32>
    %879 = math.tanh %878 : vector<16x128xf32>
    %cst_254 = arith.constant 1.000000e+00 : f32
    %880 = vector.broadcast %cst_254 : f32 to vector<16x128xf32>
    %881 = arith.subf %880, %872 : vector<16x128xf32>
    %882 = arith.mulf %881, %879 : vector<16x128xf32>
    %883 = arith.mulf %872, %844 : vector<16x128xf32>
    %884 = arith.addf %882, %883 : vector<16x128xf32>
    %885 = arith.truncf %884 : vector<16x128xf32> to vector<16x128xbf16>
    %c0_i32_255 = arith.constant 0 : i32
    %886 = arith.addi %c0_i32_255, %c4_i32_248 : i32
    %887 = arith.index_cast %886 : i32 to index
    %c0_256 = arith.constant 0 : index
    %c0_257 = arith.constant 0 : index
    %888 = vector.load %arg9[%887, %c0_256, %c0_257] : memref<8x16x128xbf16, #tpu.memory_space<vmem>>, vector<1x16x128xbf16>
    %889 = vector.shape_cast %888 : vector<1x16x128xbf16> to vector<16x128xbf16>
    %890 = vector.shape_cast %885 : vector<16x128xbf16> to vector<1x16x128xbf16>
    tpu.vector_store %arg9[%887, %c0_256, %c0_257], %890 {strides = array<i32>} : memref<8x16x128xbf16, #tpu.memory_space<vmem>>, vector<1x16x128xbf16>,
    %c5_i32_258 = arith.constant 5 : i32
    %891 = arith.index_cast %c5_i32_258 : i32 to index
    %c0_259 = arith.constant 0 : index
    %c0_260 = arith.constant 0 : index
    %892 = vector.load %arg11[%891, %c0_259, %c0_260] : memref<8x16x384xbf16, #tpu.memory_space<vmem>>, vector<1x16x384xbf16>
    %893 = vector.shape_cast %892 : vector<1x16x384xbf16> to vector<16x384xbf16>
    %894 = arith.extf %893 : vector<16x384xbf16> to vector<16x384xf32>
    %895 = arith.truncf %884 : vector<16x128xf32> to vector<16x128xbf16>
    %cst_261 = arith.constant dense<0.000000e+00> : vector<16x384xf32>
    %896 = tpu.matmul %895, %675, %cst_261 {dimension_numbers = #tpu.dot_dimension_numbers<[1], [0], [0], [1], [0, 0, 1, 1], [], []>} : vector<16x128xbf16>, vector<128x384xbf16>, vector<16x384xf32> -> vector<16x384xf32>
    %897 = vector.extract_strided_slice %894 {offsets = [0, 0], sizes = [16, 128], strides = [1, 1]} : vector<16x384xf32> to vector<16x128xf32>
    %898 = vector.extract_strided_slice %896 {offsets = [0, 0], sizes = [16, 128], strides = [1, 1]} : vector<16x384xf32> to vector<16x128xf32>
    %899 = arith.addf %897, %898 : vector<16x128xf32>
    %900 = arith.negf %899 : vector<16x128xf32>
    %901 = math.exp %900 : vector<16x128xf32>
    %cst_262 = arith.constant 1.000000e+00 : f32
    %902 = vector.broadcast %cst_262 : f32 to vector<16x128xf32>
    %903 = arith.addf %902, %901 : vector<16x128xf32>
    %904 = arith.divf %902, %903 : vector<16x128xf32>
    %905 = vector.extract_strided_slice %894 {offsets = [0, 128], sizes = [16, 128], strides = [1, 1]} : vector<16x384xf32> to vector<16x128xf32>
    %906 = vector.extract_strided_slice %896 {offsets = [0, 128], sizes = [16, 128], strides = [1, 1]} : vector<16x384xf32> to vector<16x128xf32>
    %907 = arith.addf %905, %906 : vector<16x128xf32>
    %908 = arith.negf %907 : vector<16x128xf32>
    %909 = math.exp %908 : vector<16x128xf32>
    %cst_263 = arith.constant 1.000000e+00 : f32
    %910 = vector.broadcast %cst_263 : f32 to vector<16x128xf32>
    %911 = arith.addf %910, %909 : vector<16x128xf32>
    %912 = arith.divf %910, %911 : vector<16x128xf32>
    %913 = vector.extract_strided_slice %894 {offsets = [0, 256], sizes = [16, 128], strides = [1, 1]} : vector<16x384xf32> to vector<16x128xf32>
    %914 = vector.extract_strided_slice %896 {offsets = [0, 256], sizes = [16, 128], strides = [1, 1]} : vector<16x384xf32> to vector<16x128xf32>
    %915 = vector.broadcast %677 : vector<1x128xf32> to vector<16x128xf32>
    %916 = arith.addf %914, %915 : vector<16x128xf32>
    %917 = arith.mulf %904, %916 : vector<16x128xf32>
    %918 = arith.addf %913, %917 : vector<16x128xf32>
    %919 = math.tanh %918 : vector<16x128xf32>
    %cst_264 = arith.constant 1.000000e+00 : f32
    %920 = vector.broadcast %cst_264 : f32 to vector<16x128xf32>
    %921 = arith.subf %920, %912 : vector<16x128xf32>
    %922 = arith.mulf %921, %919 : vector<16x128xf32>
    %923 = arith.mulf %912, %884 : vector<16x128xf32>
    %924 = arith.addf %922, %923 : vector<16x128xf32>
    %925 = arith.truncf %924 : vector<16x128xf32> to vector<16x128xbf16>
    %c0_i32_265 = arith.constant 0 : i32
    %926 = arith.addi %c0_i32_265, %c5_i32_258 : i32
    %927 = arith.index_cast %926 : i32 to index
    %c0_266 = arith.constant 0 : index
    %c0_267 = arith.constant 0 : index
    %928 = vector.load %arg9[%927, %c0_266, %c0_267] : memref<8x16x128xbf16, #tpu.memory_space<vmem>>, vector<1x16x128xbf16>
    %929 = vector.shape_cast %928 : vector<1x16x128xbf16> to vector<16x128xbf16>
    %930 = vector.shape_cast %925 : vector<16x128xbf16> to vector<1x16x128xbf16>
    tpu.vector_store %arg9[%927, %c0_266, %c0_267], %930 {strides = array<i32>} : memref<8x16x128xbf16, #tpu.memory_space<vmem>>, vector<1x16x128xbf16>,
    %c6_i32_268 = arith.constant 6 : i32
    %931 = arith.index_cast %c6_i32_268 : i32 to index
    %c0_269 = arith.constant 0 : index
    %c0_270 = arith.constant 0 : index
    %932 = vector.load %arg11[%931, %c0_269, %c0_270] : memref<8x16x384xbf16, #tpu.memory_space<vmem>>, vector<1x16x384xbf16>
    %933 = vector.shape_cast %932 : vector<1x16x384xbf16> to vector<16x384xbf16>
    %934 = arith.extf %933 : vector<16x384xbf16> to vector<16x384xf32>
    %935 = arith.truncf %924 : vector<16x128xf32> to vector<16x128xbf16>
    %cst_271 = arith.constant dense<0.000000e+00> : vector<16x384xf32>
    %936 = tpu.matmul %935, %675, %cst_271 {dimension_numbers = #tpu.dot_dimension_numbers<[1], [0], [0], [1], [0, 0, 1, 1], [], []>} : vector<16x128xbf16>, vector<128x384xbf16>, vector<16x384xf32> -> vector<16x384xf32>
    %937 = vector.extract_strided_slice %934 {offsets = [0, 0], sizes = [16, 128], strides = [1, 1]} : vector<16x384xf32> to vector<16x128xf32>
    %938 = vector.extract_strided_slice %936 {offsets = [0, 0], sizes = [16, 128], strides = [1, 1]} : vector<16x384xf32> to vector<16x128xf32>
    %939 = arith.addf %937, %938 : vector<16x128xf32>
    %940 = arith.negf %939 : vector<16x128xf32>
    %941 = math.exp %940 : vector<16x128xf32>
    %cst_272 = arith.constant 1.000000e+00 : f32
    %942 = vector.broadcast %cst_272 : f32 to vector<16x128xf32>
    %943 = arith.addf %942, %941 : vector<16x128xf32>
    %944 = arith.divf %942, %943 : vector<16x128xf32>
    %945 = vector.extract_strided_slice %934 {offsets = [0, 128], sizes = [16, 128], strides = [1, 1]} : vector<16x384xf32> to vector<16x128xf32>
    %946 = vector.extract_strided_slice %936 {offsets = [0, 128], sizes = [16, 128], strides = [1, 1]} : vector<16x384xf32> to vector<16x128xf32>
    %947 = arith.addf %945, %946 : vector<16x128xf32>
    %948 = arith.negf %947 : vector<16x128xf32>
    %949 = math.exp %948 : vector<16x128xf32>
    %cst_273 = arith.constant 1.000000e+00 : f32
    %950 = vector.broadcast %cst_273 : f32 to vector<16x128xf32>
    %951 = arith.addf %950, %949 : vector<16x128xf32>
    %952 = arith.divf %950, %951 : vector<16x128xf32>
    %953 = vector.extract_strided_slice %934 {offsets = [0, 256], sizes = [16, 128], strides = [1, 1]} : vector<16x384xf32> to vector<16x128xf32>
    %954 = vector.extract_strided_slice %936 {offsets = [0, 256], sizes = [16, 128], strides = [1, 1]} : vector<16x384xf32> to vector<16x128xf32>
    %955 = vector.broadcast %677 : vector<1x128xf32> to vector<16x128xf32>
    %956 = arith.addf %954, %955 : vector<16x128xf32>
    %957 = arith.mulf %944, %956 : vector<16x128xf32>
    %958 = arith.addf %953, %957 : vector<16x128xf32>
    %959 = math.tanh %958 : vector<16x128xf32>
    %cst_274 = arith.constant 1.000000e+00 : f32
    %960 = vector.broadcast %cst_274 : f32 to vector<16x128xf32>
    %961 = arith.subf %960, %952 : vector<16x128xf32>
    %962 = arith.mulf %961, %959 : vector<16x128xf32>
    %963 = arith.mulf %952, %924 : vector<16x128xf32>
    %964 = arith.addf %962, %963 : vector<16x128xf32>
    %965 = arith.truncf %964 : vector<16x128xf32> to vector<16x128xbf16>
    %c0_i32_275 = arith.constant 0 : i32
    %966 = arith.addi %c0_i32_275, %c6_i32_268 : i32
    %967 = arith.index_cast %966 : i32 to index
    %c0_276 = arith.constant 0 : index
    %c0_277 = arith.constant 0 : index
    %968 = vector.load %arg9[%967, %c0_276, %c0_277] : memref<8x16x128xbf16, #tpu.memory_space<vmem>>, vector<1x16x128xbf16>
    %969 = vector.shape_cast %968 : vector<1x16x128xbf16> to vector<16x128xbf16>
    %970 = vector.shape_cast %965 : vector<16x128xbf16> to vector<1x16x128xbf16>
    tpu.vector_store %arg9[%967, %c0_276, %c0_277], %970 {strides = array<i32>} : memref<8x16x128xbf16, #tpu.memory_space<vmem>>, vector<1x16x128xbf16>,
    %c7_i32_278 = arith.constant 7 : i32
    %971 = arith.index_cast %c7_i32_278 : i32 to index
    %c0_279 = arith.constant 0 : index
    %c0_280 = arith.constant 0 : index
    %972 = vector.load %arg11[%971, %c0_279, %c0_280] : memref<8x16x384xbf16, #tpu.memory_space<vmem>>, vector<1x16x384xbf16>
    %973 = vector.shape_cast %972 : vector<1x16x384xbf16> to vector<16x384xbf16>
    %974 = arith.extf %973 : vector<16x384xbf16> to vector<16x384xf32>
    %975 = arith.truncf %964 : vector<16x128xf32> to vector<16x128xbf16>
    %cst_281 = arith.constant dense<0.000000e+00> : vector<16x384xf32>
    %976 = tpu.matmul %975, %675, %cst_281 {dimension_numbers = #tpu.dot_dimension_numbers<[1], [0], [0], [1], [0, 0, 1, 1], [], []>} : vector<16x128xbf16>, vector<128x384xbf16>, vector<16x384xf32> -> vector<16x384xf32>
    %977 = vector.extract_strided_slice %974 {offsets = [0, 0], sizes = [16, 128], strides = [1, 1]} : vector<16x384xf32> to vector<16x128xf32>
    %978 = vector.extract_strided_slice %976 {offsets = [0, 0], sizes = [16, 128], strides = [1, 1]} : vector<16x384xf32> to vector<16x128xf32>
    %979 = arith.addf %977, %978 : vector<16x128xf32>
    %980 = arith.negf %979 : vector<16x128xf32>
    %981 = math.exp %980 : vector<16x128xf32>
    %cst_282 = arith.constant 1.000000e+00 : f32
    %982 = vector.broadcast %cst_282 : f32 to vector<16x128xf32>
    %983 = arith.addf %982, %981 : vector<16x128xf32>
    %984 = arith.divf %982, %983 : vector<16x128xf32>
    %985 = vector.extract_strided_slice %974 {offsets = [0, 128], sizes = [16, 128], strides = [1, 1]} : vector<16x384xf32> to vector<16x128xf32>
    %986 = vector.extract_strided_slice %976 {offsets = [0, 128], sizes = [16, 128], strides = [1, 1]} : vector<16x384xf32> to vector<16x128xf32>
    %987 = arith.addf %985, %986 : vector<16x128xf32>
    %988 = arith.negf %987 : vector<16x128xf32>
    %989 = math.exp %988 : vector<16x128xf32>
    %cst_283 = arith.constant 1.000000e+00 : f32
    %990 = vector.broadcast %cst_283 : f32 to vector<16x128xf32>
    %991 = arith.addf %990, %989 : vector<16x128xf32>
    %992 = arith.divf %990, %991 : vector<16x128xf32>
    %993 = vector.extract_strided_slice %974 {offsets = [0, 256], sizes = [16, 128], strides = [1, 1]} : vector<16x384xf32> to vector<16x128xf32>
    %994 = vector.extract_strided_slice %976 {offsets = [0, 256], sizes = [16, 128], strides = [1, 1]} : vector<16x384xf32> to vector<16x128xf32>
    %995 = vector.broadcast %677 : vector<1x128xf32> to vector<16x128xf32>
    %996 = arith.addf %994, %995 : vector<16x128xf32>
    %997 = arith.mulf %984, %996 : vector<16x128xf32>
    %998 = arith.addf %993, %997 : vector<16x128xf32>
    %999 = math.tanh %998 : vector<16x128xf32>
    %cst_284 = arith.constant 1.000000e+00 : f32
    %1000 = vector.broadcast %cst_284 : f32 to vector<16x128xf32>
    %1001 = arith.subf %1000, %992 : vector<16x128xf32>
    %1002 = arith.mulf %1001, %999 : vector<16x128xf32>
    %1003 = arith.mulf %992, %964 : vector<16x128xf32>
    %1004 = arith.addf %1002, %1003 : vector<16x128xf32>
    %1005 = arith.truncf %1004 : vector<16x128xf32> to vector<16x128xbf16>
    %c0_i32_285 = arith.constant 0 : i32
    %1006 = arith.addi %c0_i32_285, %c7_i32_278 : i32
    %1007 = arith.index_cast %1006 : i32 to index
    %c0_286 = arith.constant 0 : index
    %c0_287 = arith.constant 0 : index
    %1008 = vector.load %arg9[%1007, %c0_286, %c0_287] : memref<8x16x128xbf16, #tpu.memory_space<vmem>>, vector<1x16x128xbf16>
    %1009 = vector.shape_cast %1008 : vector<1x16x128xbf16> to vector<16x128xbf16>
    %1010 = vector.shape_cast %1005 : vector<16x128xbf16> to vector<1x16x128xbf16>
    tpu.vector_store %arg9[%1007, %c0_286, %c0_287], %1010 {strides = array<i32>} : memref<8x16x128xbf16, #tpu.memory_space<vmem>>, vector<1x16x128xbf16>,
    %c8_i32_288 = arith.constant 8 : i32
    %c3 = arith.constant 3 : index
    %c0_289 = arith.constant 0 : index
    %c0_290 = arith.constant 0 : index
    %1011 = vector.load %arg3[%c3, %c0_289, %c0_290] : memref<4x128x384xbf16, #tpu.memory_space<vmem>>, vector<1x128x384xbf16>
    %1012 = vector.shape_cast %1011 : vector<1x128x384xbf16> to vector<128x384xbf16>
    %c3_291 = arith.constant 3 : index
    %c0_292 = arith.constant 0 : index
    %c0_293 = arith.constant 0 : index
    %1013 = vector.load %arg5[%c3_291, %c0_292, %c0_293] : memref<4x1x128xf32, #tpu.memory_space<vmem>>, vector<1x1x128xf32>
    %1014 = vector.shape_cast %1013 : vector<1x1x128xf32> to vector<1x128xf32>
    %cst_294 = arith.constant 0.000000e+00 : f32
    %1015 = vector.broadcast %cst_294 : f32 to vector<16x128xf32>
    %c0_295 = arith.constant 0 : index
    %c0_296 = arith.constant 0 : index
    %c0_297 = arith.constant 0 : index
    %1016 = vector.load %arg9[%c0_295, %c0_296, %c0_297] : memref<8x16x128xbf16, #tpu.memory_space<vmem>>, vector<8x16x128xbf16>
    %1017 = vector.shape_cast %1016 : vector<8x16x128xbf16> to vector<128x128xbf16>
    %c2_298 = arith.constant 2 : index
    %c0_299 = arith.constant 0 : index
    %c0_300 = arith.constant 0 : index
    %1018 = vector.load %arg2[%c2_298, %c0_299, %c0_300] : memref<3x128x384xbf16, #tpu.memory_space<vmem>>, vector<1x128x384xbf16>
    %1019 = vector.shape_cast %1018 : vector<1x128x384xbf16> to vector<128x384xbf16>
    %cst_301 = arith.constant dense<0.000000e+00> : vector<128x384xf32>
    %1020 = tpu.matmul %1017, %1019, %cst_301 {dimension_numbers = #tpu.dot_dimension_numbers<[1], [0], [0], [1], [0, 0, 1, 1], [], []>} : vector<128x128xbf16>, vector<128x384xbf16>, vector<128x384xf32> -> vector<128x384xf32>
    %c3_302 = arith.constant 3 : index
    %c0_303 = arith.constant 0 : index
    %c0_304 = arith.constant 0 : index
    %1021 = vector.load %arg4[%c3_302, %c0_303, %c0_304] : memref<4x1x384xf32, #tpu.memory_space<vmem>>, vector<1x1x384xf32>
    %1022 = vector.shape_cast %1021 : vector<1x1x384xf32> to vector<1x384xf32>
    %1023 = vector.broadcast %1022 : vector<1x384xf32> to vector<128x384xf32>
    %1024 = arith.addf %1020, %1023 : vector<128x384xf32>
    %1025 = vector.shape_cast %1024 : vector<128x384xf32> to vector<8x16x384xf32>
    %1026 = arith.truncf %1025 : vector<8x16x384xf32> to vector<8x16x384xbf16>
    %c0_305 = arith.constant 0 : index
    %c0_306 = arith.constant 0 : index
    %c0_307 = arith.constant 0 : index
    %1027 = vector.load %arg11[%c0_305, %c0_306, %c0_307] : memref<8x16x384xbf16, #tpu.memory_space<vmem>>, vector<8x16x384xbf16>
    tpu.vector_store %arg11[%c0_305, %c0_306, %c0_307], %1026 {strides = array<i32>} : memref<8x16x384xbf16, #tpu.memory_space<vmem>>, vector<8x16x384xbf16>,
    %c0_i32_308 = arith.constant 0 : i32
    %1028 = arith.index_cast %c0_i32_308 : i32 to index
    %c0_309 = arith.constant 0 : index
    %c0_310 = arith.constant 0 : index
    %1029 = vector.load %arg11[%1028, %c0_309, %c0_310] : memref<8x16x384xbf16, #tpu.memory_space<vmem>>, vector<1x16x384xbf16>
    %1030 = vector.shape_cast %1029 : vector<1x16x384xbf16> to vector<16x384xbf16>
    %1031 = arith.extf %1030 : vector<16x384xbf16> to vector<16x384xf32>
    %1032 = arith.truncf %1015 : vector<16x128xf32> to vector<16x128xbf16>
    %cst_311 = arith.constant dense<0.000000e+00> : vector<16x384xf32>
    %1033 = tpu.matmul %1032, %1012, %cst_311 {dimension_numbers = #tpu.dot_dimension_numbers<[1], [0], [0], [1], [0, 0, 1, 1], [], []>} : vector<16x128xbf16>, vector<128x384xbf16>, vector<16x384xf32> -> vector<16x384xf32>
    %1034 = vector.extract_strided_slice %1031 {offsets = [0, 0], sizes = [16, 128], strides = [1, 1]} : vector<16x384xf32> to vector<16x128xf32>
    %1035 = vector.extract_strided_slice %1033 {offsets = [0, 0], sizes = [16, 128], strides = [1, 1]} : vector<16x384xf32> to vector<16x128xf32>
    %1036 = arith.addf %1034, %1035 : vector<16x128xf32>
    %1037 = arith.negf %1036 : vector<16x128xf32>
    %1038 = math.exp %1037 : vector<16x128xf32>
    %cst_312 = arith.constant 1.000000e+00 : f32
    %1039 = vector.broadcast %cst_312 : f32 to vector<16x128xf32>
    %1040 = arith.addf %1039, %1038 : vector<16x128xf32>
    %1041 = arith.divf %1039, %1040 : vector<16x128xf32>
    %1042 = vector.extract_strided_slice %1031 {offsets = [0, 128], sizes = [16, 128], strides = [1, 1]} : vector<16x384xf32> to vector<16x128xf32>
    %1043 = vector.extract_strided_slice %1033 {offsets = [0, 128], sizes = [16, 128], strides = [1, 1]} : vector<16x384xf32> to vector<16x128xf32>
    %1044 = arith.addf %1042, %1043 : vector<16x128xf32>
    %1045 = arith.negf %1044 : vector<16x128xf32>
    %1046 = math.exp %1045 : vector<16x128xf32>
    %cst_313 = arith.constant 1.000000e+00 : f32
    %1047 = vector.broadcast %cst_313 : f32 to vector<16x128xf32>
    %1048 = arith.addf %1047, %1046 : vector<16x128xf32>
    %1049 = arith.divf %1047, %1048 : vector<16x128xf32>
    %1050 = vector.extract_strided_slice %1031 {offsets = [0, 256], sizes = [16, 128], strides = [1, 1]} : vector<16x384xf32> to vector<16x128xf32>
    %1051 = vector.extract_strided_slice %1033 {offsets = [0, 256], sizes = [16, 128], strides = [1, 1]} : vector<16x384xf32> to vector<16x128xf32>
    %1052 = vector.broadcast %1014 : vector<1x128xf32> to vector<16x128xf32>
    %1053 = arith.addf %1051, %1052 : vector<16x128xf32>
    %1054 = arith.mulf %1041, %1053 : vector<16x128xf32>
    %1055 = arith.addf %1050, %1054 : vector<16x128xf32>
    %1056 = math.tanh %1055 : vector<16x128xf32>
    %cst_314 = arith.constant 1.000000e+00 : f32
    %1057 = vector.broadcast %cst_314 : f32 to vector<16x128xf32>
    %1058 = arith.subf %1057, %1049 : vector<16x128xf32>
    %1059 = arith.mulf %1058, %1056 : vector<16x128xf32>
    %1060 = arith.mulf %1049, %1015 : vector<16x128xf32>
    %1061 = arith.addf %1059, %1060 : vector<16x128xf32>
    %1062 = arith.truncf %1061 : vector<16x128xf32> to vector<16x128xbf16>
    %c0_i32_315 = arith.constant 0 : i32
    %1063 = arith.addi %c0_i32_315, %c0_i32_308 : i32
    %1064 = arith.index_cast %1063 : i32 to index
    %c0_316 = arith.constant 0 : index
    %c0_317 = arith.constant 0 : index
    %1065 = vector.load %arg10[%1064, %c0_316, %c0_317] : memref<8x16x128xbf16, #tpu.memory_space<vmem>>, vector<1x16x128xbf16>
    %1066 = vector.shape_cast %1065 : vector<1x16x128xbf16> to vector<16x128xbf16>
    %1067 = vector.shape_cast %1062 : vector<16x128xbf16> to vector<1x16x128xbf16>
    tpu.vector_store %arg10[%1064, %c0_316, %c0_317], %1067 {strides = array<i32>} : memref<8x16x128xbf16, #tpu.memory_space<vmem>>, vector<1x16x128xbf16>,
    %c1_i32_318 = arith.constant 1 : i32
    %1068 = arith.index_cast %c1_i32_318 : i32 to index
    %c0_319 = arith.constant 0 : index
    %c0_320 = arith.constant 0 : index
    %1069 = vector.load %arg11[%1068, %c0_319, %c0_320] : memref<8x16x384xbf16, #tpu.memory_space<vmem>>, vector<1x16x384xbf16>
    %1070 = vector.shape_cast %1069 : vector<1x16x384xbf16> to vector<16x384xbf16>
    %1071 = arith.extf %1070 : vector<16x384xbf16> to vector<16x384xf32>
    %1072 = arith.truncf %1061 : vector<16x128xf32> to vector<16x128xbf16>
    %cst_321 = arith.constant dense<0.000000e+00> : vector<16x384xf32>
    %1073 = tpu.matmul %1072, %1012, %cst_321 {dimension_numbers = #tpu.dot_dimension_numbers<[1], [0], [0], [1], [0, 0, 1, 1], [], []>} : vector<16x128xbf16>, vector<128x384xbf16>, vector<16x384xf32> -> vector<16x384xf32>
    %1074 = vector.extract_strided_slice %1071 {offsets = [0, 0], sizes = [16, 128], strides = [1, 1]} : vector<16x384xf32> to vector<16x128xf32>
    %1075 = vector.extract_strided_slice %1073 {offsets = [0, 0], sizes = [16, 128], strides = [1, 1]} : vector<16x384xf32> to vector<16x128xf32>
    %1076 = arith.addf %1074, %1075 : vector<16x128xf32>
    %1077 = arith.negf %1076 : vector<16x128xf32>
    %1078 = math.exp %1077 : vector<16x128xf32>
    %cst_322 = arith.constant 1.000000e+00 : f32
    %1079 = vector.broadcast %cst_322 : f32 to vector<16x128xf32>
    %1080 = arith.addf %1079, %1078 : vector<16x128xf32>
    %1081 = arith.divf %1079, %1080 : vector<16x128xf32>
    %1082 = vector.extract_strided_slice %1071 {offsets = [0, 128], sizes = [16, 128], strides = [1, 1]} : vector<16x384xf32> to vector<16x128xf32>
    %1083 = vector.extract_strided_slice %1073 {offsets = [0, 128], sizes = [16, 128], strides = [1, 1]} : vector<16x384xf32> to vector<16x128xf32>
    %1084 = arith.addf %1082, %1083 : vector<16x128xf32>
    %1085 = arith.negf %1084 : vector<16x128xf32>
    %1086 = math.exp %1085 : vector<16x128xf32>
    %cst_323 = arith.constant 1.000000e+00 : f32
    %1087 = vector.broadcast %cst_323 : f32 to vector<16x128xf32>
    %1088 = arith.addf %1087, %1086 : vector<16x128xf32>
    %1089 = arith.divf %1087, %1088 : vector<16x128xf32>
    %1090 = vector.extract_strided_slice %1071 {offsets = [0, 256], sizes = [16, 128], strides = [1, 1]} : vector<16x384xf32> to vector<16x128xf32>
    %1091 = vector.extract_strided_slice %1073 {offsets = [0, 256], sizes = [16, 128], strides = [1, 1]} : vector<16x384xf32> to vector<16x128xf32>
    %1092 = vector.broadcast %1014 : vector<1x128xf32> to vector<16x128xf32>
    %1093 = arith.addf %1091, %1092 : vector<16x128xf32>
    %1094 = arith.mulf %1081, %1093 : vector<16x128xf32>
    %1095 = arith.addf %1090, %1094 : vector<16x128xf32>
    %1096 = math.tanh %1095 : vector<16x128xf32>
    %cst_324 = arith.constant 1.000000e+00 : f32
    %1097 = vector.broadcast %cst_324 : f32 to vector<16x128xf32>
    %1098 = arith.subf %1097, %1089 : vector<16x128xf32>
    %1099 = arith.mulf %1098, %1096 : vector<16x128xf32>
    %1100 = arith.mulf %1089, %1061 : vector<16x128xf32>
    %1101 = arith.addf %1099, %1100 : vector<16x128xf32>
    %1102 = arith.truncf %1101 : vector<16x128xf32> to vector<16x128xbf16>
    %c0_i32_325 = arith.constant 0 : i32
    %1103 = arith.addi %c0_i32_325, %c1_i32_318 : i32
    %1104 = arith.index_cast %1103 : i32 to index
    %c0_326 = arith.constant 0 : index
    %c0_327 = arith.constant 0 : index
    %1105 = vector.load %arg10[%1104, %c0_326, %c0_327] : memref<8x16x128xbf16, #tpu.memory_space<vmem>>, vector<1x16x128xbf16>
    %1106 = vector.shape_cast %1105 : vector<1x16x128xbf16> to vector<16x128xbf16>
    %1107 = vector.shape_cast %1102 : vector<16x128xbf16> to vector<1x16x128xbf16>
    tpu.vector_store %arg10[%1104, %c0_326, %c0_327], %1107 {strides = array<i32>} : memref<8x16x128xbf16, #tpu.memory_space<vmem>>, vector<1x16x128xbf16>,
    %c2_i32_328 = arith.constant 2 : i32
    %1108 = arith.index_cast %c2_i32_328 : i32 to index
    %c0_329 = arith.constant 0 : index
    %c0_330 = arith.constant 0 : index
    %1109 = vector.load %arg11[%1108, %c0_329, %c0_330] : memref<8x16x384xbf16, #tpu.memory_space<vmem>>, vector<1x16x384xbf16>
    %1110 = vector.shape_cast %1109 : vector<1x16x384xbf16> to vector<16x384xbf16>
    %1111 = arith.extf %1110 : vector<16x384xbf16> to vector<16x384xf32>
    %1112 = arith.truncf %1101 : vector<16x128xf32> to vector<16x128xbf16>
    %cst_331 = arith.constant dense<0.000000e+00> : vector<16x384xf32>
    %1113 = tpu.matmul %1112, %1012, %cst_331 {dimension_numbers = #tpu.dot_dimension_numbers<[1], [0], [0], [1], [0, 0, 1, 1], [], []>} : vector<16x128xbf16>, vector<128x384xbf16>, vector<16x384xf32> -> vector<16x384xf32>
    %1114 = vector.extract_strided_slice %1111 {offsets = [0, 0], sizes = [16, 128], strides = [1, 1]} : vector<16x384xf32> to vector<16x128xf32>
    %1115 = vector.extract_strided_slice %1113 {offsets = [0, 0], sizes = [16, 128], strides = [1, 1]} : vector<16x384xf32> to vector<16x128xf32>
    %1116 = arith.addf %1114, %1115 : vector<16x128xf32>
    %1117 = arith.negf %1116 : vector<16x128xf32>
    %1118 = math.exp %1117 : vector<16x128xf32>
    %cst_332 = arith.constant 1.000000e+00 : f32
    %1119 = vector.broadcast %cst_332 : f32 to vector<16x128xf32>
    %1120 = arith.addf %1119, %1118 : vector<16x128xf32>
    %1121 = arith.divf %1119, %1120 : vector<16x128xf32>
    %1122 = vector.extract_strided_slice %1111 {offsets = [0, 128], sizes = [16, 128], strides = [1, 1]} : vector<16x384xf32> to vector<16x128xf32>
    %1123 = vector.extract_strided_slice %1113 {offsets = [0, 128], sizes = [16, 128], strides = [1, 1]} : vector<16x384xf32> to vector<16x128xf32>
    %1124 = arith.addf %1122, %1123 : vector<16x128xf32>
    %1125 = arith.negf %1124 : vector<16x128xf32>
    %1126 = math.exp %1125 : vector<16x128xf32>
    %cst_333 = arith.constant 1.000000e+00 : f32
    %1127 = vector.broadcast %cst_333 : f32 to vector<16x128xf32>
    %1128 = arith.addf %1127, %1126 : vector<16x128xf32>
    %1129 = arith.divf %1127, %1128 : vector<16x128xf32>
    %1130 = vector.extract_strided_slice %1111 {offsets = [0, 256], sizes = [16, 128], strides = [1, 1]} : vector<16x384xf32> to vector<16x128xf32>
    %1131 = vector.extract_strided_slice %1113 {offsets = [0, 256], sizes = [16, 128], strides = [1, 1]} : vector<16x384xf32> to vector<16x128xf32>
    %1132 = vector.broadcast %1014 : vector<1x128xf32> to vector<16x128xf32>
    %1133 = arith.addf %1131, %1132 : vector<16x128xf32>
    %1134 = arith.mulf %1121, %1133 : vector<16x128xf32>
    %1135 = arith.addf %1130, %1134 : vector<16x128xf32>
    %1136 = math.tanh %1135 : vector<16x128xf32>
    %cst_334 = arith.constant 1.000000e+00 : f32
    %1137 = vector.broadcast %cst_334 : f32 to vector<16x128xf32>
    %1138 = arith.subf %1137, %1129 : vector<16x128xf32>
    %1139 = arith.mulf %1138, %1136 : vector<16x128xf32>
    %1140 = arith.mulf %1129, %1101 : vector<16x128xf32>
    %1141 = arith.addf %1139, %1140 : vector<16x128xf32>
    %1142 = arith.truncf %1141 : vector<16x128xf32> to vector<16x128xbf16>
    %c0_i32_335 = arith.constant 0 : i32
    %1143 = arith.addi %c0_i32_335, %c2_i32_328 : i32
    %1144 = arith.index_cast %1143 : i32 to index
    %c0_336 = arith.constant 0 : index
    %c0_337 = arith.constant 0 : index
    %1145 = vector.load %arg10[%1144, %c0_336, %c0_337] : memref<8x16x128xbf16, #tpu.memory_space<vmem>>, vector<1x16x128xbf16>
    %1146 = vector.shape_cast %1145 : vector<1x16x128xbf16> to vector<16x128xbf16>
    %1147 = vector.shape_cast %1142 : vector<16x128xbf16> to vector<1x16x128xbf16>
    tpu.vector_store %arg10[%1144, %c0_336, %c0_337], %1147 {strides = array<i32>} : memref<8x16x128xbf16, #tpu.memory_space<vmem>>, vector<1x16x128xbf16>,
    %c3_i32_338 = arith.constant 3 : i32
    %1148 = arith.index_cast %c3_i32_338 : i32 to index
    %c0_339 = arith.constant 0 : index
    %c0_340 = arith.constant 0 : index
    %1149 = vector.load %arg11[%1148, %c0_339, %c0_340] : memref<8x16x384xbf16, #tpu.memory_space<vmem>>, vector<1x16x384xbf16>
    %1150 = vector.shape_cast %1149 : vector<1x16x384xbf16> to vector<16x384xbf16>
    %1151 = arith.extf %1150 : vector<16x384xbf16> to vector<16x384xf32>
    %1152 = arith.truncf %1141 : vector<16x128xf32> to vector<16x128xbf16>
    %cst_341 = arith.constant dense<0.000000e+00> : vector<16x384xf32>
    %1153 = tpu.matmul %1152, %1012, %cst_341 {dimension_numbers = #tpu.dot_dimension_numbers<[1], [0], [0], [1], [0, 0, 1, 1], [], []>} : vector<16x128xbf16>, vector<128x384xbf16>, vector<16x384xf32> -> vector<16x384xf32>
    %1154 = vector.extract_strided_slice %1151 {offsets = [0, 0], sizes = [16, 128], strides = [1, 1]} : vector<16x384xf32> to vector<16x128xf32>
    %1155 = vector.extract_strided_slice %1153 {offsets = [0, 0], sizes = [16, 128], strides = [1, 1]} : vector<16x384xf32> to vector<16x128xf32>
    %1156 = arith.addf %1154, %1155 : vector<16x128xf32>
    %1157 = arith.negf %1156 : vector<16x128xf32>
    %1158 = math.exp %1157 : vector<16x128xf32>
    %cst_342 = arith.constant 1.000000e+00 : f32
    %1159 = vector.broadcast %cst_342 : f32 to vector<16x128xf32>
    %1160 = arith.addf %1159, %1158 : vector<16x128xf32>
    %1161 = arith.divf %1159, %1160 : vector<16x128xf32>
    %1162 = vector.extract_strided_slice %1151 {offsets = [0, 128], sizes = [16, 128], strides = [1, 1]} : vector<16x384xf32> to vector<16x128xf32>
    %1163 = vector.extract_strided_slice %1153 {offsets = [0, 128], sizes = [16, 128], strides = [1, 1]} : vector<16x384xf32> to vector<16x128xf32>
    %1164 = arith.addf %1162, %1163 : vector<16x128xf32>
    %1165 = arith.negf %1164 : vector<16x128xf32>
    %1166 = math.exp %1165 : vector<16x128xf32>
    %cst_343 = arith.constant 1.000000e+00 : f32
    %1167 = vector.broadcast %cst_343 : f32 to vector<16x128xf32>
    %1168 = arith.addf %1167, %1166 : vector<16x128xf32>
    %1169 = arith.divf %1167, %1168 : vector<16x128xf32>
    %1170 = vector.extract_strided_slice %1151 {offsets = [0, 256], sizes = [16, 128], strides = [1, 1]} : vector<16x384xf32> to vector<16x128xf32>
    %1171 = vector.extract_strided_slice %1153 {offsets = [0, 256], sizes = [16, 128], strides = [1, 1]} : vector<16x384xf32> to vector<16x128xf32>
    %1172 = vector.broadcast %1014 : vector<1x128xf32> to vector<16x128xf32>
    %1173 = arith.addf %1171, %1172 : vector<16x128xf32>
    %1174 = arith.mulf %1161, %1173 : vector<16x128xf32>
    %1175 = arith.addf %1170, %1174 : vector<16x128xf32>
    %1176 = math.tanh %1175 : vector<16x128xf32>
    %cst_344 = arith.constant 1.000000e+00 : f32
    %1177 = vector.broadcast %cst_344 : f32 to vector<16x128xf32>
    %1178 = arith.subf %1177, %1169 : vector<16x128xf32>
    %1179 = arith.mulf %1178, %1176 : vector<16x128xf32>
    %1180 = arith.mulf %1169, %1141 : vector<16x128xf32>
    %1181 = arith.addf %1179, %1180 : vector<16x128xf32>
    %1182 = arith.truncf %1181 : vector<16x128xf32> to vector<16x128xbf16>
    %c0_i32_345 = arith.constant 0 : i32
    %1183 = arith.addi %c0_i32_345, %c3_i32_338 : i32
    %1184 = arith.index_cast %1183 : i32 to index
    %c0_346 = arith.constant 0 : index
    %c0_347 = arith.constant 0 : index
    %1185 = vector.load %arg10[%1184, %c0_346, %c0_347] : memref<8x16x128xbf16, #tpu.memory_space<vmem>>, vector<1x16x128xbf16>
    %1186 = vector.shape_cast %1185 : vector<1x16x128xbf16> to vector<16x128xbf16>
    %1187 = vector.shape_cast %1182 : vector<16x128xbf16> to vector<1x16x128xbf16>
    tpu.vector_store %arg10[%1184, %c0_346, %c0_347], %1187 {strides = array<i32>} : memref<8x16x128xbf16, #tpu.memory_space<vmem>>, vector<1x16x128xbf16>,
    %c4_i32_348 = arith.constant 4 : i32
    %1188 = arith.index_cast %c4_i32_348 : i32 to index
    %c0_349 = arith.constant 0 : index
    %c0_350 = arith.constant 0 : index
    %1189 = vector.load %arg11[%1188, %c0_349, %c0_350] : memref<8x16x384xbf16, #tpu.memory_space<vmem>>, vector<1x16x384xbf16>
    %1190 = vector.shape_cast %1189 : vector<1x16x384xbf16> to vector<16x384xbf16>
    %1191 = arith.extf %1190 : vector<16x384xbf16> to vector<16x384xf32>
    %1192 = arith.truncf %1181 : vector<16x128xf32> to vector<16x128xbf16>
    %cst_351 = arith.constant dense<0.000000e+00> : vector<16x384xf32>
    %1193 = tpu.matmul %1192, %1012, %cst_351 {dimension_numbers = #tpu.dot_dimension_numbers<[1], [0], [0], [1], [0, 0, 1, 1], [], []>} : vector<16x128xbf16>, vector<128x384xbf16>, vector<16x384xf32> -> vector<16x384xf32>
    %1194 = vector.extract_strided_slice %1191 {offsets = [0, 0], sizes = [16, 128], strides = [1, 1]} : vector<16x384xf32> to vector<16x128xf32>
    %1195 = vector.extract_strided_slice %1193 {offsets = [0, 0], sizes = [16, 128], strides = [1, 1]} : vector<16x384xf32> to vector<16x128xf32>
    %1196 = arith.addf %1194, %1195 : vector<16x128xf32>
    %1197 = arith.negf %1196 : vector<16x128xf32>
    %1198 = math.exp %1197 : vector<16x128xf32>
    %cst_352 = arith.constant 1.000000e+00 : f32
    %1199 = vector.broadcast %cst_352 : f32 to vector<16x128xf32>
    %1200 = arith.addf %1199, %1198 : vector<16x128xf32>
    %1201 = arith.divf %1199, %1200 : vector<16x128xf32>
    %1202 = vector.extract_strided_slice %1191 {offsets = [0, 128], sizes = [16, 128], strides = [1, 1]} : vector<16x384xf32> to vector<16x128xf32>
    %1203 = vector.extract_strided_slice %1193 {offsets = [0, 128], sizes = [16, 128], strides = [1, 1]} : vector<16x384xf32> to vector<16x128xf32>
    %1204 = arith.addf %1202, %1203 : vector<16x128xf32>
    %1205 = arith.negf %1204 : vector<16x128xf32>
    %1206 = math.exp %1205 : vector<16x128xf32>
    %cst_353 = arith.constant 1.000000e+00 : f32
    %1207 = vector.broadcast %cst_353 : f32 to vector<16x128xf32>
    %1208 = arith.addf %1207, %1206 : vector<16x128xf32>
    %1209 = arith.divf %1207, %1208 : vector<16x128xf32>
    %1210 = vector.extract_strided_slice %1191 {offsets = [0, 256], sizes = [16, 128], strides = [1, 1]} : vector<16x384xf32> to vector<16x128xf32>
    %1211 = vector.extract_strided_slice %1193 {offsets = [0, 256], sizes = [16, 128], strides = [1, 1]} : vector<16x384xf32> to vector<16x128xf32>
    %1212 = vector.broadcast %1014 : vector<1x128xf32> to vector<16x128xf32>
    %1213 = arith.addf %1211, %1212 : vector<16x128xf32>
    %1214 = arith.mulf %1201, %1213 : vector<16x128xf32>
    %1215 = arith.addf %1210, %1214 : vector<16x128xf32>
    %1216 = math.tanh %1215 : vector<16x128xf32>
    %cst_354 = arith.constant 1.000000e+00 : f32
    %1217 = vector.broadcast %cst_354 : f32 to vector<16x128xf32>
    %1218 = arith.subf %1217, %1209 : vector<16x128xf32>
    %1219 = arith.mulf %1218, %1216 : vector<16x128xf32>
    %1220 = arith.mulf %1209, %1181 : vector<16x128xf32>
    %1221 = arith.addf %1219, %1220 : vector<16x128xf32>
    %1222 = arith.truncf %1221 : vector<16x128xf32> to vector<16x128xbf16>
    %c0_i32_355 = arith.constant 0 : i32
    %1223 = arith.addi %c0_i32_355, %c4_i32_348 : i32
    %1224 = arith.index_cast %1223 : i32 to index
    %c0_356 = arith.constant 0 : index
    %c0_357 = arith.constant 0 : index
    %1225 = vector.load %arg10[%1224, %c0_356, %c0_357] : memref<8x16x128xbf16, #tpu.memory_space<vmem>>, vector<1x16x128xbf16>
    %1226 = vector.shape_cast %1225 : vector<1x16x128xbf16> to vector<16x128xbf16>
    %1227 = vector.shape_cast %1222 : vector<16x128xbf16> to vector<1x16x128xbf16>
    tpu.vector_store %arg10[%1224, %c0_356, %c0_357], %1227 {strides = array<i32>} : memref<8x16x128xbf16, #tpu.memory_space<vmem>>, vector<1x16x128xbf16>,
    %c5_i32_358 = arith.constant 5 : i32
    %1228 = arith.index_cast %c5_i32_358 : i32 to index
    %c0_359 = arith.constant 0 : index
    %c0_360 = arith.constant 0 : index
    %1229 = vector.load %arg11[%1228, %c0_359, %c0_360] : memref<8x16x384xbf16, #tpu.memory_space<vmem>>, vector<1x16x384xbf16>
    %1230 = vector.shape_cast %1229 : vector<1x16x384xbf16> to vector<16x384xbf16>
    %1231 = arith.extf %1230 : vector<16x384xbf16> to vector<16x384xf32>
    %1232 = arith.truncf %1221 : vector<16x128xf32> to vector<16x128xbf16>
    %cst_361 = arith.constant dense<0.000000e+00> : vector<16x384xf32>
    %1233 = tpu.matmul %1232, %1012, %cst_361 {dimension_numbers = #tpu.dot_dimension_numbers<[1], [0], [0], [1], [0, 0, 1, 1], [], []>} : vector<16x128xbf16>, vector<128x384xbf16>, vector<16x384xf32> -> vector<16x384xf32>
    %1234 = vector.extract_strided_slice %1231 {offsets = [0, 0], sizes = [16, 128], strides = [1, 1]} : vector<16x384xf32> to vector<16x128xf32>
    %1235 = vector.extract_strided_slice %1233 {offsets = [0, 0], sizes = [16, 128], strides = [1, 1]} : vector<16x384xf32> to vector<16x128xf32>
    %1236 = arith.addf %1234, %1235 : vector<16x128xf32>
    %1237 = arith.negf %1236 : vector<16x128xf32>
    %1238 = math.exp %1237 : vector<16x128xf32>
    %cst_362 = arith.constant 1.000000e+00 : f32
    %1239 = vector.broadcast %cst_362 : f32 to vector<16x128xf32>
    %1240 = arith.addf %1239, %1238 : vector<16x128xf32>
    %1241 = arith.divf %1239, %1240 : vector<16x128xf32>
    %1242 = vector.extract_strided_slice %1231 {offsets = [0, 128], sizes = [16, 128], strides = [1, 1]} : vector<16x384xf32> to vector<16x128xf32>
    %1243 = vector.extract_strided_slice %1233 {offsets = [0, 128], sizes = [16, 128], strides = [1, 1]} : vector<16x384xf32> to vector<16x128xf32>
    %1244 = arith.addf %1242, %1243 : vector<16x128xf32>
    %1245 = arith.negf %1244 : vector<16x128xf32>
    %1246 = math.exp %1245 : vector<16x128xf32>
    %cst_363 = arith.constant 1.000000e+00 : f32
    %1247 = vector.broadcast %cst_363 : f32 to vector<16x128xf32>
    %1248 = arith.addf %1247, %1246 : vector<16x128xf32>
    %1249 = arith.divf %1247, %1248 : vector<16x128xf32>
    %1250 = vector.extract_strided_slice %1231 {offsets = [0, 256], sizes = [16, 128], strides = [1, 1]} : vector<16x384xf32> to vector<16x128xf32>
    %1251 = vector.extract_strided_slice %1233 {offsets = [0, 256], sizes = [16, 128], strides = [1, 1]} : vector<16x384xf32> to vector<16x128xf32>
    %1252 = vector.broadcast %1014 : vector<1x128xf32> to vector<16x128xf32>
    %1253 = arith.addf %1251, %1252 : vector<16x128xf32>
    %1254 = arith.mulf %1241, %1253 : vector<16x128xf32>
    %1255 = arith.addf %1250, %1254 : vector<16x128xf32>
    %1256 = math.tanh %1255 : vector<16x128xf32>
    %cst_364 = arith.constant 1.000000e+00 : f32
    %1257 = vector.broadcast %cst_364 : f32 to vector<16x128xf32>
    %1258 = arith.subf %1257, %1249 : vector<16x128xf32>
    %1259 = arith.mulf %1258, %1256 : vector<16x128xf32>
    %1260 = arith.mulf %1249, %1221 : vector<16x128xf32>
    %1261 = arith.addf %1259, %1260 : vector<16x128xf32>
    %1262 = arith.truncf %1261 : vector<16x128xf32> to vector<16x128xbf16>
    %c0_i32_365 = arith.constant 0 : i32
    %1263 = arith.addi %c0_i32_365, %c5_i32_358 : i32
    %1264 = arith.index_cast %1263 : i32 to index
    %c0_366 = arith.constant 0 : index
    %c0_367 = arith.constant 0 : index
    %1265 = vector.load %arg10[%1264, %c0_366, %c0_367] : memref<8x16x128xbf16, #tpu.memory_space<vmem>>, vector<1x16x128xbf16>
    %1266 = vector.shape_cast %1265 : vector<1x16x128xbf16> to vector<16x128xbf16>
    %1267 = vector.shape_cast %1262 : vector<16x128xbf16> to vector<1x16x128xbf16>
    tpu.vector_store %arg10[%1264, %c0_366, %c0_367], %1267 {strides = array<i32>} : memref<8x16x128xbf16, #tpu.memory_space<vmem>>, vector<1x16x128xbf16>,
    %c6_i32_368 = arith.constant 6 : i32
    %1268 = arith.index_cast %c6_i32_368 : i32 to index
    %c0_369 = arith.constant 0 : index
    %c0_370 = arith.constant 0 : index
    %1269 = vector.load %arg11[%1268, %c0_369, %c0_370] : memref<8x16x384xbf16, #tpu.memory_space<vmem>>, vector<1x16x384xbf16>
    %1270 = vector.shape_cast %1269 : vector<1x16x384xbf16> to vector<16x384xbf16>
    %1271 = arith.extf %1270 : vector<16x384xbf16> to vector<16x384xf32>
    %1272 = arith.truncf %1261 : vector<16x128xf32> to vector<16x128xbf16>
    %cst_371 = arith.constant dense<0.000000e+00> : vector<16x384xf32>
    %1273 = tpu.matmul %1272, %1012, %cst_371 {dimension_numbers = #tpu.dot_dimension_numbers<[1], [0], [0], [1], [0, 0, 1, 1], [], []>} : vector<16x128xbf16>, vector<128x384xbf16>, vector<16x384xf32> -> vector<16x384xf32>
    %1274 = vector.extract_strided_slice %1271 {offsets = [0, 0], sizes = [16, 128], strides = [1, 1]} : vector<16x384xf32> to vector<16x128xf32>
    %1275 = vector.extract_strided_slice %1273 {offsets = [0, 0], sizes = [16, 128], strides = [1, 1]} : vector<16x384xf32> to vector<16x128xf32>
    %1276 = arith.addf %1274, %1275 : vector<16x128xf32>
    %1277 = arith.negf %1276 : vector<16x128xf32>
    %1278 = math.exp %1277 : vector<16x128xf32>
    %cst_372 = arith.constant 1.000000e+00 : f32
    %1279 = vector.broadcast %cst_372 : f32 to vector<16x128xf32>
    %1280 = arith.addf %1279, %1278 : vector<16x128xf32>
    %1281 = arith.divf %1279, %1280 : vector<16x128xf32>
    %1282 = vector.extract_strided_slice %1271 {offsets = [0, 128], sizes = [16, 128], strides = [1, 1]} : vector<16x384xf32> to vector<16x128xf32>
    %1283 = vector.extract_strided_slice %1273 {offsets = [0, 128], sizes = [16, 128], strides = [1, 1]} : vector<16x384xf32> to vector<16x128xf32>
    %1284 = arith.addf %1282, %1283 : vector<16x128xf32>
    %1285 = arith.negf %1284 : vector<16x128xf32>
    %1286 = math.exp %1285 : vector<16x128xf32>
    %cst_373 = arith.constant 1.000000e+00 : f32
    %1287 = vector.broadcast %cst_373 : f32 to vector<16x128xf32>
    %1288 = arith.addf %1287, %1286 : vector<16x128xf32>
    %1289 = arith.divf %1287, %1288 : vector<16x128xf32>
    %1290 = vector.extract_strided_slice %1271 {offsets = [0, 256], sizes = [16, 128], strides = [1, 1]} : vector<16x384xf32> to vector<16x128xf32>
    %1291 = vector.extract_strided_slice %1273 {offsets = [0, 256], sizes = [16, 128], strides = [1, 1]} : vector<16x384xf32> to vector<16x128xf32>
    %1292 = vector.broadcast %1014 : vector<1x128xf32> to vector<16x128xf32>
    %1293 = arith.addf %1291, %1292 : vector<16x128xf32>
    %1294 = arith.mulf %1281, %1293 : vector<16x128xf32>
    %1295 = arith.addf %1290, %1294 : vector<16x128xf32>
    %1296 = math.tanh %1295 : vector<16x128xf32>
    %cst_374 = arith.constant 1.000000e+00 : f32
    %1297 = vector.broadcast %cst_374 : f32 to vector<16x128xf32>
    %1298 = arith.subf %1297, %1289 : vector<16x128xf32>
    %1299 = arith.mulf %1298, %1296 : vector<16x128xf32>
    %1300 = arith.mulf %1289, %1261 : vector<16x128xf32>
    %1301 = arith.addf %1299, %1300 : vector<16x128xf32>
    %1302 = arith.truncf %1301 : vector<16x128xf32> to vector<16x128xbf16>
    %c0_i32_375 = arith.constant 0 : i32
    %1303 = arith.addi %c0_i32_375, %c6_i32_368 : i32
    %1304 = arith.index_cast %1303 : i32 to index
    %c0_376 = arith.constant 0 : index
    %c0_377 = arith.constant 0 : index
    %1305 = vector.load %arg10[%1304, %c0_376, %c0_377] : memref<8x16x128xbf16, #tpu.memory_space<vmem>>, vector<1x16x128xbf16>
    %1306 = vector.shape_cast %1305 : vector<1x16x128xbf16> to vector<16x128xbf16>
    %1307 = vector.shape_cast %1302 : vector<16x128xbf16> to vector<1x16x128xbf16>
    tpu.vector_store %arg10[%1304, %c0_376, %c0_377], %1307 {strides = array<i32>} : memref<8x16x128xbf16, #tpu.memory_space<vmem>>, vector<1x16x128xbf16>,
    %c7_i32_378 = arith.constant 7 : i32
    %1308 = arith.index_cast %c7_i32_378 : i32 to index
    %c0_379 = arith.constant 0 : index
    %c0_380 = arith.constant 0 : index
    %1309 = vector.load %arg11[%1308, %c0_379, %c0_380] : memref<8x16x384xbf16, #tpu.memory_space<vmem>>, vector<1x16x384xbf16>
    %1310 = vector.shape_cast %1309 : vector<1x16x384xbf16> to vector<16x384xbf16>
    %1311 = arith.extf %1310 : vector<16x384xbf16> to vector<16x384xf32>
    %1312 = arith.truncf %1301 : vector<16x128xf32> to vector<16x128xbf16>
    %cst_381 = arith.constant dense<0.000000e+00> : vector<16x384xf32>
    %1313 = tpu.matmul %1312, %1012, %cst_381 {dimension_numbers = #tpu.dot_dimension_numbers<[1], [0], [0], [1], [0, 0, 1, 1], [], []>} : vector<16x128xbf16>, vector<128x384xbf16>, vector<16x384xf32> -> vector<16x384xf32>
    %1314 = vector.extract_strided_slice %1311 {offsets = [0, 0], sizes = [16, 128], strides = [1, 1]} : vector<16x384xf32> to vector<16x128xf32>
    %1315 = vector.extract_strided_slice %1313 {offsets = [0, 0], sizes = [16, 128], strides = [1, 1]} : vector<16x384xf32> to vector<16x128xf32>
    %1316 = arith.addf %1314, %1315 : vector<16x128xf32>
    %1317 = arith.negf %1316 : vector<16x128xf32>
    %1318 = math.exp %1317 : vector<16x128xf32>
    %cst_382 = arith.constant 1.000000e+00 : f32
    %1319 = vector.broadcast %cst_382 : f32 to vector<16x128xf32>
    %1320 = arith.addf %1319, %1318 : vector<16x128xf32>
    %1321 = arith.divf %1319, %1320 : vector<16x128xf32>
    %1322 = vector.extract_strided_slice %1311 {offsets = [0, 128], sizes = [16, 128], strides = [1, 1]} : vector<16x384xf32> to vector<16x128xf32>
    %1323 = vector.extract_strided_slice %1313 {offsets = [0, 128], sizes = [16, 128], strides = [1, 1]} : vector<16x384xf32> to vector<16x128xf32>
    %1324 = arith.addf %1322, %1323 : vector<16x128xf32>
    %1325 = arith.negf %1324 : vector<16x128xf32>
    %1326 = math.exp %1325 : vector<16x128xf32>
    %cst_383 = arith.constant 1.000000e+00 : f32
    %1327 = vector.broadcast %cst_383 : f32 to vector<16x128xf32>
    %1328 = arith.addf %1327, %1326 : vector<16x128xf32>
    %1329 = arith.divf %1327, %1328 : vector<16x128xf32>
    %1330 = vector.extract_strided_slice %1311 {offsets = [0, 256], sizes = [16, 128], strides = [1, 1]} : vector<16x384xf32> to vector<16x128xf32>
    %1331 = vector.extract_strided_slice %1313 {offsets = [0, 256], sizes = [16, 128], strides = [1, 1]} : vector<16x384xf32> to vector<16x128xf32>
    %1332 = vector.broadcast %1014 : vector<1x128xf32> to vector<16x128xf32>
    %1333 = arith.addf %1331, %1332 : vector<16x128xf32>
    %1334 = arith.mulf %1321, %1333 : vector<16x128xf32>
    %1335 = arith.addf %1330, %1334 : vector<16x128xf32>
    %1336 = math.tanh %1335 : vector<16x128xf32>
    %cst_384 = arith.constant 1.000000e+00 : f32
    %1337 = vector.broadcast %cst_384 : f32 to vector<16x128xf32>
    %1338 = arith.subf %1337, %1329 : vector<16x128xf32>
    %1339 = arith.mulf %1338, %1336 : vector<16x128xf32>
    %1340 = arith.mulf %1329, %1301 : vector<16x128xf32>
    %1341 = arith.addf %1339, %1340 : vector<16x128xf32>
    %1342 = arith.truncf %1341 : vector<16x128xf32> to vector<16x128xbf16>
    %c0_i32_385 = arith.constant 0 : i32
    %1343 = arith.addi %c0_i32_385, %c7_i32_378 : i32
    %1344 = arith.index_cast %1343 : i32 to index
    %c0_386 = arith.constant 0 : index
    %c0_387 = arith.constant 0 : index
    %1345 = vector.load %arg10[%1344, %c0_386, %c0_387] : memref<8x16x128xbf16, #tpu.memory_space<vmem>>, vector<1x16x128xbf16>
    %1346 = vector.shape_cast %1345 : vector<1x16x128xbf16> to vector<16x128xbf16>
    %1347 = vector.shape_cast %1342 : vector<16x128xbf16> to vector<1x16x128xbf16>
    tpu.vector_store %arg10[%1344, %c0_386, %c0_387], %1347 {strides = array<i32>} : memref<8x16x128xbf16, #tpu.memory_space<vmem>>, vector<1x16x128xbf16>,
    %c8_i32_388 = arith.constant 8 : i32
    %c0_389 = arith.constant 0 : index
    %c0_390 = arith.constant 0 : index
    %c0_391 = arith.constant 0 : index
    %1348 = vector.load %arg10[%c0_389, %c0_390, %c0_391] : memref<8x16x128xbf16, #tpu.memory_space<vmem>>, vector<8x16x128xbf16>
    %1349 = vector.shape_cast %1348 : vector<8x16x128xbf16> to vector<128x128xbf16>
    %c0_392 = arith.constant 0 : index
    %c0_393 = arith.constant 0 : index
    %1350 = vector.load %arg6[%c0_392, %c0_393] : memref<128x4xbf16, #tpu.memory_space<vmem>>, vector<128x4xbf16>
    %cst_394 = arith.constant dense<0.000000e+00> : vector<128x4xf32>
    %1351 = tpu.matmul %1349, %1350, %cst_394 {dimension_numbers = #tpu.dot_dimension_numbers<[1], [0], [0], [1], [0, 0, 1, 1], [], []>} : vector<128x128xbf16>, vector<128x4xbf16>, vector<128x4xf32> -> vector<128x4xf32>
    %c0_395 = arith.constant 0 : index
    %c0_396 = arith.constant 0 : index
    %1352 = vector.load %arg7[%c0_395, %c0_396] : memref<1x4xf32, #tpu.memory_space<vmem>>, vector<1x4xf32>
    %1353 = vector.broadcast %1352 : vector<1x4xf32> to vector<128x4xf32>
    %1354 = arith.addf %1351, %1353 : vector<128x4xf32>
    %1355 = vector.shape_cast %1354 : vector<128x4xf32> to vector<8x16x4xf32>
    %c0_397 = arith.constant 0 : index
    %c0_398 = arith.constant 0 : index
    %c0_399 = arith.constant 0 : index
    %1356 = vector.load %arg8[%c0_397, %c0_398, %c0_399] : memref<8x16x4xf32, #tpu.memory_space<vmem>>, vector<8x16x4xf32>
    tpu.vector_store %arg8[%c0_397, %c0_398, %c0_399], %1355 {strides = array<i32>} : memref<8x16x4xf32, #tpu.memory_space<vmem>>, vector<8x16x4xf32>,
    return
  }
}

</mosaic_0001>

<bundles_post_ra>
// kernel: gru_autoencoder_forward.1
= control target key start
LH: loop header
LB: loop body
LE: loop exit
PB: predicated region body
PF: predicated region fallthrough
CT: control target
= control target key end

     0   :  { %v90_v0 = vlaneseq  ;;  %v9677_v1 = vmov 1983009808   ;;  %v13402_v3 = vmov 0   ;;  %vm147_vm0 = vcmask 1041408   ;;  %s13393_s1 = inlined_call_operand.vmem [shape: bf16[4,384], index: 1, kind: input, shape index: {}]   ;;  %s13394_s4 = inlined_call_operand.vmem [shape: f32[4,1,384], index: 4, kind: input, shape index: {}]   ;;  %s13395_s0 = inlined_call_operand.vmem [shape: f32[8,16,4], index: 0, kind: input, shape index: {}]   ;;  %s13396_s3 = inlined_call_operand.vmem [shape: bf16[4,128,384], index: 3, kind: input, shape index: {}]   ;;  %s13397_s5 = inlined_call_operand.vmem [shape: f32[4,1,128], index: 5, kind: input, shape index: {}]   ;;  %s13398_s2 = inlined_call_operand.vmem [shape: bf16[3,128,384], index: 2, kind: input, shape index: {}]   ;;  %s13399_s6 = inlined_call_operand.vmem [shape: bf16[128,4], index: 6, kind: input, shape index: {}]   ;;  %s13400_s7 = inlined_call_operand.vmem [shape: f32[1,4], index: 7, kind: input, shape index: {}]   ;;  %s13401_s8 = inlined_call_operand.vmem [shape: f32[8,16,4], index: 8, kind: output, shape index: {}]  }
   0x1   :  { %v108_v2 = vunpack.c.l.s4 %v9677_v1  ;;  %229 = vmatprep.mubr.bf16.mxu1 %v13402_v3  ;;  %189 = vmatprep.mubr.bf16.mxu0 %v13402_v3  ;;  %v87_v5 = vld [vmem:[%s13393_s1] sm:$0x3f]  ;;  %v7309_v10 = vld [vmem:[%s13394_s4 + $0x6] sm:$0x7]  ;;  %v7456_v11 = vld [vmem:[%s13394_s4 + $0x9] sm:$0x7] }
   0x2   :  { %v9728_v4 = vshrl.u32 %v90_v0, 7  ;;  %v7162_v7 = vld [vmem:[%s13394_s4 + $0x3] sm:$0x7]  ;;  %v106_v12 = vcombine.high %v87_v5, %v87_v5  ;;  %v72_v22 = vld [vmem:[%s13395_s0 + $0x48] sm:$0xff]  ;;  %vm122_vm1 = vcmask 31744   ;;  %v13404_v32 = vmov 0.0  }
   0x3   :  { %v109_v6 = vunpack.c.0.s8 %v108_v2  ;;  %v71_v20 = vld [vmem:[%s13395_s0 + $0x40] sm:$0xff]  ;;  %v64_v27 = vld [vmem:[%s13395_s0 + $0x8] sm:$0xff]  ;;  %v73_v33 = vld [vmem:[%s13395_s0 + $0x50] sm:$0xff]  ;;  %vm9680_vm2 = vmmov 0  }
   0x4   :  { %v9737_v8 = vsub.s32 0, %v9728_v4  ;;  %v9740_v9 = vsub.s32 1, %v9728_v4  ;;  %v63_v26 = vld [vmem:[%s13395_s0] sm:$0xff]  ;;  %v9781_v28 = vpack.c.bf16 %v72_v22, %v71_v20  ;;  %v74_v34 = vld [vmem:[%s13395_s0 + $0x58] sm:$0xff]  ;;  %v65_v35 = vld [vmem:[%s13395_s0 + $0x10] sm:$0xff] }
   0x5   :  { %v112_v13 = vsub.s32 %v109_v6, %v9728_v4  ;;  %v79_v30 = vpack.c.bf16 %v64_v27, %v63_v26  ;;  %v9789_v31 = vld [vmem:[%s13396_s3 + $0x4] ss:$12 sps:$4 sm:$0xff]   ;;  %v66_v36 = vld [vmem:[%s13395_s0 + $0x18] sm:$0xff]  ;;  %v9813_v37 = vld [vmem:[%s13396_s3 + $0x8] ss:$12 sps:$4 sm:$0xff]   ;;  %v9815_v38 = vpack.c.bf16 %v74_v34, %v73_v33 }
   0x6   :  { %v9750_v14 = vrot.slane %v7162_v7, %v9737_v8  ;;  %v9753_v15 = vrot.slane %v7162_v7, %v9740_v9  ;;  %v9756_v17 = vrot.slane %v7309_v10, %v9737_v8  ;;  %v9759_v18 = vrot.slane %v7309_v10, %v9740_v9  ;;  %v9821_v39 = vld [vmem:[%s13396_s3 + $0x20] ss:$12 sps:$4 sm:$0xff]   ;;  %v9841_v44 = vld [vmem:[%s13396_s3 + $0x38] ss:$12 sps:$4 sm:$0xff]   ;;  %v9851_v46 = vld [vmem:[%s13396_s3 + $0x50] ss:$12 sps:$4 sm:$0xff]  }
   0x7   :  { %v113_v16 = vrot.slane %v87_v5, %v112_v13  ;;  %v9762_v19 = vrot.slane %v7456_v11, %v9737_v8  ;;  %v9768_v21 = vrot.slane %v7456_v11, %v9740_v9  ;;  %v120_v25 = vrot.slane %v106_v12, %v112_v13  ;;  %v75_v41 = vld [vmem:[%s13395_s0 + $0x60] sm:$0xff]  ;;  %v76_v42 = vld [vmem:[%s13395_s0 + $0x68] sm:$0xff]  ;;  %v77_v49 = vld [vmem:[%s13395_s0 + $0x70] sm:$0xff] }
   0x8   :  { %13439 = vst [vmem:[#allocation5_spill] sm:$0xff] %v9750_v14  ;;  %13440 = vst [vmem:[#allocation6_spill] sm:$0xff] %v9753_v15  ;;  %v80_v40 = vpack.c.bf16 %v66_v36, %v65_v35  ;;  %v67_v43 = vld [vmem:[%s13395_s0 + $0x20] sm:$0xff]  ;;  %v68_v45 = vld [vmem:[%s13395_s0 + $0x28] sm:$0xff]  ;;  %v9853_v47 = vpack.c.bf16 %v76_v42, %v75_v41 }
   0x9   :  { %13441 = vst [vmem:[#allocation7_spill] sm:$0xff] %v9756_v17  ;;  %13442 = vst [vmem:[#allocation8_spill] sm:$0xff] %v9759_v18  ;;  %v121_v23 = vcombine.high %v113_v16, %v113_v16  ;;  %v149_v24 = vsel %vm147_vm0, %v113_v16, 0  ;;  %v155_v29 = vsel %vm147_vm0, %v120_v25, 0  ;;  %v81_v48 = vpack.c.bf16 %v68_v45, %v67_v43  ;;  %v78_v50 = vld [vmem:[%s13395_s0 + $0x78] sm:$0xff]  ;;  %v69_v52 = vld [vmem:[%s13395_s0 + $0x30] sm:$0xff] }
   0xa   :  { %13443 = vst [vmem:[#allocation9_spill] sm:$0xff] %v9762_v19  ;;  %13444 = vst [vmem:[#allocation10_spill] sm:$0xff] %v9768_v21  ;;  %v9866_v51 = vld [vmem:[%s13396_s3 + $0x68] ss:$12 sps:$4 sm:$0xff]   ;;  %v70_v53 = vld [vmem:[%s13395_s0 + $0x38] sm:$0xff]  ;;  %v86_v55 = vpack.c.bf16 %v78_v50, %v77_v49 }
   0xb   :  { %8694 = vmatprep.subr.msk.bf16.mxu1 %vm147_vm0, %v121_v23  ;;  %7055 = vmatprep.subr.msk.bf16.mxu0 %vm147_vm0, %v121_v23  ;;  %v9884_v54 = vld [vmem:[%s13396_s3 + $0x80] ss:$12 sps:$4 sm:$0xff]   ;;  %v82_v56 = vpack.c.bf16 %v70_v53, %v69_v52  ;;  %v9891_v57 = vld [vmem:[%s13396_s3 + $0x98] ss:$12 sps:$4 sm:$0xff]   ;;  %v9908_v59 = vld [vmem:[%s13396_s3 + $0x1c] ss:$12 sps:$4 sm:$0xff]  }
   0xc   :  { %8695 = vmatpush1.bf16.msra.mxu1 %v149_v24  ;;  %158 = vmatpush1.bf16.msra.mxu0 %v149_v24  ;;  %v9903_v58 = vld [vmem:[%s13396_s3] ss:$12 sps:$4 sm:$0xff]   ;;  %v9913_v60 = vld [vmem:[%s13396_s3 + $0xb0] ss:$12 sps:$4 sm:$0xff]   ;;  %v9920_v61 = vld [vmem:[%s13396_s3 + $0x18] ss:$12 sps:$4 sm:$0xff]  }
   0xd   :  { %8696 = vmatprep.subr.msk.bf16.mxu1 %vm147_vm0, %v120_v25  ;;  %7926 = vmatprep.subr.bf16.mxu0 %v13404_v32  ;;  %v9926_v62 = vld [vmem:[%s13396_s3 + $0x34] ss:$12 sps:$4 sm:$0xff]   ;;  %v9935_v63 = vld [vmem:[%s13396_s3 + $0x30] ss:$12 sps:$4 sm:$0xff]   ;;  %v9941_v0 = vld [vmem:[%s13396_s3 + $0x4c] ss:$12 sps:$4 sm:$0xff]  }
   0xe   :  { %v9950_v1 = vld [vmem:[%s13396_s3 + $0x48] ss:$12 sps:$4 sm:$0xff]   ;;  %v9959_v2 = vld [vmem:[%s13396_s3 + $0x64] ss:$12 sps:$4 sm:$0xff]   ;;  %v9971_v5 = vld [vmem:[%s13396_s3 + $0x60] ss:$12 sps:$4 sm:$0xff]  }
   0xf   :  { %7060 = vmatmul.mubr.msk.bf16.vlgmr.msra.gmra.mrb[0].mxu1 %vm122_vm1, %v9781_v28  ;;  %7056 = vmatmul.mubr.msk.bf16.vlgmr.msra.gmra.mrb[0].mxu0 %vm122_vm1, %v79_v30  ;;  %v9977_v6 = vld [vmem:[%s13396_s3 + $0x7c] ss:$12 sps:$4 sm:$0xff]   ;;  %v9987_v7 = vld [vmem:[%s13396_s3 + $0x78] ss:$12 sps:$4 sm:$0xff]   ;;  %v9995_v10 = vld [vmem:[%s13396_s3 + $0x94] ss:$12 sps:$4 sm:$0xff]  }
  0x10   :  { %7909 = vmatpush3.bf16.msra.mxu1 %v155_v29  ;;  %239 = vmatprep.mubr.bf16.mxu1 %v13402_v3  ;;  %v10003_v11 = vld [vmem:[%s13396_s3 + $0x90] ss:$12 sps:$4 sm:$0xff]   ;;  %v10009_v12 = vld [vmem:[%s13396_s3 + $0xac] ss:$12 sps:$4 sm:$0xff]   ;;  %v10018_v13 = vld [vmem:[%s13396_s3 + $0xa8] ss:$12 sps:$4 sm:$0xff]  }
  0x11   :  { %552 = vmatprep.subr.bf16.mxu1 %v9789_v31  ;;  %199 = vmatprep.mubr.bf16.mxu0 %v13402_v3  ;;  %v10051_v16 = vld [vmem:[%s13394_s4] sm:$0x7] }
  0x12   :  { %7927 = vmatpush3.bf16.msra.mxu0 %v9813_v37  ;;  %v10055_v20 = vrot.slane %v10051_v16, %v9737_v8  ;;  %v10059_v22 = vrot.slane %v10051_v16, %v9740_v9 }
  0x13   :  { %7928 = vmatprep.subr.bf16.mxu0 %v13404_v32 }
  0x16   :  { %7929 = vmatpush3.bf16.msra.mxu0 %v9821_v39 }
  0x17   :  { %7061 = vmatmul.mubr.msk.bf16.gmra.mrb[4].mxu1 %vm122_vm1, %v9815_v38  ;;  %7057 = vmatmul.mubr.msk.bf16.gmra.mrb[4].mxu0 %vm122_vm1, %v80_v40 }
  0x18   :  { %249 = vmatprep.mubr.bf16.mxu1 %v13402_v3  ;;  %7930 = vmatprep.subr.bf16.mxu0 %v13404_v32 }
  0x19   :  { %209 = vmatprep.mubr.bf16.mxu0 %v13402_v3 }
  0x1a   :  { %7931 = vmatpush3.bf16.msra.mxu0 %v9841_v44 }
  0x1b   :  { %7932 = vmatprep.subr.bf16.mxu0 %v13404_v32 }
  0x1e   :  { %7933 = vmatpush3.bf16.msra.mxu0 %v9851_v46 }
  0x1f   :  { %7062 = vmatmul.mubr.msk.bf16.gmra.mrb[8].mxu1 %vm122_vm1, %v9853_v47  ;;  %7058 = vmatmul.mubr.msk.bf16.gmra.mrb[8].mxu0 %vm122_vm1, %v81_v48 }
  0x20   :  { %259 = vmatprep.mubr.bf16.mxu1 %v13402_v3  ;;  %7934 = vmatprep.subr.bf16.mxu0 %v13404_v32 }
  0x21   :  { %219 = vmatprep.mubr.bf16.mxu0 %v13402_v3 }
  0x22   :  { %7935 = vmatpush3.bf16.msra.mxu0 %v9866_v51 }
  0x23   :  { %7936 = vmatprep.subr.bf16.mxu0 %v13404_v32 }
  0x26   :  { %7937 = vmatpush3.bf16.msra.mxu0 %v9884_v54 }
  0x27   :  { %7063 = vmatmul.mubr.msk.bf16.gmra.mrb[12].mxu1 %vm122_vm1, %v86_v55  ;;  %7059 = vmatmul.mubr.msk.bf16.gmra.mrb[12].mxu0 %vm122_vm1, %v82_v56 }
  0x28   :  { %7910 = vmatprep.mubr.msk.bf16.mxu1 %vm122_vm1, %v79_v30  ;;  %7938 = vmatprep.subr.bf16.mxu0 %v13404_v32 }
  0x29   :  { %7942 = vmatprep.mubr.msk.bf16.mxu0 %vm9680_vm2, %v13404_v32 }
  0x2a   :  { %7939 = vmatpush3.bf16.msra.mxu0 %v9891_v57 }
  0x2b   :  { %7940 = vmatprep.subr.bf16.mxu0 %v13404_v32 }
  0x2e   :  { %7941 = vmatpush3.bf16.msra.mxu0 %v9913_v60 }
  0x2f   :  { %7911 = vmatmul.mubr.msk.bf16.vlgmr.msra.gmra.mrb[16].mxu1 %vm122_vm1, %v80_v40  ;;  %7946 = vmatprep.subr.bf16.mxu0 %v13404_v32 }
  0x30   :  { %553 = vmatpush1.bf16.msra.mxu1 %v9903_v58  ;;  %7914 = vmatprep.mubr.msk.bf16.mxu1 %vm122_vm1, %v81_v48 }
  0x31   :  { %554 = vmatprep.subr.bf16.mxu1 %v9908_v59  ;;  %7943 = vmatmul.mubr.bf16.vlgmr.msra.gmra.mrb[16].mxu0 %v13402_v3 }
  0x32   :  { %7947 = vmatpush3.bf16.msra.mxu0 %v9813_v37  ;;  %7962 = vmatprep.mubr.msk.bf16.mxu0 %vm9680_vm2, %v13404_v32 }
  0x33   :  { %7948 = vmatprep.subr.bf16.mxu0 %v13404_v32 }
  0x34   :  { %555 = vmatpush1.bf16.msra.mxu1 %v9920_v61 }
  0x35   :  { %556 = vmatprep.subr.bf16.mxu1 %v9926_v62 }
  0x36   :  { %7949 = vmatpush3.bf16.msra.mxu0 %v9821_v39 }
  0x37   :  { %7915 = vmatmul.mubr.msk.bf16.gmra.mrb[20].mxu1 %vm122_vm1, %v82_v56  ;;  %7950 = vmatprep.subr.bf16.mxu0 %v13404_v32 }
  0x38   :  { %557 = vmatpush1.bf16.msra.mxu1 %v9935_v63  ;;  %7918 = vmatprep.mubr.msk.bf16.mxu1 %vm122_vm1, %v9781_v28 }
  0x39   :  { %558 = vmatprep.subr.bf16.mxu1 %v9941_v0 }
  0x3a   :  { %7951 = vmatpush3.bf16.msra.mxu0 %v9841_v44 }
  0x3b   :  { %7952 = vmatprep.subr.bf16.mxu0 %v13404_v32 }
  0x3c   :  { %559 = vmatpush1.bf16.msra.mxu1 %v9950_v1 }
  0x3d   :  { %560 = vmatprep.subr.bf16.mxu1 %v9959_v2 }
  0x3e   :  { %7953 = vmatpush3.bf16.msra.mxu0 %v9851_v46 }
  0x3f   :  { %7919 = vmatmul.mubr.msk.bf16.gmra.mrb[24].mxu1 %vm122_vm1, %v9815_v38  ;;  %7954 = vmatprep.subr.bf16.mxu0 %v13404_v32 }
  0x40   :  { %561 = vmatpush1.bf16.msra.mxu1 %v9971_v5  ;;  %7922 = vmatprep.mubr.msk.bf16.mxu1 %vm122_vm1, %v9853_v47 }
  0x41   :  { %562 = vmatprep.subr.bf16.mxu1 %v9977_v6 }
  0x42   :  { %7955 = vmatpush3.bf16.msra.mxu0 %v9866_v51 }
  0x43   :  { %7956 = vmatprep.subr.bf16.mxu0 %v13404_v32 }
  0x44   :  { %563 = vmatpush1.bf16.msra.mxu1 %v9987_v7 }
  0x45   :  { %564 = vmatprep.subr.bf16.mxu1 %v9995_v10 }
  0x46   :  { %7957 = vmatpush3.bf16.msra.mxu0 %v9884_v54 }
  0x47   :  { %7923 = vmatmul.mubr.msk.bf16.gmra.mrb[28].mxu1 %vm122_vm1, %v86_v55  ;;  %7958 = vmatprep.subr.bf16.mxu0 %v13404_v32 }
  0x48   :  { %565 = vmatpush1.bf16.msra.mxu1 %v10003_v11  ;;  %584 = vmatprep.mubr.bf16.mxu1 %v13402_v3 }
  0x49   :  { %566 = vmatprep.subr.bf16.mxu1 %v10009_v12 }
  0x4a   :  { %7959 = vmatpush3.bf16.msra.mxu0 %v9891_v57 }
  0x4b   :  { %7960 = vmatprep.subr.bf16.mxu0 %v13404_v32 }
  0x4c   :  { %567 = vmatpush1.bf16.msra.mxu1 %v10018_v13 }
  0x4d   :  { %698 = vmatprep.subr.bf16.mxu1 %v9789_v31 }
  0x4e   :  { %7961 = vmatpush3.bf16.msra.mxu0 %v9913_v60 }
  0x4f   :  { %585 = vmatmul.mubr.bf16.vlgmr.msra.gmra.mrb[32].mxu1 %v13402_v3  ;;  %7966 = vmatprep.subr.bf16.mxu0 %v13404_v32 }
  0x50   :  { %699 = vmatpush1.bf16.msra.mxu1 %v9903_v58  ;;  %730 = vmatprep.mubr.bf16.mxu1 %v13402_v3 }
  0x51   :  { %700 = vmatprep.subr.bf16.mxu1 %v9908_v59 }
  0x54   :  { %701 = vmatpush1.bf16.msra.mxu1 %v9920_v61 }
  0x55   :  { %702 = vmatprep.subr.bf16.mxu1 %v9926_v62 }
  0x58   :  { %703 = vmatpush1.bf16.msra.mxu1 %v9935_v63 }
  0x59   :  { %704 = vmatprep.subr.bf16.mxu1 %v9941_v0 }
  0x5c   :  { %705 = vmatpush1.bf16.msra.mxu1 %v9950_v1 }
  0x5d   :  { %706 = vmatprep.subr.bf16.mxu1 %v9959_v2 }
  0x60   :  { %707 = vmatpush1.bf16.msra.mxu1 %v9971_v5 }
  0x61   :  { %708 = vmatprep.subr.bf16.mxu1 %v9977_v6 }
  0x64   :  { %709 = vmatpush1.bf16.msra.mxu1 %v9987_v7 }
  0x65   :  { %710 = vmatprep.subr.bf16.mxu1 %v9995_v10 }
  0x68   :  { %711 = vmatpush1.bf16.msra.mxu1 %v10003_v11 }
  0x69   :  { %712 = vmatprep.subr.bf16.mxu1 %v10009_v12 }
  0x6c   :  { %713 = vmatpush1.bf16.msra.mxu1 %v10018_v13 }
  0x6d   :  { %839 = vmatprep.subr.bf16.mxu1 %v9789_v31 }
  0xe2   :  { %v231_v23 = vpop.f32.mrb[0].mxu1  ;;  %v191_v24 = vpop.f32.mrb[0].mxu0 }
  0xe3   :  { %v232_v25 = vadd.f32 %v231_v23, %v10055_v20  ;;  %v233_v26 = vpop.f32.mrb[1].mxu1  ;;  %v192_v27 = vadd.f32 %v191_v24, %v10055_v20  ;;  %v193_v28 = vpop.f32.mrb[1].mxu0 }
  0xe4   :  { %v234_v29 = vadd.f32 %v233_v26, %v10059_v22  ;;  %v235_v30 = vpop.f32.mrb[2].mxu1  ;;  %v194_v33 = vadd.f32 %v193_v28, %v10059_v22  ;;  %v195_v34 = vpop.f32.mrb[2].mxu0 }
  0xe5   :  { %v236_v8 = vadd.f32 %v235_v30, %v10055_v20  ;;  %v237_v35 = vpop.f32.mrb[3].mxu1  ;;  %v196_v9 = vadd.f32 %v195_v34, %v10055_v20  ;;  %v197_v36 = vpop.f32.mrb[3].mxu0 }
  0xe6   :  { %v238_v38 = vadd.f32 %v237_v35, %v10059_v22  ;;  %v198_v40 = vadd.f32 %v197_v36, %v10059_v22 }
  0xe7   :  { %v10069_v41 = vpack.c.bf16 %v236_v8, %v232_v25  ;;  %v10071_v42 = vpack.c.bf16 %v196_v9, %v192_v27 }
  0xe8   :  { %v10073_v43 = vpack.c.bf16 %v238_v38, %v234_v29  ;;  %v10075_v45 = vpack.c.bf16 %v198_v40, %v194_v33 }
  0xea   :  { %v241_v47 = vpop.f32.mrb[4].mxu1  ;;  %v201_v48 = vpop.f32.mrb[4].mxu0 }
  0xeb   :  { %v242_v49 = vadd.f32 %v241_v47, %v10055_v20  ;;  %v243_v50 = vpop.f32.mrb[5].mxu1  ;;  %v202_v52 = vadd.f32 %v201_v48, %v10055_v20  ;;  %v203_v53 = vpop.f32.mrb[5].mxu0 }
  0xec   :  { %v244_v55 = vadd.f32 %v243_v50, %v10059_v22  ;;  %v245_v56 = vpop.f32.mrb[6].mxu1  ;;  %v204_v23 = vadd.f32 %v203_v53, %v10059_v22  ;;  %v205_v24 = vpop.f32.mrb[6].mxu0 }
  0xed   :  { %v246_v25 = vadd.f32 %v245_v56, %v10055_v20  ;;  %v247_v26 = vpop.f32.mrb[7].mxu1  ;;  %v206_v27 = vadd.f32 %v205_v24, %v10055_v20  ;;  %v207_v28 = vpop.f32.mrb[7].mxu0 }
  0xee   :  { %v248_v29 = vadd.f32 %v247_v26, %v10059_v22  ;;  %v208_v30 = vadd.f32 %v207_v28, %v10059_v22 }
  0xef   :  { %v10085_v33 = vpack.c.bf16 %v246_v25, %v242_v49  ;;  %v10087_v34 = vpack.c.bf16 %v206_v27, %v202_v52 }
  0xf0   :  { %v10089_v8 = vpack.c.bf16 %v248_v29, %v244_v55  ;;  %v10091_v35 = vpack.c.bf16 %v208_v30, %v204_v23 }
  0xf2   :  { %v251_v9 = vpop.f32.mrb[8].mxu1  ;;  %v211_v36 = vpop.f32.mrb[8].mxu0 }
  0xf3   :  { %v252_v38 = vadd.f32 %v251_v9, %v10055_v20  ;;  %v253_v40 = vpop.f32.mrb[9].mxu1  ;;  %v212_v47 = vadd.f32 %v211_v36, %v10055_v20  ;;  %v213_v48 = vpop.f32.mrb[9].mxu0 }
  0xf4   :  { %v254_v50 = vadd.f32 %v253_v40, %v10059_v22  ;;  %v255_v53 = vpop.f32.mrb[10].mxu1  ;;  %v214_v49 = vadd.f32 %v213_v48, %v10059_v22  ;;  %v215_v56 = vpop.f32.mrb[10].mxu0  ;;  %v10110_v40 = vsub.s32 2, %v9728_v4 }
  0xf5   :  { %v256_v52 = vadd.f32 %v255_v53, %v10055_v20  ;;  %v257_v55 = vpop.f32.mrb[11].mxu1  ;;  %v216_v23 = vadd.f32 %v215_v56, %v10055_v20  ;;  %v217_v24 = vpop.f32.mrb[11].mxu0 }
  0xf6   :  { %v258_v25 = vadd.f32 %v257_v55, %v10059_v22  ;;  %v218_v26 = vadd.f32 %v217_v24, %v10059_v22  ;;  %13446 = vst [vmem:[#allocation12_spill] sm:$0xff] %v10110_v40 }
  0xf7   :  { %v10101_v27 = vpack.c.bf16 %v256_v52, %v252_v38  ;;  %v10103_v28 = vpack.c.bf16 %v216_v23, %v212_v47 }
  0xf8   :  { %v10105_v29 = vpack.c.bf16 %v258_v25, %v254_v50  ;;  %v10107_v30 = vpack.c.bf16 %v218_v26, %v214_v49 }
  0xfa   :  { %13445 = vst [vmem:[#allocation11_spill] sm:$0xff] %v10105_v29  ;;  %v261_v9 = vpop.f32.mrb[12].mxu1  ;;  %v221_v36 = vpop.f32.mrb[12].mxu0 }
  0xfb   :  { %v262_v48 = vadd.f32 %v261_v9, %v10055_v20  ;;  %v263_v53 = vpop.f32.mrb[13].mxu1  ;;  %v222_v56 = vadd.f32 %v221_v36, %v10055_v20  ;;  %v223_v55 = vpop.f32.mrb[13].mxu0  ;;  %v101_v36 = vrot.slane %v10051_v16, %v10110_v40 }
  0xfc   :  { %v264_v38 = vadd.f32 %v263_v53, %v10059_v22  ;;  %v265_v52 = vpop.f32.mrb[14].mxu1  ;;  %v224_v47 = vadd.f32 %v223_v55, %v10059_v22  ;;  %v225_v50 = vpop.f32.mrb[14].mxu0 }
  0xfd   :  { %v266_v49 = vadd.f32 %v265_v52, %v10055_v20  ;;  %v267_v23 = vpop.f32.mrb[15].mxu1  ;;  %v226_v24 = vadd.f32 %v225_v50, %v10055_v20  ;;  %v227_v25 = vpop.f32.mrb[15].mxu0 }
  0xfe   :  { %v268_v4 = vadd.f32 %v267_v23, %v10059_v22  ;;  %v228_v26 = vadd.f32 %v227_v25, %v10059_v22 }
  0xff   :  { %v10120_v9 = vpack.c.bf16 %v266_v49, %v262_v48  ;;  %v10124_v53 = vpack.c.bf16 %v226_v24, %v222_v56 }
 0x100   :  { %v10126_v3 = vpack.c.bf16 %v268_v4, %v264_v38  ;;  %v10128_v55 = vpack.c.bf16 %v228_v26, %v224_v47 }
 0x101   :  { %13447 = vst [vmem:[#allocation13_spill] sm:$0xff] %v10120_v9 }
 0x102   :  { %13448 = vst [vmem:[#allocation14_spill] sm:$0xff] %v10126_v3  ;;  %v7912_v52 = vpop.f32.mrb[16].mxu1 }
 0x103   :  { %v313_v32 = vadd.f32 %v7912_v52, %v101_v36  ;;  %v304_v21 = vpop.f32.mrb[17].mxu1 }
 0x104   :  { %v7913_v20 = vpop.f32.mrb[18].mxu1  ;;  %v305_v23 = vadd.f32 %v304_v21, %v101_v36  ;;  %v10132_v48 = vpop.f32.mrb[16].mxu0 }
 0x105   :  { %v316_v50 = vadd.f32 %v7913_v20, %v101_v36  ;;  %v307_v19 = vpop.f32.mrb[19].mxu1  ;;  %v7944_v16 = vpop.f32.mrb[17].mxu0 }
 0x106   :  { %v308_v18 = vadd.f32 %v307_v19, %v101_v36  ;;  %v10136_v56 = vpop.f32.mrb[18].mxu0 }
 0x107   :  { %v10130_v22 = vpack.c.bf16 %v316_v50, %v313_v32  ;;  %v7945_v47 = vpop.f32.mrb[19].mxu0 }
 0x108   :  { %v10134_v49 = vpack.c.bf16 %v308_v18, %v305_v23 }
 0x10a   :  { %v7916_v38 = vpop.f32.mrb[20].mxu1 }
 0x10b   :  { %v329_v24 = vadd.f32 %v7916_v38, %v101_v36  ;;  %v320_v25 = vpop.f32.mrb[21].mxu1 }
 0x10c   :  { %v321_v4 = vadd.f32 %v320_v25, %v101_v36  ;;  %v7917_v26 = vpop.f32.mrb[22].mxu1 }
 0x10d   :  { %v332_v52 = vadd.f32 %v7917_v26, %v101_v36  ;;  %v323_v20 = vpop.f32.mrb[23].mxu1 }
 0x10e   :  { %v324_v17 = vadd.f32 %v323_v20, %v101_v36 }
 0x10f   :  { %v10138_v21 = vpack.c.bf16 %v332_v52, %v329_v24 }
 0x110   :  { %v10140_v19 = vpack.c.bf16 %v324_v17, %v321_v4 }
 0x112   :  { %v7920_v32 = vpop.f32.mrb[24].mxu1 }
 0x113   :  { %v345_v50 = vadd.f32 %v7920_v32, %v101_v36  ;;  %v336_v18 = vpop.f32.mrb[25].mxu1  ;;  %v418_v32 = vunpack.c.l.bf16 %v10071_v42 }
 0x114   :  { %v337_v23 = vadd.f32 %v336_v18, %v101_v36  ;;  %v7921_v16 = vpop.f32.mrb[26].mxu1 }
 0x115   :  { %v348_v15 = vadd.f32 %v7921_v16, %v101_v36  ;;  %v339_v14 = vpop.f32.mrb[27].mxu1 }
 0x116   :  { %v340_v40 = vadd.f32 %v339_v14, %v101_v36  ;;  %v419_v14 = vunpack.c.l.bf16 %v10075_v45 }
 0x117   :  { %v10142_v47 = vpack.c.bf16 %v348_v15, %v345_v50 }
 0x118   :  { %v10144_v38 = vpack.c.bf16 %v340_v40, %v337_v23  ;;  %v421_v23 = vunpack.c.h.bf16 %v10071_v42 }
 0x11a   :  { %v7924_v25 = vpop.f32.mrb[28].mxu1 }
 0x11b   :  { %v361_v26 = vadd.f32 %v7924_v25, %v101_v36  ;;  %v352_v3 = vpop.f32.mrb[29].mxu1 }
 0x11c   :  { %v353_v20 = vadd.f32 %v352_v3, %v101_v36  ;;  %v7925_v24 = vpop.f32.mrb[30].mxu1  ;;  %v422_v3 = vunpack.c.h.bf16 %v10075_v45  ;;  %v10157_v45 = vld [vmem:[%s13397_s5] ss:$0 sm:$0xff] }
 0x11d   :  { %v364_v52 = vadd.f32 %v7925_v24, %v101_v36  ;;  %v355_v17 = vpop.f32.mrb[31].mxu1 }
 0x11e   :  { %v356_v4 = vadd.f32 %v355_v17, %v101_v36 }
 0x11f   :  { %v10146_v9 = vpack.c.bf16 %v364_v52, %v361_v26 }
 0x120   :  { %v10149_v18 = vpack.c.bf16 %v356_v4, %v353_v20 }
 0x121   :  { %13449 = vst [vmem:[#allocation15_spill] sm:$0xff] %v10146_v9 }
 0x122   :  { %v586_v15 = vpop.f32.mrb[32].mxu1 }
 0x123   :  { %v636_v50 = vadd.f32 %v586_v15, %v418_v32  ;;  %v588_v40 = vpop.f32.mrb[33].mxu1 }
 0x124   :  { %v650_v16 = vadd.f32 %v588_v40, %v419_v14  ;;  %v590_v25 = vpop.f32.mrb[34].mxu1 }
 0x125   :  { %v7096_v24 = vmul.f32 -1.442695, %v636_v50  ;;  %v637_v29 = vadd.f32 %v590_v25, %v421_v23  ;;  %v592_v36 = vpop.f32.mrb[35].mxu1  ;;  %v420_v25 = vunpack.c.l.bf16 %v10134_v49 }
 0x126   :  { %v651_v26 = vadd.f32 %v592_v36, %v422_v3  ;;  %v7098_v20 = vmul.f32 -1.442695, %v650_v16 }
 0x127   :  { %8934 = vpow2.f32 %v7096_v24  ;;  %v7097_v52 = vmul.f32 -1.442695, %v637_v29  ;;  %v670_v29 = vadd.f32 %v10157_v45, %v10132_v48  ;;  %v671_v24 = vadd.f32 %v10157_v45, %v10136_v56 }
 0x128   :  { %v7099_v17 = vmul.f32 -1.442695, %v651_v26  ;;  %v423_v26 = vunpack.c.h.bf16 %v10134_v49 }
 0x129   :  { %8936 = vpow2.f32 %v7097_v52 }
 0x12a   :  { %8938 = vpow2.f32 %v7098_v20 }
 0x12b   :  { %8940 = vpow2.f32 %v7099_v17 }
 0x131   :  { %v8935_v4 = vpop.eup %8934 }
 0x132   :  { %v644_v32 = vadd.f32 1.0, %v8935_v4 }
 0x133   :  { %v8937_v15 = vpop.eup %8936 }
 0x134   :  { %8942 = vrcp.f32 %v644_v32  ;;  %v645_v42 = vadd.f32 1.0, %v8937_v15  ;;  %v8939_v14 = vpop.eup %8938 }
 0x135   :  { %v8941_v50 = vpop.eup %8940  ;;  %v658_v40 = vadd.f32 1.0, %v8939_v14 }
 0x136   :  { %8944 = vrcp.f32 %v645_v42  ;;  %v659_v23 = vadd.f32 1.0, %v8941_v50 }
 0x137   :  { %8946 = vrcp.f32 %v658_v40 }
 0x138   :  { %8948 = vrcp.f32 %v659_v23  ;;  %v13450_v23 = vmov 0.0  }
 0x13e   :  { %v8943_v16 = vpop.eup %8942 }
 0x13f   :  { %v672_v3 = vmul.f32 %v8943_v16, %v670_v29 }
 0x140   :  { %v8945_v36 = vpop.eup %8944 }
 0x141   :  { %v674_v52 = vadd.f32 %v672_v3, %v420_v25  ;;  %v673_v20 = vmul.f32 %v8945_v36, %v671_v24  ;;  %v8947_v4 = vpop.eup %8946  ;;  %v13451_v25 = vmov 0   ;;  %v693_v3 = vunpack.c.l.bf16 %v10091_v35 }
 0x142   :  { %v8949_v48 = vpop.eup %8948  ;;  %v678_v32 = vsub.f32 1.0, %v8947_v4  ;;  %v682_v50 = vmul.f32 0.0, %v8947_v4 }
 0x143   :  { %8950 = vtanh.f32 %v674_v52  ;;  %v675_v17 = vadd.f32 %v673_v20, %v423_v26  ;;  %v679_v42 = vsub.f32 1.0, %v8949_v48  ;;  %v683_v16 = vmul.f32 0.0, %v8949_v48 }
 0x144   :  { %v695_v52 = vunpack.c.h.bf16 %v10087_v34  ;;  %v696_v48 = vunpack.c.h.bf16 %v10091_v35 }
 0x145   :  { %8952 = vtanh.f32 %v675_v17 }
 0x14d   :  { %v8951_v15 = vpop.eup %8950 }
 0x14e   :  { %v680_v14 = vmul.f32 %v8951_v15, %v678_v32 }
 0x14f   :  { %v8953_v40 = vpop.eup %8952 }
 0x150   :  { %v681_v29 = vmul.f32 %v8953_v40, %v679_v42  ;;  %v10165_v56 = vadd.f32 %v682_v50, %v680_v14 }
 0x152   :  { %v10167_v9 = vadd.f32 %v683_v16, %v681_v29 }
 0x154   :  { %v10171_v49 = vpack.c.bf16 %v10167_v9, %v10165_v56 }
 0x156   :  { %731 = vmatmul.mubr.bf16.vlgmr.msra.gmra.mrb[36].mxu1 %v10171_v49  ;;  %7963 = vmatmul.mubr.bf16.vlgmr.msra.gmra.mrb[20].mxu0 %v10171_v49 }
 0x157   :  { %840 = vmatpush1.bf16.msra.mxu1 %v9903_v58  ;;  %7967 = vmatpush3.bf16.msra.mxu0 %v9813_v37  ;;  %v692_v37 = vunpack.c.l.bf16 %v10087_v34 }
 0x158   :  { %841 = vmatprep.subr.bf16.mxu1 %v9908_v59  ;;  %7968 = vmatprep.subr.bf16.mxu0 %v13450_v23 }
 0x159   :  { %871 = vmatprep.mubr.bf16.mxu1 %v13451_v25  ;;  %7982 = vmatprep.mubr.msk.bf16.mxu0 %vm9680_vm2, %v13450_v23 }
 0x15b   :  { %842 = vmatpush1.bf16.msra.mxu1 %v9920_v61  ;;  %7969 = vmatpush3.bf16.msra.mxu0 %v9821_v39 }
 0x15c   :  { %843 = vmatprep.subr.bf16.mxu1 %v9926_v62  ;;  %7970 = vmatprep.subr.bf16.mxu0 %v13450_v23 }
 0x15f   :  { %844 = vmatpush1.bf16.msra.mxu1 %v9935_v63  ;;  %7971 = vmatpush3.bf16.msra.mxu0 %v9841_v44 }
 0x160   :  { %845 = vmatprep.subr.bf16.mxu1 %v9941_v0  ;;  %7972 = vmatprep.subr.bf16.mxu0 %v13450_v23 }
 0x163   :  { %846 = vmatpush1.bf16.msra.mxu1 %v9950_v1  ;;  %7973 = vmatpush3.bf16.msra.mxu0 %v9851_v46 }
 0x164   :  { %847 = vmatprep.subr.bf16.mxu1 %v9959_v2  ;;  %7974 = vmatprep.subr.bf16.mxu0 %v13450_v23 }
 0x167   :  { %848 = vmatpush1.bf16.msra.mxu1 %v9971_v5  ;;  %7975 = vmatpush3.bf16.msra.mxu0 %v9866_v51 }
 0x168   :  { %849 = vmatprep.subr.bf16.mxu1 %v9977_v6  ;;  %7976 = vmatprep.subr.bf16.mxu0 %v13450_v23 }
 0x16b   :  { %850 = vmatpush1.bf16.msra.mxu1 %v9987_v7  ;;  %7977 = vmatpush3.bf16.msra.mxu0 %v9884_v54 }
 0x16c   :  { %851 = vmatprep.subr.bf16.mxu1 %v9995_v10  ;;  %7978 = vmatprep.subr.bf16.mxu0 %v13450_v23 }
 0x16f   :  { %852 = vmatpush1.bf16.msra.mxu1 %v10003_v11  ;;  %7979 = vmatpush3.bf16.msra.mxu0 %v9891_v57 }
 0x170   :  { %853 = vmatprep.subr.bf16.mxu1 %v10009_v12  ;;  %7980 = vmatprep.subr.bf16.mxu0 %v13450_v23 }
 0x173   :  { %854 = vmatpush1.bf16.msra.mxu1 %v10018_v13  ;;  %7981 = vmatpush3.bf16.msra.mxu0 %v9913_v60 }
 0x174   :  { %980 = vmatprep.subr.bf16.mxu1 %v9789_v31  ;;  %7986 = vmatprep.subr.bf16.mxu0 %v13450_v23 }
 0x229   :  { %v732_v39 = vpop.f32.mrb[36].mxu1  ;;  %v775_v44 = vpop.f32.mrb[20].mxu0 }
 0x22a   :  { %v782_v24 = vadd.f32 %v732_v39, %v692_v37  ;;  %v734_v36 = vpop.f32.mrb[37].mxu1  ;;  %v7964_v26 = vpop.f32.mrb[21].mxu0 }
 0x22b   :  { %v796_v20 = vadd.f32 %v734_v36, %v693_v3  ;;  %v736_v17 = vpop.f32.mrb[38].mxu1  ;;  %v778_v4 = vpop.f32.mrb[22].mxu0  ;;  %v810_v36 = vadd.f32 %v10157_v45, %v775_v44 }
 0x22c   :  { %v7101_v32 = vmul.f32 -1.442695, %v782_v24  ;;  %v783_v31 = vadd.f32 %v736_v17, %v695_v52  ;;  %v738_v15 = vpop.f32.mrb[39].mxu1  ;;  %v7965_v42 = vpop.f32.mrb[23].mxu0  ;;  %v694_v17 = vunpack.c.l.bf16 %v10130_v22 }
 0x22d   :  { %v797_v14 = vadd.f32 %v738_v15, %v696_v48  ;;  %v7103_v40 = vmul.f32 -1.442695, %v796_v20  ;;  %v811_v20 = vadd.f32 %v10157_v45, %v778_v4 }
 0x22e   :  { %8954 = vpow2.f32 %v7101_v32  ;;  %v7102_v50 = vmul.f32 -1.442695, %v783_v31  ;;  %v697_v31 = vunpack.c.h.bf16 %v10130_v22 }
 0x22f   :  { %v7104_v29 = vmul.f32 -1.442695, %v797_v14 }
 0x230   :  { %8956 = vpow2.f32 %v7102_v50 }
 0x231   :  { %8958 = vpow2.f32 %v7103_v40 }
 0x232   :  { %8960 = vpow2.f32 %v7104_v29 }
 0x238   :  { %v8955_v16 = vpop.eup %8954 }
 0x239   :  { %v790_v37 = vadd.f32 1.0, %v8955_v16 }
 0x23a   :  { %v8957_v34 = vpop.eup %8956 }
 0x23b   :  { %8962 = vrcp.f32 %v790_v37  ;;  %v791_v39 = vadd.f32 1.0, %v8957_v34  ;;  %v8959_v3 = vpop.eup %8958 }
 0x23c   :  { %v8961_v35 = vpop.eup %8960  ;;  %v804_v24 = vadd.f32 1.0, %v8959_v3 }
 0x23d   :  { %8964 = vrcp.f32 %v791_v39  ;;  %v805_v26 = vadd.f32 1.0, %v8961_v35 }
 0x23e   :  { %8966 = vrcp.f32 %v804_v24 }
 0x23f   :  { %8968 = vrcp.f32 %v805_v26 }
 0x245   :  { %v8963_v52 = vpop.eup %8962 }
 0x246   :  { %v812_v48 = vmul.f32 %v8963_v52, %v810_v36 }
 0x247   :  { %v8965_v32 = vpop.eup %8964 }
 0x248   :  { %v814_v15 = vadd.f32 %v812_v48, %v694_v17  ;;  %v813_v42 = vmul.f32 %v8965_v32, %v811_v20  ;;  %v8967_v50 = vpop.eup %8966  ;;  %v837_v32 = vunpack.c.h.bf16 %v10107_v30 }
 0x249   :  { %v8969_v40 = vpop.eup %8968  ;;  %v818_v44 = vsub.f32 1.0, %v8967_v50  ;;  %v822_v34 = vmul.f32 %v8967_v50, %v10165_v56  ;;  %v10234_v56 = vld [vmem:[%s13396_s3 + $0x8] ss:$12 sps:$4 sm:$0xff]  }
 0x24a   :  { %8970 = vtanh.f32 %v814_v15  ;;  %v815_v14 = vadd.f32 %v813_v42, %v697_v31  ;;  %v819_v16 = vsub.f32 1.0, %v8969_v40  ;;  %v823_v4 = vmul.f32 %v8969_v40, %v10167_v9 }
 0x24b   :  { %v834_v9 = vunpack.c.l.bf16 %v10107_v30 }
 0x24c   :  { %8972 = vtanh.f32 %v815_v14 }
 0x254   :  { %v8971_v29 = vpop.eup %8970 }
 0x255   :  { %v820_v37 = vmul.f32 %v8971_v29, %v818_v44 }
 0x256   :  { %v8973_v39 = vpop.eup %8972 }
 0x257   :  { %v821_v3 = vmul.f32 %v8973_v39, %v819_v16  ;;  %v10220_v35 = vadd.f32 %v822_v34, %v820_v37 }
 0x259   :  { %v10222_v22 = vadd.f32 %v823_v4, %v821_v3 }
 0x25b   :  { %v10226_v24 = vpack.c.bf16 %v10222_v22, %v10220_v35 }
 0x25d   :  { %872 = vmatmul.mubr.bf16.vlgmr.msra.gmra.mrb[40].mxu1 %v10226_v24  ;;  %7983 = vmatmul.mubr.bf16.vlgmr.msra.gmra.mrb[24].mxu0 %v10226_v24 }
 0x25e   :  { %981 = vmatpush1.bf16.msra.mxu1 %v9903_v58  ;;  %7987 = vmatpush3.bf16.msra.mxu0 %v10234_v56  ;;  %v10246_v58 = vld [vmem:[%s13396_s3 + $0x20] ss:$12 sps:$4 sm:$0xff]  }
 0x25f   :  { %982 = vmatprep.subr.bf16.mxu1 %v9908_v59  ;;  %7988 = vmatprep.subr.bf16.mxu0 %v13450_v23  ;;  %v10255_v59 = vld [vmem:[%s13396_s3 + $0x38] ss:$12 sps:$4 sm:$0xff]  }
 0x260   :  { %1012 = vmatprep.mubr.bf16.mxu1 %v13451_v25  ;;  %8002 = vmatprep.mubr.msk.bf16.mxu0 %vm9680_vm2, %v13450_v23 }
 0x262   :  { %983 = vmatpush1.bf16.msra.mxu1 %v9920_v61  ;;  %7989 = vmatpush3.bf16.msra.mxu0 %v10246_v58 }
 0x263   :  { %984 = vmatprep.subr.bf16.mxu1 %v9926_v62  ;;  %7990 = vmatprep.subr.bf16.mxu0 %v13450_v23 }
 0x266   :  { %985 = vmatpush1.bf16.msra.mxu1 %v9935_v63  ;;  %7991 = vmatpush3.bf16.msra.mxu0 %v10255_v59 }
 0x267   :  { %986 = vmatprep.subr.bf16.mxu1 %v9941_v0  ;;  %7992 = vmatprep.subr.bf16.mxu0 %v13450_v23 }
 0x26a   :  { %987 = vmatpush1.bf16.msra.mxu1 %v9950_v1  ;;  %7993 = vmatpush3.bf16.msra.mxu0 %v9851_v46  ;;  %v10281_v46 = vld [vmem:[%s13396_s3 + $0x4] ss:$12 sps:$4 sm:$0xff]  }
 0x26b   :  { %988 = vmatprep.subr.bf16.mxu1 %v9959_v2  ;;  %7994 = vmatprep.subr.bf16.mxu0 %v13450_v23 }
 0x26e   :  { %989 = vmatpush1.bf16.msra.mxu1 %v9971_v5  ;;  %7995 = vmatpush3.bf16.msra.mxu0 %v9866_v51  ;;  %v833_v51 = vunpack.c.l.bf16 %v10103_v28 }
 0x26f   :  { %990 = vmatprep.subr.bf16.mxu1 %v9977_v6  ;;  %7996 = vmatprep.subr.bf16.mxu0 %v13450_v23 }
 0x272   :  { %991 = vmatpush1.bf16.msra.mxu1 %v9987_v7  ;;  %7997 = vmatpush3.bf16.msra.mxu0 %v9884_v54 }
 0x273   :  { %992 = vmatprep.subr.bf16.mxu1 %v9995_v10  ;;  %7998 = vmatprep.subr.bf16.mxu0 %v13450_v23 }
 0x276   :  { %993 = vmatpush1.bf16.msra.mxu1 %v10003_v11  ;;  %7999 = vmatpush3.bf16.msra.mxu0 %v9891_v57 }
 0x277   :  { %994 = vmatprep.subr.bf16.mxu1 %v10009_v12  ;;  %8000 = vmatprep.subr.bf16.mxu0 %v13450_v23 }
 0x27a   :  { %995 = vmatpush1.bf16.msra.mxu1 %v10018_v13  ;;  %8001 = vmatpush3.bf16.msra.mxu0 %v9913_v60  ;;  %v836_v60 = vunpack.c.h.bf16 %v10103_v28 }
 0x27b   :  { %1121 = vmatprep.subr.bf16.mxu1 %v10281_v46  ;;  %8006 = vmatprep.subr.bf16.mxu0 %v13450_v23 }
 0x330   :  { %v873_v54 = vpop.f32.mrb[40].mxu1  ;;  %v916_v57 = vpop.f32.mrb[24].mxu0 }
 0x331   :  { %v923_v36 = vadd.f32 %v873_v54, %v833_v51  ;;  %v875_v26 = vpop.f32.mrb[41].mxu1  ;;  %v7984_v52 = vpop.f32.mrb[25].mxu0  ;;  %v951_v4 = vadd.f32 %v10157_v45, %v916_v57 }
 0x332   :  { %v937_v17 = vadd.f32 %v875_v26, %v834_v9  ;;  %v877_v48 = vpop.f32.mrb[42].mxu1  ;;  %v919_v20 = vpop.f32.mrb[26].mxu0  ;;  %v835_v9 = vunpack.c.l.bf16 %v10140_v19 }
 0x333   :  { %v7105_v31 = vmul.f32 -1.442695, %v923_v36  ;;  %v924_v15 = vadd.f32 %v877_v48, %v836_v60  ;;  %v879_v42 = vpop.f32.mrb[43].mxu1  ;;  %v7985_v14 = vpop.f32.mrb[27].mxu0  ;;  %v952_v26 = vadd.f32 %v10157_v45, %v919_v20  ;;  %v838_v60 = vunpack.c.h.bf16 %v10140_v19 }
 0x334   :  { %v938_v50 = vadd.f32 %v879_v42, %v837_v32  ;;  %v7107_v44 = vmul.f32 -1.442695, %v937_v17 }
 0x335   :  { %8974 = vpow2.f32 %v7105_v31  ;;  %v7106_v40 = vmul.f32 -1.442695, %v924_v15 }
 0x336   :  { %v7108_v29 = vmul.f32 -1.442695, %v938_v50 }
 0x337   :  { %8976 = vpow2.f32 %v7106_v40 }
 0x338   :  { %8978 = vpow2.f32 %v7107_v44 }
 0x339   :  { %8980 = vpow2.f32 %v7108_v29 }
 0x33f   :  { %v8975_v16 = vpop.eup %8974 }
 0x340   :  { %v931_v37 = vadd.f32 1.0, %v8975_v16 }
 0x341   :  { %v8977_v28 = vpop.eup %8976 }
 0x342   :  { %8982 = vrcp.f32 %v931_v37  ;;  %v932_v34 = vadd.f32 1.0, %v8977_v28  ;;  %v8979_v39 = vpop.eup %8978 }
 0x343   :  { %v8981_v30 = vpop.eup %8980  ;;  %v945_v3 = vadd.f32 1.0, %v8979_v39 }
 0x344   :  { %8984 = vrcp.f32 %v932_v34  ;;  %v946_v51 = vadd.f32 1.0, %v8981_v30  ;;  %v978_v30 = vunpack.c.h.bf16 %v10128_v55 }
 0x345   :  { %8986 = vrcp.f32 %v945_v3 }
 0x346   :  { %8988 = vrcp.f32 %v946_v51 }
 0x34c   :  { %v8983_v54 = vpop.eup %8982 }
 0x34d   :  { %v953_v36 = vmul.f32 %v8983_v54, %v951_v4 }
 0x34e   :  { %v8985_v52 = vpop.eup %8984 }
 0x34f   :  { %v955_v17 = vadd.f32 %v953_v36, %v835_v9  ;;  %v954_v48 = vmul.f32 %v8985_v52, %v952_v26  ;;  %v8987_v31 = vpop.eup %8986 }
 0x350   :  { %v8989_v15 = vpop.eup %8988  ;;  %v959_v57 = vsub.f32 1.0, %v8987_v31  ;;  %v963_v40 = vmul.f32 %v8987_v31, %v10220_v35  ;;  %v10308_v35 = vld [vmem:[%s13396_s3] ss:$12 sps:$4 sm:$0xff]  }
 0x351   :  { %8990 = vtanh.f32 %v955_v17  ;;  %v956_v32 = vadd.f32 %v954_v48, %v838_v60  ;;  %v960_v14 = vsub.f32 1.0, %v8989_v15  ;;  %v964_v20 = vmul.f32 %v8989_v15, %v10222_v22  ;;  %v10315_v22 = vld [vmem:[%s13396_s3 + $0x1c] ss:$12 sps:$4 sm:$0xff]  }
 0x353   :  { %8992 = vtanh.f32 %v956_v32 }
 0x35b   :  { %v8991_v42 = vpop.eup %8990 }
 0x35c   :  { %v961_v50 = vmul.f32 %v8991_v42, %v959_v57 }
 0x35d   :  { %v8993_v44 = vpop.eup %8992 }
 0x35e   :  { %v962_v29 = vmul.f32 %v8993_v44, %v960_v14  ;;  %v10295_v16 = vadd.f32 %v963_v40, %v961_v50  ;;  %v976_v14 = vunpack.c.l.bf16 %v10138_v21 }
 0x360   :  { %v10297_v19 = vadd.f32 %v964_v20, %v962_v29  ;;  %v979_v29 = vunpack.c.h.bf16 %v10138_v21 }
 0x362   :  { %v10301_v37 = vpack.c.bf16 %v10297_v19, %v10295_v16 }
 0x364   :  { %1013 = vmatmul.mubr.bf16.vlgmr.msra.gmra.mrb[44].mxu1 %v10301_v37  ;;  %8003 = vmatmul.mubr.bf16.vlgmr.msra.gmra.mrb[28].mxu0 %v10301_v37 }
 0x365   :  { %1122 = vmatpush1.bf16.msra.mxu1 %v10308_v35  ;;  %8007 = vmatpush3.bf16.msra.mxu0 %v10234_v56 }
 0x366   :  { %1123 = vmatprep.subr.bf16.mxu1 %v10315_v22  ;;  %8008 = vmatprep.subr.bf16.mxu0 %v13450_v23 }
 0x367   :  { %1153 = vmatprep.mubr.bf16.mxu1 %v13451_v25  ;;  %8022 = vmatprep.mubr.msk.bf16.mxu0 %vm9680_vm2, %v13450_v23 }
 0x369   :  { %1124 = vmatpush1.bf16.msra.mxu1 %v9920_v61  ;;  %8009 = vmatpush3.bf16.msra.mxu0 %v10246_v58  ;;  %v10334_v61 = vld [vmem:[%s13396_s3 + $0x50] ss:$12 sps:$4 sm:$0xff]  }
 0x36a   :  { %1125 = vmatprep.subr.bf16.mxu1 %v9926_v62  ;;  %8010 = vmatprep.subr.bf16.mxu0 %v13450_v23  ;;  %v10343_v62 = vld [vmem:[%s13396_s3 + $0x68] ss:$12 sps:$4 sm:$0xff]  }
 0x36d   :  { %1126 = vmatpush1.bf16.msra.mxu1 %v9935_v63  ;;  %8011 = vmatpush3.bf16.msra.mxu0 %v10255_v59  ;;  %v10352_v63 = vld [vmem:[%s13396_s3 + $0x80] ss:$12 sps:$4 sm:$0xff]  }
 0x36e   :  { %1127 = vmatprep.subr.bf16.mxu1 %v9941_v0  ;;  %8012 = vmatprep.subr.bf16.mxu0 %v13450_v23  ;;  %v10361_v0 = vld [vmem:[%s13396_s3 + $0x98] ss:$12 sps:$4 sm:$0xff]  }
 0x371   :  { %1128 = vmatpush1.bf16.msra.mxu1 %v9950_v1  ;;  %8013 = vmatpush3.bf16.msra.mxu0 %v10334_v61  ;;  %v10370_v1 = vld [vmem:[%s13396_s3 + $0xb0] ss:$12 sps:$4 sm:$0xff]  }
 0x372   :  { %1129 = vmatprep.subr.bf16.mxu1 %v9959_v2  ;;  %8014 = vmatprep.subr.bf16.mxu0 %v13450_v23  ;;  %v974_v2 = vunpack.c.l.bf16 %v10124_v53 }
 0x375   :  { %1130 = vmatpush1.bf16.msra.mxu1 %v9971_v5  ;;  %8015 = vmatpush3.bf16.msra.mxu0 %v10343_v62 }
 0x376   :  { %1131 = vmatprep.subr.bf16.mxu1 %v9977_v6  ;;  %8016 = vmatprep.subr.bf16.mxu0 %v13450_v23 }
 0x379   :  { %1132 = vmatpush1.bf16.msra.mxu1 %v9987_v7  ;;  %8017 = vmatpush3.bf16.msra.mxu0 %v10352_v63  ;;  %v975_v7 = vunpack.c.l.bf16 %v10128_v55 }
 0x37a   :  { %1133 = vmatprep.subr.bf16.mxu1 %v9995_v10  ;;  %8018 = vmatprep.subr.bf16.mxu0 %v13450_v23 }
 0x37d   :  { %1134 = vmatpush1.bf16.msra.mxu1 %v10003_v11  ;;  %8019 = vmatpush3.bf16.msra.mxu0 %v10361_v0 }
 0x37e   :  { %1135 = vmatprep.subr.bf16.mxu1 %v10009_v12  ;;  %8020 = vmatprep.subr.bf16.mxu0 %v13450_v23 }
 0x381   :  { %1136 = vmatpush1.bf16.msra.mxu1 %v10018_v13  ;;  %8021 = vmatpush3.bf16.msra.mxu0 %v10370_v1  ;;  %v977_v13 = vunpack.c.h.bf16 %v10124_v53 }
 0x382   :  { %1262 = vmatprep.subr.bf16.mxu1 %v10281_v46  ;;  %8026 = vmatprep.subr.bf16.mxu0 %v13450_v23 }
 0x437   :  { %v1014_v5 = vpop.f32.mrb[44].mxu1  ;;  %v1057_v6 = vpop.f32.mrb[28].mxu0 }
 0x438   :  { %v1064_v10 = vadd.f32 %v1014_v5, %v974_v2  ;;  %v1016_v11 = vpop.f32.mrb[45].mxu1  ;;  %v8004_v12 = vpop.f32.mrb[29].mxu0  ;;  %v1092_v15 = vadd.f32 %v10157_v45, %v1057_v6 }
 0x439   :  { %v1078_v28 = vadd.f32 %v1016_v11, %v975_v7  ;;  %v1018_v34 = vpop.f32.mrb[46].mxu1  ;;  %v1060_v39 = vpop.f32.mrb[30].mxu0 }
 0x43a   :  { %v7109_v3 = vmul.f32 -1.442695, %v1064_v10  ;;  %v1065_v4 = vadd.f32 %v1018_v34, %v977_v13  ;;  %v1020_v51 = vpop.f32.mrb[47].mxu1  ;;  %v8005_v54 = vpop.f32.mrb[31].mxu0  ;;  %v1093_v40 = vadd.f32 %v10157_v45, %v1060_v39 }
 0x43b   :  { %v1079_v9 = vadd.f32 %v1020_v51, %v978_v30  ;;  %v7111_v26 = vmul.f32 -1.442695, %v1078_v28  ;;  %v10419_v51 = vld [vmem:[%s13396_s3 + $0x30] ss:$12 sps:$4 sm:$0xff]   ;;  %v10426_v54 = vld [vmem:[%s13396_s3 + $0x4c] ss:$12 sps:$4 sm:$0xff]  }
 0x43c   :  { %8994 = vpow2.f32 %v7109_v3  ;;  %v7110_v36 = vmul.f32 -1.442695, %v1065_v4 }
 0x43d   :  { %v7112_v52 = vmul.f32 -1.442695, %v1079_v9  ;;  %v10433_v9 = vld [vmem:[%s13396_s3 + $0x48] ss:$12 sps:$4 sm:$0xff]  }
 0x43e   :  { %8996 = vpow2.f32 %v7110_v36  ;;  %v10440_v36 = vld [vmem:[%s13396_s3 + $0x64] ss:$12 sps:$4 sm:$0xff]  }
 0x43f   :  { %8998 = vpow2.f32 %v7111_v26  ;;  %v10447_v26 = vld [vmem:[%s13396_s3 + $0x60] ss:$12 sps:$4 sm:$0xff]  }
 0x440   :  { %9000 = vpow2.f32 %v7112_v52  ;;  %v10454_v52 = vld [vmem:[%s13396_s3 + $0x7c] ss:$12 sps:$4 sm:$0xff]  }
 0x446   :  { %v8995_v60 = vpop.eup %8994 }
 0x447   :  { %v1072_v17 = vadd.f32 1.0, %v8995_v60  ;;  %v10461_v60 = vld [vmem:[%s13396_s3 + $0x78] ss:$12 sps:$4 sm:$0xff]  }
 0x448   :  { %v8997_v53 = vpop.eup %8996 }
 0x449   :  { %9002 = vrcp.f32 %v1072_v17  ;;  %v1073_v48 = vadd.f32 1.0, %v8997_v53  ;;  %v8999_v32 = vpop.eup %8998  ;;  %v10468_v17 = vld [vmem:[%s13396_s3 + $0x94] ss:$12 sps:$4 sm:$0xff]   ;;  %v10475_v53 = vld [vmem:[%s13396_s3 + $0x90] ss:$12 sps:$4 sm:$0xff]  }
 0x44a   :  { %v9001_v55 = vpop.eup %9000  ;;  %v1086_v31 = vadd.f32 1.0, %v8999_v32  ;;  %v10489_v32 = vld [vmem:[%s13396_s3 + $0xa8] ss:$12 sps:$4 sm:$0xff]  }
 0x44b   :  { %9004 = vrcp.f32 %v1073_v48  ;;  %v1087_v57 = vadd.f32 1.0, %v9001_v55  ;;  %v10482_v48 = vld [vmem:[%s13396_s3 + $0xac] ss:$12 sps:$4 sm:$0xff]   ;;  %v1115_v55 = vunpack.c.l.bf16 %v10069_v41 }
 0x44c   :  { %9006 = vrcp.f32 %v1086_v31 }
 0x44d   :  { %9008 = vrcp.f32 %v1087_v57  ;;  %v1116_v57 = vunpack.c.l.bf16 %v10073_v43 }
 0x453   :  { %v9003_v42 = vpop.eup %9002 }
 0x454   :  { %v1094_v50 = vmul.f32 %v9003_v42, %v1092_v15 }
 0x455   :  { %v9005_v44 = vpop.eup %9004 }
 0x456   :  { %v1096_v20 = vadd.f32 %v1094_v50, %v976_v14  ;;  %v1095_v2 = vmul.f32 %v9005_v44, %v1093_v40  ;;  %v9007_v7 = vpop.eup %9006  ;;  %v1118_v40 = vunpack.c.h.bf16 %v10069_v41 }
 0x457   :  { %v9009_v10 = vpop.eup %9008  ;;  %v1100_v6 = vsub.f32 1.0, %v9007_v7  ;;  %v1104_v28 = vmul.f32 %v9007_v7, %v10295_v16  ;;  %v10405_v16 = vld [vmem:[%s13396_s3 + $0x18] ss:$12 sps:$4 sm:$0xff]  }
 0x458   :  { %9010 = vtanh.f32 %v1096_v20  ;;  %v1097_v5 = vadd.f32 %v1095_v2, %v979_v29  ;;  %v1101_v12 = vsub.f32 1.0, %v9009_v10  ;;  %v1105_v39 = vmul.f32 %v9009_v10, %v10297_v19  ;;  %v10412_v19 = vld [vmem:[%s13396_s3 + $0x34] ss:$12 sps:$4 sm:$0xff]  }
 0x459   :  { %v1119_v2 = vunpack.c.h.bf16 %v10073_v43 }
 0x45a   :  { %9012 = vtanh.f32 %v1097_v5 }
 0x462   :  { %v9011_v11 = vpop.eup %9010 }
 0x463   :  { %v1102_v13 = vmul.f32 %v9011_v11, %v1100_v6 }
 0x464   :  { %v9013_v34 = vpop.eup %9012 }
 0x465   :  { %v1103_v30 = vmul.f32 %v9013_v34, %v1101_v12  ;;  %v10385_v3 = vadd.f32 %v1104_v28, %v1102_v13 }
 0x467   :  { %v10387_v21 = vadd.f32 %v1105_v39, %v1103_v30 }
 0x469   :  { %v10391_v4 = vpack.c.bf16 %v10387_v21, %v10385_v3 }
 0x46b   :  { %1154 = vmatmul.mubr.bf16.vlgmr.msra.gmra.mrb[48].mxu1 %v10391_v4  ;;  %8023 = vmatmul.mubr.bf16.vlgmr.msra.gmra.mrb[32].mxu0 %v10391_v4 }
 0x46c   :  { %1263 = vmatpush1.bf16.msra.mxu1 %v10308_v35  ;;  %8027 = vmatpush3.bf16.msra.mxu0 %v10234_v56 }
 0x46d   :  { %1264 = vmatprep.subr.bf16.mxu1 %v10315_v22  ;;  %8028 = vmatprep.subr.bf16.mxu0 %v13450_v23 }
 0x46e   :  { %1294 = vmatprep.mubr.bf16.mxu1 %v13451_v25  ;;  %8042 = vmatprep.mubr.msk.bf16.mxu0 %vm9680_vm2, %v13450_v23 }
 0x470   :  { %1265 = vmatpush1.bf16.msra.mxu1 %v10405_v16  ;;  %8029 = vmatpush3.bf16.msra.mxu0 %v10246_v58 }
 0x471   :  { %1266 = vmatprep.subr.bf16.mxu1 %v10412_v19  ;;  %8030 = vmatprep.subr.bf16.mxu0 %v13450_v23 }
 0x474   :  { %1267 = vmatpush1.bf16.msra.mxu1 %v10419_v51  ;;  %8031 = vmatpush3.bf16.msra.mxu0 %v10255_v59 }
 0x475   :  { %1268 = vmatprep.subr.bf16.mxu1 %v10426_v54  ;;  %8032 = vmatprep.subr.bf16.mxu0 %v13450_v23 }
 0x478   :  { %1269 = vmatpush1.bf16.msra.mxu1 %v10433_v9  ;;  %8033 = vmatpush3.bf16.msra.mxu0 %v10334_v61 }
 0x479   :  { %1270 = vmatprep.subr.bf16.mxu1 %v10440_v36  ;;  %8034 = vmatprep.subr.bf16.mxu0 %v13450_v23 }
 0x47c   :  { %1271 = vmatpush1.bf16.msra.mxu1 %v10447_v26  ;;  %8035 = vmatpush3.bf16.msra.mxu0 %v10343_v62 }
 0x47d   :  { %1272 = vmatprep.subr.bf16.mxu1 %v10454_v52  ;;  %8036 = vmatprep.subr.bf16.mxu0 %v13450_v23 }
 0x480   :  { %1273 = vmatpush1.bf16.msra.mxu1 %v10461_v60  ;;  %8037 = vmatpush3.bf16.msra.mxu0 %v10352_v63 }
 0x481   :  { %1274 = vmatprep.subr.bf16.mxu1 %v10468_v17  ;;  %8038 = vmatprep.subr.bf16.mxu0 %v13450_v23 }
 0x484   :  { %1275 = vmatpush1.bf16.msra.mxu1 %v10475_v53  ;;  %8039 = vmatpush3.bf16.msra.mxu0 %v10361_v0 }
 0x485   :  { %1276 = vmatprep.subr.bf16.mxu1 %v10482_v48  ;;  %8040 = vmatprep.subr.bf16.mxu0 %v13450_v23 }
 0x488   :  { %1277 = vmatpush1.bf16.msra.mxu1 %v10489_v32  ;;  %8041 = vmatpush3.bf16.msra.mxu0 %v10370_v1 }
 0x489   :  { %1403 = vmatprep.subr.bf16.mxu1 %v10281_v46  ;;  %8046 = vmatprep.subr.bf16.mxu0 %v13450_v23 }
 0x53e   :  { %v1155_v31 = vpop.f32.mrb[48].mxu1  ;;  %v1198_v15 = vpop.f32.mrb[32].mxu0 }
 0x53f   :  { %v1205_v42 = vadd.f32 %v1155_v31, %v1115_v55  ;;  %v1157_v14 = vpop.f32.mrb[49].mxu1  ;;  %v8024_v50 = vpop.f32.mrb[33].mxu0 }
 0x540   :  { %v1219_v44 = vadd.f32 %v1157_v14, %v1116_v57  ;;  %v1159_v29 = vpop.f32.mrb[50].mxu1  ;;  %v1201_v20 = vpop.f32.mrb[34].mxu0  ;;  %v1233_v57 = vadd.f32 %v10157_v45, %v1198_v15  ;;  %v1117_v50 = vunpack.c.l.bf16 %v10144_v38 }
 0x541   :  { %v7113_v5 = vmul.f32 -1.442695, %v1205_v42  ;;  %v1206_v7 = vadd.f32 %v1159_v29, %v1118_v40  ;;  %v1161_v10 = vpop.f32.mrb[51].mxu1  ;;  %v8025_v6 = vpop.f32.mrb[35].mxu0 }
 0x542   :  { %v1220_v11 = vadd.f32 %v1161_v10, %v1119_v2  ;;  %v7115_v13 = vmul.f32 -1.442695, %v1219_v44  ;;  %v1234_v44 = vadd.f32 %v10157_v45, %v1201_v20  ;;  %v1120_v2 = vunpack.c.h.bf16 %v10144_v38 }
 0x543   :  { %9014 = vpow2.f32 %v7113_v5  ;;  %v7114_v12 = vmul.f32 -1.442695, %v1206_v7 }
 0x544   :  { %v7116_v28 = vmul.f32 -1.442695, %v1220_v11 }
 0x545   :  { %9016 = vpow2.f32 %v7114_v12 }
 0x546   :  { %9018 = vpow2.f32 %v7115_v13 }
 0x547   :  { %9020 = vpow2.f32 %v7116_v28 }
 0x54d   :  { %v9015_v34 = vpop.eup %9014 }
 0x54e   :  { %v1213_v30 = vadd.f32 1.0, %v9015_v34 }
 0x54f   :  { %v9017_v41 = vpop.eup %9016 }
 0x550   :  { %9022 = vrcp.f32 %v1213_v30  ;;  %v1214_v39 = vadd.f32 1.0, %v9017_v41  ;;  %v9019_v55 = vpop.eup %9018 }
 0x551   :  { %v9021_v43 = vpop.eup %9020  ;;  %v1227_v31 = vadd.f32 1.0, %v9019_v55 }
 0x552   :  { %9024 = vrcp.f32 %v1214_v39  ;;  %v1228_v42 = vadd.f32 1.0, %v9021_v43 }
 0x553   :  { %9026 = vrcp.f32 %v1227_v31  ;;  %v1257_v31 = vunpack.c.l.bf16 %v10089_v8 }
 0x554   :  { %9028 = vrcp.f32 %v1228_v42 }
 0x55a   :  { %v9023_v14 = vpop.eup %9022 }
 0x55b   :  { %v1235_v40 = vmul.f32 %v9023_v14, %v1233_v57 }
 0x55c   :  { %v9025_v29 = vpop.eup %9024 }
 0x55d   :  { %v1237_v5 = vadd.f32 %v1235_v40, %v1117_v50  ;;  %v1236_v7 = vmul.f32 %v9025_v29, %v1234_v44  ;;  %v9027_v6 = vpop.eup %9026  ;;  %v1259_v50 = vunpack.c.h.bf16 %v10085_v33 }
 0x55e   :  { %v9029_v11 = vpop.eup %9028  ;;  %v1241_v15 = vsub.f32 1.0, %v9027_v6  ;;  %v1245_v34 = vmul.f32 %v9027_v6, %v10385_v3  ;;  %v1256_v3 = vunpack.c.l.bf16 %v10085_v33 }
 0x55f   :  { %9030 = vtanh.f32 %v1237_v5  ;;  %v1238_v10 = vadd.f32 %v1236_v7, %v1120_v2  ;;  %v1242_v13 = vsub.f32 1.0, %v9029_v11  ;;  %v1246_v20 = vmul.f32 %v9029_v11, %v10387_v21 }
 0x560   :  { %v1260_v2 = vunpack.c.h.bf16 %v10089_v8 }
 0x561   :  { %9032 = vtanh.f32 %v1238_v10 }
 0x569   :  { %v9031_v12 = vpop.eup %9030 }
 0x56a   :  { %v1243_v28 = vmul.f32 %v9031_v12, %v1241_v15 }
 0x56b   :  { %v9033_v30 = vpop.eup %9032 }
 0x56c   :  { %v1244_v41 = vmul.f32 %v9033_v30, %v1242_v13  ;;  %v10505_v39 = vadd.f32 %v1245_v34, %v1243_v28 }
 0x56e   :  { %v10507_v38 = vadd.f32 %v1246_v20, %v1244_v41 }
 0x570   :  { %v10511_v55 = vpack.c.bf16 %v10507_v38, %v10505_v39 }
 0x572   :  { %1295 = vmatmul.mubr.bf16.vlgmr.msra.gmra.mrb[52].mxu1 %v10511_v55  ;;  %8043 = vmatmul.mubr.bf16.vlgmr.msra.gmra.mrb[36].mxu0 %v10511_v55 }
 0x573   :  { %1404 = vmatpush1.bf16.msra.mxu1 %v10308_v35  ;;  %8047 = vmatpush3.bf16.msra.mxu0 %v10234_v56 }
 0x574   :  { %1405 = vmatprep.subr.bf16.mxu1 %v10315_v22  ;;  %8048 = vmatprep.subr.bf16.mxu0 %v13450_v23 }
 0x575   :  { %1435 = vmatprep.mubr.bf16.mxu1 %v13451_v25  ;;  %8062 = vmatprep.mubr.msk.bf16.mxu0 %vm9680_vm2, %v13450_v23 }
 0x577   :  { %1406 = vmatpush1.bf16.msra.mxu1 %v10405_v16  ;;  %8049 = vmatpush3.bf16.msra.mxu0 %v10246_v58 }
 0x578   :  { %1407 = vmatprep.subr.bf16.mxu1 %v10412_v19  ;;  %8050 = vmatprep.subr.bf16.mxu0 %v13450_v23 }
 0x57b   :  { %1408 = vmatpush1.bf16.msra.mxu1 %v10419_v51  ;;  %8051 = vmatpush3.bf16.msra.mxu0 %v10255_v59 }
 0x57c   :  { %1409 = vmatprep.subr.bf16.mxu1 %v10426_v54  ;;  %8052 = vmatprep.subr.bf16.mxu0 %v13450_v23 }
 0x57f   :  { %1410 = vmatpush1.bf16.msra.mxu1 %v10433_v9  ;;  %8053 = vmatpush3.bf16.msra.mxu0 %v10334_v61 }
 0x580   :  { %1411 = vmatprep.subr.bf16.mxu1 %v10440_v36  ;;  %8054 = vmatprep.subr.bf16.mxu0 %v13450_v23 }
 0x583   :  { %1412 = vmatpush1.bf16.msra.mxu1 %v10447_v26  ;;  %8055 = vmatpush3.bf16.msra.mxu0 %v10343_v62 }
 0x584   :  { %1413 = vmatprep.subr.bf16.mxu1 %v10454_v52  ;;  %8056 = vmatprep.subr.bf16.mxu0 %v13450_v23 }
 0x587   :  { %1414 = vmatpush1.bf16.msra.mxu1 %v10461_v60  ;;  %8057 = vmatpush3.bf16.msra.mxu0 %v10352_v63 }
 0x588   :  { %1415 = vmatprep.subr.bf16.mxu1 %v10468_v17  ;;  %8058 = vmatprep.subr.bf16.mxu0 %v13450_v23 }
 0x58b   :  { %1416 = vmatpush1.bf16.msra.mxu1 %v10475_v53  ;;  %8059 = vmatpush3.bf16.msra.mxu0 %v10361_v0 }
 0x58c   :  { %1417 = vmatprep.subr.bf16.mxu1 %v10482_v48  ;;  %8060 = vmatprep.subr.bf16.mxu0 %v13450_v23 }
 0x58f   :  { %1418 = vmatpush1.bf16.msra.mxu1 %v10489_v32  ;;  %8061 = vmatpush3.bf16.msra.mxu0 %v10370_v1 }
 0x590   :  { %1544 = vmatprep.subr.bf16.mxu1 %v10281_v46  ;;  %8066 = vmatprep.subr.bf16.mxu0 %v13450_v23 }
 0x645   :  { %v1296_v21 = vpop.f32.mrb[52].mxu1  ;;  %v1339_v43 = vpop.f32.mrb[36].mxu0 }
 0x646   :  { %v1346_v57 = vadd.f32 %v1296_v21, %v1256_v3  ;;  %v1298_v42 = vpop.f32.mrb[53].mxu1  ;;  %v8044_v14 = vpop.f32.mrb[37].mxu0  ;;  %v1374_v20 = vadd.f32 %v10157_v45, %v1339_v43 }
 0x647   :  { %v1360_v40 = vadd.f32 %v1298_v42, %v1257_v31  ;;  %v1300_v44 = vpop.f32.mrb[54].mxu1  ;;  %v1342_v29 = vpop.f32.mrb[38].mxu0  ;;  %v1258_v31 = vunpack.c.l.bf16 %v10142_v47 }
 0x648   :  { %v7117_v5 = vmul.f32 -1.442695, %v1346_v57  ;;  %v1347_v46 = vadd.f32 %v1300_v44, %v1259_v50  ;;  %v1302_v7 = vpop.f32.mrb[55].mxu1  ;;  %v8045_v10 = vpop.f32.mrb[39].mxu0  ;;  %v1375_v42 = vadd.f32 %v10157_v45, %v1342_v29  ;;  %v1261_v50 = vunpack.c.h.bf16 %v10142_v47 }
 0x649   :  { %v1361_v6 = vadd.f32 %v1302_v7, %v1260_v2  ;;  %v7119_v15 = vmul.f32 -1.442695, %v1360_v40 }
 0x64a   :  { %9034 = vpow2.f32 %v7117_v5  ;;  %v7118_v11 = vmul.f32 -1.442695, %v1347_v46 }
 0x64b   :  { %v7120_v12 = vmul.f32 -1.442695, %v1361_v6 }
 0x64c   :  { %9036 = vpow2.f32 %v7118_v11 }
 0x64d   :  { %9038 = vpow2.f32 %v7119_v15 }
 0x64e   :  { %9040 = vpow2.f32 %v7120_v12 }
 0x654   :  { %v9035_v13 = vpop.eup %9034 }
 0x655   :  { %v1354_v28 = vadd.f32 1.0, %v9035_v13 }
 0x656   :  { %v9037_v33 = vpop.eup %9036 }
 0x657   :  { %9042 = vrcp.f32 %v1354_v28  ;;  %v1355_v34 = vadd.f32 1.0, %v9037_v33  ;;  %v9039_v30 = vpop.eup %9038 }
 0x658   :  { %v9041_v8 = vpop.eup %9040  ;;  %v1368_v41 = vadd.f32 1.0, %v9039_v30 }
 0x659   :  { %9044 = vrcp.f32 %v1355_v34  ;;  %v1369_v3 = vadd.f32 1.0, %v9041_v8  ;;  %v10619_v8 = vld [vmem:[%s13397_s5] ss:$0 sm:$0xff] }
 0x65a   :  { %9046 = vrcp.f32 %v1368_v41 }
 0x65b   :  { %9048 = vrcp.f32 %v1369_v3 }
 0x661   :  { %v9043_v21 = vpop.eup %9042 }
 0x662   :  { %v1376_v57 = vmul.f32 %v9043_v21, %v1374_v20  ;;  %v1399_v21 = vunpack.c.l.bf16 %v10149_v18 }
 0x663   :  { %v9045_v14 = vpop.eup %9044 }
 0x664   :  { %v1378_v40 = vadd.f32 %v1376_v57, %v1258_v31  ;;  %v1377_v44 = vmul.f32 %v9045_v14, %v1375_v42  ;;  %v9047_v5 = vpop.eup %9046  ;;  %v1402_v14 = vunpack.c.h.bf16 %v10149_v18 }
 0x665   :  { %v9049_v46 = vpop.eup %9048  ;;  %v1382_v43 = vsub.f32 1.0, %v9047_v5  ;;  %v1386_v11 = vmul.f32 %v9047_v5, %v10505_v39 }
 0x666   :  { %9050 = vtanh.f32 %v1378_v40  ;;  %v1379_v2 = vadd.f32 %v1377_v44, %v1261_v50  ;;  %v1383_v10 = vsub.f32 1.0, %v9049_v46  ;;  %v1387_v45 = vmul.f32 %v9049_v46, %v10507_v38 }
 0x668   :  { %9052 = vtanh.f32 %v1379_v2 }
 0x670   :  { %v9051_v7 = vpop.eup %9050 }
 0x671   :  { %v1384_v6 = vmul.f32 %v9051_v7, %v1382_v43 }
 0x672   :  { %v9053_v15 = vpop.eup %9052 }
 0x673   :  { %v1385_v12 = vmul.f32 %v9053_v15, %v1383_v10  ;;  %v10560_v29 = vadd.f32 %v1386_v11, %v1384_v6 }
 0x675   :  { %v10562_v47 = vadd.f32 %v1387_v45, %v1385_v12 }
 0x677   :  { %v10566_v13 = vpack.c.bf16 %v10562_v47, %v10560_v29 }
 0x679   :  { %1436 = vmatmul.mubr.bf16.vlgmr.msra.gmra.mrb[56].mxu1 %v10566_v13  ;;  %8063 = vmatmul.mubr.bf16.vlgmr.msra.gmra.mrb[40].mxu0 %v10566_v13 }
 0x67a   :  { %1545 = vmatpush1.bf16.msra.mxu1 %v10308_v35  ;;  %8067 = vmatpush3.bf16.msra.mxu0 %v10234_v56  ;;  %v8736_v56 = vld [vmem:[%s13398_s2 + $0x4] ss:$12 sps:$4 sm:$0xff]  }
 0x67b   :  { %1546 = vmatprep.subr.bf16.mxu1 %v10315_v22  ;;  %8068 = vmatprep.subr.bf16.mxu0 %v13450_v23 }
 0x67c   :  { %1576 = vmatprep.mubr.bf16.mxu1 %v13451_v25  ;;  %8082 = vmatprep.mubr.msk.bf16.mxu0 %vm9680_vm2, %v13450_v23 }
 0x67e   :  { %1547 = vmatpush1.bf16.msra.mxu1 %v10405_v16  ;;  %8069 = vmatpush3.bf16.msra.mxu0 %v10246_v58  ;;  %v10609_v58 = vld [vmem:[%s13398_s2 + $0x8] ss:$12 sps:$4 sm:$0xff]   ;;  %v1400_v16 = vunpack.c.h.bf16 %v10101_v27 }
 0x67f   :  { %1548 = vmatprep.subr.bf16.mxu1 %v10412_v19  ;;  %8070 = vmatprep.subr.bf16.mxu0 %v13450_v23 }
 0x682   :  { %1549 = vmatpush1.bf16.msra.mxu1 %v10419_v51  ;;  %8071 = vmatpush3.bf16.msra.mxu0 %v10255_v59  ;;  %v1397_v59 = vunpack.c.l.bf16 %v10101_v27 }
 0x683   :  { %1550 = vmatprep.subr.bf16.mxu1 %v10426_v54  ;;  %8072 = vmatprep.subr.bf16.mxu0 %v13450_v23 }
 0x686   :  { %1551 = vmatpush1.bf16.msra.mxu1 %v10433_v9  ;;  %8073 = vmatpush3.bf16.msra.mxu0 %v10334_v61  ;;  %v13452_v61 = vld [vmem:[#allocation11_spill] sm:$0xff] }
 0x687   :  { %1552 = vmatprep.subr.bf16.mxu1 %v10440_v36  ;;  %8074 = vmatprep.subr.bf16.mxu0 %v13450_v23  ;;  %v1401_v9 = vunpack.c.h.bf16 %v13452_v61 }
 0x68a   :  { %1553 = vmatpush1.bf16.msra.mxu1 %v10447_v26  ;;  %8075 = vmatpush3.bf16.msra.mxu0 %v10343_v62  ;;  %v1398_v62 = vunpack.c.l.bf16 %v13452_v61  ;;  %v8745_v61 = vld [vmem:[%s13398_s2 + $0x38] ss:$12 sps:$4 sm:$0xff]  }
 0x68b   :  { %1554 = vmatprep.subr.bf16.mxu1 %v10454_v52  ;;  %8076 = vmatprep.subr.bf16.mxu0 %v13450_v23 }
 0x68e   :  { %1555 = vmatpush1.bf16.msra.mxu1 %v10461_v60  ;;  %8077 = vmatpush3.bf16.msra.mxu0 %v10352_v63 }
 0x68f   :  { %1556 = vmatprep.subr.bf16.mxu1 %v10468_v17  ;;  %8078 = vmatprep.subr.bf16.mxu0 %v13450_v23 }
 0x692   :  { %1557 = vmatpush1.bf16.msra.mxu1 %v10475_v53  ;;  %8079 = vmatpush3.bf16.msra.mxu0 %v10361_v0 }
 0x693   :  { %1558 = vmatprep.subr.bf16.mxu1 %v10482_v48  ;;  %8080 = vmatprep.subr.bf16.mxu0 %v13450_v23 }
 0x696   :  { %1559 = vmatpush1.bf16.msra.mxu1 %v10489_v32  ;;  %8081 = vmatpush3.bf16.msra.mxu0 %v10370_v1 }
 0x697   :  { %1896 = vmatprep.subr.bf16.mxu1 %v8736_v56  ;;  %8086 = vmatprep.subr.bf16.mxu0 %v10609_v58  ;;  %v8734_v56 = vld [vmem:[%s13398_s2] ss:$12 sps:$4 sm:$0xff]  }
 0x74c   :  { %v1437_v35 = vpop.f32.mrb[56].mxu1  ;;  %v1480_v22 = vpop.f32.mrb[40].mxu0 }
 0x74d   :  { %v1487_v63 = vadd.f32 %v1437_v35, %v1397_v59  ;;  %v1439_v0 = vpop.f32.mrb[57].mxu1  ;;  %v8064_v1 = vpop.f32.mrb[41].mxu0  ;;  %v1515_v41 = vadd.f32 %v10619_v8, %v1480_v22  ;;  %v8738_v35 = vld [vmem:[%s13398_s2 + $0x18] ss:$12 sps:$4 sm:$0xff]   ;;  %v8744_v22 = vld [vmem:[%s13398_s2 + $0x34] ss:$12 sps:$4 sm:$0xff]  }
 0x74e   :  { %v1501_v19 = vadd.f32 %v1439_v0, %v1398_v62  ;;  %v1441_v51 = vpop.f32.mrb[58].mxu1  ;;  %v1483_v54 = vpop.f32.mrb[42].mxu0  ;;  %v8748_v62 = vld [vmem:[%s13398_s2 + $0x4c] ss:$12 sps:$4 sm:$0xff]   ;;  %v8746_v0 = vld [vmem:[%s13398_s2 + $0x48] ss:$12 sps:$4 sm:$0xff]  }
 0x74f   :  { %v7121_v36 = vmul.f32 -1.442695, %v1487_v63  ;;  %v1488_v26 = vadd.f32 %v1441_v51, %v1400_v16  ;;  %v1443_v52 = vpop.f32.mrb[59].mxu1  ;;  %v8065_v60 = vpop.f32.mrb[43].mxu0  ;;  %v1516_v57 = vadd.f32 %v10619_v8, %v1483_v54  ;;  %v8749_v63 = vld [vmem:[%s13398_s2 + $0x50] ss:$12 sps:$4 sm:$0xff]  }
 0x750   :  { %v1502_v17 = vadd.f32 %v1443_v52, %v1401_v9  ;;  %v7123_v48 = vmul.f32 -1.442695, %v1501_v19  ;;  %v8752_v1 = vld [vmem:[%s13398_s2 + $0x64] ss:$12 sps:$4 sm:$0xff]   ;;  %v8753_v16 = vld [vmem:[%s13398_s2 + $0x68] ss:$12 sps:$4 sm:$0xff]  }
 0x751   :  { %9054 = vpow2.f32 %v7121_v36  ;;  %v7122_v53 = vmul.f32 -1.442695, %v1488_v26  ;;  %v8750_v19 = vld [vmem:[%s13398_s2 + $0x60] ss:$12 sps:$4 sm:$0xff]   ;;  %v8756_v51 = vld [vmem:[%s13398_s2 + $0x7c] ss:$12 sps:$4 sm:$0xff]  }
 0x752   :  { %v7124_v32 = vmul.f32 -1.442695, %v1502_v17  ;;  %v8757_v54 = vld [vmem:[%s13398_s2 + $0x80] ss:$12 sps:$4 sm:$0xff]   ;;  %v8754_v9 = vld [vmem:[%s13398_s2 + $0x78] ss:$12 sps:$4 sm:$0xff]  }
 0x753   :  { %9056 = vpow2.f32 %v7122_v53  ;;  %v8760_v36 = vld [vmem:[%s13398_s2 + $0x94] ss:$12 sps:$4 sm:$0xff]   ;;  %v8761_v26 = vld [vmem:[%s13398_s2 + $0x98] ss:$12 sps:$4 sm:$0xff]   ;;  %v8758_v52 = vld [vmem:[%s13398_s2 + $0x90] ss:$12 sps:$4 sm:$0xff]  }
 0x754   :  { %9058 = vpow2.f32 %v7123_v48  ;;  %v8764_v60 = vld [vmem:[%s13398_s2 + $0xac] ss:$12 sps:$4 sm:$0xff]   ;;  %v8765_v17 = vld [vmem:[%s13398_s2 + $0xb0] ss:$12 sps:$4 sm:$0xff]   ;;  %v8762_v53 = vld [vmem:[%s13398_s2 + $0xa8] ss:$12 sps:$4 sm:$0xff]  }
 0x755   :  { %9060 = vpow2.f32 %v7124_v32  ;;  %v10764_v48 = vld [vmem:[%s13396_s3 + $0xf0] ss:$12 sps:$4 sm:$0xff]   ;;  %v10770_v32 = vld [vmem:[%s13396_s3 + $0xe0] ss:$12 sps:$4 sm:$0xff]  }
 0x75b   :  { %v9055_v39 = vpop.eup %9054 }
 0x75c   :  { %v1495_v38 = vadd.f32 1.0, %v9055_v39  ;;  %v10778_v39 = vld [vmem:[%s13396_s3 + $0x10c] ss:$12 sps:$4 sm:$0xff]  }
 0x75d   :  { %v9057_v27 = vpop.eup %9056 }
 0x75e   :  { %9062 = vrcp.f32 %v1495_v38  ;;  %v1496_v28 = vadd.f32 1.0, %v9057_v27  ;;  %v9059_v33 = vpop.eup %9058  ;;  %v10783_v38 = vld [vmem:[%s13396_s3 + $0x108] ss:$12 sps:$4 sm:$0xff]   ;;  %v10789_v27 = vld [vmem:[%s13396_s3 + $0xf8] ss:$12 sps:$4 sm:$0xff]  }
 0x75f   :  { %v9061_v34 = vpop.eup %9060  ;;  %v1509_v30 = vadd.f32 1.0, %v9059_v33  ;;  %v10802_v33 = vld [vmem:[%s13396_s3 + $0x120] ss:$12 sps:$4 sm:$0xff]  }
 0x760   :  { %9064 = vrcp.f32 %v1496_v28  ;;  %v1510_v20 = vadd.f32 1.0, %v9061_v34  ;;  %v10797_v28 = vld [vmem:[%s13396_s3 + $0x124] ss:$12 sps:$4 sm:$0xff]   ;;  %v10811_v34 = vld [vmem:[%s13396_s3 + $0x13c] ss:$12 sps:$4 sm:$0xff]  }
 0x761   :  { %9066 = vrcp.f32 %v1509_v30  ;;  %v10816_v30 = vld [vmem:[%s13396_s3 + $0x138] ss:$12 sps:$4 sm:$0xff]  }
 0x762   :  { %9068 = vrcp.f32 %v1510_v20  ;;  %v10829_v20 = vld [vmem:[%s13396_s3 + $0x154] ss:$12 sps:$4 sm:$0xff]  }
 0x768   :  { %v9063_v3 = vpop.eup %9062 }
 0x769   :  { %v1517_v31 = vmul.f32 %v9063_v3, %v1515_v41  ;;  %v10821_v41 = vld [vmem:[%s13396_s3 + $0x110] ss:$12 sps:$4 sm:$0xff]  }
 0x76a   :  { %v9065_v42 = vpop.eup %9064  ;;  %v10834_v3 = vld [vmem:[%s13396_s3 + $0x150] ss:$12 sps:$4 sm:$0xff]  }
 0x76b   :  { %v1519_v50 = vadd.f32 %v1517_v31, %v1399_v21  ;;  %v1518_v40 = vmul.f32 %v9065_v42, %v1516_v57  ;;  %v9067_v2 = vpop.eup %9066  ;;  %v10842_v21 = vld [vmem:[%s13396_s3 + $0x16c] ss:$12 sps:$4 sm:$0xff]   ;;  %v10847_v31 = vld [vmem:[%s13396_s3 + $0x168] ss:$12 sps:$4 sm:$0xff]  }
 0x76c   :  { %v9069_v5 = vpop.eup %9068  ;;  %v1523_v46 = vsub.f32 1.0, %v9067_v2  ;;  %v1527_v6 = vmul.f32 %v9067_v2, %v10560_v29  ;;  %v8740_v29 = vld [vmem:[%s13398_s2 + $0x1c] ss:$12 sps:$4 sm:$0xff]   ;;  %v10862_v42 = vld [vmem:[%s13396_s3 + $0x140] ss:$12 sps:$4 sm:$0xff]  }
 0x76d   :  { %9070 = vtanh.f32 %v1519_v50  ;;  %v1520_v44 = vadd.f32 %v1518_v40, %v1402_v14  ;;  %v1524_v7 = vsub.f32 1.0, %v9069_v5  ;;  %v1528_v12 = vmul.f32 %v9069_v5, %v10562_v47  ;;  %v8741_v47 = vld [vmem:[%s13398_s2 + $0x20] ss:$12 sps:$4 sm:$0xff]   ;;  %v10852_v57 = vld [vmem:[%s13396_s3 + $0x128] ss:$12 sps:$4 sm:$0xff]  }
 0x76e   :  { %v10869_v14 = vld [vmem:[%s13396_s3 + $0x158] ss:$12 sps:$4 sm:$0xff]   ;;  %v10876_v50 = vld [vmem:[%s13396_s3 + $0x170] ss:$12 sps:$4 sm:$0xff]  }
 0x76f   :  { %9072 = vtanh.f32 %v1520_v44  ;;  %v13453_v40 = vld [vmem:[#allocation13_spill] sm:$0xff] }
 0x770   :  { %v1538_v44 = vunpack.c.l.bf16 %v13453_v40 }
 0x777   :  { %v9071_v43 = vpop.eup %9070 }
 0x778   :  { %v1525_v10 = vmul.f32 %v9071_v43, %v1523_v46  ;;  %v13454_v46 = vld [vmem:[#allocation14_spill] sm:$0xff] }
 0x779   :  { %v9073_v11 = vpop.eup %9072  ;;  %v1539_v43 = vunpack.c.l.bf16 %v13454_v46 }
 0x77a   :  { %v1526_v15 = vmul.f32 %v9073_v11, %v1524_v7  ;;  %v10627_v45 = vadd.f32 %v1527_v6, %v1525_v10  ;;  %v1541_v11 = vunpack.c.h.bf16 %v13453_v40 }
 0x77c   :  { %v10629_v18 = vadd.f32 %v1528_v12, %v1526_v15 }
 0x77e   :  { %v10636_v59 = vpack.c.bf16 %v10629_v18, %v10627_v45 }
 0x780   :  { %1577 = vmatmul.mubr.bf16.vlgmr.msra.gmra.mrb[60].mxu1 %v10636_v59  ;;  %8083 = vmatmul.mubr.bf16.vlgmr.msra.gmra.mrb[44].mxu0 %v10636_v59 }
 0x781   :  { %1897 = vmatpush1.bf16.msra.mxu1 %v8734_v56  ;;  %8087 = vmatpush3.bf16.msra.mxu0 %v10609_v58  ;;  %v8742_v58 = vld [vmem:[%s13398_s2 + $0x30] ss:$12 sps:$4 sm:$0xff]  }
 0x782   :  { %8102 = vmatprep.mubr.bf16.mxu0 %v10171_v49  ;;  %1898 = vmatprep.subr.bf16.mxu1 %v8740_v29 }
 0x783   :  { %8088 = vmatprep.subr.bf16.mxu0 %v8741_v47  ;;  %1928 = vmatprep.mubr.bf16.mxu1 %v13451_v25 }
 0x785   :  { %1899 = vmatpush1.bf16.msra.mxu1 %v8738_v35  ;;  %8089 = vmatpush3.bf16.msra.mxu0 %v8741_v47 }
 0x786   :  { %1900 = vmatprep.subr.bf16.mxu1 %v8744_v22  ;;  %8090 = vmatprep.subr.bf16.mxu0 %v8745_v61 }
 0x789   :  { %1901 = vmatpush1.bf16.msra.mxu1 %v8742_v58  ;;  %8091 = vmatpush3.bf16.msra.mxu0 %v8745_v61 }
 0x78a   :  { %1902 = vmatprep.subr.bf16.mxu1 %v8748_v62  ;;  %8092 = vmatprep.subr.bf16.mxu0 %v8749_v63 }
 0x78d   :  { %1903 = vmatpush1.bf16.msra.mxu1 %v8746_v0  ;;  %8093 = vmatpush3.bf16.msra.mxu0 %v8749_v63 }
 0x78e   :  { %1904 = vmatprep.subr.bf16.mxu1 %v8752_v1  ;;  %8094 = vmatprep.subr.bf16.mxu0 %v8753_v16 }
 0x791   :  { %1905 = vmatpush1.bf16.msra.mxu1 %v8750_v19  ;;  %8095 = vmatpush3.bf16.msra.mxu0 %v8753_v16 }
 0x792   :  { %1906 = vmatprep.subr.bf16.mxu1 %v8756_v51  ;;  %8096 = vmatprep.subr.bf16.mxu0 %v8757_v54 }
 0x795   :  { %1907 = vmatpush1.bf16.msra.mxu1 %v8754_v9  ;;  %8097 = vmatpush3.bf16.msra.mxu0 %v8757_v54 }
 0x796   :  { %1908 = vmatprep.subr.bf16.mxu1 %v8760_v36  ;;  %8098 = vmatprep.subr.bf16.mxu0 %v8761_v26 }
 0x799   :  { %1909 = vmatpush1.bf16.msra.mxu1 %v8758_v52  ;;  %8099 = vmatpush3.bf16.msra.mxu0 %v8761_v26 }
 0x79a   :  { %1910 = vmatprep.subr.bf16.mxu1 %v8764_v60  ;;  %8100 = vmatprep.subr.bf16.mxu0 %v8765_v17  ;;  %v13455_v60 = vld [vmem:[#allocation15_spill] sm:$0xff] }
 0x79d   :  { %1911 = vmatpush1.bf16.msra.mxu1 %v8762_v53  ;;  %8101 = vmatpush3.bf16.msra.mxu0 %v8765_v17  ;;  %v1540_v17 = vunpack.c.l.bf16 %v13455_v60 }
 0x79e   :  { %8118 = vmatprep.subr.bf16.mxu1 %v13450_v23 }
 0x7a0   :  { %1929 = vmatmul.mubr.bf16.vlgmr.msra.gmra.mrb[64].mxu1 %v10171_v49  ;;  %8103 = vmatmul.mubr.bf16.vlgmr.msra.gmra.mrb[48].mxu0 %v10226_v24  ;;  %v10730_v49 = vld [vmem:[%s13396_s3 + $0xc4] ss:$12 sps:$4 sm:$0xff]  }
 0x7a1   :  { %8106 = vmatprep.mubr.bf16.mxu0 %v10301_v37  ;;  %1938 = vmatprep.mubr.bf16.mxu1 %v13451_v25 }
 0x7a2   :  { %2291 = vmatprep.subr.bf16.mxu0 %v10730_v49 }
 0x7a8   :  { %1939 = vmatmul.mubr.bf16.gmra.mrb[68].mxu1 %v10226_v24  ;;  %8107 = vmatmul.mubr.bf16.gmra.mrb[52].mxu0 %v10391_v4  ;;  %v10735_v24 = vld [vmem:[%s13396_s3 + $0xc0] ss:$12 sps:$4 sm:$0xff]  }
 0x7a9   :  { %8110 = vmatprep.mubr.bf16.mxu0 %v10511_v55  ;;  %1948 = vmatprep.mubr.bf16.mxu1 %v13451_v25 }
 0x7aa   :  { %2292 = vmatpush1.bf16.msra.mxu0 %v10735_v24 }
 0x7b0   :  { %1949 = vmatmul.mubr.bf16.gmra.mrb[72].mxu1 %v10301_v37  ;;  %8111 = vmatmul.mubr.bf16.gmra.mrb[56].mxu0 %v10566_v13  ;;  %v10742_v37 = vld [vmem:[%s13396_s3 + $0xdc] ss:$12 sps:$4 sm:$0xff]  }
 0x7b1   :  { %8114 = vmatprep.mubr.bf16.mxu0 %v10636_v59  ;;  %1958 = vmatprep.mubr.bf16.mxu1 %v13451_v25 }
 0x7b2   :  { %2293 = vmatprep.subr.bf16.mxu0 %v10742_v37 }
 0x7b8   :  { %1959 = vmatmul.mubr.bf16.gmra.mrb[76].mxu1 %v10391_v4  ;;  %v10747_v4 = vld [vmem:[%s13396_s3 + $0xd8] ss:$12 sps:$4 sm:$0xff]  }
 0x7b9   :  { %1968 = vmatprep.mubr.bf16.mxu1 %v13451_v25  ;;  %2294 = vmatpush1.bf16.msra.mxu0 %v10747_v4 }
 0x7c0   :  { %1969 = vmatmul.mubr.bf16.gmra.mrb[80].mxu1 %v10511_v55  ;;  %v10754_v55 = vld [vmem:[%s13396_s3 + $0xc8] ss:$12 sps:$4 sm:$0xff]  }
 0x7c1   :  { %1978 = vmatprep.mubr.bf16.mxu1 %v13451_v25  ;;  %8119 = vmatpush3.bf16.msra.mxu1 %v10754_v55 }
 0x7c2   :  { %8120 = vmatprep.subr.bf16.mxu1 %v13450_v23 }
 0x7c5   :  { %8121 = vmatpush3.bf16.msra.mxu1 %v10770_v32 }
 0x7c6   :  { %8122 = vmatprep.subr.bf16.mxu1 %v13450_v23 }
 0x7c8   :  { %1979 = vmatmul.mubr.bf16.gmra.mrb[84].mxu1 %v10566_v13  ;;  %v10759_v13 = vld [vmem:[%s13396_s3 + $0xf4] ss:$12 sps:$4 sm:$0xff]  }
 0x7c9   :  { %1988 = vmatprep.mubr.bf16.mxu1 %v13451_v25  ;;  %2295 = vmatprep.subr.bf16.mxu0 %v10759_v13 }
 0x7ca   :  { %2296 = vmatpush1.bf16.msra.mxu0 %v10764_v48  ;;  %8123 = vmatpush3.bf16.msra.mxu1 %v10789_v27 }
 0x7cb   :  { %2297 = vmatprep.subr.bf16.mxu0 %v10778_v39  ;;  %8124 = vmatprep.subr.bf16.mxu1 %v13450_v23 }
 0x7ce   :  { %2298 = vmatpush1.bf16.msra.mxu0 %v10783_v38  ;;  %8125 = vmatpush3.bf16.msra.mxu1 %v10821_v41 }
 0x7cf   :  { %2299 = vmatprep.subr.bf16.mxu0 %v10797_v28  ;;  %8126 = vmatprep.subr.bf16.mxu1 %v13450_v23 }
 0x7d0   :  { %1989 = vmatmul.mubr.bf16.gmra.mrb[88].mxu1 %v10636_v59  ;;  %v1542_v59 = vunpack.c.h.bf16 %v13454_v46 }
 0x7d1   :  { %1998 = vmatprep.mubr.bf16.mxu1 %v13451_v25 }
 0x7d2   :  { %2300 = vmatpush1.bf16.msra.mxu0 %v10802_v33  ;;  %8127 = vmatpush3.bf16.msra.mxu1 %v10852_v57 }
 0x7d3   :  { %2301 = vmatprep.subr.bf16.mxu0 %v10811_v34  ;;  %8128 = vmatprep.subr.bf16.mxu1 %v13450_v23 }
 0x7d6   :  { %2302 = vmatpush1.bf16.msra.mxu0 %v10816_v30  ;;  %8129 = vmatpush3.bf16.msra.mxu1 %v10862_v42 }
 0x7d7   :  { %2303 = vmatprep.subr.bf16.mxu0 %v10829_v20  ;;  %8130 = vmatprep.subr.bf16.mxu1 %v13450_v23 }
 0x7da   :  { %2304 = vmatpush1.bf16.msra.mxu0 %v10834_v3  ;;  %8131 = vmatpush3.bf16.msra.mxu1 %v10869_v14 }
 0x7db   :  { %2305 = vmatprep.subr.bf16.mxu0 %v10842_v21  ;;  %8132 = vmatprep.subr.bf16.mxu1 %v13450_v23 }
 0x7de   :  { %2306 = vmatpush1.bf16.msra.mxu0 %v10847_v31  ;;  %8133 = vmatpush3.bf16.msra.mxu1 %v10876_v50 }
 0x7df   :  { %2436 = vmatprep.subr.bf16.mxu0 %v10730_v49  ;;  %8138 = vmatprep.subr.bf16.mxu1 %v13450_v23 }
 0x853   :  { %v1578_v2 = vpop.f32.mrb[60].mxu1  ;;  %v1621_v5 = vpop.f32.mrb[44].mxu0 }
 0x854   :  { %v1628_v7 = vadd.f32 %v1578_v2, %v1538_v44  ;;  %v1580_v10 = vpop.f32.mrb[61].mxu1  ;;  %v8084_v6 = vpop.f32.mrb[45].mxu0  ;;  %v1656_v26 = vadd.f32 %v10619_v8, %v1621_v5  ;;  %v1543_v2 = vunpack.c.h.bf16 %v13455_v60 }
 0x855   :  { %v1642_v15 = vadd.f32 %v1580_v10, %v1539_v43  ;;  %v1582_v12 = vpop.f32.mrb[62].mxu1  ;;  %v1624_v56 = vpop.f32.mrb[46].mxu0  ;;  %v13456_v10 = vld [vmem:[#allocation12_spill] sm:$0xff] }
 0x856   :  { %v7125_v29 = vmul.f32 -1.442695, %v1628_v7  ;;  %v1629_v47 = vadd.f32 %v1582_v12, %v1541_v11  ;;  %v1584_v35 = vpop.f32.mrb[63].mxu1  ;;  %v8085_v22 = vpop.f32.mrb[47].mxu0  ;;  %v1657_v40 = vadd.f32 %v10619_v8, %v1624_v56  ;;  %v9599_v7 = vld [vmem:[%s13394_s4 + $0x3] sm:$0x7] }
 0x857   :  { %v1643_v61 = vadd.f32 %v1584_v35, %v1542_v59  ;;  %v7127_v62 = vmul.f32 -1.442695, %v1642_v15  ;;  %v10892_v6 = vrot.slane %v9599_v7, %v13456_v10  ;;  %v13457_v8 = vld [vmem:[#allocation5_spill] sm:$0xff] }
 0x858   :  { %9074 = vpow2.f32 %v7125_v29  ;;  %v7126_v58 = vmul.f32 -1.442695, %v1629_v47 }
 0x859   :  { %v7128_v63 = vmul.f32 -1.442695, %v1643_v61 }
 0x85a   :  { %9076 = vpow2.f32 %v7126_v58 }
 0x85b   :  { %9078 = vpow2.f32 %v7127_v62 }
 0x85c   :  { %9080 = vpow2.f32 %v7128_v63  ;;  %v13458_v63 = vld [vmem:[#allocation6_spill] sm:$0xff] }
 0x862   :  { %v9075_v0 = vpop.eup %9074 }
 0x863   :  { %v1636_v1 = vadd.f32 1.0, %v9075_v0 }
 0x864   :  { %v9077_v16 = vpop.eup %9076 }
 0x865   :  { %9082 = vrcp.f32 %v1636_v1  ;;  %v1637_v19 = vadd.f32 1.0, %v9077_v16  ;;  %v9079_v51 = vpop.eup %9078 }
 0x866   :  { %v9081_v54 = vpop.eup %9080  ;;  %v1650_v9 = vadd.f32 1.0, %v9079_v51 }
 0x867   :  { %9084 = vrcp.f32 %v1637_v19  ;;  %v1651_v36 = vadd.f32 1.0, %v9081_v54 }
 0x868   :  { %9086 = vrcp.f32 %v1650_v9 }
 0x869   :  { %9088 = vrcp.f32 %v1651_v36 }
 0x86f   :  { %v9083_v52 = vpop.eup %9082 }
 0x870   :  { %v1658_v53 = vmul.f32 %v9083_v52, %v1656_v26 }
 0x871   :  { %v9085_v44 = vpop.eup %9084 }
 0x872   :  { %v1660_v46 = vadd.f32 %v1658_v53, %v1540_v17  ;;  %v1659_v43 = vmul.f32 %v9085_v44, %v1657_v40  ;;  %v9087_v9 = vpop.eup %9086 }
 0x873   :  { %v1930_v5 = vpop.f32.mrb[64].mxu1  ;;  %v8104_v11 = vpop.f32.mrb[48].mxu0 }
 0x874   :  { %9090 = vtanh.f32 %v1660_v46  ;;  %v1661_v15 = vadd.f32 %v1659_v43, %v1543_v2  ;;  %v1932_v12 = vpop.f32.mrb[65].mxu1  ;;  %v2043_v59 = vpop.f32.mrb[49].mxu0  ;;  %v1931_v56 = vadd.f32 %v1930_v5, %v13457_v8  ;;  %v2052_v35 = vadd.f32 %v8104_v11, %v10892_v6 }
 0x875   :  { %v1934_v29 = vpop.f32.mrb[66].mxu1  ;;  %v8105_v47 = vpop.f32.mrb[50].mxu0  ;;  %v1933_v0 = vadd.f32 %v1932_v12, %v13458_v63  ;;  %v2044_v1 = vadd.f32 %v2043_v59, %v10892_v6  ;;  %v1664_v43 = vsub.f32 1.0, %v9087_v9  ;;  %v1668_v5 = vmul.f32 %v9087_v9, %v10627_v45 }
 0x876   :  { %9092 = vtanh.f32 %v1661_v15  ;;  %v1935_v22 = vadd.f32 %v1934_v29, %v13457_v8  ;;  %v2055_v61 = vadd.f32 %v8105_v47, %v10892_v6  ;;  %v1936_v58 = vpop.f32.mrb[67].mxu1  ;;  %v2046_v62 = vpop.f32.mrb[51].mxu0 }
 0x877   :  { %v1937_v16 = vadd.f32 %v1936_v58, %v13458_v63  ;;  %v2047_v19 = vadd.f32 %v2046_v62, %v10892_v6  ;;  %v9089_v52 = vpop.eup %9088 }
 0x878   :  { %v10902_v51 = vpack.c.bf16 %v1935_v22, %v1931_v56  ;;  %v10904_v54 = vpack.c.bf16 %v2055_v61, %v2052_v35  ;;  %v1665_v7 = vsub.f32 1.0, %v9089_v52 }
 0x879   :  { %v10906_v36 = vpack.c.bf16 %v1937_v16, %v1933_v0  ;;  %v10908_v26 = vpack.c.bf16 %v2047_v19, %v2044_v1  ;;  %v1669_v1 = vmul.f32 %v9089_v52, %v10629_v18 }
 0x87b   :  { %v1940_v60 = vpop.f32.mrb[68].mxu1  ;;  %v8108_v17 = vpop.f32.mrb[52].mxu0 }
 0x87c   :  { %v1942_v53 = vpop.f32.mrb[69].mxu1  ;;  %v2059_v40 = vpop.f32.mrb[53].mxu0  ;;  %v1941_v44 = vadd.f32 %v1940_v60, %v13457_v8  ;;  %v2068_v15 = vadd.f32 %v8108_v17, %v10892_v6 }
 0x87d   :  { %v1944_v2 = vpop.f32.mrb[70].mxu1  ;;  %v8109_v46 = vpop.f32.mrb[54].mxu0  ;;  %v1943_v12 = vadd.f32 %v1942_v53, %v13458_v63  ;;  %v2060_v35 = vadd.f32 %v2059_v40, %v10892_v6 }
 0x87e   :  { %v9091_v11 = vpop.eup %9090  ;;  %v1945_v59 = vadd.f32 %v1944_v2, %v13457_v8  ;;  %v2071_v56 = vadd.f32 %v8109_v46, %v10892_v6  ;;  %v1946_v29 = vpop.f32.mrb[71].mxu1 }
 0x87f   :  { %v2062_v47 = vpop.f32.mrb[55].mxu0  ;;  %v1947_v22 = vadd.f32 %v1946_v29, %v13458_v63  ;;  %v1666_v58 = vmul.f32 %v9091_v11, %v1664_v43 }
 0x880   :  { %v2063_v61 = vadd.f32 %v2062_v47, %v10892_v6  ;;  %v9093_v62 = vpop.eup %9092  ;;  %v10919_v45 = vpack.c.bf16 %v1945_v59, %v1941_v44  ;;  %v10921_v0 = vpack.c.bf16 %v2071_v56, %v2068_v15 }
 0x881   :  { %v10924_v16 = vpack.c.bf16 %v1947_v22, %v1943_v12  ;;  %v1667_v9 = vmul.f32 %v9093_v62, %v1665_v7  ;;  %v1670_v60 = vadd.f32 %v1668_v5, %v1666_v58 }
 0x882   :  { %v10926_v19 = vpack.c.bf16 %v2063_v61, %v2060_v35 }
 0x883   :  { %v1950_v17 = vpop.f32.mrb[72].mxu1  ;;  %v8112_v53 = vpop.f32.mrb[56].mxu0  ;;  %v1671_v40 = vadd.f32 %v1669_v1, %v1667_v9 }
 0x884   :  { %v1952_v2 = vpop.f32.mrb[73].mxu1  ;;  %v2075_v46 = vpop.f32.mrb[57].mxu0  ;;  %v1951_v43 = vadd.f32 %v1950_v17, %v13457_v8  ;;  %v2084_v15 = vadd.f32 %v8112_v53, %v10892_v6 }
 0x885   :  { %v1954_v11 = vpop.f32.mrb[74].mxu1  ;;  %v8113_v44 = vpop.f32.mrb[58].mxu0  ;;  %v1672_v59 = vpack.c.bf16 %v1671_v40, %v1670_v60  ;;  %v1953_v18 = vadd.f32 %v1952_v2, %v13458_v63  ;;  %v2076_v56 = vadd.f32 %v2075_v46, %v10892_v6 }
 0x886   :  { %v1955_v52 = vadd.f32 %v1954_v11, %v13457_v8  ;;  %v2087_v12 = vadd.f32 %v8113_v44, %v10892_v6  ;;  %v1956_v7 = vpop.f32.mrb[75].mxu1  ;;  %v2078_v5 = vpop.f32.mrb[59].mxu0 }
 0x887   :  { %v1957_v29 = vadd.f32 %v1956_v7, %v13458_v63  ;;  %v2079_v47 = vadd.f32 %v2078_v5, %v10892_v6  ;;  %1999 = vmatmul.mubr.bf16.gmra.mrb[92].mxu1 %v1672_v59  ;;  %8115 = vmatmul.mubr.bf16.gmra.mrb[60].mxu0 %v1672_v59 }
 0x888   :  { %v10936_v35 = vpack.c.bf16 %v1955_v52, %v1951_v43  ;;  %v10938_v22 = vpack.c.bf16 %v2087_v12, %v2084_v15  ;;  %2323 = vmatprep.mubr.bf16.mxu0 %v13451_v25  ;;  %8134 = vmatprep.mubr.msk.bf16.mxu1 %vm9680_vm2, %v13450_v23 }
 0x889   :  { %v10943_v61 = vpack.c.bf16 %v1957_v29, %v1953_v18  ;;  %v10945_v58 = vpack.c.bf16 %v2079_v47, %v2076_v56 }
 0x88a   :  { %13459 = vst [vmem:[#allocation11_spill] sm:$0xff] %v10938_v22 }
 0x88b   :  { %v1960_v62 = vpop.f32.mrb[76].mxu1 }
 0x88c   :  { %v1962_v1 = vpop.f32.mrb[77].mxu1  ;;  %v1961_v60 = vadd.f32 %v1960_v62, %v13457_v8 }
 0x88d   :  { %v1964_v9 = vpop.f32.mrb[78].mxu1  ;;  %v1963_v40 = vadd.f32 %v1962_v1, %v13458_v63 }
 0x88e   :  { %v1965_v17 = vadd.f32 %v1964_v9, %v13457_v8  ;;  %v1966_v53 = vpop.f32.mrb[79].mxu1 }
 0x88f   :  { %v1967_v2 = vadd.f32 %v1966_v53, %v13458_v63  ;;  %2324 = vmatmul.mubr.bf16.vlgmr.msra.gmra.mrb[64].mxu0 %v13451_v25  ;;  %8135 = vmatmul.mubr.bf16.vlgmr.msra.gmra.mrb[96].mxu1 %v13451_v25 }
 0x890   :  { %v10953_v46 = vpack.c.bf16 %v1965_v17, %v1961_v60  ;;  %2437 = vmatpush1.bf16.msra.mxu0 %v10735_v24  ;;  %8139 = vmatpush3.bf16.msra.mxu1 %v10754_v55 }
 0x891   :  { %v10957_v43 = vpack.c.bf16 %v1967_v2, %v1963_v40  ;;  %2438 = vmatprep.subr.bf16.mxu0 %v10742_v37  ;;  %8140 = vmatprep.subr.bf16.mxu1 %v13450_v23 }
 0x892   :  { %2468 = vmatprep.mubr.bf16.mxu0 %v13451_v25  ;;  %8154 = vmatprep.mubr.msk.bf16.mxu1 %vm9680_vm2, %v13450_v23 }
 0x893   :  { %v1970_v11 = vpop.f32.mrb[80].mxu1 }
 0x894   :  { %v1972_v44 = vpop.f32.mrb[81].mxu1  ;;  %2439 = vmatpush1.bf16.msra.mxu0 %v10747_v4  ;;  %8141 = vmatpush3.bf16.msra.mxu1 %v10770_v32  ;;  %v1971_v15 = vadd.f32 %v1970_v11, %v13457_v8 }
 0x895   :  { %v1974_v59 = vpop.f32.mrb[82].mxu1  ;;  %2440 = vmatprep.subr.bf16.mxu0 %v10759_v13  ;;  %8142 = vmatprep.subr.bf16.mxu1 %v13450_v23  ;;  %v1973_v12 = vadd.f32 %v1972_v44, %v13458_v63 }
 0x896   :  { %v1975_v18 = vadd.f32 %v1974_v59, %v13457_v8  ;;  %v1976_v52 = vpop.f32.mrb[83].mxu1 }
 0x897   :  { %v1977_v7 = vadd.f32 %v1976_v52, %v13458_v63 }
 0x898   :  { %v10972_v5 = vpack.c.bf16 %v1975_v18, %v1971_v15  ;;  %2441 = vmatpush1.bf16.msra.mxu0 %v10764_v48  ;;  %8143 = vmatpush3.bf16.msra.mxu1 %v10789_v27 }
 0x899   :  { %v10976_v56 = vpack.c.bf16 %v1977_v7, %v1973_v12  ;;  %2442 = vmatprep.subr.bf16.mxu0 %v10778_v39  ;;  %8144 = vmatprep.subr.bf16.mxu1 %v13450_v23 }
 0x89b   :  { %v1980_v29 = vpop.f32.mrb[84].mxu1 }
 0x89c   :  { %v1982_v47 = vpop.f32.mrb[85].mxu1  ;;  %2443 = vmatpush1.bf16.msra.mxu0 %v10783_v38  ;;  %8145 = vmatpush3.bf16.msra.mxu1 %v10821_v41  ;;  %v1981_v1 = vadd.f32 %v1980_v29, %v13457_v8 }
 0x89d   :  { %v1984_v62 = vpop.f32.mrb[86].mxu1  ;;  %2444 = vmatprep.subr.bf16.mxu0 %v10797_v28  ;;  %8146 = vmatprep.subr.bf16.mxu1 %v13450_v23  ;;  %v1983_v17 = vadd.f32 %v1982_v47, %v13458_v63 }
 0x89e   :  { %v1985_v9 = vadd.f32 %v1984_v62, %v13457_v8  ;;  %v1986_v60 = vpop.f32.mrb[87].mxu1 }
 0x89f   :  { %v1987_v53 = vadd.f32 %v1986_v60, %v13458_v63 }
 0x8a0   :  { %v10988_v40 = vpack.c.bf16 %v1985_v9, %v1981_v1  ;;  %2445 = vmatpush1.bf16.msra.mxu0 %v10802_v33  ;;  %8147 = vmatpush3.bf16.msra.mxu1 %v10852_v57 }
 0x8a1   :  { %v10992_v2 = vpack.c.bf16 %v1987_v53, %v1983_v17  ;;  %2446 = vmatprep.subr.bf16.mxu0 %v10811_v34  ;;  %8148 = vmatprep.subr.bf16.mxu1 %v13450_v23 }
 0x8a3   :  { %13460 = vst [vmem:[#allocation13_spill] sm:$0xff] %v10992_v2  ;;  %v1990_v11 = vpop.f32.mrb[88].mxu1 }
 0x8a4   :  { %v1992_v44 = vpop.f32.mrb[89].mxu1  ;;  %2447 = vmatpush1.bf16.msra.mxu0 %v10816_v30  ;;  %8149 = vmatpush3.bf16.msra.mxu1 %v10862_v42  ;;  %v1991_v15 = vadd.f32 %v1990_v11, %v13457_v8 }
 0x8a5   :  { %v1994_v59 = vpop.f32.mrb[90].mxu1  ;;  %2448 = vmatprep.subr.bf16.mxu0 %v10829_v20  ;;  %8150 = vmatprep.subr.bf16.mxu1 %v13450_v23  ;;  %v1993_v12 = vadd.f32 %v1992_v44, %v13458_v63 }
 0x8a6   :  { %v1995_v18 = vadd.f32 %v1994_v59, %v13457_v8  ;;  %v1996_v52 = vpop.f32.mrb[91].mxu1 }
 0x8a7   :  { %v1997_v7 = vadd.f32 %v1996_v52, %v13458_v63 }
 0x8a8   :  { %v11004_v29 = vpack.c.bf16 %v1995_v18, %v1991_v15  ;;  %2449 = vmatpush1.bf16.msra.mxu0 %v10834_v3  ;;  %8151 = vmatpush3.bf16.msra.mxu1 %v10869_v14 }
 0x8a9   :  { %v11008_v47 = vpack.c.bf16 %v1997_v7, %v1993_v12  ;;  %2450 = vmatprep.subr.bf16.mxu0 %v10842_v21  ;;  %8152 = vmatprep.subr.bf16.mxu1 %v13450_v23 }
 0x8aa   :  { %13461 = vst [vmem:[#allocation14_spill] sm:$0xff] %v11004_v29 }
 0x8ab   :  { %13462 = vst [vmem:[#allocation15_spill] sm:$0xff] %v11008_v47 }
 0x8ac   :  { %2451 = vmatpush1.bf16.msra.mxu0 %v10847_v31  ;;  %8153 = vmatpush3.bf16.msra.mxu1 %v10876_v50 }
 0x8ad   :  { %2576 = vmatprep.subr.bf16.mxu0 %v10730_v49  ;;  %8158 = vmatprep.subr.bf16.mxu1 %v13450_v23 }
 0x95a   :  { %v2000_v62 = vpop.f32.mrb[92].mxu1  ;;  %v8116_v1 = vpop.f32.mrb[60].mxu0 }
 0x95b   :  { %v2002_v9 = vpop.f32.mrb[93].mxu1  ;;  %v2091_v60 = vpop.f32.mrb[61].mxu0  ;;  %v2001_v11 = vadd.f32 %v2000_v62, %v13457_v8  ;;  %v2100_v44 = vadd.f32 %v8116_v1, %v10892_v6 }
 0x95c   :  { %v2004_v17 = vpop.f32.mrb[94].mxu1  ;;  %v8117_v53 = vpop.f32.mrb[62].mxu0  ;;  %v2003_v12 = vadd.f32 %v2002_v9, %v13458_v63  ;;  %v2092_v7 = vadd.f32 %v2091_v60, %v10892_v6 }
 0x95d   :  { %v2005_v59 = vadd.f32 %v2004_v17, %v13457_v8  ;;  %v2103_v15 = vadd.f32 %v8117_v53, %v10892_v6  ;;  %v2006_v18 = vpop.f32.mrb[95].mxu1  ;;  %v2094_v52 = vpop.f32.mrb[63].mxu0  ;;  %v2157_v8 = vunpack.c.l.bf16 %v10902_v51  ;;  %v2158_v53 = vunpack.c.l.bf16 %v10906_v36 }
 0x95e   :  { %v2007_v10 = vadd.f32 %v2006_v18, %v13458_v63  ;;  %v2095_v47 = vadd.f32 %v2094_v52, %v10892_v6  ;;  %v2160_v63 = vunpack.c.h.bf16 %v10902_v51 }
 0x95f   :  { %v11024_v29 = vpack.c.bf16 %v2005_v59, %v2001_v11  ;;  %v11026_v22 = vpack.c.bf16 %v2103_v15, %v2100_v44  ;;  %v2161_v44 = vunpack.c.h.bf16 %v10906_v36 }
 0x960   :  { %v11028_v62 = vpack.c.bf16 %v2007_v10, %v2003_v12  ;;  %v11030_v1 = vpack.c.bf16 %v2095_v47, %v2092_v7 }
 0x961   :  { %13463 = vst [vmem:[#allocation5_spill] sm:$0xff] %v11024_v29  ;;  %13464 = vst [vmem:[#allocation6_spill] sm:$0xff] %v11026_v22 }
 0x962   :  { %13465 = vst [vmem:[#allocation16_spill] sm:$0xff] %v11028_v62  ;;  %v2325_v17 = vpop.f32.mrb[64].mxu0  ;;  %v2368_v9 = vpop.f32.mrb[96].mxu1 }
 0x963   :  { %v2375_v2 = vadd.f32 %v2325_v17, %v2157_v8  ;;  %v2327_v60 = vpop.f32.mrb[65].mxu0  ;;  %v8136_v18 = vpop.f32.mrb[97].mxu1 }
 0x964   :  { %v2389_v6 = vadd.f32 %v2327_v60, %v2158_v53  ;;  %v2329_v11 = vpop.f32.mrb[66].mxu0  ;;  %v2371_v59 = vpop.f32.mrb[98].mxu1 }
 0x965   :  { %v7211_v10 = vmul.f32 -1.442695, %v2375_v2  ;;  %v2376_v15 = vadd.f32 %v2329_v11, %v2160_v63  ;;  %v2331_v47 = vpop.f32.mrb[67].mxu0  ;;  %v8137_v52 = vpop.f32.mrb[99].mxu1  ;;  %v11039_v2 = vld [vmem:[%s13397_s5 + $0x1] ss:$0 sm:$0xff] }
 0x966   :  { %v2390_v12 = vadd.f32 %v2331_v47, %v2161_v44  ;;  %v7213_v22 = vmul.f32 -1.442695, %v2389_v6  ;;  %v2409_v18 = vadd.f32 %v11039_v2, %v2368_v9  ;;  %v2410_v44 = vadd.f32 %v11039_v2, %v2371_v59 }
 0x967   :  { %9094 = vpow2.f32 %v7211_v10  ;;  %v7212_v7 = vmul.f32 -1.442695, %v2376_v15  ;;  %v2162_v15 = vunpack.c.h.bf16 %v10908_v26 }
 0x968   :  { %v7214_v62 = vmul.f32 -1.442695, %v2390_v12 }
 0x969   :  { %9096 = vpow2.f32 %v7212_v7 }
 0x96a   :  { %9098 = vpow2.f32 %v7213_v22  ;;  %v2159_v22 = vunpack.c.l.bf16 %v10908_v26 }
 0x96b   :  { %9100 = vpow2.f32 %v7214_v62 }
 0x971   :  { %v9095_v8 = vpop.eup %9094 }
 0x972   :  { %v2383_v51 = vadd.f32 1.0, %v9095_v8 }
 0x973   :  { %v9097_v17 = vpop.eup %9096 }
 0x974   :  { %9102 = vrcp.f32 %v2383_v51  ;;  %v2384_v53 = vadd.f32 1.0, %v9097_v17  ;;  %v9099_v36 = vpop.eup %9098 }
 0x975   :  { %v9101_v60 = vpop.eup %9100  ;;  %v2397_v63 = vadd.f32 1.0, %v9099_v36 }
 0x976   :  { %9104 = vrcp.f32 %v2384_v53  ;;  %v2398_v6 = vadd.f32 1.0, %v9101_v60 }
 0x977   :  { %9106 = vrcp.f32 %v2397_v63 }
 0x978   :  { %9108 = vrcp.f32 %v2398_v6  ;;  %v2430_v6 = vunpack.c.l.bf16 %v10919_v45 }
 0x97e   :  { %v9103_v11 = vpop.eup %9102 }
 0x97f   :  { %v2411_v62 = vmul.f32 %v9103_v11, %v2409_v18 }
 0x980   :  { %v9105_v10 = vpop.eup %9104 }
 0x981   :  { %v2413_v47 = vadd.f32 %v2411_v62, %v2159_v22  ;;  %v2412_v52 = vmul.f32 %v9105_v10, %v2410_v44  ;;  %v9107_v7 = vpop.eup %9106  ;;  %v2431_v44 = vunpack.c.l.bf16 %v10924_v16 }
 0x982   :  { %v9109_v8 = vpop.eup %9108  ;;  %v2417_v9 = vsub.f32 1.0, %v9107_v7  ;;  %v2421_v36 = vmul.f32 0.0, %v9107_v7 }
 0x983   :  { %9110 = vtanh.f32 %v2413_v47  ;;  %v2414_v12 = vadd.f32 %v2412_v52, %v2162_v15  ;;  %v2418_v17 = vsub.f32 1.0, %v9109_v8  ;;  %v2422_v18 = vmul.f32 0.0, %v9109_v8 }
 0x984   :  { %v2433_v52 = vunpack.c.h.bf16 %v10919_v45 }
 0x985   :  { %9112 = vtanh.f32 %v2414_v12 }
 0x98d   :  { %v9111_v51 = vpop.eup %9110 }
 0x98e   :  { %v2419_v53 = vmul.f32 %v9111_v51, %v2417_v9  ;;  %v2434_v9 = vunpack.c.h.bf16 %v10924_v16 }
 0x98f   :  { %v9113_v60 = vpop.eup %9112 }
 0x990   :  { %v2420_v63 = vmul.f32 %v9113_v60, %v2418_v17  ;;  %v11045_v59 = vadd.f32 %v2421_v36, %v2419_v53 }
 0x992   :  { %v11047_v11 = vadd.f32 %v2422_v18, %v2420_v63 }
 0x994   :  { %v11051_v26 = vpack.c.bf16 %v11047_v11, %v11045_v59 }
 0x996   :  { %2469 = vmatmul.mubr.bf16.vlgmr.msra.gmra.mrb[68].mxu0 %v11051_v26  ;;  %8155 = vmatmul.mubr.bf16.vlgmr.msra.gmra.mrb[100].mxu1 %v11051_v26 }
 0x997   :  { %2577 = vmatpush1.bf16.msra.mxu0 %v10735_v24  ;;  %8159 = vmatpush3.bf16.msra.mxu1 %v10754_v55 }
 0x998   :  { %2578 = vmatprep.subr.bf16.mxu0 %v10742_v37  ;;  %8160 = vmatprep.subr.bf16.mxu1 %v13450_v23 }
 0x999   :  { %2608 = vmatprep.mubr.bf16.mxu0 %v13451_v25  ;;  %8174 = vmatprep.mubr.msk.bf16.mxu1 %vm9680_vm2, %v13450_v23 }
 0x99b   :  { %2579 = vmatpush1.bf16.msra.mxu0 %v10747_v4  ;;  %8161 = vmatpush3.bf16.msra.mxu1 %v10770_v32 }
 0x99c   :  { %2580 = vmatprep.subr.bf16.mxu0 %v10759_v13  ;;  %8162 = vmatprep.subr.bf16.mxu1 %v13450_v23 }
 0x99f   :  { %2581 = vmatpush1.bf16.msra.mxu0 %v10764_v48  ;;  %8163 = vmatpush3.bf16.msra.mxu1 %v10789_v27 }
 0x9a0   :  { %2582 = vmatprep.subr.bf16.mxu0 %v10778_v39  ;;  %8164 = vmatprep.subr.bf16.mxu1 %v13450_v23 }
 0x9a3   :  { %2583 = vmatpush1.bf16.msra.mxu0 %v10783_v38  ;;  %8165 = vmatpush3.bf16.msra.mxu1 %v10821_v41 }
 0x9a4   :  { %2584 = vmatprep.subr.bf16.mxu0 %v10797_v28  ;;  %8166 = vmatprep.subr.bf16.mxu1 %v13450_v23 }
 0x9a7   :  { %2585 = vmatpush1.bf16.msra.mxu0 %v10802_v33  ;;  %8167 = vmatpush3.bf16.msra.mxu1 %v10852_v57 }
 0x9a8   :  { %2586 = vmatprep.subr.bf16.mxu0 %v10811_v34  ;;  %8168 = vmatprep.subr.bf16.mxu1 %v13450_v23 }
 0x9ab   :  { %2587 = vmatpush1.bf16.msra.mxu0 %v10816_v30  ;;  %8169 = vmatpush3.bf16.msra.mxu1 %v10862_v42 }
 0x9ac   :  { %2588 = vmatprep.subr.bf16.mxu0 %v10829_v20  ;;  %8170 = vmatprep.subr.bf16.mxu1 %v13450_v23 }
 0x9af   :  { %2589 = vmatpush1.bf16.msra.mxu0 %v10834_v3  ;;  %8171 = vmatpush3.bf16.msra.mxu1 %v10869_v14 }
 0x9b0   :  { %2590 = vmatprep.subr.bf16.mxu0 %v10842_v21  ;;  %8172 = vmatprep.subr.bf16.mxu1 %v13450_v23 }
 0x9b3   :  { %2591 = vmatpush1.bf16.msra.mxu0 %v10847_v31  ;;  %8173 = vmatpush3.bf16.msra.mxu1 %v10876_v50 }
 0x9b4   :  { %2716 = vmatprep.subr.bf16.mxu0 %v10730_v49  ;;  %8178 = vmatprep.subr.bf16.mxu1 %v13450_v23 }
 0xa69   :  { %v2470_v22 = vpop.f32.mrb[68].mxu0  ;;  %v2513_v62 = vpop.f32.mrb[100].mxu1 }
 0xa6a   :  { %v2520_v10 = vadd.f32 %v2470_v22, %v2430_v6  ;;  %v2472_v15 = vpop.f32.mrb[69].mxu0  ;;  %v8156_v47 = vpop.f32.mrb[101].mxu1 }
 0xa6b   :  { %v2534_v12 = vadd.f32 %v2472_v15, %v2431_v44  ;;  %v2474_v7 = vpop.f32.mrb[70].mxu0  ;;  %v2516_v8 = vpop.f32.mrb[102].mxu1  ;;  %v2548_v47 = vadd.f32 %v11039_v2, %v2513_v62 }
 0xa6c   :  { %v7216_v51 = vmul.f32 -1.442695, %v2520_v10  ;;  %v2521_v17 = vadd.f32 %v2474_v7, %v2433_v52  ;;  %v2476_v53 = vpop.f32.mrb[71].mxu0  ;;  %v8157_v36 = vpop.f32.mrb[103].mxu1 }
 0xa6d   :  { %v2535_v60 = vadd.f32 %v2476_v53, %v2434_v9  ;;  %v7218_v18 = vmul.f32 -1.442695, %v2534_v12  ;;  %v2432_v9 = vunpack.c.l.bf16 %v10904_v54  ;;  %v2549_v12 = vadd.f32 %v11039_v2, %v2516_v8 }
 0xa6e   :  { %9114 = vpow2.f32 %v7216_v51  ;;  %v7217_v63 = vmul.f32 -1.442695, %v2521_v17  ;;  %v2435_v17 = vunpack.c.h.bf16 %v10904_v54 }
 0xa6f   :  { %v7219_v29 = vmul.f32 -1.442695, %v2535_v60 }
 0xa70   :  { %9116 = vpow2.f32 %v7217_v63 }
 0xa71   :  { %9118 = vpow2.f32 %v7218_v18 }
 0xa72   :  { %9120 = vpow2.f32 %v7219_v29 }
 0xa78   :  { %v9115_v6 = vpop.eup %9114 }
 0xa79   :  { %v2528_v22 = vadd.f32 1.0, %v9115_v6 }
 0xa7a   :  { %v9117_v45 = vpop.eup %9116 }
 0xa7b   :  { %9122 = vrcp.f32 %v2528_v22  ;;  %v2529_v44 = vadd.f32 1.0, %v9117_v45  ;;  %v9119_v15 = vpop.eup %9118 }
 0xa7c   :  { %v9121_v16 = vpop.eup %9120  ;;  %v2542_v10 = vadd.f32 1.0, %v9119_v15 }
 0xa7d   :  { %9124 = vrcp.f32 %v2529_v44  ;;  %v2543_v52 = vadd.f32 1.0, %v9121_v16 }
 0xa7e   :  { %9126 = vrcp.f32 %v2542_v10 }
 0xa7f   :  { %9128 = vrcp.f32 %v2543_v52 }
 0xa85   :  { %v9123_v7 = vpop.eup %9122 }
 0xa86   :  { %v2550_v51 = vmul.f32 %v9123_v7, %v2548_v47 }
 0xa87   :  { %v9125_v29 = vpop.eup %9124 }
 0xa88   :  { %v2552_v53 = vadd.f32 %v2550_v51, %v2432_v9  ;;  %v2551_v36 = vmul.f32 %v9125_v29, %v2549_v12  ;;  %v9127_v63 = vpop.eup %9126  ;;  %v2572_v9 = vunpack.c.l.bf16 %v10926_v19 }
 0xa89   :  { %v9129_v18 = vpop.eup %9128  ;;  %v2556_v62 = vsub.f32 1.0, %v9127_v63  ;;  %v2560_v44 = vmul.f32 %v9127_v63, %v11045_v59 }
 0xa8a   :  { %9130 = vtanh.f32 %v2552_v53  ;;  %v2553_v60 = vadd.f32 %v2551_v36, %v2435_v17  ;;  %v2557_v22 = vsub.f32 1.0, %v9129_v18  ;;  %v2561_v8 = vmul.f32 %v9129_v18, %v11047_v11 }
 0xa8b   :  { %v2575_v17 = vunpack.c.h.bf16 %v10926_v19 }
 0xa8c   :  { %9132 = vtanh.f32 %v2553_v60 }
 0xa94   :  { %v9131_v6 = vpop.eup %9130 }
 0xa95   :  { %v2558_v45 = vmul.f32 %v9131_v6, %v2556_v62 }
 0xa96   :  { %v9133_v15 = vpop.eup %9132 }
 0xa97   :  { %v2559_v16 = vmul.f32 %v9133_v15, %v2557_v22  ;;  %v11100_v10 = vadd.f32 %v2560_v44, %v2558_v45 }
 0xa99   :  { %v11102_v54 = vadd.f32 %v2561_v8, %v2559_v16 }
 0xa9b   :  { %v11106_v47 = vpack.c.bf16 %v11102_v54, %v11100_v10 }
 0xa9d   :  { %2609 = vmatmul.mubr.bf16.vlgmr.msra.gmra.mrb[72].mxu0 %v11106_v47  ;;  %8175 = vmatmul.mubr.bf16.vlgmr.msra.gmra.mrb[104].mxu1 %v11106_v47 }
 0xa9e   :  { %2717 = vmatpush1.bf16.msra.mxu0 %v10735_v24  ;;  %8179 = vmatpush3.bf16.msra.mxu1 %v10754_v55  ;;  %v2570_v24 = vunpack.c.l.bf16 %v10936_v35  ;;  %v2571_v55 = vunpack.c.l.bf16 %v10943_v61 }
 0xa9f   :  { %2718 = vmatprep.subr.bf16.mxu0 %v10742_v37  ;;  %8180 = vmatprep.subr.bf16.mxu1 %v13450_v23 }
 0xaa0   :  { %2748 = vmatprep.mubr.bf16.mxu0 %v13451_v25  ;;  %8194 = vmatprep.mubr.msk.bf16.mxu1 %vm9680_vm2, %v13450_v23 }
 0xaa2   :  { %2719 = vmatpush1.bf16.msra.mxu0 %v10747_v4  ;;  %8181 = vmatpush3.bf16.msra.mxu1 %v10770_v32 }
 0xaa3   :  { %2720 = vmatprep.subr.bf16.mxu0 %v10759_v13  ;;  %8182 = vmatprep.subr.bf16.mxu1 %v13450_v23 }
 0xaa6   :  { %2721 = vmatpush1.bf16.msra.mxu0 %v10764_v48  ;;  %8183 = vmatpush3.bf16.msra.mxu1 %v10789_v27 }
 0xaa7   :  { %2722 = vmatprep.subr.bf16.mxu0 %v10778_v39  ;;  %8184 = vmatprep.subr.bf16.mxu1 %v13450_v23  ;;  %v2573_v39 = vunpack.c.h.bf16 %v10936_v35 }
 0xaaa   :  { %2723 = vmatpush1.bf16.msra.mxu0 %v10783_v38  ;;  %8185 = vmatpush3.bf16.msra.mxu1 %v10821_v41 }
 0xaab   :  { %2724 = vmatprep.subr.bf16.mxu0 %v10797_v28  ;;  %8186 = vmatprep.subr.bf16.mxu1 %v13450_v23 }
 0xaae   :  { %2725 = vmatpush1.bf16.msra.mxu0 %v10802_v33  ;;  %8187 = vmatpush3.bf16.msra.mxu1 %v10852_v57  ;;  %v2574_v33 = vunpack.c.h.bf16 %v10943_v61 }
 0xaaf   :  { %2726 = vmatprep.subr.bf16.mxu0 %v10811_v34  ;;  %8188 = vmatprep.subr.bf16.mxu1 %v13450_v23 }
 0xab2   :  { %2727 = vmatpush1.bf16.msra.mxu0 %v10816_v30  ;;  %8189 = vmatpush3.bf16.msra.mxu1 %v10862_v42 }
 0xab3   :  { %2728 = vmatprep.subr.bf16.mxu0 %v10829_v20  ;;  %8190 = vmatprep.subr.bf16.mxu1 %v13450_v23 }
 0xab6   :  { %2729 = vmatpush1.bf16.msra.mxu0 %v10834_v3  ;;  %8191 = vmatpush3.bf16.msra.mxu1 %v10869_v14 }
 0xab7   :  { %2730 = vmatprep.subr.bf16.mxu0 %v10842_v21  ;;  %8192 = vmatprep.subr.bf16.mxu1 %v13450_v23 }
 0xaba   :  { %2731 = vmatpush1.bf16.msra.mxu0 %v10847_v31  ;;  %8193 = vmatpush3.bf16.msra.mxu1 %v10876_v50 }
 0xabb   :  { %2856 = vmatprep.subr.bf16.mxu0 %v10730_v49  ;;  %8198 = vmatprep.subr.bf16.mxu1 %v13450_v23 }
 0xb70   :  { %v2610_v37 = vpop.f32.mrb[72].mxu0  ;;  %v2653_v4 = vpop.f32.mrb[104].mxu1 }
 0xb71   :  { %v2660_v13 = vadd.f32 %v2610_v37, %v2570_v24  ;;  %v2612_v48 = vpop.f32.mrb[73].mxu0  ;;  %v8176_v32 = vpop.f32.mrb[105].mxu1  ;;  %v2688_v11 = vadd.f32 %v11039_v2, %v2653_v4  ;;  %v11180_v4 = vld [vmem:[%s13396_s3 + $0xdc] ss:$12 sps:$4 sm:$0xff]  }
 0xb72   :  { %v2674_v38 = vadd.f32 %v2612_v48, %v2571_v55  ;;  %v2614_v27 = vpop.f32.mrb[74].mxu0  ;;  %v2656_v28 = vpop.f32.mrb[106].mxu1  ;;  %v11190_v55 = vld [vmem:[%s13396_s3 + $0xd8] ss:$12 sps:$4 sm:$0xff]   ;;  %v11202_v48 = vld [vmem:[%s13396_s3 + $0xf4] ss:$12 sps:$4 sm:$0xff]  }
 0xb73   :  { %v7220_v34 = vmul.f32 -1.442695, %v2660_v13  ;;  %v2661_v49 = vadd.f32 %v2614_v27, %v2573_v39  ;;  %v2616_v30 = vpop.f32.mrb[75].mxu0  ;;  %v8177_v41 = vpop.f32.mrb[107].mxu1  ;;  %v2689_v12 = vadd.f32 %v11039_v2, %v2656_v28  ;;  %v11196_v13 = vld [vmem:[%s13396_s3 + $0xe0] ss:$12 sps:$4 sm:$0xff]  }
 0xb74   :  { %v2675_v20 = vadd.f32 %v2616_v30, %v2574_v33  ;;  %v7222_v21 = vmul.f32 -1.442695, %v2674_v38  ;;  %v11209_v32 = vld [vmem:[%s13396_s3 + $0xf0] ss:$12 sps:$4 sm:$0xff]   ;;  %v11215_v39 = vld [vmem:[%s13396_s3 + $0xf8] ss:$12 sps:$4 sm:$0xff]  }
 0xb75   :  { %9134 = vpow2.f32 %v7220_v34  ;;  %v7221_v3 = vmul.f32 -1.442695, %v2661_v49  ;;  %v11221_v38 = vld [vmem:[%s13396_s3 + $0x10c] ss:$12 sps:$4 sm:$0xff]   ;;  %v11228_v27 = vld [vmem:[%s13396_s3 + $0x108] ss:$12 sps:$4 sm:$0xff]  }
 0xb76   :  { %v7223_v31 = vmul.f32 -1.442695, %v2675_v20  ;;  %v11234_v28 = vld [vmem:[%s13396_s3 + $0x110] ss:$12 sps:$4 sm:$0xff]   ;;  %v11247_v34 = vld [vmem:[%s13396_s3 + $0x120] ss:$12 sps:$4 sm:$0xff]  }
 0xb77   :  { %9136 = vpow2.f32 %v7221_v3  ;;  %v11240_v33 = vld [vmem:[%s13396_s3 + $0x124] ss:$12 sps:$4 sm:$0xff]   ;;  %v11253_v49 = vld [vmem:[%s13396_s3 + $0x128] ss:$12 sps:$4 sm:$0xff]   ;;  %v11272_v20 = vld [vmem:[%s13396_s3 + $0x140] ss:$12 sps:$4 sm:$0xff]  }
 0xb78   :  { %9138 = vpow2.f32 %v7222_v21  ;;  %v11259_v30 = vld [vmem:[%s13396_s3 + $0x13c] ss:$12 sps:$4 sm:$0xff]   ;;  %v11266_v41 = vld [vmem:[%s13396_s3 + $0x138] ss:$12 sps:$4 sm:$0xff]   ;;  %v11278_v3 = vld [vmem:[%s13396_s3 + $0x154] ss:$12 sps:$4 sm:$0xff]  }
 0xb79   :  { %9140 = vpow2.f32 %v7223_v31  ;;  %v11285_v21 = vld [vmem:[%s13396_s3 + $0x150] ss:$12 sps:$4 sm:$0xff]   ;;  %v11291_v31 = vld [vmem:[%s13396_s3 + $0x158] ss:$12 sps:$4 sm:$0xff]  }
 0xb7f   :  { %v9135_v57 = vpop.eup %9134 }
 0xb80   :  { %v2668_v42 = vadd.f32 1.0, %v9135_v57  ;;  %v11297_v57 = vld [vmem:[%s13396_s3 + $0x16c] ss:$12 sps:$4 sm:$0xff]  }
 0xb81   :  { %v9137_v14 = vpop.eup %9136 }
 0xb82   :  { %9142 = vrcp.f32 %v2668_v42  ;;  %v2669_v50 = vadd.f32 1.0, %v9137_v14  ;;  %v9139_v35 = vpop.eup %9138  ;;  %v11304_v42 = vld [vmem:[%s13396_s3 + $0x168] ss:$12 sps:$4 sm:$0xff]   ;;  %v11310_v14 = vld [vmem:[%s13396_s3 + $0x170] ss:$12 sps:$4 sm:$0xff]  }
 0xb83   :  { %v9141_v61 = vpop.eup %9140  ;;  %v2682_v59 = vadd.f32 1.0, %v9139_v35  ;;  %v2710_v35 = vunpack.c.l.bf16 %v10953_v46 }
 0xb84   :  { %9144 = vrcp.f32 %v2669_v50  ;;  %v2683_v52 = vadd.f32 1.0, %v9141_v61  ;;  %v11316_v50 = vld [vmem:[%s13396_s3 + $0xc4] ss:$12 sps:$4 sm:$0xff]  }
 0xb85   :  { %9146 = vrcp.f32 %v2682_v59 }
 0xb86   :  { %9148 = vrcp.f32 %v2683_v52 }
 0xb8c   :  { %v9143_v7 = vpop.eup %9142 }
 0xb8d   :  { %v2690_v51 = vmul.f32 %v9143_v7, %v2688_v11  ;;  %v2711_v11 = vunpack.c.l.bf16 %v10957_v43 }
 0xb8e   :  { %v9145_v29 = vpop.eup %9144 }
 0xb8f   :  { %v2692_v53 = vadd.f32 %v2690_v51, %v2572_v9  ;;  %v2691_v36 = vmul.f32 %v9145_v29, %v2689_v12  ;;  %v9147_v63 = vpop.eup %9146  ;;  %v2713_v51 = vunpack.c.h.bf16 %v10953_v46 }
 0xb90   :  { %v9149_v18 = vpop.eup %9148  ;;  %v2696_v62 = vsub.f32 1.0, %v9147_v63  ;;  %v2700_v44 = vmul.f32 %v9147_v63, %v11100_v10  ;;  %v11168_v10 = vld [vmem:[%s13396_s3 + $0xc0] ss:$12 sps:$4 sm:$0xff]  }
 0xb91   :  { %9150 = vtanh.f32 %v2692_v53  ;;  %v2693_v60 = vadd.f32 %v2691_v36, %v2575_v17  ;;  %v2697_v22 = vsub.f32 1.0, %v9149_v18  ;;  %v2701_v8 = vmul.f32 %v9149_v18, %v11102_v54  ;;  %v11174_v54 = vld [vmem:[%s13396_s3 + $0xc8] ss:$12 sps:$4 sm:$0xff]  }
 0xb92   :  { %v2714_v53 = vunpack.c.h.bf16 %v10957_v43 }
 0xb93   :  { %9152 = vtanh.f32 %v2693_v60 }
 0xb9b   :  { %v9151_v6 = vpop.eup %9150 }
 0xb9c   :  { %v2698_v45 = vmul.f32 %v9151_v6, %v2696_v62 }
 0xb9d   :  { %v9153_v15 = vpop.eup %9152 }
 0xb9e   :  { %v2699_v16 = vmul.f32 %v9153_v15, %v2697_v22  ;;  %v11155_v24 = vadd.f32 %v2700_v44, %v2698_v45 }
 0xba0   :  { %v11157_v19 = vadd.f32 %v2701_v8, %v2699_v16 }
 0xba2   :  { %v11161_v37 = vpack.c.bf16 %v11157_v19, %v11155_v24 }
 0xba4   :  { %2749 = vmatmul.mubr.bf16.vlgmr.msra.gmra.mrb[76].mxu0 %v11161_v37  ;;  %8195 = vmatmul.mubr.bf16.vlgmr.msra.gmra.mrb[108].mxu1 %v11161_v37 }
 0xba5   :  { %2857 = vmatpush1.bf16.msra.mxu0 %v11168_v10  ;;  %8199 = vmatpush3.bf16.msra.mxu1 %v11174_v54 }
 0xba6   :  { %2858 = vmatprep.subr.bf16.mxu0 %v11180_v4  ;;  %8200 = vmatprep.subr.bf16.mxu1 %v13450_v23 }
 0xba7   :  { %2888 = vmatprep.mubr.bf16.mxu0 %v13451_v25  ;;  %8214 = vmatprep.mubr.msk.bf16.mxu1 %vm9680_vm2, %v13450_v23 }
 0xba9   :  { %2859 = vmatpush1.bf16.msra.mxu0 %v11190_v55  ;;  %8201 = vmatpush3.bf16.msra.mxu1 %v11196_v13 }
 0xbaa   :  { %2860 = vmatprep.subr.bf16.mxu0 %v11202_v48  ;;  %8202 = vmatprep.subr.bf16.mxu1 %v13450_v23 }
 0xbad   :  { %2861 = vmatpush1.bf16.msra.mxu0 %v11209_v32  ;;  %8203 = vmatpush3.bf16.msra.mxu1 %v11215_v39 }
 0xbae   :  { %2862 = vmatprep.subr.bf16.mxu0 %v11221_v38  ;;  %8204 = vmatprep.subr.bf16.mxu1 %v13450_v23 }
 0xbb1   :  { %2863 = vmatpush1.bf16.msra.mxu0 %v11228_v27  ;;  %8205 = vmatpush3.bf16.msra.mxu1 %v11234_v28 }
 0xbb2   :  { %2864 = vmatprep.subr.bf16.mxu0 %v11240_v33  ;;  %8206 = vmatprep.subr.bf16.mxu1 %v13450_v23 }
 0xbb5   :  { %2865 = vmatpush1.bf16.msra.mxu0 %v11247_v34  ;;  %8207 = vmatpush3.bf16.msra.mxu1 %v11253_v49 }
 0xbb6   :  { %2866 = vmatprep.subr.bf16.mxu0 %v11259_v30  ;;  %8208 = vmatprep.subr.bf16.mxu1 %v13450_v23 }
 0xbb9   :  { %2867 = vmatpush1.bf16.msra.mxu0 %v11266_v41  ;;  %8209 = vmatpush3.bf16.msra.mxu1 %v11272_v20 }
 0xbba   :  { %2868 = vmatprep.subr.bf16.mxu0 %v11278_v3  ;;  %8210 = vmatprep.subr.bf16.mxu1 %v13450_v23 }
 0xbbd   :  { %2869 = vmatpush1.bf16.msra.mxu0 %v11285_v21  ;;  %8211 = vmatpush3.bf16.msra.mxu1 %v11291_v31 }
 0xbbe   :  { %2870 = vmatprep.subr.bf16.mxu0 %v11297_v57  ;;  %8212 = vmatprep.subr.bf16.mxu1 %v13450_v23 }
 0xbc1   :  { %2871 = vmatpush1.bf16.msra.mxu0 %v11304_v42  ;;  %8213 = vmatpush3.bf16.msra.mxu1 %v11310_v14 }
 0xbc2   :  { %2996 = vmatprep.subr.bf16.mxu0 %v11316_v50  ;;  %8218 = vmatprep.subr.bf16.mxu1 %v13450_v23 }
 0xc77   :  { %v2750_v61 = vpop.f32.mrb[76].mxu0  ;;  %v2793_v59 = vpop.f32.mrb[108].mxu1 }
 0xc78   :  { %v2800_v52 = vadd.f32 %v2750_v61, %v2710_v35  ;;  %v2752_v7 = vpop.f32.mrb[77].mxu0  ;;  %v8196_v9 = vpop.f32.mrb[109].mxu1  ;;  %v2828_v61 = vadd.f32 %v11039_v2, %v2793_v59 }
 0xc79   :  { %v2814_v12 = vadd.f32 %v2752_v7, %v2711_v11  ;;  %v2754_v29 = vpop.f32.mrb[78].mxu0  ;;  %v2796_v17 = vpop.f32.mrb[110].mxu1  ;;  %v2712_v7 = vunpack.c.l.bf16 %v10921_v0 }
 0xc7a   :  { %v7224_v36 = vmul.f32 -1.442695, %v2800_v52  ;;  %v2801_v60 = vadd.f32 %v2754_v29, %v2713_v51  ;;  %v2756_v63 = vpop.f32.mrb[79].mxu0  ;;  %v8197_v18 = vpop.f32.mrb[111].mxu1  ;;  %v2829_v51 = vadd.f32 %v11039_v2, %v2796_v17  ;;  %v2715_v29 = vunpack.c.h.bf16 %v10921_v0 }
 0xc7b   :  { %v2815_v62 = vadd.f32 %v2756_v63, %v2714_v53  ;;  %v7226_v22 = vmul.f32 -1.442695, %v2814_v12 }
 0xc7c   :  { %9154 = vpow2.f32 %v7224_v36  ;;  %v7225_v6 = vmul.f32 -1.442695, %v2801_v60 }
 0xc7d   :  { %v7227_v45 = vmul.f32 -1.442695, %v2815_v62 }
 0xc7e   :  { %9156 = vpow2.f32 %v7225_v6 }
 0xc7f   :  { %9158 = vpow2.f32 %v7226_v22 }
 0xc80   :  { %9160 = vpow2.f32 %v7227_v45 }
 0xc86   :  { %v9155_v44 = vpop.eup %9154 }
 0xc87   :  { %v2808_v15 = vadd.f32 1.0, %v9155_v44 }
 0xc88   :  { %v9157_v46 = vpop.eup %9156 }
 0xc89   :  { %9162 = vrcp.f32 %v2808_v15  ;;  %v2809_v16 = vadd.f32 1.0, %v9157_v46  ;;  %v9159_v8 = vpop.eup %9158 }
 0xc8a   :  { %v9161_v43 = vpop.eup %9160  ;;  %v2822_v35 = vadd.f32 1.0, %v9159_v8 }
 0xc8b   :  { %9164 = vrcp.f32 %v2809_v16  ;;  %v2823_v11 = vadd.f32 1.0, %v9161_v43  ;;  %v2851_v43 = vunpack.c.l.bf16 %v10976_v56 }
 0xc8c   :  { %9166 = vrcp.f32 %v2822_v35 }
 0xc8d   :  { %9168 = vrcp.f32 %v2823_v11 }
 0xc93   :  { %v9163_v52 = vpop.eup %9162 }
 0xc94   :  { %v2830_v9 = vmul.f32 %v9163_v52, %v2828_v61  ;;  %v2853_v52 = vunpack.c.h.bf16 %v10972_v5 }
 0xc95   :  { %v9165_v12 = vpop.eup %9164 }
 0xc96   :  { %v2832_v53 = vadd.f32 %v2830_v9, %v2712_v7  ;;  %v2831_v36 = vmul.f32 %v9165_v12, %v2829_v51  ;;  %v9167_v63 = vpop.eup %9166  ;;  %v2854_v12 = vunpack.c.h.bf16 %v10976_v56 }
 0xc97   :  { %v9169_v18 = vpop.eup %9168  ;;  %v2836_v59 = vsub.f32 1.0, %v9167_v63  ;;  %v2840_v45 = vmul.f32 %v9167_v63, %v11155_v24  ;;  %v2850_v24 = vunpack.c.l.bf16 %v10972_v5 }
 0xc98   :  { %9170 = vtanh.f32 %v2832_v53  ;;  %v2833_v60 = vadd.f32 %v2831_v36, %v2715_v29  ;;  %v2837_v6 = vsub.f32 1.0, %v9169_v18  ;;  %v2841_v17 = vmul.f32 %v9169_v18, %v11157_v19 }
 0xc9a   :  { %9172 = vtanh.f32 %v2833_v60 }
 0xca2   :  { %v9171_v62 = vpop.eup %9170 }
 0xca3   :  { %v2838_v22 = vmul.f32 %v9171_v62, %v2836_v59 }
 0xca4   :  { %v9173_v44 = vpop.eup %9172 }
 0xca5   :  { %v2839_v15 = vmul.f32 %v9173_v44, %v2837_v6  ;;  %v11330_v46 = vadd.f32 %v2840_v45, %v2838_v22 }
 0xca7   :  { %v11332_v0 = vadd.f32 %v2841_v17, %v2839_v15 }
 0xca9   :  { %v11336_v16 = vpack.c.bf16 %v11332_v0, %v11330_v46 }
 0xcab   :  { %2889 = vmatmul.mubr.bf16.vlgmr.msra.gmra.mrb[80].mxu0 %v11336_v16  ;;  %8215 = vmatmul.mubr.bf16.vlgmr.msra.gmra.mrb[112].mxu1 %v11336_v16 }
 0xcac   :  { %2997 = vmatpush1.bf16.msra.mxu0 %v11168_v10  ;;  %8219 = vmatpush3.bf16.msra.mxu1 %v11174_v54 }
 0xcad   :  { %2998 = vmatprep.subr.bf16.mxu0 %v11180_v4  ;;  %8220 = vmatprep.subr.bf16.mxu1 %v13450_v23 }
 0xcae   :  { %3028 = vmatprep.mubr.bf16.mxu0 %v13451_v25  ;;  %8234 = vmatprep.mubr.msk.bf16.mxu1 %vm9680_vm2, %v13450_v23 }
 0xcb0   :  { %2999 = vmatpush1.bf16.msra.mxu0 %v11190_v55  ;;  %8221 = vmatpush3.bf16.msra.mxu1 %v11196_v13 }
 0xcb1   :  { %3000 = vmatprep.subr.bf16.mxu0 %v11202_v48  ;;  %8222 = vmatprep.subr.bf16.mxu1 %v13450_v23 }
 0xcb4   :  { %3001 = vmatpush1.bf16.msra.mxu0 %v11209_v32  ;;  %8223 = vmatpush3.bf16.msra.mxu1 %v11215_v39 }
 0xcb5   :  { %3002 = vmatprep.subr.bf16.mxu0 %v11221_v38  ;;  %8224 = vmatprep.subr.bf16.mxu1 %v13450_v23 }
 0xcb8   :  { %3003 = vmatpush1.bf16.msra.mxu0 %v11228_v27  ;;  %8225 = vmatpush3.bf16.msra.mxu1 %v11234_v28 }
 0xcb9   :  { %3004 = vmatprep.subr.bf16.mxu0 %v11240_v33  ;;  %8226 = vmatprep.subr.bf16.mxu1 %v13450_v23 }
 0xcbc   :  { %3005 = vmatpush1.bf16.msra.mxu0 %v11247_v34  ;;  %8227 = vmatpush3.bf16.msra.mxu1 %v11253_v49 }
 0xcbd   :  { %3006 = vmatprep.subr.bf16.mxu0 %v11259_v30  ;;  %8228 = vmatprep.subr.bf16.mxu1 %v13450_v23 }
 0xcc0   :  { %3007 = vmatpush1.bf16.msra.mxu0 %v11266_v41  ;;  %8229 = vmatpush3.bf16.msra.mxu1 %v11272_v20 }
 0xcc1   :  { %3008 = vmatprep.subr.bf16.mxu0 %v11278_v3  ;;  %8230 = vmatprep.subr.bf16.mxu1 %v13450_v23 }
 0xcc4   :  { %3009 = vmatpush1.bf16.msra.mxu0 %v11285_v21  ;;  %8231 = vmatpush3.bf16.msra.mxu1 %v11291_v31 }
 0xcc5   :  { %3010 = vmatprep.subr.bf16.mxu0 %v11297_v57  ;;  %8232 = vmatprep.subr.bf16.mxu1 %v13450_v23 }
 0xcc8   :  { %3011 = vmatpush1.bf16.msra.mxu0 %v11304_v42  ;;  %8233 = vmatpush3.bf16.msra.mxu1 %v11310_v14 }
 0xcc9   :  { %3136 = vmatprep.subr.bf16.mxu0 %v11316_v50  ;;  %8238 = vmatprep.subr.bf16.mxu1 %v13450_v23 }
 0xd7e   :  { %v2890_v19 = vpop.f32.mrb[80].mxu0  ;;  %v2933_v8 = vpop.f32.mrb[112].mxu1 }
 0xd7f   :  { %v2940_v35 = vadd.f32 %v2890_v19, %v2850_v24  ;;  %v2892_v61 = vpop.f32.mrb[81].mxu0  ;;  %v8216_v11 = vpop.f32.mrb[113].mxu1  ;;  %v2968_v17 = vadd.f32 %v11039_v2, %v2933_v8 }
 0xd80   :  { %v2954_v7 = vadd.f32 %v2892_v61, %v2851_v43  ;;  %v2894_v9 = vpop.f32.mrb[82].mxu0  ;;  %v2936_v51 = vpop.f32.mrb[114].mxu1  ;;  %v2852_v43 = vunpack.c.l.bf16 %v10945_v58 }
 0xd81   :  { %v7228_v29 = vmul.f32 -1.442695, %v2940_v35  ;;  %v2941_v53 = vadd.f32 %v2894_v9, %v2853_v52  ;;  %v2896_v36 = vpop.f32.mrb[83].mxu0  ;;  %v8217_v60 = vpop.f32.mrb[115].mxu1  ;;  %v2969_v61 = vadd.f32 %v11039_v2, %v2936_v51  ;;  %v2855_v52 = vunpack.c.h.bf16 %v10945_v58 }
 0xd82   :  { %v2955_v63 = vadd.f32 %v2896_v36, %v2854_v12  ;;  %v7230_v59 = vmul.f32 -1.442695, %v2954_v7 }
 0xd83   :  { %9174 = vpow2.f32 %v7228_v29  ;;  %v7229_v18 = vmul.f32 -1.442695, %v2941_v53 }
 0xd84   :  { %v7231_v62 = vmul.f32 -1.442695, %v2955_v63 }
 0xd85   :  { %9176 = vpow2.f32 %v7229_v18 }
 0xd86   :  { %9178 = vpow2.f32 %v7230_v59 }
 0xd87   :  { %9180 = vpow2.f32 %v7231_v62 }
 0xd8d   :  { %v9175_v6 = vpop.eup %9174 }
 0xd8e   :  { %v2948_v22 = vadd.f32 1.0, %v9175_v6 }
 0xd8f   :  { %v9177_v5 = vpop.eup %9176 }
 0xd90   :  { %9182 = vrcp.f32 %v2948_v22  ;;  %v2949_v45 = vadd.f32 1.0, %v9177_v5  ;;  %v9179_v44 = vpop.eup %9178 }
 0xd91   :  { %v9181_v56 = vpop.eup %9180  ;;  %v2962_v15 = vadd.f32 1.0, %v9179_v44 }
 0xd92   :  { %9184 = vrcp.f32 %v2949_v45  ;;  %v2963_v24 = vadd.f32 1.0, %v9181_v56  ;;  %v13466_v45 = vld [vmem:[#allocation13_spill] sm:$0xff] }
 0xd93   :  { %9186 = vrcp.f32 %v2962_v15  ;;  %v2991_v44 = vunpack.c.l.bf16 %v13466_v45 }
 0xd94   :  { %9188 = vrcp.f32 %v2963_v24  ;;  %v2993_v24 = vunpack.c.h.bf16 %v10988_v40 }
 0xd9a   :  { %v9183_v19 = vpop.eup %9182 }
 0xd9b   :  { %v2970_v35 = vmul.f32 %v9183_v19, %v2968_v17 }
 0xd9c   :  { %v9185_v11 = vpop.eup %9184 }
 0xd9d   :  { %v2972_v7 = vadd.f32 %v2970_v35, %v2852_v43  ;;  %v2971_v9 = vmul.f32 %v9185_v11, %v2969_v61  ;;  %v9187_v29 = vpop.eup %9186  ;;  %v2994_v61 = vunpack.c.h.bf16 %v13466_v45 }
 0xd9e   :  { %v9189_v53 = vpop.eup %9188  ;;  %v2976_v8 = vsub.f32 1.0, %v9187_v29  ;;  %v2980_v18 = vmul.f32 %v9187_v29, %v11330_v46  ;;  %v2990_v46 = vunpack.c.l.bf16 %v10988_v40 }
 0xd9f   :  { %9190 = vtanh.f32 %v2972_v7  ;;  %v2973_v12 = vadd.f32 %v2971_v9, %v2855_v52  ;;  %v2977_v60 = vsub.f32 1.0, %v9189_v53  ;;  %v2981_v51 = vmul.f32 %v9189_v53, %v11332_v0 }
 0xda1   :  { %9192 = vtanh.f32 %v2973_v12 }
 0xda9   :  { %v9191_v36 = vpop.eup %9190 }
 0xdaa   :  { %v2978_v63 = vmul.f32 %v9191_v36, %v2976_v8 }
 0xdab   :  { %v9193_v59 = vpop.eup %9192 }
 0xdac   :  { %v2979_v62 = vmul.f32 %v9193_v59, %v2977_v60  ;;  %v11385_v6 = vadd.f32 %v2980_v18, %v2978_v63 }
 0xdae   :  { %v11387_v58 = vadd.f32 %v2981_v51, %v2979_v62 }
 0xdb0   :  { %v11391_v22 = vpack.c.bf16 %v11387_v58, %v11385_v6 }
 0xdb2   :  { %3029 = vmatmul.mubr.bf16.vlgmr.msra.gmra.mrb[84].mxu0 %v11391_v22  ;;  %8235 = vmatmul.mubr.bf16.vlgmr.msra.gmra.mrb[116].mxu1 %v11391_v22 }
 0xdb3   :  { %3137 = vmatpush1.bf16.msra.mxu0 %v11168_v10  ;;  %8239 = vmatpush3.bf16.msra.mxu1 %v11174_v54 }
 0xdb4   :  { %3138 = vmatprep.subr.bf16.mxu0 %v11180_v4  ;;  %8240 = vmatprep.subr.bf16.mxu1 %v13450_v23 }
 0xdb5   :  { %3168 = vmatprep.mubr.bf16.mxu0 %v13451_v25  ;;  %8254 = vmatprep.mubr.msk.bf16.mxu1 %vm9680_vm2, %v13450_v23 }
 0xdb7   :  { %3139 = vmatpush1.bf16.msra.mxu0 %v11190_v55  ;;  %8241 = vmatpush3.bf16.msra.mxu1 %v11196_v13 }
 0xdb8   :  { %3140 = vmatprep.subr.bf16.mxu0 %v11202_v48  ;;  %8242 = vmatprep.subr.bf16.mxu1 %v13450_v23 }
 0xdbb   :  { %3141 = vmatpush1.bf16.msra.mxu0 %v11209_v32  ;;  %8243 = vmatpush3.bf16.msra.mxu1 %v11215_v39 }
 0xdbc   :  { %3142 = vmatprep.subr.bf16.mxu0 %v11221_v38  ;;  %8244 = vmatprep.subr.bf16.mxu1 %v13450_v23 }
 0xdbf   :  { %3143 = vmatpush1.bf16.msra.mxu0 %v11228_v27  ;;  %8245 = vmatpush3.bf16.msra.mxu1 %v11234_v28 }
 0xdc0   :  { %3144 = vmatprep.subr.bf16.mxu0 %v11240_v33  ;;  %8246 = vmatprep.subr.bf16.mxu1 %v13450_v23 }
 0xdc3   :  { %3145 = vmatpush1.bf16.msra.mxu0 %v11247_v34  ;;  %8247 = vmatpush3.bf16.msra.mxu1 %v11253_v49 }
 0xdc4   :  { %3146 = vmatprep.subr.bf16.mxu0 %v11259_v30  ;;  %8248 = vmatprep.subr.bf16.mxu1 %v13450_v23 }
 0xdc7   :  { %3147 = vmatpush1.bf16.msra.mxu0 %v11266_v41  ;;  %8249 = vmatpush3.bf16.msra.mxu1 %v11272_v20 }
 0xdc8   :  { %3148 = vmatprep.subr.bf16.mxu0 %v11278_v3  ;;  %8250 = vmatprep.subr.bf16.mxu1 %v13450_v23 }
 0xdcb   :  { %3149 = vmatpush1.bf16.msra.mxu0 %v11285_v21  ;;  %8251 = vmatpush3.bf16.msra.mxu1 %v11291_v31 }
 0xdcc   :  { %3150 = vmatprep.subr.bf16.mxu0 %v11297_v57  ;;  %8252 = vmatprep.subr.bf16.mxu1 %v13450_v23 }
 0xdcf   :  { %3151 = vmatpush1.bf16.msra.mxu0 %v11304_v42  ;;  %8253 = vmatpush3.bf16.msra.mxu1 %v11310_v14 }
 0xdd0   :  { %3276 = vmatprep.subr.bf16.mxu0 %v11316_v50  ;;  %8258 = vmatprep.subr.bf16.mxu1 %v13450_v23 }
 0xe85   :  { %v3030_v0 = vpop.f32.mrb[84].mxu0  ;;  %v3073_v5 = vpop.f32.mrb[116].mxu1 }
 0xe86   :  { %v3080_v56 = vadd.f32 %v3030_v0, %v2990_v46  ;;  %v3032_v15 = vpop.f32.mrb[85].mxu0  ;;  %v8236_v17 = vpop.f32.mrb[117].mxu1  ;;  %v3108_v62 = vadd.f32 %v11039_v2, %v3073_v5  ;;  %v13467_v0 = vld [vmem:[#allocation11_spill] sm:$0xff] }
 0xe87   :  { %v3094_v19 = vadd.f32 %v3032_v15, %v2991_v44  ;;  %v3034_v43 = vpop.f32.mrb[86].mxu0  ;;  %v3076_v35 = vpop.f32.mrb[118].mxu1  ;;  %v2992_v45 = vunpack.c.l.bf16 %v13467_v0  ;;  %v2995_v17 = vunpack.c.h.bf16 %v13467_v0 }
 0xe88   :  { %v7232_v11 = vmul.f32 -1.442695, %v3080_v56  ;;  %v3081_v50 = vadd.f32 %v3034_v43, %v2993_v24  ;;  %v3036_v52 = vpop.f32.mrb[87].mxu0  ;;  %v8237_v7 = vpop.f32.mrb[119].mxu1  ;;  %v3109_v56 = vadd.f32 %v11039_v2, %v3076_v35 }
 0xe89   :  { %v3095_v9 = vadd.f32 %v3036_v52, %v2994_v61  ;;  %v7234_v29 = vmul.f32 -1.442695, %v3094_v19 }
 0xe8a   :  { %9194 = vpow2.f32 %v7232_v11  ;;  %v7233_v12 = vmul.f32 -1.442695, %v3081_v50 }
 0xe8b   :  { %v7235_v53 = vmul.f32 -1.442695, %v3095_v9 }
 0xe8c   :  { %9196 = vpow2.f32 %v7233_v12 }
 0xe8d   :  { %9198 = vpow2.f32 %v7234_v29 }
 0xe8e   :  { %9200 = vpow2.f32 %v7235_v53 }
 0xe94   :  { %v9195_v8 = vpop.eup %9194 }
 0xe95   :  { %v3088_v36 = vadd.f32 1.0, %v9195_v8 }
 0xe96   :  { %v9197_v40 = vpop.eup %9196 }
 0xe97   :  { %9202 = vrcp.f32 %v3088_v36  ;;  %v3089_v60 = vadd.f32 1.0, %v9197_v40  ;;  %v9199_v63 = vpop.eup %9198 }
 0xe98   :  { %v9201_v18 = vpop.eup %9200  ;;  %v3102_v59 = vadd.f32 1.0, %v9199_v63 }
 0xe99   :  { %9204 = vrcp.f32 %v3089_v60  ;;  %v3103_v51 = vadd.f32 1.0, %v9201_v18 }
 0xe9a   :  { %9206 = vrcp.f32 %v3102_v59 }
 0xe9b   :  { %9208 = vrcp.f32 %v3103_v51 }
 0xea1   :  { %v9203_v46 = vpop.eup %9202 }
 0xea2   :  { %v3110_v44 = vmul.f32 %v9203_v46, %v3108_v62  ;;  %v11499_v62 = vld [vmem:[%s13397_s5 + $0x1] ss:$0 sm:$0xff] }
 0xea3   :  { %v9205_v15 = vpop.eup %9204 }
 0xea4   :  { %v3112_v24 = vadd.f32 %v3110_v44, %v2992_v45  ;;  %v3111_v19 = vmul.f32 %v9205_v15, %v3109_v56  ;;  %v9207_v61 = vpop.eup %9206  ;;  %v3132_v45 = vunpack.c.l.bf16 %v11030_v1 }
 0xea5   :  { %v9209_v11 = vpop.eup %9208  ;;  %v3116_v5 = vsub.f32 1.0, %v9207_v61  ;;  %v3120_v9 = vmul.f32 %v9207_v61, %v11385_v6 }
 0xea6   :  { %9210 = vtanh.f32 %v3112_v24  ;;  %v3113_v43 = vadd.f32 %v3111_v19, %v2995_v17  ;;  %v3117_v52 = vsub.f32 1.0, %v9209_v11  ;;  %v3121_v2 = vmul.f32 %v9209_v11, %v11387_v58 }
 0xea7   :  { %v3135_v17 = vunpack.c.h.bf16 %v11030_v1 }
 0xea8   :  { %9212 = vtanh.f32 %v3113_v43 }
 0xeb0   :  { %v9211_v50 = vpop.eup %9210 }
 0xeb1   :  { %v3118_v7 = vmul.f32 %v9211_v50, %v3116_v5 }
 0xeb2   :  { %v9213_v12 = vpop.eup %9212 }
 0xeb3   :  { %v3119_v29 = vmul.f32 %v9213_v12, %v3117_v52  ;;  %v11440_v35 = vadd.f32 %v3120_v9, %v3118_v7 }
 0xeb5   :  { %v11442_v53 = vadd.f32 %v3121_v2, %v3119_v29 }
 0xeb7   :  { %v11446_v8 = vpack.c.bf16 %v11442_v53, %v11440_v35 }
 0xeb9   :  { %3169 = vmatmul.mubr.bf16.vlgmr.msra.gmra.mrb[88].mxu0 %v11446_v8  ;;  %8255 = vmatmul.mubr.bf16.vlgmr.msra.gmra.mrb[120].mxu1 %v11446_v8 }
 0xeba   :  { %3277 = vmatpush1.bf16.msra.mxu0 %v11168_v10  ;;  %8259 = vmatpush3.bf16.msra.mxu1 %v11174_v54  ;;  %v8800_v10 = vld [vmem:[%s13398_s2 + $0xc4] ss:$12 sps:$4 sm:$0xff]   ;;  %v11489_v54 = vld [vmem:[%s13398_s2 + $0xc8] ss:$12 sps:$4 sm:$0xff]  }
 0xebb   :  { %3278 = vmatprep.subr.bf16.mxu0 %v11180_v4  ;;  %8260 = vmatprep.subr.bf16.mxu1 %v13450_v23  ;;  %v13468_v4 = vld [vmem:[#allocation14_spill] sm:$0xff] }
 0xebc   :  { %3308 = vmatprep.mubr.bf16.mxu0 %v13451_v25  ;;  %8274 = vmatprep.mubr.msk.bf16.mxu1 %vm9680_vm2, %v13450_v23 }
 0xebe   :  { %3279 = vmatpush1.bf16.msra.mxu0 %v11190_v55  ;;  %8261 = vmatpush3.bf16.msra.mxu1 %v11196_v13  ;;  %v3130_v55 = vunpack.c.l.bf16 %v13468_v4 }
 0xebf   :  { %3280 = vmatprep.subr.bf16.mxu0 %v11202_v48  ;;  %8262 = vmatprep.subr.bf16.mxu1 %v13450_v23 }
 0xec2   :  { %3281 = vmatpush1.bf16.msra.mxu0 %v11209_v32  ;;  %8263 = vmatpush3.bf16.msra.mxu1 %v11215_v39  ;;  %v13469_v32 = vld [vmem:[#allocation15_spill] sm:$0xff] }
 0xec3   :  { %3282 = vmatprep.subr.bf16.mxu0 %v11221_v38  ;;  %8264 = vmatprep.subr.bf16.mxu1 %v13450_v23  ;;  %v3131_v39 = vunpack.c.l.bf16 %v13469_v32 }
 0xec6   :  { %3283 = vmatpush1.bf16.msra.mxu0 %v11228_v27  ;;  %8265 = vmatpush3.bf16.msra.mxu1 %v11234_v28 }
 0xec7   :  { %3284 = vmatprep.subr.bf16.mxu0 %v11240_v33  ;;  %8266 = vmatprep.subr.bf16.mxu1 %v13450_v23  ;;  %v3133_v33 = vunpack.c.h.bf16 %v13468_v4  ;;  %v8798_v4 = vld [vmem:[%s13398_s2 + $0xc0] ss:$12 sps:$4 sm:$0xff]  }
 0xeca   :  { %3285 = vmatpush1.bf16.msra.mxu0 %v11247_v34  ;;  %8267 = vmatpush3.bf16.msra.mxu1 %v11253_v49 }
 0xecb   :  { %3286 = vmatprep.subr.bf16.mxu0 %v11259_v30  ;;  %8268 = vmatprep.subr.bf16.mxu1 %v13450_v23 }
 0xece   :  { %3287 = vmatpush1.bf16.msra.mxu0 %v11266_v41  ;;  %8269 = vmatpush3.bf16.msra.mxu1 %v11272_v20  ;;  %v3134_v41 = vunpack.c.h.bf16 %v13469_v32  ;;  %v8809_v32 = vld [vmem:[%s13398_s2 + $0xf8] ss:$12 sps:$4 sm:$0xff]  }
 0xecf   :  { %3288 = vmatprep.subr.bf16.mxu0 %v11278_v3  ;;  %8270 = vmatprep.subr.bf16.mxu1 %v13450_v23 }
 0xed2   :  { %3289 = vmatpush1.bf16.msra.mxu0 %v11285_v21  ;;  %8271 = vmatpush3.bf16.msra.mxu1 %v11291_v31 }
 0xed3   :  { %3290 = vmatprep.subr.bf16.mxu0 %v11297_v57  ;;  %8272 = vmatprep.subr.bf16.mxu1 %v13450_v23 }
 0xed6   :  { %3291 = vmatpush1.bf16.msra.mxu0 %v11304_v42  ;;  %8273 = vmatpush3.bf16.msra.mxu1 %v11310_v14 }
 0xed7   :  { %3629 = vmatprep.subr.bf16.mxu0 %v8800_v10  ;;  %8278 = vmatprep.subr.bf16.mxu1 %v11489_v54 }
 0xf8c   :  { %v3170_v13 = vpop.f32.mrb[88].mxu0  ;;  %v3213_v48 = vpop.f32.mrb[120].mxu1 }
 0xf8d   :  { %v3220_v38 = vadd.f32 %v3170_v13, %v3130_v55  ;;  %v3172_v27 = vpop.f32.mrb[89].mxu0  ;;  %v8256_v28 = vpop.f32.mrb[121].mxu1  ;;  %v3248_v51 = vadd.f32 %v11499_v62, %v3213_v48  ;;  %v8802_v13 = vld [vmem:[%s13398_s2 + $0xd8] ss:$12 sps:$4 sm:$0xff]   ;;  %v8808_v48 = vld [vmem:[%s13398_s2 + $0xf4] ss:$12 sps:$4 sm:$0xff]  }
 0xf8e   :  { %v3234_v34 = vadd.f32 %v3172_v27, %v3131_v39  ;;  %v3174_v49 = vpop.f32.mrb[90].mxu0  ;;  %v3216_v30 = vpop.f32.mrb[122].mxu1  ;;  %v8812_v39 = vld [vmem:[%s13398_s2 + $0x10c] ss:$12 sps:$4 sm:$0xff]   ;;  %v8810_v27 = vld [vmem:[%s13398_s2 + $0x108] ss:$12 sps:$4 sm:$0xff]  }
 0xf8f   :  { %v7236_v20 = vmul.f32 -1.442695, %v3220_v38  ;;  %v3221_v3 = vadd.f32 %v3174_v49, %v3133_v33  ;;  %v3176_v21 = vpop.f32.mrb[91].mxu0  ;;  %v8257_v31 = vpop.f32.mrb[123].mxu1  ;;  %v3249_v56 = vadd.f32 %v11499_v62, %v3216_v30  ;;  %v8813_v38 = vld [vmem:[%s13398_s2 + $0x110] ss:$12 sps:$4 sm:$0xff]  }
 0xf90   :  { %v3235_v57 = vadd.f32 %v3176_v21, %v3134_v41  ;;  %v7238_v14 = vmul.f32 -1.442695, %v3234_v34  ;;  %v8816_v28 = vld [vmem:[%s13398_s2 + $0x124] ss:$12 sps:$4 sm:$0xff]   ;;  %v8817_v33 = vld [vmem:[%s13398_s2 + $0x128] ss:$12 sps:$4 sm:$0xff]  }
 0xf91   :  { %9214 = vpow2.f32 %v7236_v20  ;;  %v7237_v42 = vmul.f32 -1.442695, %v3221_v3  ;;  %v8814_v34 = vld [vmem:[%s13398_s2 + $0x120] ss:$12 sps:$4 sm:$0xff]   ;;  %v8820_v49 = vld [vmem:[%s13398_s2 + $0x13c] ss:$12 sps:$4 sm:$0xff]  }
 0xf92   :  { %v7239_v6 = vmul.f32 -1.442695, %v3235_v57  ;;  %v8821_v30 = vld [vmem:[%s13398_s2 + $0x140] ss:$12 sps:$4 sm:$0xff]   ;;  %v8818_v41 = vld [vmem:[%s13398_s2 + $0x138] ss:$12 sps:$4 sm:$0xff]  }
 0xf93   :  { %9216 = vpow2.f32 %v7237_v42  ;;  %v8824_v20 = vld [vmem:[%s13398_s2 + $0x154] ss:$12 sps:$4 sm:$0xff]   ;;  %v8825_v3 = vld [vmem:[%s13398_s2 + $0x158] ss:$12 sps:$4 sm:$0xff]   ;;  %v8822_v21 = vld [vmem:[%s13398_s2 + $0x150] ss:$12 sps:$4 sm:$0xff]  }
 0xf94   :  { %9218 = vpow2.f32 %v7238_v14  ;;  %v8828_v31 = vld [vmem:[%s13398_s2 + $0x16c] ss:$12 sps:$4 sm:$0xff]   ;;  %v8829_v57 = vld [vmem:[%s13398_s2 + $0x170] ss:$12 sps:$4 sm:$0xff]   ;;  %v8826_v42 = vld [vmem:[%s13398_s2 + $0x168] ss:$12 sps:$4 sm:$0xff]  }
 0xf95   :  { %9220 = vpow2.f32 %v7239_v6  ;;  %v11645_v14 = vld [vmem:[%s13396_s3 + $0x1a0] ss:$12 sps:$4 sm:$0xff]   ;;  %v11650_v6 = vld [vmem:[%s13396_s3 + $0x1b0] ss:$12 sps:$4 sm:$0xff]  }
 0xf9b   :  { %v9215_v58 = vpop.eup %9214 }
 0xf9c   :  { %v3228_v36 = vadd.f32 1.0, %v9215_v58  ;;  %v11658_v58 = vld [vmem:[%s13396_s3 + $0x1cc] ss:$12 sps:$4 sm:$0xff]  }
 0xf9d   :  { %v9217_v40 = vpop.eup %9216 }
 0xf9e   :  { %9222 = vrcp.f32 %v3228_v36  ;;  %v3229_v60 = vadd.f32 1.0, %v9217_v40  ;;  %v9219_v63 = vpop.eup %9218  ;;  %v11664_v36 = vld [vmem:[%s13396_s3 + $0x1b8] ss:$12 sps:$4 sm:$0xff]   ;;  %v11669_v40 = vld [vmem:[%s13396_s3 + $0x1c8] ss:$12 sps:$4 sm:$0xff]  }
 0xf9f   :  { %v9221_v18 = vpop.eup %9220  ;;  %v3242_v59 = vadd.f32 1.0, %v9219_v63  ;;  %v11683_v63 = vld [vmem:[%s13396_s3 + $0x1e0] ss:$12 sps:$4 sm:$0xff]  }
 0xfa0   :  { %9224 = vrcp.f32 %v3229_v60  ;;  %v3243_v46 = vadd.f32 1.0, %v9221_v18  ;;  %v11677_v60 = vld [vmem:[%s13396_s3 + $0x1e4] ss:$12 sps:$4 sm:$0xff]   ;;  %v11691_v18 = vld [vmem:[%s13396_s3 + $0x1fc] ss:$12 sps:$4 sm:$0xff]  }
 0xfa1   :  { %9226 = vrcp.f32 %v3242_v59  ;;  %v11696_v59 = vld [vmem:[%s13396_s3 + $0x1d0] ss:$12 sps:$4 sm:$0xff]  }
 0xfa2   :  { %9228 = vrcp.f32 %v3243_v46  ;;  %v11709_v46 = vld [vmem:[%s13396_s3 + $0x214] ss:$12 sps:$4 sm:$0xff]  }
 0xfa8   :  { %v9223_v0 = vpop.eup %9222 }
 0xfa9   :  { %v3250_v44 = vmul.f32 %v9223_v0, %v3248_v51  ;;  %v11701_v51 = vld [vmem:[%s13396_s3 + $0x1f8] ss:$12 sps:$4 sm:$0xff]   ;;  %v11715_v0 = vld [vmem:[%s13396_s3 + $0x210] ss:$12 sps:$4 sm:$0xff]  }
 0xfaa   :  { %v9225_v15 = vpop.eup %9224 }
 0xfab   :  { %v3252_v24 = vadd.f32 %v3250_v44, %v3132_v45  ;;  %v3251_v19 = vmul.f32 %v9225_v15, %v3249_v56  ;;  %v9227_v61 = vpop.eup %9226  ;;  %v11722_v45 = vld [vmem:[%s13396_s3 + $0x22c] ss:$12 sps:$4 sm:$0xff]   ;;  %v11727_v44 = vld [vmem:[%s13396_s3 + $0x1e8] ss:$12 sps:$4 sm:$0xff]  }
 0xfac   :  { %v9229_v11 = vpop.eup %9228  ;;  %v3256_v5 = vsub.f32 1.0, %v9227_v61  ;;  %v3260_v9 = vmul.f32 %v9227_v61, %v11440_v35  ;;  %v8804_v35 = vld [vmem:[%s13398_s2 + $0xdc] ss:$12 sps:$4 sm:$0xff]   ;;  %v11742_v15 = vld [vmem:[%s13396_s3 + $0x200] ss:$12 sps:$4 sm:$0xff]  }
 0xfad   :  { %9230 = vtanh.f32 %v3252_v24  ;;  %v3253_v43 = vadd.f32 %v3251_v19, %v3135_v17  ;;  %v3257_v52 = vsub.f32 1.0, %v9229_v11  ;;  %v3261_v2 = vmul.f32 %v9229_v11, %v11442_v53  ;;  %v8805_v53 = vld [vmem:[%s13398_s2 + $0xe0] ss:$12 sps:$4 sm:$0xff]   ;;  %v11732_v56 = vld [vmem:[%s13396_s3 + $0x228] ss:$12 sps:$4 sm:$0xff]  }
 0xfae   :  { %v11749_v17 = vld [vmem:[%s13396_s3 + $0x218] ss:$12 sps:$4 sm:$0xff]   ;;  %v11756_v24 = vld [vmem:[%s13396_s3 + $0x230] ss:$12 sps:$4 sm:$0xff]  }
 0xfaf   :  { %9232 = vtanh.f32 %v3253_v43  ;;  %v13470_v19 = vld [vmem:[#allocation5_spill] sm:$0xff] }
 0xfb0   :  { %v3270_v43 = vunpack.c.l.bf16 %v13470_v19 }
 0xfb7   :  { %v9231_v50 = vpop.eup %9230 }
 0xfb8   :  { %v3258_v7 = vmul.f32 %v9231_v50, %v3256_v5  ;;  %v13471_v5 = vld [vmem:[#allocation16_spill] sm:$0xff] }
 0xfb9   :  { %v9233_v12 = vpop.eup %9232  ;;  %v3271_v50 = vunpack.c.l.bf16 %v13471_v5 }
 0xfba   :  { %v3259_v29 = vmul.f32 %v9233_v12, %v3257_v52  ;;  %v11507_v10 = vadd.f32 %v3260_v9, %v3258_v7  ;;  %v3273_v12 = vunpack.c.h.bf16 %v13470_v19 }
 0xfbc   :  { %v11509_v1 = vadd.f32 %v3261_v2, %v3259_v29 }
 0xfbe   :  { %v11516_v55 = vpack.c.bf16 %v11509_v1, %v11507_v10 }
 0xfc0   :  { %3309 = vmatmul.mubr.bf16.vlgmr.msra.gmra.mrb[92].mxu0 %v11516_v55  ;;  %8275 = vmatmul.mubr.bf16.vlgmr.msra.gmra.mrb[124].mxu1 %v11516_v55 }
 0xfc1   :  { %3630 = vmatpush1.bf16.msra.mxu0 %v8798_v4  ;;  %8279 = vmatpush3.bf16.msra.mxu1 %v11489_v54  ;;  %v8806_v54 = vld [vmem:[%s13398_s2 + $0xf0] ss:$12 sps:$4 sm:$0xff]  }
 0xfc2   :  { %8294 = vmatprep.mubr.bf16.mxu1 %v11051_v26  ;;  %3631 = vmatprep.subr.bf16.mxu0 %v8804_v35 }
 0xfc3   :  { %8280 = vmatprep.subr.bf16.mxu1 %v8805_v53  ;;  %3661 = vmatprep.mubr.bf16.mxu0 %v13451_v25 }
 0xfc5   :  { %3632 = vmatpush1.bf16.msra.mxu0 %v8802_v13  ;;  %8281 = vmatpush3.bf16.msra.mxu1 %v8805_v53 }
 0xfc6   :  { %3633 = vmatprep.subr.bf16.mxu0 %v8808_v48  ;;  %8282 = vmatprep.subr.bf16.mxu1 %v8809_v32 }
 0xfc9   :  { %3634 = vmatpush1.bf16.msra.mxu0 %v8806_v54  ;;  %8283 = vmatpush3.bf16.msra.mxu1 %v8809_v32 }
 0xfca   :  { %3635 = vmatprep.subr.bf16.mxu0 %v8812_v39  ;;  %8284 = vmatprep.subr.bf16.mxu1 %v8813_v38 }
 0xfcd   :  { %3636 = vmatpush1.bf16.msra.mxu0 %v8810_v27  ;;  %8285 = vmatpush3.bf16.msra.mxu1 %v8813_v38 }
 0xfce   :  { %3637 = vmatprep.subr.bf16.mxu0 %v8816_v28  ;;  %8286 = vmatprep.subr.bf16.mxu1 %v8817_v33 }
 0xfd1   :  { %3638 = vmatpush1.bf16.msra.mxu0 %v8814_v34  ;;  %8287 = vmatpush3.bf16.msra.mxu1 %v8817_v33 }
 0xfd2   :  { %3639 = vmatprep.subr.bf16.mxu0 %v8820_v49  ;;  %8288 = vmatprep.subr.bf16.mxu1 %v8821_v30 }
 0xfd5   :  { %3640 = vmatpush1.bf16.msra.mxu0 %v8818_v41  ;;  %8289 = vmatpush3.bf16.msra.mxu1 %v8821_v30 }
 0xfd6   :  { %3641 = vmatprep.subr.bf16.mxu0 %v8824_v20  ;;  %8290 = vmatprep.subr.bf16.mxu1 %v8825_v3 }
 0xfd9   :  { %3642 = vmatpush1.bf16.msra.mxu0 %v8822_v21  ;;  %8291 = vmatpush3.bf16.msra.mxu1 %v8825_v3 }
 0xfda   :  { %3643 = vmatprep.subr.bf16.mxu0 %v8828_v31  ;;  %8292 = vmatprep.subr.bf16.mxu1 %v8829_v57  ;;  %v13472_v31 = vld [vmem:[#allocation6_spill] sm:$0xff] }
 0xfdd   :  { %3644 = vmatpush1.bf16.msra.mxu0 %v8826_v42  ;;  %8293 = vmatpush3.bf16.msra.mxu1 %v8829_v57  ;;  %v3272_v57 = vunpack.c.l.bf16 %v13472_v31 }
 0xfde   :  { %8310 = vmatprep.subr.bf16.mxu0 %v13450_v23 }
 0xfe0   :  { %3662 = vmatmul.mubr.bf16.vlgmr.msra.gmra.mrb[96].mxu0 %v11051_v26  ;;  %8295 = vmatmul.mubr.bf16.vlgmr.msra.gmra.mrb[128].mxu1 %v11106_v47  ;;  %v11610_v26 = vld [vmem:[%s13396_s3 + $0x184] ss:$12 sps:$4 sm:$0xff]  }
 0xfe1   :  { %8298 = vmatprep.mubr.bf16.mxu1 %v11161_v37  ;;  %3671 = vmatprep.mubr.bf16.mxu0 %v13451_v25 }
 0xfe2   :  { %4024 = vmatprep.subr.bf16.mxu1 %v11610_v26 }
 0xfe8   :  { %3672 = vmatmul.mubr.bf16.gmra.mrb[100].mxu0 %v11106_v47  ;;  %8299 = vmatmul.mubr.bf16.gmra.mrb[132].mxu1 %v11336_v16  ;;  %v11615_v47 = vld [vmem:[%s13396_s3 + $0x180] ss:$12 sps:$4 sm:$0xff]  }
 0xfe9   :  { %8302 = vmatprep.mubr.bf16.mxu1 %v11391_v22  ;;  %3681 = vmatprep.mubr.bf16.mxu0 %v13451_v25 }
 0xfea   :  { %4025 = vmatpush1.bf16.msra.mxu1 %v11615_v47 }
 0xff0   :  { %3682 = vmatmul.mubr.bf16.gmra.mrb[104].mxu0 %v11161_v37  ;;  %8303 = vmatmul.mubr.bf16.gmra.mrb[136].mxu1 %v11446_v8  ;;  %v11622_v37 = vld [vmem:[%s13396_s3 + $0x19c] ss:$12 sps:$4 sm:$0xff]  }
 0xff1   :  { %8306 = vmatprep.mubr.bf16.mxu1 %v11516_v55  ;;  %3691 = vmatprep.mubr.bf16.mxu0 %v13451_v25 }
 0xff2   :  { %4026 = vmatprep.subr.bf16.mxu1 %v11622_v37 }
 0xff8   :  { %3692 = vmatmul.mubr.bf16.gmra.mrb[108].mxu0 %v11336_v16  ;;  %v11627_v16 = vld [vmem:[%s13396_s3 + $0x198] ss:$12 sps:$4 sm:$0xff]  }
 0xff9   :  { %3701 = vmatprep.mubr.bf16.mxu0 %v13451_v25  ;;  %4027 = vmatpush1.bf16.msra.mxu1 %v11627_v16 }
0x1000   :  { %3702 = vmatmul.mubr.bf16.gmra.mrb[112].mxu0 %v11391_v22  ;;  %v11633_v22 = vld [vmem:[%s13396_s3 + $0x188] ss:$12 sps:$4 sm:$0xff]  }
0x1001   :  { %3711 = vmatprep.mubr.bf16.mxu0 %v13451_v25  ;;  %8311 = vmatpush3.bf16.msra.mxu0 %v11633_v22 }
0x1002   :  { %8312 = vmatprep.subr.bf16.mxu0 %v13450_v23 }
0x1005   :  { %8313 = vmatpush3.bf16.msra.mxu0 %v11645_v14 }
0x1006   :  { %8314 = vmatprep.subr.bf16.mxu0 %v13450_v23 }
0x1008   :  { %3712 = vmatmul.mubr.bf16.gmra.mrb[116].mxu0 %v11446_v8  ;;  %v11639_v8 = vld [vmem:[%s13396_s3 + $0x1b4] ss:$12 sps:$4 sm:$0xff]  }
0x1009   :  { %3721 = vmatprep.mubr.bf16.mxu0 %v13451_v25  ;;  %4028 = vmatprep.subr.bf16.mxu1 %v11639_v8 }
0x100a   :  { %4029 = vmatpush1.bf16.msra.mxu1 %v11650_v6  ;;  %8315 = vmatpush3.bf16.msra.mxu0 %v11664_v36 }
0x100b   :  { %4030 = vmatprep.subr.bf16.mxu1 %v11658_v58  ;;  %8316 = vmatprep.subr.bf16.mxu0 %v13450_v23 }
0x100e   :  { %4031 = vmatpush1.bf16.msra.mxu1 %v11669_v40  ;;  %8317 = vmatpush3.bf16.msra.mxu0 %v11696_v59 }
0x100f   :  { %4032 = vmatprep.subr.bf16.mxu1 %v11677_v60  ;;  %8318 = vmatprep.subr.bf16.mxu0 %v13450_v23 }
0x1010   :  { %3722 = vmatmul.mubr.bf16.gmra.mrb[120].mxu0 %v11516_v55  ;;  %v3274_v55 = vunpack.c.h.bf16 %v13471_v5 }
0x1011   :  { %3731 = vmatprep.mubr.bf16.mxu0 %v13451_v25 }
0x1012   :  { %4033 = vmatpush1.bf16.msra.mxu1 %v11683_v63  ;;  %8319 = vmatpush3.bf16.msra.mxu0 %v11727_v44 }
0x1013   :  { %4034 = vmatprep.subr.bf16.mxu1 %v11691_v18  ;;  %8320 = vmatprep.subr.bf16.mxu0 %v13450_v23 }
0x1016   :  { %4035 = vmatpush1.bf16.msra.mxu1 %v11701_v51  ;;  %8321 = vmatpush3.bf16.msra.mxu0 %v11742_v15 }
0x1017   :  { %4036 = vmatprep.subr.bf16.mxu1 %v11709_v46  ;;  %8322 = vmatprep.subr.bf16.mxu0 %v13450_v23 }
0x101a   :  { %4037 = vmatpush1.bf16.msra.mxu1 %v11715_v0  ;;  %8323 = vmatpush3.bf16.msra.mxu0 %v11749_v17 }
0x101b   :  { %4038 = vmatprep.subr.bf16.mxu1 %v11722_v45  ;;  %8324 = vmatprep.subr.bf16.mxu0 %v13450_v23 }
0x101e   :  { %4039 = vmatpush1.bf16.msra.mxu1 %v11732_v56  ;;  %8325 = vmatpush3.bf16.msra.mxu0 %v11756_v24 }
0x101f   :  { %4169 = vmatprep.subr.bf16.mxu1 %v11610_v26  ;;  %8330 = vmatprep.subr.bf16.mxu0 %v13450_v23 }
0x1093   :  { %v3310_v61 = vpop.f32.mrb[92].mxu0  ;;  %v3353_v11 = vpop.f32.mrb[124].mxu1 }
0x1094   :  { %v3360_v52 = vadd.f32 %v3310_v61, %v3270_v43  ;;  %v3312_v7 = vpop.f32.mrb[93].mxu0  ;;  %v8276_v9 = vpop.f32.mrb[125].mxu1  ;;  %v3388_v3 = vadd.f32 %v11499_v62, %v3353_v11  ;;  %v3275_v61 = vunpack.c.h.bf16 %v13472_v31 }
0x1095   :  { %v3374_v29 = vadd.f32 %v3312_v7, %v3271_v50  ;;  %v3314_v2 = vpop.f32.mrb[94].mxu0  ;;  %v3356_v4 = vpop.f32.mrb[126].mxu1  ;;  %v13473_v7 = vld [vmem:[#allocation12_spill] sm:$0xff] }
0x1096   :  { %v7240_v35 = vmul.f32 -1.442695, %v3360_v52  ;;  %v3361_v53 = vadd.f32 %v3314_v2, %v3273_v12  ;;  %v3316_v13 = vpop.f32.mrb[95].mxu0  ;;  %v8277_v48 = vpop.f32.mrb[127].mxu1  ;;  %v3389_v19 = vadd.f32 %v11499_v62, %v3356_v4  ;;  %v9625_v52 = vld [vmem:[%s13394_s4 + $0x6] sm:$0x7] }
0x1097   :  { %v3375_v32 = vadd.f32 %v3316_v13, %v3274_v55  ;;  %v7242_v39 = vmul.f32 -1.442695, %v3374_v29  ;;  %v11772_v9 = vrot.slane %v9625_v52, %v13473_v7  ;;  %v13474_v62 = vld [vmem:[#allocation7_spill] sm:$0xff] }
0x1098   :  { %9234 = vpow2.f32 %v7240_v35  ;;  %v7241_v54 = vmul.f32 -1.442695, %v3361_v53 }
0x1099   :  { %v7243_v38 = vmul.f32 -1.442695, %v3375_v32 }
0x109a   :  { %9236 = vpow2.f32 %v7241_v54 }
0x109b   :  { %9238 = vpow2.f32 %v7242_v39 }
0x109c   :  { %9240 = vpow2.f32 %v7243_v38  ;;  %v13475_v38 = vld [vmem:[#allocation8_spill] sm:$0xff] }
0x10a2   :  { %v9235_v27 = vpop.eup %9234 }
0x10a3   :  { %v3368_v28 = vadd.f32 1.0, %v9235_v27 }
0x10a4   :  { %v9237_v33 = vpop.eup %9236 }
0x10a5   :  { %9242 = vrcp.f32 %v3368_v28  ;;  %v3369_v34 = vadd.f32 1.0, %v9237_v33  ;;  %v9239_v49 = vpop.eup %9238 }
0x10a6   :  { %v9241_v30 = vpop.eup %9240  ;;  %v3382_v41 = vadd.f32 1.0, %v9239_v49 }
0x10a7   :  { %9244 = vrcp.f32 %v3369_v34  ;;  %v3383_v20 = vadd.f32 1.0, %v9241_v30 }
0x10a8   :  { %9246 = vrcp.f32 %v3382_v41 }
0x10a9   :  { %9248 = vrcp.f32 %v3383_v20 }
0x10af   :  { %v9243_v21 = vpop.eup %9242 }
0x10b0   :  { %v3390_v42 = vmul.f32 %v9243_v21, %v3388_v3 }
0x10b1   :  { %v9245_v43 = vpop.eup %9244 }
0x10b2   :  { %v3392_v5 = vadd.f32 %v3390_v42, %v3272_v57  ;;  %v3391_v50 = vmul.f32 %v9245_v43, %v3389_v19  ;;  %v9247_v41 = vpop.eup %9246 }
0x10b3   :  { %v3663_v11 = vpop.f32.mrb[96].mxu0  ;;  %v8296_v12 = vpop.f32.mrb[128].mxu1 }
0x10b4   :  { %9250 = vtanh.f32 %v3392_v5  ;;  %v3393_v29 = vadd.f32 %v3391_v50, %v3275_v61  ;;  %v3665_v2 = vpop.f32.mrb[97].mxu0  ;;  %v3776_v55 = vpop.f32.mrb[129].mxu1  ;;  %v3664_v4 = vadd.f32 %v3663_v11, %v13474_v62  ;;  %v3785_v13 = vadd.f32 %v8296_v12, %v11772_v9 }
0x10b5   :  { %v3667_v35 = vpop.f32.mrb[98].mxu0  ;;  %v8297_v53 = vpop.f32.mrb[130].mxu1  ;;  %v3666_v27 = vadd.f32 %v3665_v2, %v13475_v38  ;;  %v3777_v28 = vadd.f32 %v3776_v55, %v11772_v9  ;;  %v3396_v50 = vsub.f32 1.0, %v9247_v41  ;;  %v3400_v11 = vmul.f32 %v9247_v41, %v11507_v10 }
0x10b6   :  { %9252 = vtanh.f32 %v3393_v29  ;;  %v3668_v48 = vadd.f32 %v3667_v35, %v13474_v62  ;;  %v3788_v32 = vadd.f32 %v8297_v53, %v11772_v9  ;;  %v3669_v54 = vpop.f32.mrb[99].mxu0  ;;  %v3779_v39 = vpop.f32.mrb[131].mxu1 }
0x10b7   :  { %v3670_v33 = vadd.f32 %v3669_v54, %v13475_v38  ;;  %v3780_v34 = vadd.f32 %v3779_v39, %v11772_v9  ;;  %v9249_v21 = vpop.eup %9248 }
0x10b8   :  { %v11782_v49 = vpack.c.bf16 %v3668_v48, %v3664_v4  ;;  %v11784_v30 = vpack.c.bf16 %v3788_v32, %v3785_v13  ;;  %v3397_v52 = vsub.f32 1.0, %v9249_v21 }
0x10b9   :  { %v11786_v20 = vpack.c.bf16 %v3670_v33, %v3666_v27  ;;  %v11788_v3 = vpack.c.bf16 %v3780_v34, %v3777_v28  ;;  %v3401_v28 = vmul.f32 %v9249_v21, %v11509_v1 }
0x10bb   :  { %v3673_v31 = vpop.f32.mrb[100].mxu0  ;;  %v8300_v57 = vpop.f32.mrb[132].mxu1 }
0x10bc   :  { %v3675_v42 = vpop.f32.mrb[101].mxu0  ;;  %v3792_v19 = vpop.f32.mrb[133].mxu1  ;;  %v3674_v43 = vadd.f32 %v3673_v31, %v13474_v62  ;;  %v3801_v29 = vadd.f32 %v8300_v57, %v11772_v9 }
0x10bd   :  { %v3677_v61 = vpop.f32.mrb[102].mxu0  ;;  %v8301_v5 = vpop.f32.mrb[134].mxu1  ;;  %v3676_v2 = vadd.f32 %v3675_v42, %v13475_v38  ;;  %v3793_v13 = vadd.f32 %v3792_v19, %v11772_v9 }
0x10be   :  { %v9251_v12 = vpop.eup %9250  ;;  %v3678_v55 = vadd.f32 %v3677_v61, %v13474_v62  ;;  %v3804_v4 = vadd.f32 %v8301_v5, %v11772_v9  ;;  %v3679_v35 = vpop.f32.mrb[103].mxu0 }
0x10bf   :  { %v3795_v53 = vpop.f32.mrb[135].mxu1  ;;  %v3680_v48 = vadd.f32 %v3679_v35, %v13475_v38  ;;  %v3398_v54 = vmul.f32 %v9251_v12, %v3396_v50 }
0x10c0   :  { %v3796_v32 = vadd.f32 %v3795_v53, %v11772_v9  ;;  %v9253_v39 = vpop.eup %9252  ;;  %v11799_v10 = vpack.c.bf16 %v3678_v55, %v3674_v43  ;;  %v11801_v27 = vpack.c.bf16 %v3804_v4, %v3801_v29 }
0x10c1   :  { %v11804_v33 = vpack.c.bf16 %v3680_v48, %v3676_v2  ;;  %v3399_v41 = vmul.f32 %v9253_v39, %v3397_v52  ;;  %v3402_v31 = vadd.f32 %v3400_v11, %v3398_v54 }
0x10c2   :  { %v11806_v34 = vpack.c.bf16 %v3796_v32, %v3793_v13 }
0x10c3   :  { %v3683_v57 = vpop.f32.mrb[104].mxu0  ;;  %v8304_v42 = vpop.f32.mrb[136].mxu1  ;;  %v3403_v19 = vadd.f32 %v3401_v28, %v3399_v41 }
0x10c4   :  { %v3685_v61 = vpop.f32.mrb[105].mxu0  ;;  %v3808_v5 = vpop.f32.mrb[137].mxu1  ;;  %v3684_v50 = vadd.f32 %v3683_v57, %v13474_v62  ;;  %v3817_v29 = vadd.f32 %v8304_v42, %v11772_v9 }
0x10c5   :  { %v3687_v12 = vpop.f32.mrb[106].mxu0  ;;  %v8305_v43 = vpop.f32.mrb[138].mxu1  ;;  %v3404_v55 = vpack.c.bf16 %v3403_v19, %v3402_v31  ;;  %v3686_v1 = vadd.f32 %v3685_v61, %v13475_v38  ;;  %v3809_v4 = vadd.f32 %v3808_v5, %v11772_v9 }
0x10c6   :  { %v3688_v21 = vadd.f32 %v3687_v12, %v13474_v62  ;;  %v3820_v2 = vadd.f32 %v8305_v43, %v11772_v9  ;;  %v3689_v52 = vpop.f32.mrb[107].mxu0  ;;  %v3811_v11 = vpop.f32.mrb[139].mxu1 }
0x10c7   :  { %v3690_v35 = vadd.f32 %v3689_v52, %v13475_v38  ;;  %v3812_v53 = vadd.f32 %v3811_v11, %v11772_v9  ;;  %3732 = vmatmul.mubr.bf16.gmra.mrb[124].mxu0 %v3404_v55  ;;  %8307 = vmatmul.mubr.bf16.gmra.mrb[140].mxu1 %v3404_v55 }
0x10c8   :  { %v11816_v13 = vpack.c.bf16 %v3688_v21, %v3684_v50  ;;  %v11818_v48 = vpack.c.bf16 %v3820_v2, %v3817_v29  ;;  %4056 = vmatprep.mubr.bf16.mxu1 %v13451_v25  ;;  %8326 = vmatprep.mubr.msk.bf16.mxu0 %vm9680_vm2, %v13450_v23 }
0x10c9   :  { %v11823_v32 = vpack.c.bf16 %v3690_v35, %v3686_v1  ;;  %v11825_v54 = vpack.c.bf16 %v3812_v53, %v3809_v4 }
0x10ca   :  { %13476 = vst [vmem:[#allocation13_spill] sm:$0xff] %v11818_v48 }
0x10cb   :  { %v3693_v39 = vpop.f32.mrb[108].mxu0 }
0x10cc   :  { %v3695_v28 = vpop.f32.mrb[109].mxu0  ;;  %v3694_v31 = vadd.f32 %v3693_v39, %v13474_v62 }
0x10cd   :  { %v3697_v41 = vpop.f32.mrb[110].mxu0  ;;  %v3696_v19 = vadd.f32 %v3695_v28, %v13475_v38 }
0x10ce   :  { %v3698_v57 = vadd.f32 %v3697_v41, %v13474_v62  ;;  %v3699_v42 = vpop.f32.mrb[111].mxu0 }
0x10cf   :  { %v3700_v61 = vadd.f32 %v3699_v42, %v13475_v38  ;;  %4057 = vmatmul.mubr.bf16.vlgmr.msra.gmra.mrb[144].mxu1 %v13451_v25  ;;  %8327 = vmatmul.mubr.bf16.vlgmr.msra.gmra.mrb[128].mxu0 %v13451_v25 }
0x10d0   :  { %v11833_v5 = vpack.c.bf16 %v3698_v57, %v3694_v31  ;;  %4170 = vmatpush1.bf16.msra.mxu1 %v11615_v47  ;;  %8331 = vmatpush3.bf16.msra.mxu0 %v11633_v22 }
0x10d1   :  { %v11837_v50 = vpack.c.bf16 %v3700_v61, %v3696_v19  ;;  %4171 = vmatprep.subr.bf16.mxu1 %v11622_v37  ;;  %8332 = vmatprep.subr.bf16.mxu0 %v13450_v23 }
0x10d2   :  { %4201 = vmatprep.mubr.bf16.mxu1 %v13451_v25  ;;  %8346 = vmatprep.mubr.msk.bf16.mxu0 %vm9680_vm2, %v13450_v23 }
0x10d3   :  { %v3703_v12 = vpop.f32.mrb[112].mxu0 }
0x10d4   :  { %v3705_v43 = vpop.f32.mrb[113].mxu0  ;;  %4172 = vmatpush1.bf16.msra.mxu1 %v11627_v16  ;;  %8333 = vmatpush3.bf16.msra.mxu0 %v11645_v14  ;;  %v3704_v29 = vadd.f32 %v3703_v12, %v13474_v62 }
0x10d5   :  { %v3707_v55 = vpop.f32.mrb[114].mxu0  ;;  %4173 = vmatprep.subr.bf16.mxu1 %v11639_v8  ;;  %8334 = vmatprep.subr.bf16.mxu0 %v13450_v23  ;;  %v3706_v2 = vadd.f32 %v3705_v43, %v13475_v38 }
0x10d6   :  { %v3708_v1 = vadd.f32 %v3707_v55, %v13474_v62  ;;  %v3709_v21 = vpop.f32.mrb[115].mxu0 }
0x10d7   :  { %v3710_v52 = vadd.f32 %v3709_v21, %v13475_v38 }
0x10d8   :  { %v11852_v11 = vpack.c.bf16 %v3708_v1, %v3704_v29  ;;  %4174 = vmatpush1.bf16.msra.mxu1 %v11650_v6  ;;  %8335 = vmatpush3.bf16.msra.mxu0 %v11664_v36 }
0x10d9   :  { %v11856_v4 = vpack.c.bf16 %v3710_v52, %v3706_v2  ;;  %4175 = vmatprep.subr.bf16.mxu1 %v11658_v58  ;;  %8336 = vmatprep.subr.bf16.mxu0 %v13450_v23 }
0x10db   :  { %v3713_v35 = vpop.f32.mrb[116].mxu0 }
0x10dc   :  { %v3715_v53 = vpop.f32.mrb[117].mxu0  ;;  %4176 = vmatpush1.bf16.msra.mxu1 %v11669_v40  ;;  %8337 = vmatpush3.bf16.msra.mxu0 %v11696_v59  ;;  %v3714_v28 = vadd.f32 %v3713_v35, %v13474_v62 }
0x10dd   :  { %v3717_v39 = vpop.f32.mrb[118].mxu0  ;;  %4177 = vmatprep.subr.bf16.mxu1 %v11677_v60  ;;  %8338 = vmatprep.subr.bf16.mxu0 %v13450_v23  ;;  %v3716_v57 = vadd.f32 %v3715_v53, %v13475_v38 }
0x10de   :  { %v3718_v41 = vadd.f32 %v3717_v39, %v13474_v62  ;;  %v3719_v31 = vpop.f32.mrb[119].mxu0 }
0x10df   :  { %v3720_v42 = vadd.f32 %v3719_v31, %v13475_v38 }
0x10e0   :  { %v11868_v19 = vpack.c.bf16 %v3718_v41, %v3714_v28  ;;  %4178 = vmatpush1.bf16.msra.mxu1 %v11683_v63  ;;  %8339 = vmatpush3.bf16.msra.mxu0 %v11727_v44 }
0x10e1   :  { %v11872_v61 = vpack.c.bf16 %v3720_v42, %v3716_v57  ;;  %4179 = vmatprep.subr.bf16.mxu1 %v11691_v18  ;;  %8340 = vmatprep.subr.bf16.mxu0 %v13450_v23 }
0x10e3   :  { %13477 = vst [vmem:[#allocation11_spill] sm:$0xff] %v11872_v61  ;;  %v3723_v12 = vpop.f32.mrb[120].mxu0 }
0x10e4   :  { %v3725_v43 = vpop.f32.mrb[121].mxu0  ;;  %4180 = vmatpush1.bf16.msra.mxu1 %v11701_v51  ;;  %8341 = vmatpush3.bf16.msra.mxu0 %v11742_v15  ;;  %v3724_v29 = vadd.f32 %v3723_v12, %v13474_v62 }
0x10e5   :  { %v3727_v55 = vpop.f32.mrb[122].mxu0  ;;  %4181 = vmatprep.subr.bf16.mxu1 %v11709_v46  ;;  %8342 = vmatprep.subr.bf16.mxu0 %v13450_v23  ;;  %v3726_v2 = vadd.f32 %v3725_v43, %v13475_v38 }
0x10e6   :  { %v3728_v1 = vadd.f32 %v3727_v55, %v13474_v62  ;;  %v3729_v21 = vpop.f32.mrb[123].mxu0 }
0x10e7   :  { %v3730_v52 = vadd.f32 %v3729_v21, %v13475_v38 }
0x10e8   :  { %v11884_v35 = vpack.c.bf16 %v3728_v1, %v3724_v29  ;;  %4182 = vmatpush1.bf16.msra.mxu1 %v11715_v0  ;;  %8343 = vmatpush3.bf16.msra.mxu0 %v11749_v17 }
0x10e9   :  { %v11888_v53 = vpack.c.bf16 %v3730_v52, %v3726_v2  ;;  %4183 = vmatprep.subr.bf16.mxu1 %v11722_v45  ;;  %8344 = vmatprep.subr.bf16.mxu0 %v13450_v23 }
0x10ea   :  { %13478 = vst [vmem:[#allocation14_spill] sm:$0xff] %v11884_v35 }
0x10eb   :  { %13479 = vst [vmem:[#allocation15_spill] sm:$0xff] %v11888_v53 }
0x10ec   :  { %4184 = vmatpush1.bf16.msra.mxu1 %v11732_v56  ;;  %8345 = vmatpush3.bf16.msra.mxu0 %v11756_v24 }
0x10ed   :  { %4308 = vmatprep.subr.bf16.mxu1 %v11610_v26  ;;  %8350 = vmatprep.subr.bf16.mxu0 %v13450_v23 }
0x119a   :  { %v3733_v39 = vpop.f32.mrb[124].mxu0  ;;  %v8308_v28 = vpop.f32.mrb[140].mxu1 }
0x119b   :  { %v3735_v41 = vpop.f32.mrb[125].mxu0  ;;  %v3824_v31 = vpop.f32.mrb[141].mxu1  ;;  %v3734_v12 = vadd.f32 %v3733_v39, %v13474_v62  ;;  %v3833_v43 = vadd.f32 %v8308_v28, %v11772_v9 }
0x119c   :  { %v3737_v57 = vpop.f32.mrb[126].mxu0  ;;  %v8309_v42 = vpop.f32.mrb[142].mxu1  ;;  %v3736_v2 = vadd.f32 %v3735_v41, %v13475_v38  ;;  %v3825_v52 = vadd.f32 %v3824_v31, %v11772_v9 }
0x119d   :  { %v3738_v55 = vadd.f32 %v3737_v57, %v13474_v62  ;;  %v3836_v29 = vadd.f32 %v8309_v42, %v11772_v9  ;;  %v3739_v1 = vpop.f32.mrb[127].mxu0  ;;  %v3827_v21 = vpop.f32.mrb[143].mxu1  ;;  %v3890_v62 = vunpack.c.l.bf16 %v11782_v49  ;;  %v3891_v42 = vunpack.c.l.bf16 %v11786_v20 }
0x119e   :  { %v3740_v7 = vadd.f32 %v3739_v1, %v13475_v38  ;;  %v3828_v53 = vadd.f32 %v3827_v21, %v11772_v9  ;;  %v3893_v38 = vunpack.c.h.bf16 %v11782_v49 }
0x119f   :  { %v11904_v35 = vpack.c.bf16 %v3738_v55, %v3734_v12  ;;  %v11906_v48 = vpack.c.bf16 %v3836_v29, %v3833_v43  ;;  %v3894_v43 = vunpack.c.h.bf16 %v11786_v20 }
0x11a0   :  { %v11908_v39 = vpack.c.bf16 %v3740_v7, %v3736_v2  ;;  %v11910_v28 = vpack.c.bf16 %v3828_v53, %v3825_v52 }
0x11a1   :  { %13480 = vst [vmem:[#allocation5_spill] sm:$0xff] %v11904_v35  ;;  %13481 = vst [vmem:[#allocation16_spill] sm:$0xff] %v11906_v48 }
0x11a2   :  { %13482 = vst [vmem:[#allocation6_spill] sm:$0xff] %v11908_v39  ;;  %v4058_v57 = vpop.f32.mrb[144].mxu1  ;;  %v4101_v41 = vpop.f32.mrb[128].mxu0 }
0x11a3   :  { %v4108_v61 = vadd.f32 %v4058_v57, %v3890_v62  ;;  %v4060_v31 = vpop.f32.mrb[145].mxu1  ;;  %v8328_v1 = vpop.f32.mrb[129].mxu0 }
0x11a4   :  { %v4122_v9 = vadd.f32 %v4060_v31, %v3891_v42  ;;  %v4062_v12 = vpop.f32.mrb[146].mxu1  ;;  %v4104_v55 = vpop.f32.mrb[130].mxu0 }
0x11a5   :  { %v7358_v7 = vmul.f32 -1.442695, %v4108_v61  ;;  %v4109_v29 = vadd.f32 %v4062_v12, %v3893_v38  ;;  %v4064_v53 = vpop.f32.mrb[147].mxu1  ;;  %v8329_v21 = vpop.f32.mrb[131].mxu0  ;;  %v11919_v61 = vld [vmem:[%s13397_s5 + $0x2] ss:$0 sm:$0xff] }
0x11a6   :  { %v4123_v2 = vadd.f32 %v4064_v53, %v3894_v43  ;;  %v7360_v48 = vmul.f32 -1.442695, %v4122_v9  ;;  %v4142_v1 = vadd.f32 %v11919_v61, %v4101_v41  ;;  %v4143_v43 = vadd.f32 %v11919_v61, %v4104_v55 }
0x11a7   :  { %9254 = vpow2.f32 %v7358_v7  ;;  %v7359_v52 = vmul.f32 -1.442695, %v4109_v29  ;;  %v3895_v29 = vunpack.c.h.bf16 %v11788_v3 }
0x11a8   :  { %v7361_v39 = vmul.f32 -1.442695, %v4123_v2 }
0x11a9   :  { %9256 = vpow2.f32 %v7359_v52 }
0x11aa   :  { %9258 = vpow2.f32 %v7360_v48  ;;  %v3892_v48 = vunpack.c.l.bf16 %v11788_v3 }
0x11ab   :  { %9260 = vpow2.f32 %v7361_v39 }
0x11b1   :  { %v9255_v62 = vpop.eup %9254 }
0x11b2   :  { %v4116_v49 = vadd.f32 1.0, %v9255_v62 }
0x11b3   :  { %v9257_v57 = vpop.eup %9256 }
0x11b4   :  { %9262 = vrcp.f32 %v4116_v49  ;;  %v4117_v42 = vadd.f32 1.0, %v9257_v57  ;;  %v9259_v20 = vpop.eup %9258 }
0x11b5   :  { %v9261_v31 = vpop.eup %9260  ;;  %v4130_v38 = vadd.f32 1.0, %v9259_v20 }
0x11b6   :  { %9264 = vrcp.f32 %v4117_v42  ;;  %v4131_v9 = vadd.f32 1.0, %v9261_v31 }
0x11b7   :  { %9266 = vrcp.f32 %v4130_v38 }
0x11b8   :  { %9268 = vrcp.f32 %v4131_v9  ;;  %v4163_v9 = vunpack.c.l.bf16 %v11799_v10 }
0x11be   :  { %v9263_v12 = vpop.eup %9262 }
0x11bf   :  { %v4144_v39 = vmul.f32 %v9263_v12, %v4142_v1 }
0x11c0   :  { %v9265_v7 = vpop.eup %9264 }
0x11c1   :  { %v4146_v53 = vadd.f32 %v4144_v39, %v3892_v48  ;;  %v4145_v21 = vmul.f32 %v9265_v7, %v4143_v43  ;;  %v9267_v52 = vpop.eup %9266  ;;  %v4164_v43 = vunpack.c.l.bf16 %v11804_v33 }
0x11c2   :  { %v9269_v62 = vpop.eup %9268  ;;  %v4150_v41 = vsub.f32 1.0, %v9267_v52  ;;  %v4154_v20 = vmul.f32 0.0, %v9267_v52 }
0x11c3   :  { %9270 = vtanh.f32 %v4146_v53  ;;  %v4147_v2 = vadd.f32 %v4145_v21, %v3895_v29  ;;  %v4151_v57 = vsub.f32 1.0, %v9269_v62  ;;  %v4155_v1 = vmul.f32 0.0, %v9269_v62 }
0x11c4   :  { %v4166_v21 = vunpack.c.h.bf16 %v11799_v10 }
0x11c5   :  { %9272 = vtanh.f32 %v4147_v2 }
0x11cd   :  { %v9271_v49 = vpop.eup %9270 }
0x11ce   :  { %v4152_v42 = vmul.f32 %v9271_v49, %v4150_v41  ;;  %v4167_v41 = vunpack.c.h.bf16 %v11804_v33 }
0x11cf   :  { %v9273_v31 = vpop.eup %9272 }
0x11d0   :  { %v4153_v38 = vmul.f32 %v9273_v31, %v4151_v57  ;;  %v11925_v55 = vadd.f32 %v4154_v20, %v4152_v42 }
0x11d2   :  { %v11927_v12 = vadd.f32 %v4155_v1, %v4153_v38 }
0x11d4   :  { %v11931_v3 = vpack.c.bf16 %v11927_v12, %v11925_v55 }
0x11d6   :  { %4202 = vmatmul.mubr.bf16.vlgmr.msra.gmra.mrb[148].mxu1 %v11931_v3  ;;  %8347 = vmatmul.mubr.bf16.vlgmr.msra.gmra.mrb[132].mxu0 %v11931_v3 }
0x11d7   :  { %4309 = vmatpush1.bf16.msra.mxu1 %v11615_v47  ;;  %8351 = vmatpush3.bf16.msra.mxu0 %v11633_v22 }
0x11d8   :  { %4310 = vmatprep.subr.bf16.mxu1 %v11622_v37  ;;  %8352 = vmatprep.subr.bf16.mxu0 %v13450_v23 }
0x11d9   :  { %4340 = vmatprep.mubr.bf16.mxu1 %v13451_v25  ;;  %8366 = vmatprep.mubr.msk.bf16.mxu0 %vm9680_vm2, %v13450_v23 }
0x11db   :  { %4311 = vmatpush1.bf16.msra.mxu1 %v11627_v16  ;;  %8353 = vmatpush3.bf16.msra.mxu0 %v11645_v14 }
0x11dc   :  { %4312 = vmatprep.subr.bf16.mxu1 %v11639_v8  ;;  %8354 = vmatprep.subr.bf16.mxu0 %v13450_v23 }
0x11df   :  { %4313 = vmatpush1.bf16.msra.mxu1 %v11650_v6  ;;  %8355 = vmatpush3.bf16.msra.mxu0 %v11664_v36 }
0x11e0   :  { %4314 = vmatprep.subr.bf16.mxu1 %v11658_v58  ;;  %8356 = vmatprep.subr.bf16.mxu0 %v13450_v23 }
0x11e3   :  { %4315 = vmatpush1.bf16.msra.mxu1 %v11669_v40  ;;  %8357 = vmatpush3.bf16.msra.mxu0 %v11696_v59 }
0x11e4   :  { %4316 = vmatprep.subr.bf16.mxu1 %v11677_v60  ;;  %8358 = vmatprep.subr.bf16.mxu0 %v13450_v23 }
0x11e7   :  { %4317 = vmatpush1.bf16.msra.mxu1 %v11683_v63  ;;  %8359 = vmatpush3.bf16.msra.mxu0 %v11727_v44 }
0x11e8   :  { %4318 = vmatprep.subr.bf16.mxu1 %v11691_v18  ;;  %8360 = vmatprep.subr.bf16.mxu0 %v13450_v23 }
0x11eb   :  { %4319 = vmatpush1.bf16.msra.mxu1 %v11701_v51  ;;  %8361 = vmatpush3.bf16.msra.mxu0 %v11742_v15 }
0x11ec   :  { %4320 = vmatprep.subr.bf16.mxu1 %v11709_v46  ;;  %8362 = vmatprep.subr.bf16.mxu0 %v13450_v23 }
0x11ef   :  { %4321 = vmatpush1.bf16.msra.mxu1 %v11715_v0  ;;  %8363 = vmatpush3.bf16.msra.mxu0 %v11749_v17 }
0x11f0   :  { %4322 = vmatprep.subr.bf16.mxu1 %v11722_v45  ;;  %8364 = vmatprep.subr.bf16.mxu0 %v13450_v23 }
0x11f3   :  { %4323 = vmatpush1.bf16.msra.mxu1 %v11732_v56  ;;  %8365 = vmatpush3.bf16.msra.mxu0 %v11756_v24 }
0x11f4   :  { %4447 = vmatprep.subr.bf16.mxu1 %v11610_v26  ;;  %8370 = vmatprep.subr.bf16.mxu0 %v13450_v23 }
0x12a9   :  { %v4203_v48 = vpop.f32.mrb[148].mxu1  ;;  %v4246_v39 = vpop.f32.mrb[132].mxu0 }
0x12aa   :  { %v4253_v7 = vadd.f32 %v4203_v48, %v4163_v9  ;;  %v4205_v29 = vpop.f32.mrb[149].mxu1  ;;  %v8348_v53 = vpop.f32.mrb[133].mxu0 }
0x12ab   :  { %v4267_v2 = vadd.f32 %v4205_v29, %v4164_v43  ;;  %v4207_v52 = vpop.f32.mrb[150].mxu1  ;;  %v4249_v62 = vpop.f32.mrb[134].mxu0  ;;  %v4281_v53 = vadd.f32 %v11919_v61, %v4246_v39 }
0x12ac   :  { %v7363_v49 = vmul.f32 -1.442695, %v4253_v7  ;;  %v4254_v57 = vadd.f32 %v4207_v52, %v4166_v21  ;;  %v4209_v42 = vpop.f32.mrb[151].mxu1  ;;  %v8349_v20 = vpop.f32.mrb[135].mxu0 }
0x12ad   :  { %v4268_v31 = vadd.f32 %v4209_v42, %v4167_v41  ;;  %v7365_v1 = vmul.f32 -1.442695, %v4267_v2  ;;  %v4165_v41 = vunpack.c.l.bf16 %v11784_v30  ;;  %v4282_v2 = vadd.f32 %v11919_v61, %v4249_v62 }
0x12ae   :  { %9274 = vpow2.f32 %v7363_v49  ;;  %v7364_v38 = vmul.f32 -1.442695, %v4254_v57  ;;  %v4168_v57 = vunpack.c.h.bf16 %v11784_v30 }
0x12af   :  { %v7366_v35 = vmul.f32 -1.442695, %v4268_v31 }
0x12b0   :  { %9276 = vpow2.f32 %v7364_v38 }
0x12b1   :  { %9278 = vpow2.f32 %v7365_v1 }
0x12b2   :  { %9280 = vpow2.f32 %v7366_v35 }
0x12b8   :  { %v9275_v9 = vpop.eup %9274 }
0x12b9   :  { %v4261_v48 = vadd.f32 1.0, %v9275_v9 }
0x12ba   :  { %v9277_v10 = vpop.eup %9276 }
0x12bb   :  { %9282 = vrcp.f32 %v4261_v48  ;;  %v4262_v43 = vadd.f32 1.0, %v9277_v10  ;;  %v9279_v29 = vpop.eup %9278 }
0x12bc   :  { %v9281_v33 = vpop.eup %9280  ;;  %v4275_v7 = vadd.f32 1.0, %v9279_v29 }
0x12bd   :  { %9284 = vrcp.f32 %v4262_v43  ;;  %v4276_v21 = vadd.f32 1.0, %v9281_v33 }
0x12be   :  { %9286 = vrcp.f32 %v4275_v7 }
0x12bf   :  { %9288 = vrcp.f32 %v4276_v21 }
0x12c5   :  { %v9283_v52 = vpop.eup %9282 }
0x12c6   :  { %v4283_v49 = vmul.f32 %v9283_v52, %v4281_v53 }
0x12c7   :  { %v9285_v35 = vpop.eup %9284 }
0x12c8   :  { %v4285_v42 = vadd.f32 %v4283_v49, %v4165_v41  ;;  %v4284_v20 = vmul.f32 %v9285_v35, %v4282_v2  ;;  %v9287_v38 = vpop.eup %9286  ;;  %v4304_v41 = vunpack.c.l.bf16 %v11806_v34 }
0x12c9   :  { %v9289_v1 = vpop.eup %9288  ;;  %v4289_v39 = vsub.f32 1.0, %v9287_v38  ;;  %v4293_v43 = vmul.f32 %v9287_v38, %v11925_v55 }
0x12ca   :  { %9290 = vtanh.f32 %v4285_v42  ;;  %v4286_v31 = vadd.f32 %v4284_v20, %v4168_v57  ;;  %v4290_v48 = vsub.f32 1.0, %v9289_v1  ;;  %v4294_v62 = vmul.f32 %v9289_v1, %v11927_v12 }
0x12cb   :  { %v4307_v57 = vunpack.c.h.bf16 %v11806_v34 }
0x12cc   :  { %9292 = vtanh.f32 %v4286_v31 }
0x12d4   :  { %v9291_v9 = vpop.eup %9290 }
0x12d5   :  { %v4291_v10 = vmul.f32 %v9291_v9, %v4289_v39 }
0x12d6   :  { %v9293_v29 = vpop.eup %9292 }
0x12d7   :  { %v4292_v33 = vmul.f32 %v9293_v29, %v4290_v48  ;;  %v11980_v7 = vadd.f32 %v4293_v43, %v4291_v10 }
0x12d9   :  { %v11982_v30 = vadd.f32 %v4294_v62, %v4292_v33 }
0x12db   :  { %v11986_v53 = vpack.c.bf16 %v11982_v30, %v11980_v7 }
0x12dd   :  { %4341 = vmatmul.mubr.bf16.vlgmr.msra.gmra.mrb[152].mxu1 %v11986_v53  ;;  %8367 = vmatmul.mubr.bf16.vlgmr.msra.gmra.mrb[136].mxu0 %v11986_v53 }
0x12de   :  { %4448 = vmatpush1.bf16.msra.mxu1 %v11615_v47  ;;  %8371 = vmatpush3.bf16.msra.mxu0 %v11633_v22  ;;  %v4302_v47 = vunpack.c.l.bf16 %v11816_v13  ;;  %v4303_v22 = vunpack.c.l.bf16 %v11823_v32 }
0x12df   :  { %4449 = vmatprep.subr.bf16.mxu1 %v11622_v37  ;;  %8372 = vmatprep.subr.bf16.mxu0 %v13450_v23 }
0x12e0   :  { %4479 = vmatprep.mubr.bf16.mxu1 %v13451_v25  ;;  %8386 = vmatprep.mubr.msk.bf16.mxu0 %vm9680_vm2, %v13450_v23 }
0x12e2   :  { %4450 = vmatpush1.bf16.msra.mxu1 %v11627_v16  ;;  %8373 = vmatpush3.bf16.msra.mxu0 %v11645_v14 }
0x12e3   :  { %4451 = vmatprep.subr.bf16.mxu1 %v11639_v8  ;;  %8374 = vmatprep.subr.bf16.mxu0 %v13450_v23 }
0x12e6   :  { %4452 = vmatpush1.bf16.msra.mxu1 %v11650_v6  ;;  %8375 = vmatpush3.bf16.msra.mxu0 %v11664_v36 }
0x12e7   :  { %4453 = vmatprep.subr.bf16.mxu1 %v11658_v58  ;;  %8376 = vmatprep.subr.bf16.mxu0 %v13450_v23  ;;  %v4305_v58 = vunpack.c.h.bf16 %v11816_v13 }
0x12ea   :  { %4454 = vmatpush1.bf16.msra.mxu1 %v11669_v40  ;;  %8377 = vmatpush3.bf16.msra.mxu0 %v11696_v59 }
0x12eb   :  { %4455 = vmatprep.subr.bf16.mxu1 %v11677_v60  ;;  %8378 = vmatprep.subr.bf16.mxu0 %v13450_v23 }
0x12ee   :  { %4456 = vmatpush1.bf16.msra.mxu1 %v11683_v63  ;;  %8379 = vmatpush3.bf16.msra.mxu0 %v11727_v44  ;;  %v4306_v63 = vunpack.c.h.bf16 %v11823_v32 }
0x12ef   :  { %4457 = vmatprep.subr.bf16.mxu1 %v11691_v18  ;;  %8380 = vmatprep.subr.bf16.mxu0 %v13450_v23 }
0x12f2   :  { %4458 = vmatpush1.bf16.msra.mxu1 %v11701_v51  ;;  %8381 = vmatpush3.bf16.msra.mxu0 %v11742_v15 }
0x12f3   :  { %4459 = vmatprep.subr.bf16.mxu1 %v11709_v46  ;;  %8382 = vmatprep.subr.bf16.mxu0 %v13450_v23 }
0x12f6   :  { %4460 = vmatpush1.bf16.msra.mxu1 %v11715_v0  ;;  %8383 = vmatpush3.bf16.msra.mxu0 %v11749_v17 }
0x12f7   :  { %4461 = vmatprep.subr.bf16.mxu1 %v11722_v45  ;;  %8384 = vmatprep.subr.bf16.mxu0 %v13450_v23 }
0x12fa   :  { %4462 = vmatpush1.bf16.msra.mxu1 %v11732_v56  ;;  %8385 = vmatpush3.bf16.msra.mxu0 %v11756_v24 }
0x12fb   :  { %4586 = vmatprep.subr.bf16.mxu1 %v11610_v26  ;;  %8390 = vmatprep.subr.bf16.mxu0 %v13450_v23 }
0x13b0   :  { %v4342_v37 = vpop.f32.mrb[152].mxu1  ;;  %v4385_v16 = vpop.f32.mrb[136].mxu0 }
0x13b1   :  { %v4392_v8 = vadd.f32 %v4342_v37, %v4302_v47  ;;  %v4344_v14 = vpop.f32.mrb[153].mxu1  ;;  %v8368_v6 = vpop.f32.mrb[137].mxu0  ;;  %v4420_v12 = vadd.f32 %v11919_v61, %v4385_v16  ;;  %v12060_v16 = vld [vmem:[%s13396_s3 + $0x19c] ss:$12 sps:$4 sm:$0xff]  }
0x13b2   :  { %v4406_v36 = vadd.f32 %v4344_v14, %v4303_v22  ;;  %v4346_v40 = vpop.f32.mrb[154].mxu1  ;;  %v4388_v60 = vpop.f32.mrb[138].mxu0  ;;  %v12070_v22 = vld [vmem:[%s13396_s3 + $0x198] ss:$12 sps:$4 sm:$0xff]   ;;  %v12082_v14 = vld [vmem:[%s13396_s3 + $0x1b4] ss:$12 sps:$4 sm:$0xff]  }
0x13b3   :  { %v7367_v18 = vmul.f32 -1.442695, %v4392_v8  ;;  %v4393_v26 = vadd.f32 %v4346_v40, %v4305_v58  ;;  %v4348_v59 = vpop.f32.mrb[155].mxu1  ;;  %v8369_v51 = vpop.f32.mrb[139].mxu0  ;;  %v4421_v2 = vadd.f32 %v11919_v61, %v4388_v60  ;;  %v12076_v8 = vld [vmem:[%s13396_s3 + $0x1a0] ss:$12 sps:$4 sm:$0xff]  }
0x13b4   :  { %v4407_v46 = vadd.f32 %v4348_v59, %v4306_v63  ;;  %v7369_v45 = vmul.f32 -1.442695, %v4406_v36  ;;  %v12089_v6 = vld [vmem:[%s13396_s3 + $0x1b0] ss:$12 sps:$4 sm:$0xff]   ;;  %v12095_v58 = vld [vmem:[%s13396_s3 + $0x1b8] ss:$12 sps:$4 sm:$0xff]  }
0x13b5   :  { %9294 = vpow2.f32 %v7367_v18  ;;  %v7368_v0 = vmul.f32 -1.442695, %v4393_v26  ;;  %v12101_v36 = vld [vmem:[%s13396_s3 + $0x1cc] ss:$12 sps:$4 sm:$0xff]   ;;  %v12108_v40 = vld [vmem:[%s13396_s3 + $0x1c8] ss:$12 sps:$4 sm:$0xff]  }
0x13b6   :  { %v7370_v44 = vmul.f32 -1.442695, %v4407_v46  ;;  %v12114_v60 = vld [vmem:[%s13396_s3 + $0x1d0] ss:$12 sps:$4 sm:$0xff]   ;;  %v12127_v18 = vld [vmem:[%s13396_s3 + $0x1e0] ss:$12 sps:$4 sm:$0xff]  }
0x13b7   :  { %9296 = vpow2.f32 %v7368_v0  ;;  %v12120_v63 = vld [vmem:[%s13396_s3 + $0x1e4] ss:$12 sps:$4 sm:$0xff]   ;;  %v12133_v26 = vld [vmem:[%s13396_s3 + $0x1e8] ss:$12 sps:$4 sm:$0xff]   ;;  %v12152_v46 = vld [vmem:[%s13396_s3 + $0x200] ss:$12 sps:$4 sm:$0xff]  }
0x13b8   :  { %9298 = vpow2.f32 %v7369_v45  ;;  %v12139_v59 = vld [vmem:[%s13396_s3 + $0x1fc] ss:$12 sps:$4 sm:$0xff]   ;;  %v12146_v51 = vld [vmem:[%s13396_s3 + $0x1f8] ss:$12 sps:$4 sm:$0xff]   ;;  %v12158_v0 = vld [vmem:[%s13396_s3 + $0x214] ss:$12 sps:$4 sm:$0xff]  }
0x13b9   :  { %9300 = vpow2.f32 %v7370_v44  ;;  %v12165_v45 = vld [vmem:[%s13396_s3 + $0x210] ss:$12 sps:$4 sm:$0xff]   ;;  %v12171_v44 = vld [vmem:[%s13396_s3 + $0x218] ss:$12 sps:$4 sm:$0xff]  }
0x13bf   :  { %v9295_v56 = vpop.eup %9294 }
0x13c0   :  { %v4400_v15 = vadd.f32 1.0, %v9295_v56  ;;  %v12177_v56 = vld [vmem:[%s13396_s3 + $0x22c] ss:$12 sps:$4 sm:$0xff]  }
0x13c1   :  { %v9297_v17 = vpop.eup %9296 }
0x13c2   :  { %9302 = vrcp.f32 %v4400_v15  ;;  %v4401_v24 = vadd.f32 1.0, %v9297_v17  ;;  %v9299_v13 = vpop.eup %9298  ;;  %v12184_v15 = vld [vmem:[%s13396_s3 + $0x228] ss:$12 sps:$4 sm:$0xff]   ;;  %v12190_v17 = vld [vmem:[%s13396_s3 + $0x230] ss:$12 sps:$4 sm:$0xff]  }
0x13c3   :  { %v9301_v32 = vpop.eup %9300  ;;  %v4414_v55 = vadd.f32 1.0, %v9299_v13  ;;  %v4441_v13 = vunpack.c.l.bf16 %v11833_v5 }
0x13c4   :  { %9304 = vrcp.f32 %v4401_v24  ;;  %v4415_v21 = vadd.f32 1.0, %v9301_v32  ;;  %v12196_v24 = vld [vmem:[%s13396_s3 + $0x184] ss:$12 sps:$4 sm:$0xff]  }
0x13c5   :  { %9306 = vrcp.f32 %v4414_v55 }
0x13c6   :  { %9308 = vrcp.f32 %v4415_v21 }
0x13cc   :  { %v9303_v52 = vpop.eup %9302 }
0x13cd   :  { %v4422_v49 = vmul.f32 %v9303_v52, %v4420_v12  ;;  %v4442_v12 = vunpack.c.l.bf16 %v11837_v50 }
0x13ce   :  { %v9305_v35 = vpop.eup %9304 }
0x13cf   :  { %v4424_v42 = vadd.f32 %v4422_v49, %v4304_v41  ;;  %v4423_v20 = vmul.f32 %v9305_v35, %v4421_v2  ;;  %v9307_v38 = vpop.eup %9306  ;;  %v4444_v49 = vunpack.c.h.bf16 %v11833_v5 }
0x13d0   :  { %v9309_v1 = vpop.eup %9308  ;;  %v4428_v39 = vsub.f32 1.0, %v9307_v38  ;;  %v4432_v43 = vmul.f32 %v9307_v38, %v11980_v7  ;;  %v12048_v7 = vld [vmem:[%s13396_s3 + $0x180] ss:$12 sps:$4 sm:$0xff]  }
0x13d1   :  { %9310 = vtanh.f32 %v4424_v42  ;;  %v4425_v31 = vadd.f32 %v4423_v20, %v4307_v57  ;;  %v4429_v48 = vsub.f32 1.0, %v9309_v1  ;;  %v4433_v62 = vmul.f32 %v9309_v1, %v11982_v30  ;;  %v12054_v30 = vld [vmem:[%s13396_s3 + $0x188] ss:$12 sps:$4 sm:$0xff]  }
0x13d2   :  { %v4445_v42 = vunpack.c.h.bf16 %v11837_v50 }
0x13d3   :  { %9312 = vtanh.f32 %v4425_v31 }
0x13db   :  { %v9311_v9 = vpop.eup %9310 }
0x13dc   :  { %v4430_v10 = vmul.f32 %v9311_v9, %v4428_v39 }
0x13dd   :  { %v9313_v29 = vpop.eup %9312 }
0x13de   :  { %v4431_v33 = vmul.f32 %v9313_v29, %v4429_v48  ;;  %v12035_v47 = vadd.f32 %v4432_v43, %v4430_v10 }
0x13e0   :  { %v12037_v34 = vadd.f32 %v4433_v62, %v4431_v33 }
0x13e2   :  { %v12041_v37 = vpack.c.bf16 %v12037_v34, %v12035_v47 }
0x13e4   :  { %4480 = vmatmul.mubr.bf16.vlgmr.msra.gmra.mrb[156].mxu1 %v12041_v37  ;;  %8387 = vmatmul.mubr.bf16.vlgmr.msra.gmra.mrb[140].mxu0 %v12041_v37 }
0x13e5   :  { %4587 = vmatpush1.bf16.msra.mxu1 %v12048_v7  ;;  %8391 = vmatpush3.bf16.msra.mxu0 %v12054_v30 }
0x13e6   :  { %4588 = vmatprep.subr.bf16.mxu1 %v12060_v16  ;;  %8392 = vmatprep.subr.bf16.mxu0 %v13450_v23 }
0x13e7   :  { %4618 = vmatprep.mubr.bf16.mxu1 %v13451_v25  ;;  %8406 = vmatprep.mubr.msk.bf16.mxu0 %vm9680_vm2, %v13450_v23 }
0x13e9   :  { %4589 = vmatpush1.bf16.msra.mxu1 %v12070_v22  ;;  %8393 = vmatpush3.bf16.msra.mxu0 %v12076_v8 }
0x13ea   :  { %4590 = vmatprep.subr.bf16.mxu1 %v12082_v14  ;;  %8394 = vmatprep.subr.bf16.mxu0 %v13450_v23 }
0x13ed   :  { %4591 = vmatpush1.bf16.msra.mxu1 %v12089_v6  ;;  %8395 = vmatpush3.bf16.msra.mxu0 %v12095_v58 }
0x13ee   :  { %4592 = vmatprep.subr.bf16.mxu1 %v12101_v36  ;;  %8396 = vmatprep.subr.bf16.mxu0 %v13450_v23 }
0x13f1   :  { %4593 = vmatpush1.bf16.msra.mxu1 %v12108_v40  ;;  %8397 = vmatpush3.bf16.msra.mxu0 %v12114_v60 }
0x13f2   :  { %4594 = vmatprep.subr.bf16.mxu1 %v12120_v63  ;;  %8398 = vmatprep.subr.bf16.mxu0 %v13450_v23 }
0x13f5   :  { %4595 = vmatpush1.bf16.msra.mxu1 %v12127_v18  ;;  %8399 = vmatpush3.bf16.msra.mxu0 %v12133_v26 }
0x13f6   :  { %4596 = vmatprep.subr.bf16.mxu1 %v12139_v59  ;;  %8400 = vmatprep.subr.bf16.mxu0 %v13450_v23 }
0x13f9   :  { %4597 = vmatpush1.bf16.msra.mxu1 %v12146_v51  ;;  %8401 = vmatpush3.bf16.msra.mxu0 %v12152_v46 }
0x13fa   :  { %4598 = vmatprep.subr.bf16.mxu1 %v12158_v0  ;;  %8402 = vmatprep.subr.bf16.mxu0 %v13450_v23 }
0x13fd   :  { %4599 = vmatpush1.bf16.msra.mxu1 %v12165_v45  ;;  %8403 = vmatpush3.bf16.msra.mxu0 %v12171_v44 }
0x13fe   :  { %4600 = vmatprep.subr.bf16.mxu1 %v12177_v56  ;;  %8404 = vmatprep.subr.bf16.mxu0 %v13450_v23 }
0x1401   :  { %4601 = vmatpush1.bf16.msra.mxu1 %v12184_v15  ;;  %8405 = vmatpush3.bf16.msra.mxu0 %v12190_v17 }
0x1402   :  { %4725 = vmatprep.subr.bf16.mxu1 %v12196_v24  ;;  %8410 = vmatprep.subr.bf16.mxu0 %v13450_v23 }
0x14b7   :  { %v4481_v32 = vpop.f32.mrb[156].mxu1  ;;  %v4524_v55 = vpop.f32.mrb[140].mxu0 }
0x14b8   :  { %v4531_v21 = vadd.f32 %v4481_v32, %v4441_v13  ;;  %v4483_v52 = vpop.f32.mrb[157].mxu1  ;;  %v8388_v41 = vpop.f32.mrb[141].mxu0  ;;  %v4559_v32 = vadd.f32 %v11919_v61, %v4524_v55 }
0x14b9   :  { %v4545_v2 = vadd.f32 %v4483_v52, %v4442_v12  ;;  %v4485_v35 = vpop.f32.mrb[158].mxu1  ;;  %v4527_v57 = vpop.f32.mrb[142].mxu0  ;;  %v4443_v52 = vunpack.c.l.bf16 %v11801_v27 }
0x14ba   :  { %v7371_v20 = vmul.f32 -1.442695, %v4531_v21  ;;  %v4532_v31 = vadd.f32 %v4485_v35, %v4444_v49  ;;  %v4487_v38 = vpop.f32.mrb[159].mxu1  ;;  %v8389_v1 = vpop.f32.mrb[143].mxu0  ;;  %v4560_v49 = vadd.f32 %v11919_v61, %v4527_v57  ;;  %v4446_v35 = vunpack.c.h.bf16 %v11801_v27 }
0x14bb   :  { %v4546_v39 = vadd.f32 %v4487_v38, %v4445_v42  ;;  %v7373_v48 = vmul.f32 -1.442695, %v4545_v2 }
0x14bc   :  { %9314 = vpow2.f32 %v7371_v20  ;;  %v7372_v9 = vmul.f32 -1.442695, %v4532_v31 }
0x14bd   :  { %v7374_v10 = vmul.f32 -1.442695, %v4546_v39 }
0x14be   :  { %9316 = vpow2.f32 %v7372_v9 }
0x14bf   :  { %9318 = vpow2.f32 %v7373_v48 }
0x14c0   :  { %9320 = vpow2.f32 %v7374_v10 }
0x14c6   :  { %v9315_v43 = vpop.eup %9314 }
0x14c7   :  { %v4539_v29 = vadd.f32 1.0, %v9315_v43 }
0x14c8   :  { %v9317_v5 = vpop.eup %9316 }
0x14c9   :  { %9322 = vrcp.f32 %v4539_v29  ;;  %v4540_v33 = vadd.f32 1.0, %v9317_v5  ;;  %v9319_v62 = vpop.eup %9318 }
0x14ca   :  { %v9321_v50 = vpop.eup %9320  ;;  %v4553_v13 = vadd.f32 1.0, %v9319_v62 }
0x14cb   :  { %9324 = vrcp.f32 %v4540_v33  ;;  %v4554_v12 = vadd.f32 1.0, %v9321_v50  ;;  %v4581_v50 = vunpack.c.l.bf16 %v11856_v4 }
0x14cc   :  { %9326 = vrcp.f32 %v4553_v13 }
0x14cd   :  { %9328 = vrcp.f32 %v4554_v12 }
0x14d3   :  { %v9323_v21 = vpop.eup %9322 }
0x14d4   :  { %v4561_v41 = vmul.f32 %v9323_v21, %v4559_v32  ;;  %v4583_v21 = vunpack.c.h.bf16 %v11852_v11 }
0x14d5   :  { %v9325_v2 = vpop.eup %9324 }
0x14d6   :  { %v4563_v42 = vadd.f32 %v4561_v41, %v4443_v52  ;;  %v4562_v20 = vmul.f32 %v9325_v2, %v4560_v49  ;;  %v9327_v38 = vpop.eup %9326  ;;  %v4584_v2 = vunpack.c.h.bf16 %v11856_v4 }
0x14d7   :  { %v9329_v1 = vpop.eup %9328  ;;  %v4567_v55 = vsub.f32 1.0, %v9327_v38  ;;  %v4571_v10 = vmul.f32 %v9327_v38, %v12035_v47  ;;  %v4580_v47 = vunpack.c.l.bf16 %v11852_v11 }
0x14d8   :  { %9330 = vtanh.f32 %v4563_v42  ;;  %v4564_v31 = vadd.f32 %v4562_v20, %v4446_v35  ;;  %v4568_v9 = vsub.f32 1.0, %v9329_v1  ;;  %v4572_v57 = vmul.f32 %v9329_v1, %v12037_v34 }
0x14da   :  { %9332 = vtanh.f32 %v4564_v31 }
0x14e2   :  { %v9331_v39 = vpop.eup %9330 }
0x14e3   :  { %v4569_v48 = vmul.f32 %v9331_v39, %v4567_v55 }
0x14e4   :  { %v9333_v43 = vpop.eup %9332 }
0x14e5   :  { %v4570_v29 = vmul.f32 %v9333_v43, %v4568_v9  ;;  %v12210_v5 = vadd.f32 %v4571_v10, %v4569_v48 }
0x14e7   :  { %v12212_v27 = vadd.f32 %v4572_v57, %v4570_v29 }
0x14e9   :  { %v12216_v33 = vpack.c.bf16 %v12212_v27, %v12210_v5 }
0x14eb   :  { %4619 = vmatmul.mubr.bf16.vlgmr.msra.gmra.mrb[160].mxu1 %v12216_v33  ;;  %8407 = vmatmul.mubr.bf16.vlgmr.msra.gmra.mrb[144].mxu0 %v12216_v33 }
0x14ec   :  { %4726 = vmatpush1.bf16.msra.mxu1 %v12048_v7  ;;  %8411 = vmatpush3.bf16.msra.mxu0 %v12054_v30 }
0x14ed   :  { %4727 = vmatprep.subr.bf16.mxu1 %v12060_v16  ;;  %8412 = vmatprep.subr.bf16.mxu0 %v13450_v23 }
0x14ee   :  { %4757 = vmatprep.mubr.bf16.mxu1 %v13451_v25  ;;  %8426 = vmatprep.mubr.msk.bf16.mxu0 %vm9680_vm2, %v13450_v23 }
0x14f0   :  { %4728 = vmatpush1.bf16.msra.mxu1 %v12070_v22  ;;  %8413 = vmatpush3.bf16.msra.mxu0 %v12076_v8 }
0x14f1   :  { %4729 = vmatprep.subr.bf16.mxu1 %v12082_v14  ;;  %8414 = vmatprep.subr.bf16.mxu0 %v13450_v23 }
0x14f4   :  { %4730 = vmatpush1.bf16.msra.mxu1 %v12089_v6  ;;  %8415 = vmatpush3.bf16.msra.mxu0 %v12095_v58 }
0x14f5   :  { %4731 = vmatprep.subr.bf16.mxu1 %v12101_v36  ;;  %8416 = vmatprep.subr.bf16.mxu0 %v13450_v23 }
0x14f8   :  { %4732 = vmatpush1.bf16.msra.mxu1 %v12108_v40  ;;  %8417 = vmatpush3.bf16.msra.mxu0 %v12114_v60 }
0x14f9   :  { %4733 = vmatprep.subr.bf16.mxu1 %v12120_v63  ;;  %8418 = vmatprep.subr.bf16.mxu0 %v13450_v23 }
0x14fc   :  { %4734 = vmatpush1.bf16.msra.mxu1 %v12127_v18  ;;  %8419 = vmatpush3.bf16.msra.mxu0 %v12133_v26 }
0x14fd   :  { %4735 = vmatprep.subr.bf16.mxu1 %v12139_v59  ;;  %8420 = vmatprep.subr.bf16.mxu0 %v13450_v23 }
0x1500   :  { %4736 = vmatpush1.bf16.msra.mxu1 %v12146_v51  ;;  %8421 = vmatpush3.bf16.msra.mxu0 %v12152_v46 }
0x1501   :  { %4737 = vmatprep.subr.bf16.mxu1 %v12158_v0  ;;  %8422 = vmatprep.subr.bf16.mxu0 %v13450_v23 }
0x1504   :  { %4738 = vmatpush1.bf16.msra.mxu1 %v12165_v45  ;;  %8423 = vmatpush3.bf16.msra.mxu0 %v12171_v44 }
0x1505   :  { %4739 = vmatprep.subr.bf16.mxu1 %v12177_v56  ;;  %8424 = vmatprep.subr.bf16.mxu0 %v13450_v23 }
0x1508   :  { %4740 = vmatpush1.bf16.msra.mxu1 %v12184_v15  ;;  %8425 = vmatpush3.bf16.msra.mxu0 %v12190_v17 }
0x1509   :  { %4864 = vmatprep.subr.bf16.mxu1 %v12196_v24  ;;  %8430 = vmatprep.subr.bf16.mxu0 %v13450_v23 }
0x15be   :  { %v4620_v34 = vpop.f32.mrb[160].mxu1  ;;  %v4663_v62 = vpop.f32.mrb[144].mxu0 }
0x15bf   :  { %v4670_v13 = vadd.f32 %v4620_v34, %v4580_v47  ;;  %v4622_v32 = vpop.f32.mrb[161].mxu1  ;;  %v8408_v12 = vpop.f32.mrb[145].mxu0  ;;  %v4698_v57 = vadd.f32 %v11919_v61, %v4663_v62 }
0x15c0   :  { %v4684_v52 = vadd.f32 %v4622_v32, %v4581_v50  ;;  %v4624_v41 = vpop.f32.mrb[162].mxu1  ;;  %v4666_v49 = vpop.f32.mrb[146].mxu0  ;;  %v4582_v50 = vunpack.c.l.bf16 %v11825_v54 }
0x15c1   :  { %v7375_v35 = vmul.f32 -1.442695, %v4670_v13  ;;  %v4671_v42 = vadd.f32 %v4624_v41, %v4583_v21  ;;  %v4626_v20 = vpop.f32.mrb[163].mxu1  ;;  %v8409_v31 = vpop.f32.mrb[147].mxu0  ;;  %v4699_v32 = vadd.f32 %v11919_v61, %v4666_v49  ;;  %v4585_v21 = vunpack.c.h.bf16 %v11825_v54 }
0x15c2   :  { %v4685_v38 = vadd.f32 %v4626_v20, %v4584_v2  ;;  %v7377_v55 = vmul.f32 -1.442695, %v4684_v52 }
0x15c3   :  { %9334 = vpow2.f32 %v7375_v35  ;;  %v7376_v1 = vmul.f32 -1.442695, %v4671_v42 }
0x15c4   :  { %v7378_v39 = vmul.f32 -1.442695, %v4685_v38 }
0x15c5   :  { %9336 = vpow2.f32 %v7376_v1 }
0x15c6   :  { %9338 = vpow2.f32 %v7377_v55 }
0x15c7   :  { %9340 = vpow2.f32 %v7378_v39 }
0x15cd   :  { %v9335_v9 = vpop.eup %9334 }
0x15ce   :  { %v4678_v48 = vadd.f32 1.0, %v9335_v9 }
0x15cf   :  { %v9337_v11 = vpop.eup %9336 }
0x15d0   :  { %9342 = vrcp.f32 %v4678_v48  ;;  %v4679_v10 = vadd.f32 1.0, %v9337_v11  ;;  %v9339_v43 = vpop.eup %9338 }
0x15d1   :  { %v9341_v4 = vpop.eup %9340  ;;  %v4692_v29 = vadd.f32 1.0, %v9339_v43 }
0x15d2   :  { %9344 = vrcp.f32 %v4679_v10  ;;  %v4693_v47 = vadd.f32 1.0, %v9341_v4  ;;  %v13483_v10 = vld [vmem:[#allocation11_spill] sm:$0xff] }
0x15d3   :  { %9346 = vrcp.f32 %v4692_v29  ;;  %v4720_v43 = vunpack.c.l.bf16 %v13483_v10 }
0x15d4   :  { %9348 = vrcp.f32 %v4693_v47  ;;  %v4722_v47 = vunpack.c.h.bf16 %v11868_v19 }
0x15da   :  { %v9343_v34 = vpop.eup %9342 }
0x15db   :  { %v4700_v13 = vmul.f32 %v9343_v34, %v4698_v57 }
0x15dc   :  { %v9345_v12 = vpop.eup %9344 }
0x15dd   :  { %v4702_v52 = vadd.f32 %v4700_v13, %v4582_v50  ;;  %v4701_v41 = vmul.f32 %v9345_v12, %v4699_v32  ;;  %v9347_v35 = vpop.eup %9346  ;;  %v4723_v32 = vunpack.c.h.bf16 %v13483_v10 }
0x15de   :  { %v9349_v42 = vpop.eup %9348  ;;  %v4706_v62 = vsub.f32 1.0, %v9347_v35  ;;  %v4710_v1 = vmul.f32 %v9347_v35, %v12210_v5  ;;  %v4719_v5 = vunpack.c.l.bf16 %v11868_v19 }
0x15df   :  { %9350 = vtanh.f32 %v4702_v52  ;;  %v4703_v2 = vadd.f32 %v4701_v41, %v4585_v21  ;;  %v4707_v31 = vsub.f32 1.0, %v9349_v42  ;;  %v4711_v49 = vmul.f32 %v9349_v42, %v12212_v27 }
0x15e1   :  { %9352 = vtanh.f32 %v4703_v2 }
0x15e9   :  { %v9351_v20 = vpop.eup %9350 }
0x15ea   :  { %v4708_v38 = vmul.f32 %v9351_v20, %v4706_v62 }
0x15eb   :  { %v9353_v55 = vpop.eup %9352 }
0x15ec   :  { %v4709_v39 = vmul.f32 %v9353_v55, %v4707_v31  ;;  %v12265_v9 = vadd.f32 %v4710_v1, %v4708_v38 }
0x15ee   :  { %v12267_v54 = vadd.f32 %v4711_v49, %v4709_v39 }
0x15f0   :  { %v12271_v48 = vpack.c.bf16 %v12267_v54, %v12265_v9 }
0x15f2   :  { %4758 = vmatmul.mubr.bf16.vlgmr.msra.gmra.mrb[164].mxu1 %v12271_v48  ;;  %8427 = vmatmul.mubr.bf16.vlgmr.msra.gmra.mrb[148].mxu0 %v12271_v48 }
0x15f3   :  { %4865 = vmatpush1.bf16.msra.mxu1 %v12048_v7  ;;  %8431 = vmatpush3.bf16.msra.mxu0 %v12054_v30 }
0x15f4   :  { %4866 = vmatprep.subr.bf16.mxu1 %v12060_v16  ;;  %8432 = vmatprep.subr.bf16.mxu0 %v13450_v23 }
0x15f5   :  { %4896 = vmatprep.mubr.bf16.mxu1 %v13451_v25  ;;  %8446 = vmatprep.mubr.msk.bf16.mxu0 %vm9680_vm2, %v13450_v23 }
0x15f7   :  { %4867 = vmatpush1.bf16.msra.mxu1 %v12070_v22  ;;  %8433 = vmatpush3.bf16.msra.mxu0 %v12076_v8 }
0x15f8   :  { %4868 = vmatprep.subr.bf16.mxu1 %v12082_v14  ;;  %8434 = vmatprep.subr.bf16.mxu0 %v13450_v23 }
0x15fb   :  { %4869 = vmatpush1.bf16.msra.mxu1 %v12089_v6  ;;  %8435 = vmatpush3.bf16.msra.mxu0 %v12095_v58 }
0x15fc   :  { %4870 = vmatprep.subr.bf16.mxu1 %v12101_v36  ;;  %8436 = vmatprep.subr.bf16.mxu0 %v13450_v23 }
0x15ff   :  { %4871 = vmatpush1.bf16.msra.mxu1 %v12108_v40  ;;  %8437 = vmatpush3.bf16.msra.mxu0 %v12114_v60 }
0x1600   :  { %4872 = vmatprep.subr.bf16.mxu1 %v12120_v63  ;;  %8438 = vmatprep.subr.bf16.mxu0 %v13450_v23 }
0x1603   :  { %4873 = vmatpush1.bf16.msra.mxu1 %v12127_v18  ;;  %8439 = vmatpush3.bf16.msra.mxu0 %v12133_v26 }
0x1604   :  { %4874 = vmatprep.subr.bf16.mxu1 %v12139_v59  ;;  %8440 = vmatprep.subr.bf16.mxu0 %v13450_v23 }
0x1607   :  { %4875 = vmatpush1.bf16.msra.mxu1 %v12146_v51  ;;  %8441 = vmatpush3.bf16.msra.mxu0 %v12152_v46 }
0x1608   :  { %4876 = vmatprep.subr.bf16.mxu1 %v12158_v0  ;;  %8442 = vmatprep.subr.bf16.mxu0 %v13450_v23 }
0x160b   :  { %4877 = vmatpush1.bf16.msra.mxu1 %v12165_v45  ;;  %8443 = vmatpush3.bf16.msra.mxu0 %v12171_v44 }
0x160c   :  { %4878 = vmatprep.subr.bf16.mxu1 %v12177_v56  ;;  %8444 = vmatprep.subr.bf16.mxu0 %v13450_v23 }
0x160f   :  { %4879 = vmatpush1.bf16.msra.mxu1 %v12184_v15  ;;  %8445 = vmatpush3.bf16.msra.mxu0 %v12190_v17 }
0x1610   :  { %5003 = vmatprep.subr.bf16.mxu1 %v12196_v24  ;;  %8450 = vmatprep.subr.bf16.mxu0 %v13450_v23 }
0x16c5   :  { %v4759_v27 = vpop.f32.mrb[164].mxu1  ;;  %v4802_v11 = vpop.f32.mrb[148].mxu0 }
0x16c6   :  { %v4809_v4 = vadd.f32 %v4759_v27, %v4719_v5  ;;  %v4761_v29 = vpop.f32.mrb[165].mxu1  ;;  %v8428_v57 = vpop.f32.mrb[149].mxu0  ;;  %v4837_v39 = vadd.f32 %v11919_v61, %v4802_v11  ;;  %v13484_v27 = vld [vmem:[#allocation13_spill] sm:$0xff] }
0x16c7   :  { %v4823_v34 = vadd.f32 %v4761_v29, %v4720_v43  ;;  %v4763_v50 = vpop.f32.mrb[166].mxu1  ;;  %v4805_v13 = vpop.f32.mrb[150].mxu0  ;;  %v4721_v10 = vunpack.c.l.bf16 %v13484_v27  ;;  %v4724_v57 = vunpack.c.h.bf16 %v13484_v27 }
0x16c8   :  { %v7379_v12 = vmul.f32 -1.442695, %v4809_v4  ;;  %v4810_v24 = vadd.f32 %v4763_v50, %v4722_v47  ;;  %v4765_v21 = vpop.f32.mrb[167].mxu1  ;;  %v8429_v52 = vpop.f32.mrb[151].mxu0  ;;  %v4838_v4 = vadd.f32 %v11919_v61, %v4805_v13 }
0x16c9   :  { %v4824_v41 = vadd.f32 %v4765_v21, %v4723_v32  ;;  %v7381_v35 = vmul.f32 -1.442695, %v4823_v34 }
0x16ca   :  { %9354 = vpow2.f32 %v7379_v12  ;;  %v7380_v2 = vmul.f32 -1.442695, %v4810_v24 }
0x16cb   :  { %v7382_v42 = vmul.f32 -1.442695, %v4824_v41 }
0x16cc   :  { %9356 = vpow2.f32 %v7380_v2 }
0x16cd   :  { %9358 = vpow2.f32 %v7381_v35 }
0x16ce   :  { %9360 = vpow2.f32 %v7382_v42 }
0x16d4   :  { %v9355_v62 = vpop.eup %9354 }
0x16d5   :  { %v4817_v20 = vadd.f32 1.0, %v9355_v62 }
0x16d6   :  { %v9357_v19 = vpop.eup %9356 }
0x16d7   :  { %9362 = vrcp.f32 %v4817_v20  ;;  %v4818_v31 = vadd.f32 1.0, %v9357_v19  ;;  %v9359_v38 = vpop.eup %9358 }
0x16d8   :  { %v9361_v1 = vpop.eup %9360  ;;  %v4831_v55 = vadd.f32 1.0, %v9359_v38 }
0x16d9   :  { %9364 = vrcp.f32 %v4818_v31  ;;  %v4832_v49 = vadd.f32 1.0, %v9361_v1 }
0x16da   :  { %9366 = vrcp.f32 %v4831_v55 }
0x16db   :  { %9368 = vrcp.f32 %v4832_v49 }
0x16e1   :  { %v9363_v5 = vpop.eup %9362 }
0x16e2   :  { %v4839_v43 = vmul.f32 %v9363_v5, %v4837_v39  ;;  %v12379_v39 = vld [vmem:[%s13397_s5 + $0x2] ss:$0 sm:$0xff] }
0x16e3   :  { %v9365_v29 = vpop.eup %9364 }
0x16e4   :  { %v4841_v47 = vadd.f32 %v4839_v43, %v4721_v10  ;;  %v4840_v34 = vmul.f32 %v9365_v29, %v4838_v4  ;;  %v9367_v32 = vpop.eup %9366  ;;  %v4860_v10 = vunpack.c.l.bf16 %v11910_v28 }
0x16e5   :  { %v9369_v12 = vpop.eup %9368  ;;  %v4845_v11 = vsub.f32 1.0, %v9367_v32  ;;  %v4849_v41 = vmul.f32 %v9367_v32, %v12265_v9 }
0x16e6   :  { %9370 = vtanh.f32 %v4841_v47  ;;  %v4842_v50 = vadd.f32 %v4840_v34, %v4724_v57  ;;  %v4846_v21 = vsub.f32 1.0, %v9369_v12  ;;  %v4850_v61 = vmul.f32 %v9369_v12, %v12267_v54 }
0x16e7   :  { %v4863_v57 = vunpack.c.h.bf16 %v11910_v28 }
0x16e8   :  { %9372 = vtanh.f32 %v4842_v50 }
0x16f0   :  { %v9371_v24 = vpop.eup %9370 }
0x16f1   :  { %v4847_v52 = vmul.f32 %v9371_v24, %v4845_v11 }
0x16f2   :  { %v9373_v2 = vpop.eup %9372 }
0x16f3   :  { %v4848_v35 = vmul.f32 %v9373_v2, %v4846_v21  ;;  %v12320_v13 = vadd.f32 %v4849_v41, %v4847_v52 }
0x16f5   :  { %v12322_v42 = vadd.f32 %v4850_v61, %v4848_v35 }
0x16f7   :  { %v12326_v62 = vpack.c.bf16 %v12322_v42, %v12320_v13 }
0x16f9   :  { %4897 = vmatmul.mubr.bf16.vlgmr.msra.gmra.mrb[168].mxu1 %v12326_v62  ;;  %8447 = vmatmul.mubr.bf16.vlgmr.msra.gmra.mrb[152].mxu0 %v12326_v62 }
0x16fa   :  { %5004 = vmatpush1.bf16.msra.mxu1 %v12048_v7  ;;  %8451 = vmatpush3.bf16.msra.mxu0 %v12054_v30  ;;  %v8864_v7 = vld [vmem:[%s13398_s2 + $0x184] ss:$12 sps:$4 sm:$0xff]   ;;  %v12369_v30 = vld [vmem:[%s13398_s2 + $0x188] ss:$12 sps:$4 sm:$0xff]  }
0x16fb   :  { %5005 = vmatprep.subr.bf16.mxu1 %v12060_v16  ;;  %8452 = vmatprep.subr.bf16.mxu0 %v13450_v23  ;;  %v13485_v16 = vld [vmem:[#allocation14_spill] sm:$0xff] }
0x16fc   :  { %5035 = vmatprep.mubr.bf16.mxu1 %v13451_v25  ;;  %8466 = vmatprep.mubr.msk.bf16.mxu0 %vm9680_vm2, %v13450_v23 }
0x16fe   :  { %5006 = vmatpush1.bf16.msra.mxu1 %v12070_v22  ;;  %8453 = vmatpush3.bf16.msra.mxu0 %v12076_v8  ;;  %v4858_v22 = vunpack.c.l.bf16 %v13485_v16 }
0x16ff   :  { %5007 = vmatprep.subr.bf16.mxu1 %v12082_v14  ;;  %8454 = vmatprep.subr.bf16.mxu0 %v13450_v23 }
0x1702   :  { %5008 = vmatpush1.bf16.msra.mxu1 %v12089_v6  ;;  %8455 = vmatpush3.bf16.msra.mxu0 %v12095_v58  ;;  %v13486_v6 = vld [vmem:[#allocation15_spill] sm:$0xff] }
0x1703   :  { %5009 = vmatprep.subr.bf16.mxu1 %v12101_v36  ;;  %8456 = vmatprep.subr.bf16.mxu0 %v13450_v23  ;;  %v4859_v58 = vunpack.c.l.bf16 %v13486_v6 }
0x1706   :  { %5010 = vmatpush1.bf16.msra.mxu1 %v12108_v40  ;;  %8457 = vmatpush3.bf16.msra.mxu0 %v12114_v60 }
0x1707   :  { %5011 = vmatprep.subr.bf16.mxu1 %v12120_v63  ;;  %8458 = vmatprep.subr.bf16.mxu0 %v13450_v23  ;;  %v4861_v63 = vunpack.c.h.bf16 %v13485_v16  ;;  %v8862_v16 = vld [vmem:[%s13398_s2 + $0x180] ss:$12 sps:$4 sm:$0xff]  }
0x170a   :  { %5012 = vmatpush1.bf16.msra.mxu1 %v12127_v18  ;;  %8459 = vmatpush3.bf16.msra.mxu0 %v12133_v26 }
0x170b   :  { %5013 = vmatprep.subr.bf16.mxu1 %v12139_v59  ;;  %8460 = vmatprep.subr.bf16.mxu0 %v13450_v23 }
0x170e   :  { %5014 = vmatpush1.bf16.msra.mxu1 %v12146_v51  ;;  %8461 = vmatpush3.bf16.msra.mxu0 %v12152_v46  ;;  %v4862_v51 = vunpack.c.h.bf16 %v13486_v6  ;;  %v8873_v6 = vld [vmem:[%s13398_s2 + $0x1b8] ss:$12 sps:$4 sm:$0xff]  }
0x170f   :  { %5015 = vmatprep.subr.bf16.mxu1 %v12158_v0  ;;  %8462 = vmatprep.subr.bf16.mxu0 %v13450_v23 }
0x1712   :  { %5016 = vmatpush1.bf16.msra.mxu1 %v12165_v45  ;;  %8463 = vmatpush3.bf16.msra.mxu0 %v12171_v44 }
0x1713   :  { %5017 = vmatprep.subr.bf16.mxu1 %v12177_v56  ;;  %8464 = vmatprep.subr.bf16.mxu0 %v13450_v23 }
0x1716   :  { %5018 = vmatpush1.bf16.msra.mxu1 %v12184_v15  ;;  %8465 = vmatpush3.bf16.msra.mxu0 %v12190_v17 }
0x1717   :  { %5355 = vmatprep.subr.bf16.mxu1 %v8864_v7  ;;  %8470 = vmatprep.subr.bf16.mxu0 %v12369_v30 }
0x17cc   :  { %v4898_v8 = vpop.f32.mrb[168].mxu1  ;;  %v4941_v14 = vpop.f32.mrb[152].mxu0 }
0x17cd   :  { %v4948_v36 = vadd.f32 %v4898_v8, %v4858_v22  ;;  %v4900_v40 = vpop.f32.mrb[169].mxu1  ;;  %v8448_v60 = vpop.f32.mrb[153].mxu0  ;;  %v4976_v49 = vadd.f32 %v12379_v39, %v4941_v14  ;;  %v8866_v8 = vld [vmem:[%s13398_s2 + $0x198] ss:$12 sps:$4 sm:$0xff]   ;;  %v8872_v14 = vld [vmem:[%s13398_s2 + $0x1b4] ss:$12 sps:$4 sm:$0xff]  }
0x17ce   :  { %v4962_v18 = vadd.f32 %v4900_v40, %v4859_v58  ;;  %v4902_v26 = vpop.f32.mrb[170].mxu1  ;;  %v4944_v59 = vpop.f32.mrb[154].mxu0  ;;  %v8876_v58 = vld [vmem:[%s13398_s2 + $0x1cc] ss:$12 sps:$4 sm:$0xff]   ;;  %v8874_v40 = vld [vmem:[%s13398_s2 + $0x1c8] ss:$12 sps:$4 sm:$0xff]  }
0x17cf   :  { %v7383_v46 = vmul.f32 -1.442695, %v4948_v36  ;;  %v4949_v0 = vadd.f32 %v4902_v26, %v4861_v63  ;;  %v4904_v45 = vpop.f32.mrb[171].mxu1  ;;  %v8449_v44 = vpop.f32.mrb[155].mxu0  ;;  %v4977_v4 = vadd.f32 %v12379_v39, %v4944_v59  ;;  %v8877_v36 = vld [vmem:[%s13398_s2 + $0x1d0] ss:$12 sps:$4 sm:$0xff]  }
0x17d0   :  { %v4963_v56 = vadd.f32 %v4904_v45, %v4862_v51  ;;  %v7385_v17 = vmul.f32 -1.442695, %v4962_v18  ;;  %v8880_v60 = vld [vmem:[%s13398_s2 + $0x1e4] ss:$12 sps:$4 sm:$0xff]   ;;  %v8881_v63 = vld [vmem:[%s13398_s2 + $0x1e8] ss:$12 sps:$4 sm:$0xff]  }
0x17d1   :  { %9374 = vpow2.f32 %v7383_v46  ;;  %v7384_v15 = vmul.f32 -1.442695, %v4949_v0  ;;  %v8878_v18 = vld [vmem:[%s13398_s2 + $0x1e0] ss:$12 sps:$4 sm:$0xff]   ;;  %v8884_v26 = vld [vmem:[%s13398_s2 + $0x1fc] ss:$12 sps:$4 sm:$0xff]  }
0x17d2   :  { %v7386_v9 = vmul.f32 -1.442695, %v4963_v56  ;;  %v8885_v59 = vld [vmem:[%s13398_s2 + $0x200] ss:$12 sps:$4 sm:$0xff]   ;;  %v8882_v51 = vld [vmem:[%s13398_s2 + $0x1f8] ss:$12 sps:$4 sm:$0xff]  }
0x17d3   :  { %9376 = vpow2.f32 %v7384_v15  ;;  %v8888_v46 = vld [vmem:[%s13398_s2 + $0x214] ss:$12 sps:$4 sm:$0xff]   ;;  %v8889_v0 = vld [vmem:[%s13398_s2 + $0x218] ss:$12 sps:$4 sm:$0xff]   ;;  %v8886_v45 = vld [vmem:[%s13398_s2 + $0x210] ss:$12 sps:$4 sm:$0xff]  }
0x17d4   :  { %9378 = vpow2.f32 %v7385_v17  ;;  %v8892_v44 = vld [vmem:[%s13398_s2 + $0x22c] ss:$12 sps:$4 sm:$0xff]   ;;  %v8893_v56 = vld [vmem:[%s13398_s2 + $0x230] ss:$12 sps:$4 sm:$0xff]   ;;  %v8890_v15 = vld [vmem:[%s13398_s2 + $0x228] ss:$12 sps:$4 sm:$0xff]  }
0x17d5   :  { %9380 = vpow2.f32 %v7386_v9  ;;  %v12525_v17 = vld [vmem:[%s13396_s3 + $0x260] ss:$12 sps:$4 sm:$0xff]   ;;  %v12530_v9 = vld [vmem:[%s13396_s3 + $0x270] ss:$12 sps:$4 sm:$0xff]  }
0x17db   :  { %v9375_v54 = vpop.eup %9374 }
0x17dc   :  { %v4956_v20 = vadd.f32 1.0, %v9375_v54  ;;  %v12538_v54 = vld [vmem:[%s13396_s3 + $0x28c] ss:$12 sps:$4 sm:$0xff]  }
0x17dd   :  { %v9377_v19 = vpop.eup %9376 }
0x17de   :  { %9382 = vrcp.f32 %v4956_v20  ;;  %v4957_v31 = vadd.f32 1.0, %v9377_v19  ;;  %v9379_v38 = vpop.eup %9378  ;;  %v12544_v20 = vld [vmem:[%s13396_s3 + $0x278] ss:$12 sps:$4 sm:$0xff]   ;;  %v12549_v19 = vld [vmem:[%s13396_s3 + $0x288] ss:$12 sps:$4 sm:$0xff]  }
0x17df   :  { %v9381_v1 = vpop.eup %9380  ;;  %v4970_v55 = vadd.f32 1.0, %v9379_v38  ;;  %v12563_v38 = vld [vmem:[%s13396_s3 + $0x2a0] ss:$12 sps:$4 sm:$0xff]  }
0x17e0   :  { %9384 = vrcp.f32 %v4957_v31  ;;  %v4971_v5 = vadd.f32 1.0, %v9381_v1  ;;  %v12557_v31 = vld [vmem:[%s13396_s3 + $0x2a4] ss:$12 sps:$4 sm:$0xff]   ;;  %v12571_v1 = vld [vmem:[%s13396_s3 + $0x2bc] ss:$12 sps:$4 sm:$0xff]  }
0x17e1   :  { %9386 = vrcp.f32 %v4970_v55  ;;  %v12576_v55 = vld [vmem:[%s13396_s3 + $0x290] ss:$12 sps:$4 sm:$0xff]  }
0x17e2   :  { %9388 = vrcp.f32 %v4971_v5  ;;  %v12589_v5 = vld [vmem:[%s13396_s3 + $0x2d4] ss:$12 sps:$4 sm:$0xff]  }
0x17e8   :  { %v9383_v27 = vpop.eup %9382 }
0x17e9   :  { %v4978_v43 = vmul.f32 %v9383_v27, %v4976_v49  ;;  %v12581_v49 = vld [vmem:[%s13396_s3 + $0x2b8] ss:$12 sps:$4 sm:$0xff]   ;;  %v12595_v27 = vld [vmem:[%s13396_s3 + $0x2d0] ss:$12 sps:$4 sm:$0xff]  }
0x17ea   :  { %v9385_v29 = vpop.eup %9384 }
0x17eb   :  { %v4980_v47 = vadd.f32 %v4978_v43, %v4860_v10  ;;  %v4979_v34 = vmul.f32 %v9385_v29, %v4977_v4  ;;  %v9387_v32 = vpop.eup %9386  ;;  %v12602_v10 = vld [vmem:[%s13396_s3 + $0x2ec] ss:$12 sps:$4 sm:$0xff]   ;;  %v12607_v43 = vld [vmem:[%s13396_s3 + $0x2a8] ss:$12 sps:$4 sm:$0xff]  }
0x17ec   :  { %v9389_v12 = vpop.eup %9388  ;;  %v4984_v11 = vsub.f32 1.0, %v9387_v32  ;;  %v4988_v41 = vmul.f32 %v9387_v32, %v12320_v13  ;;  %v8868_v13 = vld [vmem:[%s13398_s2 + $0x19c] ss:$12 sps:$4 sm:$0xff]   ;;  %v12622_v29 = vld [vmem:[%s13396_s3 + $0x2c0] ss:$12 sps:$4 sm:$0xff]  }
0x17ed   :  { %9390 = vtanh.f32 %v4980_v47  ;;  %v4981_v50 = vadd.f32 %v4979_v34, %v4863_v57  ;;  %v4985_v21 = vsub.f32 1.0, %v9389_v12  ;;  %v4989_v61 = vmul.f32 %v9389_v12, %v12322_v42  ;;  %v8869_v42 = vld [vmem:[%s13398_s2 + $0x1a0] ss:$12 sps:$4 sm:$0xff]   ;;  %v12612_v4 = vld [vmem:[%s13396_s3 + $0x2e8] ss:$12 sps:$4 sm:$0xff]  }
0x17ee   :  { %v12629_v57 = vld [vmem:[%s13396_s3 + $0x2d8] ss:$12 sps:$4 sm:$0xff]   ;;  %v12636_v47 = vld [vmem:[%s13396_s3 + $0x2f0] ss:$12 sps:$4 sm:$0xff]  }
0x17ef   :  { %9392 = vtanh.f32 %v4981_v50  ;;  %v13487_v34 = vld [vmem:[#allocation5_spill] sm:$0xff] }
0x17f0   :  { %v4997_v50 = vunpack.c.l.bf16 %v13487_v34 }
0x17f7   :  { %v9391_v24 = vpop.eup %9390 }
0x17f8   :  { %v4986_v52 = vmul.f32 %v9391_v24, %v4984_v11  ;;  %v13488_v11 = vld [vmem:[#allocation6_spill] sm:$0xff] }
0x17f9   :  { %v9393_v2 = vpop.eup %9392  ;;  %v4998_v24 = vunpack.c.l.bf16 %v13488_v11 }
0x17fa   :  { %v4987_v35 = vmul.f32 %v9393_v2, %v4985_v21  ;;  %v12387_v7 = vadd.f32 %v4988_v41, %v4986_v52  ;;  %v5000_v2 = vunpack.c.h.bf16 %v13487_v34 }
0x17fc   :  { %v12389_v28 = vadd.f32 %v4989_v61, %v4987_v35 }
0x17fe   :  { %v12396_v22 = vpack.c.bf16 %v12389_v28, %v12387_v7 }
0x1800   :  { %5036 = vmatmul.mubr.bf16.vlgmr.msra.gmra.mrb[172].mxu1 %v12396_v22  ;;  %8467 = vmatmul.mubr.bf16.vlgmr.msra.gmra.mrb[156].mxu0 %v12396_v22 }
0x1801   :  { %5356 = vmatpush1.bf16.msra.mxu1 %v8862_v16  ;;  %8471 = vmatpush3.bf16.msra.mxu0 %v12369_v30  ;;  %v8870_v30 = vld [vmem:[%s13398_s2 + $0x1b0] ss:$12 sps:$4 sm:$0xff]  }
0x1802   :  { %8486 = vmatprep.mubr.bf16.mxu0 %v11931_v3  ;;  %5357 = vmatprep.subr.bf16.mxu1 %v8868_v13 }
0x1803   :  { %8472 = vmatprep.subr.bf16.mxu0 %v8869_v42  ;;  %5387 = vmatprep.mubr.bf16.mxu1 %v13451_v25 }
0x1805   :  { %5358 = vmatpush1.bf16.msra.mxu1 %v8866_v8  ;;  %8473 = vmatpush3.bf16.msra.mxu0 %v8869_v42 }
0x1806   :  { %5359 = vmatprep.subr.bf16.mxu1 %v8872_v14  ;;  %8474 = vmatprep.subr.bf16.mxu0 %v8873_v6 }
0x1809   :  { %5360 = vmatpush1.bf16.msra.mxu1 %v8870_v30  ;;  %8475 = vmatpush3.bf16.msra.mxu0 %v8873_v6 }
0x180a   :  { %5361 = vmatprep.subr.bf16.mxu1 %v8876_v58  ;;  %8476 = vmatprep.subr.bf16.mxu0 %v8877_v36 }
0x180d   :  { %5362 = vmatpush1.bf16.msra.mxu1 %v8874_v40  ;;  %8477 = vmatpush3.bf16.msra.mxu0 %v8877_v36 }
0x180e   :  { %5363 = vmatprep.subr.bf16.mxu1 %v8880_v60  ;;  %8478 = vmatprep.subr.bf16.mxu0 %v8881_v63 }
0x1811   :  { %5364 = vmatpush1.bf16.msra.mxu1 %v8878_v18  ;;  %8479 = vmatpush3.bf16.msra.mxu0 %v8881_v63 }
0x1812   :  { %5365 = vmatprep.subr.bf16.mxu1 %v8884_v26  ;;  %8480 = vmatprep.subr.bf16.mxu0 %v8885_v59 }
0x1815   :  { %5366 = vmatpush1.bf16.msra.mxu1 %v8882_v51  ;;  %8481 = vmatpush3.bf16.msra.mxu0 %v8885_v59 }
0x1816   :  { %5367 = vmatprep.subr.bf16.mxu1 %v8888_v46  ;;  %8482 = vmatprep.subr.bf16.mxu0 %v8889_v0 }
0x1819   :  { %5368 = vmatpush1.bf16.msra.mxu1 %v8886_v45  ;;  %8483 = vmatpush3.bf16.msra.mxu0 %v8889_v0 }
0x181a   :  { %5369 = vmatprep.subr.bf16.mxu1 %v8892_v44  ;;  %8484 = vmatprep.subr.bf16.mxu0 %v8893_v56  ;;  %v13489_v44 = vld [vmem:[#allocation16_spill] sm:$0xff] }
0x181d   :  { %5370 = vmatpush1.bf16.msra.mxu1 %v8890_v15  ;;  %8485 = vmatpush3.bf16.msra.mxu0 %v8893_v56  ;;  %v4999_v56 = vunpack.c.l.bf16 %v13489_v44 }
0x181e   :  { %8502 = vmatprep.subr.bf16.mxu1 %v13450_v23 }
0x1820   :  { %5388 = vmatmul.mubr.bf16.vlgmr.msra.gmra.mrb[176].mxu1 %v11931_v3  ;;  %8487 = vmatmul.mubr.bf16.vlgmr.msra.gmra.mrb[160].mxu0 %v11986_v53  ;;  %v12490_v3 = vld [vmem:[%s13396_s3 + $0x244] ss:$12 sps:$4 sm:$0xff]  }
0x1821   :  { %8490 = vmatprep.mubr.bf16.mxu0 %v12041_v37  ;;  %5397 = vmatprep.mubr.bf16.mxu1 %v13451_v25 }
0x1822   :  { %5750 = vmatprep.subr.bf16.mxu0 %v12490_v3 }
0x1828   :  { %5398 = vmatmul.mubr.bf16.gmra.mrb[180].mxu1 %v11986_v53  ;;  %8491 = vmatmul.mubr.bf16.gmra.mrb[164].mxu0 %v12216_v33  ;;  %v12495_v53 = vld [vmem:[%s13396_s3 + $0x240] ss:$12 sps:$4 sm:$0xff]  }
0x1829   :  { %8494 = vmatprep.mubr.bf16.mxu0 %v12271_v48  ;;  %5407 = vmatprep.mubr.bf16.mxu1 %v13451_v25 }
0x182a   :  { %5751 = vmatpush1.bf16.msra.mxu0 %v12495_v53 }
0x1830   :  { %5408 = vmatmul.mubr.bf16.gmra.mrb[184].mxu1 %v12041_v37  ;;  %8495 = vmatmul.mubr.bf16.gmra.mrb[168].mxu0 %v12326_v62  ;;  %v12502_v37 = vld [vmem:[%s13396_s3 + $0x25c] ss:$12 sps:$4 sm:$0xff]  }
0x1831   :  { %8498 = vmatprep.mubr.bf16.mxu0 %v12396_v22  ;;  %5417 = vmatprep.mubr.bf16.mxu1 %v13451_v25 }
0x1832   :  { %5752 = vmatprep.subr.bf16.mxu0 %v12502_v37 }
0x1838   :  { %5418 = vmatmul.mubr.bf16.gmra.mrb[188].mxu1 %v12216_v33  ;;  %v12507_v33 = vld [vmem:[%s13396_s3 + $0x258] ss:$12 sps:$4 sm:$0xff]  }
0x1839   :  { %5427 = vmatprep.mubr.bf16.mxu1 %v13451_v25  ;;  %5753 = vmatpush1.bf16.msra.mxu0 %v12507_v33 }
0x1840   :  { %5428 = vmatmul.mubr.bf16.gmra.mrb[192].mxu1 %v12271_v48  ;;  %v12513_v48 = vld [vmem:[%s13396_s3 + $0x248] ss:$12 sps:$4 sm:$0xff]  }
0x1841   :  { %5437 = vmatprep.mubr.bf16.mxu1 %v13451_v25  ;;  %8503 = vmatpush3.bf16.msra.mxu1 %v12513_v48 }
0x1842   :  { %8504 = vmatprep.subr.bf16.mxu1 %v13450_v23 }
0x1845   :  { %8505 = vmatpush3.bf16.msra.mxu1 %v12525_v17 }
0x1846   :  { %8506 = vmatprep.subr.bf16.mxu1 %v13450_v23 }
0x1848   :  { %5438 = vmatmul.mubr.bf16.gmra.mrb[196].mxu1 %v12326_v62  ;;  %v12519_v62 = vld [vmem:[%s13396_s3 + $0x274] ss:$12 sps:$4 sm:$0xff]  }
0x1849   :  { %5447 = vmatprep.mubr.bf16.mxu1 %v13451_v25  ;;  %5754 = vmatprep.subr.bf16.mxu0 %v12519_v62 }
0x184a   :  { %5755 = vmatpush1.bf16.msra.mxu0 %v12530_v9  ;;  %8507 = vmatpush3.bf16.msra.mxu1 %v12544_v20 }
0x184b   :  { %5756 = vmatprep.subr.bf16.mxu0 %v12538_v54  ;;  %8508 = vmatprep.subr.bf16.mxu1 %v13450_v23 }
0x184e   :  { %5757 = vmatpush1.bf16.msra.mxu0 %v12549_v19  ;;  %8509 = vmatpush3.bf16.msra.mxu1 %v12576_v55 }
0x184f   :  { %5758 = vmatprep.subr.bf16.mxu0 %v12557_v31  ;;  %8510 = vmatprep.subr.bf16.mxu1 %v13450_v23 }
0x1850   :  { %5448 = vmatmul.mubr.bf16.gmra.mrb[200].mxu1 %v12396_v22  ;;  %v5001_v22 = vunpack.c.h.bf16 %v13488_v11 }
0x1851   :  { %5457 = vmatprep.mubr.bf16.mxu1 %v13451_v25 }
0x1852   :  { %5759 = vmatpush1.bf16.msra.mxu0 %v12563_v38  ;;  %8511 = vmatpush3.bf16.msra.mxu1 %v12607_v43 }
0x1853   :  { %5760 = vmatprep.subr.bf16.mxu0 %v12571_v1  ;;  %8512 = vmatprep.subr.bf16.mxu1 %v13450_v23 }
0x1856   :  { %5761 = vmatpush1.bf16.msra.mxu0 %v12581_v49  ;;  %8513 = vmatpush3.bf16.msra.mxu1 %v12622_v29 }
0x1857   :  { %5762 = vmatprep.subr.bf16.mxu0 %v12589_v5  ;;  %8514 = vmatprep.subr.bf16.mxu1 %v13450_v23 }
0x185a   :  { %5763 = vmatpush1.bf16.msra.mxu0 %v12595_v27  ;;  %8515 = vmatpush3.bf16.msra.mxu1 %v12629_v57 }
0x185b   :  { %5764 = vmatprep.subr.bf16.mxu0 %v12602_v10  ;;  %8516 = vmatprep.subr.bf16.mxu1 %v13450_v23 }
0x185e   :  { %5765 = vmatpush1.bf16.msra.mxu0 %v12612_v4  ;;  %8517 = vmatpush3.bf16.msra.mxu1 %v12636_v47 }
0x185f   :  { %5895 = vmatprep.subr.bf16.mxu0 %v12490_v3  ;;  %8522 = vmatprep.subr.bf16.mxu1 %v13450_v23 }
0x18d3   :  { %v5037_v32 = vpop.f32.mrb[172].mxu1  ;;  %v5080_v12 = vpop.f32.mrb[156].mxu0 }
0x18d4   :  { %v5087_v21 = vadd.f32 %v5037_v32, %v4997_v50  ;;  %v5039_v52 = vpop.f32.mrb[173].mxu1  ;;  %v8468_v41 = vpop.f32.mrb[157].mxu0  ;;  %v5115_v0 = vadd.f32 %v12379_v39, %v5080_v12  ;;  %v5002_v32 = vunpack.c.h.bf16 %v13489_v44 }
0x18d5   :  { %v5101_v35 = vadd.f32 %v5039_v52, %v4998_v24  ;;  %v5041_v61 = vpop.f32.mrb[174].mxu1  ;;  %v5083_v16 = vpop.f32.mrb[158].mxu0  ;;  %v13490_v52 = vld [vmem:[#allocation12_spill] sm:$0xff] }
0x18d6   :  { %v7387_v13 = vmul.f32 -1.442695, %v5087_v21  ;;  %v5088_v42 = vadd.f32 %v5041_v61, %v5000_v2  ;;  %v5043_v8 = vpop.f32.mrb[175].mxu1  ;;  %v8469_v14 = vpop.f32.mrb[159].mxu0  ;;  %v5116_v34 = vadd.f32 %v12379_v39, %v5083_v16  ;;  %v9651_v21 = vld [vmem:[%s13394_s4 + $0x9] sm:$0x7] }
0x18d7   :  { %v5102_v6 = vadd.f32 %v5043_v8, %v5001_v22  ;;  %v7389_v58 = vmul.f32 -1.442695, %v5101_v35  ;;  %v12652_v41 = vrot.slane %v9651_v21, %v13490_v52  ;;  %v13491_v39 = vld [vmem:[#allocation9_spill] sm:$0xff] }
0x18d8   :  { %9394 = vpow2.f32 %v7387_v13  ;;  %v7388_v30 = vmul.f32 -1.442695, %v5088_v42 }
0x18d9   :  { %v7390_v36 = vmul.f32 -1.442695, %v5102_v6 }
0x18da   :  { %9396 = vpow2.f32 %v7388_v30 }
0x18db   :  { %9398 = vpow2.f32 %v7389_v58 }
0x18dc   :  { %9400 = vpow2.f32 %v7390_v36  ;;  %v13492_v36 = vld [vmem:[#allocation10_spill] sm:$0xff] }
0x18e2   :  { %v9395_v40 = vpop.eup %9394 }
0x18e3   :  { %v5095_v60 = vadd.f32 1.0, %v9395_v40 }
0x18e4   :  { %v9397_v63 = vpop.eup %9396 }
0x18e5   :  { %9402 = vrcp.f32 %v5095_v60  ;;  %v5096_v18 = vadd.f32 1.0, %v9397_v63  ;;  %v9399_v26 = vpop.eup %9398 }
0x18e6   :  { %v9401_v59 = vpop.eup %9400  ;;  %v5109_v51 = vadd.f32 1.0, %v9399_v26 }
0x18e7   :  { %9404 = vrcp.f32 %v5096_v18  ;;  %v5110_v46 = vadd.f32 1.0, %v9401_v59 }
0x18e8   :  { %9406 = vrcp.f32 %v5109_v51 }
0x18e9   :  { %9408 = vrcp.f32 %v5110_v46 }
0x18ef   :  { %v9403_v45 = vpop.eup %9402 }
0x18f0   :  { %v5117_v15 = vmul.f32 %v9403_v45, %v5115_v0 }
0x18f1   :  { %v9405_v50 = vpop.eup %9404 }
0x18f2   :  { %v5119_v11 = vadd.f32 %v5117_v15, %v4999_v56  ;;  %v5118_v24 = vmul.f32 %v9405_v50, %v5116_v34  ;;  %v9407_v51 = vpop.eup %9406 }
0x18f3   :  { %v5389_v12 = vpop.f32.mrb[176].mxu1  ;;  %v8488_v2 = vpop.f32.mrb[160].mxu0  ;;  %v5127_v52 = vmul.f32 %v9407_v51, %v12387_v7 }
0x18f4   :  { %9410 = vtanh.f32 %v5119_v11  ;;  %v5120_v35 = vadd.f32 %v5118_v24, %v5002_v32  ;;  %v5391_v61 = vpop.f32.mrb[177].mxu1  ;;  %v5502_v22 = vpop.f32.mrb[161].mxu0  ;;  %v5390_v16 = vadd.f32 %v5389_v12, %v13491_v39  ;;  %v5511_v8 = vadd.f32 %v8488_v2, %v12652_v41 }
0x18f5   :  { %v5393_v13 = vpop.f32.mrb[178].mxu1  ;;  %v8489_v42 = vpop.f32.mrb[162].mxu0  ;;  %v5392_v40 = vadd.f32 %v5391_v61, %v13492_v36  ;;  %v5503_v60 = vadd.f32 %v5502_v22, %v12652_v41  ;;  %v5123_v24 = vsub.f32 1.0, %v9407_v51 }
0x18f6   :  { %9412 = vtanh.f32 %v5120_v35  ;;  %v5394_v14 = vadd.f32 %v5393_v13, %v13491_v39  ;;  %v5514_v6 = vadd.f32 %v8489_v42, %v12652_v41  ;;  %v5395_v30 = vpop.f32.mrb[179].mxu1  ;;  %v5505_v58 = vpop.f32.mrb[163].mxu0 }
0x18f7   :  { %v5396_v63 = vadd.f32 %v5395_v30, %v13492_v36  ;;  %v5506_v18 = vadd.f32 %v5505_v58, %v12652_v41  ;;  %v9409_v45 = vpop.eup %9408 }
0x18f8   :  { %v12662_v26 = vpack.c.bf16 %v5394_v14, %v5390_v16  ;;  %v12664_v59 = vpack.c.bf16 %v5514_v6, %v5511_v8  ;;  %v5124_v21 = vsub.f32 1.0, %v9409_v45 }
0x18f9   :  { %v12666_v46 = vpack.c.bf16 %v5396_v63, %v5392_v40  ;;  %v12668_v0 = vpack.c.bf16 %v5506_v18, %v5503_v60  ;;  %v5128_v40 = vmul.f32 %v9409_v45, %v12389_v28 }
0x18fb   :  { %v5399_v44 = vpop.f32.mrb[180].mxu1  ;;  %v8492_v56 = vpop.f32.mrb[164].mxu0 }
0x18fc   :  { %v5401_v15 = vpop.f32.mrb[181].mxu1  ;;  %v5518_v34 = vpop.f32.mrb[165].mxu0  ;;  %v5400_v50 = vadd.f32 %v5399_v44, %v13491_v39  ;;  %v5527_v2 = vadd.f32 %v8492_v56, %v12652_v41 }
0x18fd   :  { %v5403_v32 = vpop.f32.mrb[182].mxu1  ;;  %v8493_v11 = vpop.f32.mrb[166].mxu0  ;;  %v5402_v35 = vadd.f32 %v5401_v15, %v13492_v36  ;;  %v5519_v42 = vadd.f32 %v5518_v34, %v12652_v41 }
0x18fe   :  { %v9411_v12 = vpop.eup %9410  ;;  %v5404_v61 = vadd.f32 %v5403_v32, %v13491_v39  ;;  %v5530_v22 = vadd.f32 %v8493_v11, %v12652_v41  ;;  %v5405_v16 = vpop.f32.mrb[183].mxu1 }
0x18ff   :  { %v5521_v13 = vpop.f32.mrb[167].mxu0  ;;  %v5406_v8 = vadd.f32 %v5405_v16, %v13492_v36  ;;  %v5125_v6 = vmul.f32 %v9411_v12, %v5123_v24 }
0x1900   :  { %v5522_v14 = vadd.f32 %v5521_v13, %v12652_v41  ;;  %v9413_v30 = vpop.eup %9412  ;;  %v12679_v7 = vpack.c.bf16 %v5404_v61, %v5400_v50  ;;  %v12681_v58 = vpack.c.bf16 %v5530_v22, %v5527_v2 }
0x1901   :  { %v12684_v60 = vpack.c.bf16 %v5406_v8, %v5402_v35  ;;  %v5126_v18 = vmul.f32 %v9413_v30, %v5124_v21  ;;  %v5129_v51 = vadd.f32 %v5127_v52, %v5125_v6 }
0x1902   :  { %v12686_v63 = vpack.c.bf16 %v5522_v14, %v5519_v42 }
0x1903   :  { %v5409_v44 = vpop.f32.mrb[184].mxu1  ;;  %v8496_v56 = vpop.f32.mrb[168].mxu0  ;;  %v5130_v15 = vadd.f32 %v5128_v40, %v5126_v18 }
0x1904   :  { %v5411_v34 = vpop.f32.mrb[185].mxu1  ;;  %v5534_v32 = vpop.f32.mrb[169].mxu0  ;;  %v5410_v11 = vadd.f32 %v5409_v44, %v13491_v39  ;;  %v5543_v2 = vadd.f32 %v8496_v56, %v12652_v41 }
0x1905   :  { %v5413_v24 = vpop.f32.mrb[186].mxu1  ;;  %v8497_v50 = vpop.f32.mrb[170].mxu0  ;;  %v5131_v12 = vpack.c.bf16 %v5130_v15, %v5129_v51  ;;  %v5412_v28 = vadd.f32 %v5411_v34, %v13492_v36  ;;  %v5535_v61 = vadd.f32 %v5534_v32, %v12652_v41 }
0x1906   :  { %v5414_v45 = vadd.f32 %v5413_v24, %v13491_v39  ;;  %v5546_v35 = vadd.f32 %v8497_v50, %v12652_v41  ;;  %v5415_v21 = vpop.f32.mrb[187].mxu1  ;;  %v5537_v52 = vpop.f32.mrb[171].mxu0 }
0x1907   :  { %v5416_v22 = vadd.f32 %v5415_v21, %v13492_v36  ;;  %v5538_v16 = vadd.f32 %v5537_v52, %v12652_v41  ;;  %5458 = vmatmul.mubr.bf16.gmra.mrb[204].mxu1 %v5131_v12  ;;  %8499 = vmatmul.mubr.bf16.gmra.mrb[172].mxu0 %v5131_v12 }
0x1908   :  { %v12696_v13 = vpack.c.bf16 %v5414_v45, %v5410_v11  ;;  %v12698_v42 = vpack.c.bf16 %v5546_v35, %v5543_v2  ;;  %5782 = vmatprep.mubr.bf16.mxu0 %v13451_v25  ;;  %8518 = vmatprep.mubr.msk.bf16.mxu1 %vm9680_vm2, %v13450_v23 }
0x1909   :  { %v12703_v8 = vpack.c.bf16 %v5416_v22, %v5412_v28  ;;  %v12705_v14 = vpack.c.bf16 %v5538_v16, %v5535_v61 }
0x190a   :  { %13493 = vst [vmem:[#allocation7_spill] sm:$0xff] %v12698_v42 }
0x190b   :  { %v5419_v6 = vpop.f32.mrb[188].mxu1 }
0x190c   :  { %v5421_v30 = vpop.f32.mrb[189].mxu1  ;;  %v5420_v18 = vadd.f32 %v5419_v6, %v13491_v39 }
0x190d   :  { %v5423_v40 = vpop.f32.mrb[190].mxu1  ;;  %v5422_v56 = vadd.f32 %v5421_v30, %v13492_v36 }
0x190e   :  { %v5424_v51 = vadd.f32 %v5423_v40, %v13491_v39  ;;  %v5425_v44 = vpop.f32.mrb[191].mxu1 }
0x190f   :  { %v5426_v15 = vadd.f32 %v5425_v44, %v13492_v36  ;;  %5783 = vmatmul.mubr.bf16.vlgmr.msra.gmra.mrb[176].mxu0 %v13451_v25  ;;  %8519 = vmatmul.mubr.bf16.vlgmr.msra.gmra.mrb[208].mxu1 %v13451_v25 }
0x1910   :  { %v12713_v34 = vpack.c.bf16 %v5424_v51, %v5420_v18  ;;  %5896 = vmatpush1.bf16.msra.mxu0 %v12495_v53  ;;  %8523 = vmatpush3.bf16.msra.mxu1 %v12513_v48 }
0x1911   :  { %v12717_v32 = vpack.c.bf16 %v5426_v15, %v5422_v56  ;;  %5897 = vmatprep.subr.bf16.mxu0 %v12502_v37  ;;  %8524 = vmatprep.subr.bf16.mxu1 %v13450_v23 }
0x1912   :  { %5927 = vmatprep.mubr.bf16.mxu0 %v13451_v25  ;;  %8538 = vmatprep.mubr.msk.bf16.mxu1 %vm9680_vm2, %v13450_v23 }
0x1913   :  { %v5429_v11 = vpop.f32.mrb[192].mxu1 }
0x1914   :  { %v5431_v24 = vpop.f32.mrb[193].mxu1  ;;  %5898 = vmatpush1.bf16.msra.mxu0 %v12507_v33  ;;  %8525 = vmatpush3.bf16.msra.mxu1 %v12525_v17  ;;  %v5430_v12 = vadd.f32 %v5429_v11, %v13491_v39 }
0x1915   :  { %v5433_v50 = vpop.f32.mrb[194].mxu1  ;;  %5899 = vmatprep.subr.bf16.mxu0 %v12519_v62  ;;  %8526 = vmatprep.subr.bf16.mxu1 %v13450_v23  ;;  %v5432_v45 = vadd.f32 %v5431_v24, %v13492_v36 }
0x1916   :  { %v5434_v2 = vadd.f32 %v5433_v50, %v13491_v39  ;;  %v5435_v28 = vpop.f32.mrb[195].mxu1 }
0x1917   :  { %v5436_v35 = vadd.f32 %v5435_v28, %v13492_v36 }
0x1918   :  { %v12732_v21 = vpack.c.bf16 %v5434_v2, %v5430_v12  ;;  %5900 = vmatpush1.bf16.msra.mxu0 %v12530_v9  ;;  %8527 = vmatpush3.bf16.msra.mxu1 %v12544_v20 }
0x1919   :  { %v12736_v52 = vpack.c.bf16 %v5436_v35, %v5432_v45  ;;  %5901 = vmatprep.subr.bf16.mxu0 %v12538_v54  ;;  %8528 = vmatprep.subr.bf16.mxu1 %v13450_v23 }
0x191b   :  { %v5439_v61 = vpop.f32.mrb[196].mxu1 }
0x191c   :  { %v5441_v22 = vpop.f32.mrb[197].mxu1  ;;  %5902 = vmatpush1.bf16.msra.mxu0 %v12549_v19  ;;  %8529 = vmatpush3.bf16.msra.mxu1 %v12576_v55  ;;  %v5440_v6 = vadd.f32 %v5439_v61, %v13491_v39 }
0x191d   :  { %v5443_v16 = vpop.f32.mrb[198].mxu1  ;;  %5903 = vmatprep.subr.bf16.mxu0 %v12557_v31  ;;  %8530 = vmatprep.subr.bf16.mxu1 %v13450_v23  ;;  %v5442_v18 = vadd.f32 %v5441_v22, %v13492_v36 }
0x191e   :  { %v5444_v30 = vadd.f32 %v5443_v16, %v13491_v39  ;;  %v5445_v40 = vpop.f32.mrb[199].mxu1 }
0x191f   :  { %v5446_v51 = vadd.f32 %v5445_v40, %v13492_v36 }
0x1920   :  { %v12748_v44 = vpack.c.bf16 %v5444_v30, %v5440_v6  ;;  %5904 = vmatpush1.bf16.msra.mxu0 %v12563_v38  ;;  %8531 = vmatpush3.bf16.msra.mxu1 %v12607_v43 }
0x1921   :  { %v12752_v56 = vpack.c.bf16 %v5446_v51, %v5442_v18  ;;  %5905 = vmatprep.subr.bf16.mxu0 %v12571_v1  ;;  %8532 = vmatprep.subr.bf16.mxu1 %v13450_v23 }
0x1923   :  { %13494 = vst [vmem:[#allocation8_spill] sm:$0xff] %v12752_v56  ;;  %v5449_v15 = vpop.f32.mrb[200].mxu1 }
0x1924   :  { %v5451_v11 = vpop.f32.mrb[201].mxu1  ;;  %5906 = vmatpush1.bf16.msra.mxu0 %v12581_v49  ;;  %8533 = vmatpush3.bf16.msra.mxu1 %v12622_v29  ;;  %v5450_v50 = vadd.f32 %v5449_v15, %v13491_v39 }
0x1925   :  { %v5453_v24 = vpop.f32.mrb[202].mxu1  ;;  %5907 = vmatprep.subr.bf16.mxu0 %v12589_v5  ;;  %8534 = vmatprep.subr.bf16.mxu1 %v13450_v23  ;;  %v5452_v28 = vadd.f32 %v5451_v11, %v13492_v36 }
0x1926   :  { %v5454_v12 = vadd.f32 %v5453_v24, %v13491_v39  ;;  %v5455_v2 = vpop.f32.mrb[203].mxu1 }
0x1927   :  { %v5456_v45 = vadd.f32 %v5455_v2, %v13492_v36 }
0x1928   :  { %v12764_v35 = vpack.c.bf16 %v5454_v12, %v5450_v50  ;;  %5908 = vmatpush1.bf16.msra.mxu0 %v12595_v27  ;;  %8535 = vmatpush3.bf16.msra.mxu1 %v12629_v57 }
0x1929   :  { %v12768_v61 = vpack.c.bf16 %v5456_v45, %v5452_v28  ;;  %5909 = vmatprep.subr.bf16.mxu0 %v12602_v10  ;;  %8536 = vmatprep.subr.bf16.mxu1 %v13450_v23 }
0x192a   :  { %13495 = vst [vmem:[#allocation11_spill] sm:$0xff] %v12764_v35 }
0x192b   :  { %13496 = vst [vmem:[#allocation13_spill] sm:$0xff] %v12768_v61 }
0x192c   :  { %5910 = vmatpush1.bf16.msra.mxu0 %v12612_v4  ;;  %8537 = vmatpush3.bf16.msra.mxu1 %v12636_v47 }
0x192d   :  { %6034 = vmatprep.subr.bf16.mxu0 %v12490_v3  ;;  %8542 = vmatprep.subr.bf16.mxu1 %v13450_v23 }
0x19da   :  { %v5459_v22 = vpop.f32.mrb[204].mxu1  ;;  %v8500_v16 = vpop.f32.mrb[172].mxu0 }
0x19db   :  { %v5461_v6 = vpop.f32.mrb[205].mxu1  ;;  %v5550_v30 = vpop.f32.mrb[173].mxu0  ;;  %v5460_v51 = vadd.f32 %v5459_v22, %v13491_v39  ;;  %v5559_v15 = vadd.f32 %v8500_v16, %v12652_v41 }
0x19dc   :  { %v5463_v40 = vpop.f32.mrb[206].mxu1  ;;  %v8501_v18 = vpop.f32.mrb[174].mxu0  ;;  %v5462_v2 = vadd.f32 %v5461_v6, %v13492_v36  ;;  %v5551_v28 = vadd.f32 %v5550_v30, %v12652_v41 }
0x19dd   :  { %v5464_v11 = vadd.f32 %v5463_v40, %v13491_v39  ;;  %v5562_v24 = vadd.f32 %v8501_v18, %v12652_v41  ;;  %v5465_v50 = vpop.f32.mrb[207].mxu1  ;;  %v5553_v12 = vpop.f32.mrb[175].mxu0  ;;  %v5616_v39 = vunpack.c.l.bf16 %v12662_v26  ;;  %v5617_v18 = vunpack.c.l.bf16 %v12666_v46 }
0x19de   :  { %v5466_v45 = vadd.f32 %v5465_v50, %v13492_v36  ;;  %v5554_v61 = vadd.f32 %v5553_v12, %v12652_v41  ;;  %v5619_v36 = vunpack.c.h.bf16 %v12662_v26 }
0x19df   :  { %v12784_v35 = vpack.c.bf16 %v5464_v11, %v5460_v51  ;;  %v12786_v42 = vpack.c.bf16 %v5562_v24, %v5559_v15  ;;  %v5620_v15 = vunpack.c.h.bf16 %v12666_v46 }
0x19e0   :  { %v12788_v22 = vpack.c.bf16 %v5466_v45, %v5462_v2  ;;  %v12790_v16 = vpack.c.bf16 %v5554_v61, %v5551_v28 }
0x19e1   :  { %13497 = vst [vmem:[#allocation14_spill] sm:$0xff] %v12784_v35  ;;  %13498 = vst [vmem:[#allocation15_spill] sm:$0xff] %v12786_v42 }
0x19e2   :  { %13499 = vst [vmem:[#allocation5_spill] sm:$0xff] %v12788_v22  ;;  %v5784_v40 = vpop.f32.mrb[176].mxu0  ;;  %v5827_v6 = vpop.f32.mrb[208].mxu1 }
0x19e3   :  { %v5834_v56 = vadd.f32 %v5784_v40, %v5616_v39  ;;  %v5786_v30 = vpop.f32.mrb[177].mxu0  ;;  %v8520_v50 = vpop.f32.mrb[209].mxu1 }
0x19e4   :  { %v5848_v41 = vadd.f32 %v5786_v30, %v5617_v18  ;;  %v5788_v51 = vpop.f32.mrb[178].mxu0  ;;  %v5830_v11 = vpop.f32.mrb[210].mxu1 }
0x19e5   :  { %v7505_v24 = vmul.f32 -1.442695, %v5834_v56  ;;  %v5835_v12 = vadd.f32 %v5788_v51, %v5619_v36  ;;  %v5790_v61 = vpop.f32.mrb[179].mxu0  ;;  %v8521_v2 = vpop.f32.mrb[211].mxu1  ;;  %v12799_v56 = vld [vmem:[%s13397_s5 + $0x3] ss:$0 sm:$0xff] }
0x19e6   :  { %v5849_v28 = vadd.f32 %v5790_v61, %v5620_v15  ;;  %v7507_v42 = vmul.f32 -1.442695, %v5848_v41  ;;  %v5868_v50 = vadd.f32 %v12799_v56, %v5827_v6  ;;  %v5869_v15 = vadd.f32 %v12799_v56, %v5830_v11 }
0x19e7   :  { %9414 = vpow2.f32 %v7505_v24  ;;  %v7506_v45 = vmul.f32 -1.442695, %v5835_v12  ;;  %v5621_v12 = vunpack.c.h.bf16 %v12668_v0 }
0x19e8   :  { %v7508_v22 = vmul.f32 -1.442695, %v5849_v28 }
0x19e9   :  { %9416 = vpow2.f32 %v7506_v45 }
0x19ea   :  { %9418 = vpow2.f32 %v7507_v42  ;;  %v5618_v42 = vunpack.c.l.bf16 %v12668_v0 }
0x19eb   :  { %9420 = vpow2.f32 %v7508_v22 }
0x19f1   :  { %v9415_v39 = vpop.eup %9414 }
0x19f2   :  { %v5842_v26 = vadd.f32 1.0, %v9415_v39 }
0x19f3   :  { %v9417_v40 = vpop.eup %9416 }
0x19f4   :  { %9422 = vrcp.f32 %v5842_v26  ;;  %v5843_v18 = vadd.f32 1.0, %v9417_v40  ;;  %v9419_v46 = vpop.eup %9418 }
0x19f5   :  { %v9421_v30 = vpop.eup %9420  ;;  %v5856_v36 = vadd.f32 1.0, %v9419_v46 }
0x19f6   :  { %9424 = vrcp.f32 %v5843_v18  ;;  %v5857_v41 = vadd.f32 1.0, %v9421_v30 }
0x19f7   :  { %9426 = vrcp.f32 %v5856_v36 }
0x19f8   :  { %9428 = vrcp.f32 %v5857_v41  ;;  %v5889_v41 = vunpack.c.l.bf16 %v12679_v7 }
0x19fe   :  { %v9423_v51 = vpop.eup %9422 }
0x19ff   :  { %v5870_v22 = vmul.f32 %v9423_v51, %v5868_v50 }
0x1a00   :  { %v9425_v24 = vpop.eup %9424 }
0x1a01   :  { %v5872_v61 = vadd.f32 %v5870_v22, %v5618_v42  ;;  %v5871_v2 = vmul.f32 %v9425_v24, %v5869_v15  ;;  %v9427_v45 = vpop.eup %9426  ;;  %v5890_v15 = vunpack.c.l.bf16 %v12684_v60 }
0x1a02   :  { %v9429_v39 = vpop.eup %9428  ;;  %v5876_v6 = vsub.f32 1.0, %v9427_v45  ;;  %v5880_v46 = vmul.f32 0.0, %v9427_v45 }
0x1a03   :  { %9430 = vtanh.f32 %v5872_v61  ;;  %v5873_v28 = vadd.f32 %v5871_v2, %v5621_v12  ;;  %v5877_v40 = vsub.f32 1.0, %v9429_v39  ;;  %v5881_v50 = vmul.f32 0.0, %v9429_v39 }
0x1a04   :  { %v5892_v2 = vunpack.c.h.bf16 %v12679_v7 }
0x1a05   :  { %9432 = vtanh.f32 %v5873_v28 }
0x1a0d   :  { %v9431_v26 = vpop.eup %9430 }
0x1a0e   :  { %v5878_v18 = vmul.f32 %v9431_v26, %v5876_v6  ;;  %v5893_v6 = vunpack.c.h.bf16 %v12684_v60 }
0x1a0f   :  { %v9433_v30 = vpop.eup %9432 }
0x1a10   :  { %v5879_v36 = vmul.f32 %v9433_v30, %v5877_v40  ;;  %v12805_v11 = vadd.f32 %v5880_v46, %v5878_v18 }
0x1a12   :  { %v12807_v51 = vadd.f32 %v5881_v50, %v5879_v36 }
0x1a14   :  { %v12811_v0 = vpack.c.bf16 %v12807_v51, %v12805_v11 }
0x1a16   :  { %5928 = vmatmul.mubr.bf16.vlgmr.msra.gmra.mrb[180].mxu0 %v12811_v0  ;;  %8539 = vmatmul.mubr.bf16.vlgmr.msra.gmra.mrb[212].mxu1 %v12811_v0 }
0x1a17   :  { %6035 = vmatpush1.bf16.msra.mxu0 %v12495_v53  ;;  %8543 = vmatpush3.bf16.msra.mxu1 %v12513_v48 }
0x1a18   :  { %6036 = vmatprep.subr.bf16.mxu0 %v12502_v37  ;;  %8544 = vmatprep.subr.bf16.mxu1 %v13450_v23 }
0x1a19   :  { %6066 = vmatprep.mubr.bf16.mxu0 %v13451_v25  ;;  %8558 = vmatprep.mubr.msk.bf16.mxu1 %vm9680_vm2, %v13450_v23 }
0x1a1b   :  { %6037 = vmatpush1.bf16.msra.mxu0 %v12507_v33  ;;  %8545 = vmatpush3.bf16.msra.mxu1 %v12525_v17 }
0x1a1c   :  { %6038 = vmatprep.subr.bf16.mxu0 %v12519_v62  ;;  %8546 = vmatprep.subr.bf16.mxu1 %v13450_v23 }
0x1a1f   :  { %6039 = vmatpush1.bf16.msra.mxu0 %v12530_v9  ;;  %8547 = vmatpush3.bf16.msra.mxu1 %v12544_v20 }
0x1a20   :  { %6040 = vmatprep.subr.bf16.mxu0 %v12538_v54  ;;  %8548 = vmatprep.subr.bf16.mxu1 %v13450_v23 }
0x1a23   :  { %6041 = vmatpush1.bf16.msra.mxu0 %v12549_v19  ;;  %8549 = vmatpush3.bf16.msra.mxu1 %v12576_v55 }
0x1a24   :  { %6042 = vmatprep.subr.bf16.mxu0 %v12557_v31  ;;  %8550 = vmatprep.subr.bf16.mxu1 %v13450_v23 }
0x1a27   :  { %6043 = vmatpush1.bf16.msra.mxu0 %v12563_v38  ;;  %8551 = vmatpush3.bf16.msra.mxu1 %v12607_v43 }
0x1a28   :  { %6044 = vmatprep.subr.bf16.mxu0 %v12571_v1  ;;  %8552 = vmatprep.subr.bf16.mxu1 %v13450_v23 }
0x1a2b   :  { %6045 = vmatpush1.bf16.msra.mxu0 %v12581_v49  ;;  %8553 = vmatpush3.bf16.msra.mxu1 %v12622_v29 }
0x1a2c   :  { %6046 = vmatprep.subr.bf16.mxu0 %v12589_v5  ;;  %8554 = vmatprep.subr.bf16.mxu1 %v13450_v23 }
0x1a2f   :  { %6047 = vmatpush1.bf16.msra.mxu0 %v12595_v27  ;;  %8555 = vmatpush3.bf16.msra.mxu1 %v12629_v57 }
0x1a30   :  { %6048 = vmatprep.subr.bf16.mxu0 %v12602_v10  ;;  %8556 = vmatprep.subr.bf16.mxu1 %v13450_v23 }
0x1a33   :  { %6049 = vmatpush1.bf16.msra.mxu0 %v12612_v4  ;;  %8557 = vmatpush3.bf16.msra.mxu1 %v12636_v47 }
0x1a34   :  { %6173 = vmatprep.subr.bf16.mxu0 %v12490_v3  ;;  %8562 = vmatprep.subr.bf16.mxu1 %v13450_v23 }
0x1ae9   :  { %v5929_v42 = vpop.f32.mrb[180].mxu0  ;;  %v5972_v22 = vpop.f32.mrb[212].mxu1 }
0x1aea   :  { %v5979_v24 = vadd.f32 %v5929_v42, %v5889_v41  ;;  %v5931_v12 = vpop.f32.mrb[181].mxu0  ;;  %v8540_v61 = vpop.f32.mrb[213].mxu1 }
0x1aeb   :  { %v5993_v28 = vadd.f32 %v5931_v12, %v5890_v15  ;;  %v5933_v45 = vpop.f32.mrb[182].mxu0  ;;  %v5975_v39 = vpop.f32.mrb[214].mxu1  ;;  %v6007_v61 = vadd.f32 %v12799_v56, %v5972_v22 }
0x1aec   :  { %v7510_v26 = vmul.f32 -1.442695, %v5979_v24  ;;  %v5980_v40 = vadd.f32 %v5933_v45, %v5892_v2  ;;  %v5935_v18 = vpop.f32.mrb[183].mxu0  ;;  %v8541_v46 = vpop.f32.mrb[215].mxu1 }
0x1aed   :  { %v5994_v30 = vadd.f32 %v5935_v18, %v5893_v6  ;;  %v7512_v50 = vmul.f32 -1.442695, %v5993_v28  ;;  %v5891_v6 = vunpack.c.l.bf16 %v12664_v59  ;;  %v6008_v28 = vadd.f32 %v12799_v56, %v5975_v39 }
0x1aee   :  { %9434 = vpow2.f32 %v7510_v26  ;;  %v7511_v36 = vmul.f32 -1.442695, %v5980_v40  ;;  %v5894_v40 = vunpack.c.h.bf16 %v12664_v59 }
0x1aef   :  { %v7513_v35 = vmul.f32 -1.442695, %v5994_v30 }
0x1af0   :  { %9436 = vpow2.f32 %v7511_v36 }
0x1af1   :  { %9438 = vpow2.f32 %v7512_v50 }
0x1af2   :  { %9440 = vpow2.f32 %v7513_v35 }
0x1af8   :  { %v9435_v41 = vpop.eup %9434 }
0x1af9   :  { %v5987_v42 = vadd.f32 1.0, %v9435_v41 }
0x1afa   :  { %v9437_v7 = vpop.eup %9436 }
0x1afb   :  { %9442 = vrcp.f32 %v5987_v42  ;;  %v5988_v15 = vadd.f32 1.0, %v9437_v7  ;;  %v9439_v12 = vpop.eup %9438 }
0x1afc   :  { %v9441_v60 = vpop.eup %9440  ;;  %v6001_v24 = vadd.f32 1.0, %v9439_v12 }
0x1afd   :  { %9444 = vrcp.f32 %v5988_v15  ;;  %v6002_v2 = vadd.f32 1.0, %v9441_v60 }
0x1afe   :  { %9446 = vrcp.f32 %v6001_v24 }
0x1aff   :  { %9448 = vrcp.f32 %v6002_v2 }
0x1b05   :  { %v9443_v45 = vpop.eup %9442 }
0x1b06   :  { %v6009_v26 = vmul.f32 %v9443_v45, %v6007_v61 }
0x1b07   :  { %v9445_v35 = vpop.eup %9444 }
0x1b08   :  { %v6011_v18 = vadd.f32 %v6009_v26, %v5891_v6  ;;  %v6010_v46 = vmul.f32 %v9445_v35, %v6008_v28  ;;  %v9447_v36 = vpop.eup %9446  ;;  %v6030_v6 = vunpack.c.l.bf16 %v12686_v63 }
0x1b09   :  { %v9449_v50 = vpop.eup %9448  ;;  %v6015_v22 = vsub.f32 1.0, %v9447_v36  ;;  %v6019_v15 = vmul.f32 %v9447_v36, %v12805_v11 }
0x1b0a   :  { %9450 = vtanh.f32 %v6011_v18  ;;  %v6012_v30 = vadd.f32 %v6010_v46, %v5894_v40  ;;  %v6016_v42 = vsub.f32 1.0, %v9449_v50  ;;  %v6020_v39 = vmul.f32 %v9449_v50, %v12807_v51 }
0x1b0b   :  { %v6033_v40 = vunpack.c.h.bf16 %v12686_v63 }
0x1b0c   :  { %9452 = vtanh.f32 %v6012_v30 }
0x1b14   :  { %v9451_v41 = vpop.eup %9450 }
0x1b15   :  { %v6017_v7 = vmul.f32 %v9451_v41, %v6015_v22 }
0x1b16   :  { %v9453_v12 = vpop.eup %9452 }
0x1b17   :  { %v6018_v60 = vmul.f32 %v9453_v12, %v6016_v42  ;;  %v12860_v24 = vadd.f32 %v6019_v15, %v6017_v7 }
0x1b19   :  { %v12862_v59 = vadd.f32 %v6020_v39, %v6018_v60 }
0x1b1b   :  { %v12866_v61 = vpack.c.bf16 %v12862_v59, %v12860_v24 }
0x1b1d   :  { %6067 = vmatmul.mubr.bf16.vlgmr.msra.gmra.mrb[184].mxu0 %v12866_v61  ;;  %8559 = vmatmul.mubr.bf16.vlgmr.msra.gmra.mrb[216].mxu1 %v12866_v61 }
0x1b1e   :  { %6174 = vmatpush1.bf16.msra.mxu0 %v12495_v53  ;;  %8563 = vmatpush3.bf16.msra.mxu1 %v12513_v48  ;;  %v6028_v53 = vunpack.c.l.bf16 %v12696_v13  ;;  %v6029_v48 = vunpack.c.l.bf16 %v12703_v8 }
0x1b1f   :  { %6175 = vmatprep.subr.bf16.mxu0 %v12502_v37  ;;  %8564 = vmatprep.subr.bf16.mxu1 %v13450_v23 }
0x1b20   :  { %6205 = vmatprep.mubr.bf16.mxu0 %v13451_v25  ;;  %8578 = vmatprep.mubr.msk.bf16.mxu1 %vm9680_vm2, %v13450_v23 }
0x1b22   :  { %6176 = vmatpush1.bf16.msra.mxu0 %v12507_v33  ;;  %8565 = vmatpush3.bf16.msra.mxu1 %v12525_v17 }
0x1b23   :  { %6177 = vmatprep.subr.bf16.mxu0 %v12519_v62  ;;  %8566 = vmatprep.subr.bf16.mxu1 %v13450_v23 }
0x1b26   :  { %6178 = vmatpush1.bf16.msra.mxu0 %v12530_v9  ;;  %8567 = vmatpush3.bf16.msra.mxu1 %v12544_v20 }
0x1b27   :  { %6179 = vmatprep.subr.bf16.mxu0 %v12538_v54  ;;  %8568 = vmatprep.subr.bf16.mxu1 %v13450_v23  ;;  %v6031_v54 = vunpack.c.h.bf16 %v12696_v13 }
0x1b2a   :  { %6180 = vmatpush1.bf16.msra.mxu0 %v12549_v19  ;;  %8569 = vmatpush3.bf16.msra.mxu1 %v12576_v55 }
0x1b2b   :  { %6181 = vmatprep.subr.bf16.mxu0 %v12557_v31  ;;  %8570 = vmatprep.subr.bf16.mxu1 %v13450_v23 }
0x1b2e   :  { %6182 = vmatpush1.bf16.msra.mxu0 %v12563_v38  ;;  %8571 = vmatpush3.bf16.msra.mxu1 %v12607_v43  ;;  %v6032_v38 = vunpack.c.h.bf16 %v12703_v8 }
0x1b2f   :  { %6183 = vmatprep.subr.bf16.mxu0 %v12571_v1  ;;  %8572 = vmatprep.subr.bf16.mxu1 %v13450_v23 }
0x1b32   :  { %6184 = vmatpush1.bf16.msra.mxu0 %v12581_v49  ;;  %8573 = vmatpush3.bf16.msra.mxu1 %v12622_v29 }
0x1b33   :  { %6185 = vmatprep.subr.bf16.mxu0 %v12589_v5  ;;  %8574 = vmatprep.subr.bf16.mxu1 %v13450_v23 }
0x1b36   :  { %6186 = vmatpush1.bf16.msra.mxu0 %v12595_v27  ;;  %8575 = vmatpush3.bf16.msra.mxu1 %v12629_v57 }
0x1b37   :  { %6187 = vmatprep.subr.bf16.mxu0 %v12602_v10  ;;  %8576 = vmatprep.subr.bf16.mxu1 %v13450_v23 }
0x1b3a   :  { %6188 = vmatpush1.bf16.msra.mxu0 %v12612_v4  ;;  %8577 = vmatpush3.bf16.msra.mxu1 %v12636_v47 }
0x1b3b   :  { %6312 = vmatprep.subr.bf16.mxu0 %v12490_v3  ;;  %8582 = vmatprep.subr.bf16.mxu1 %v13450_v23 }
0x1bf0   :  { %v6068_v37 = vpop.f32.mrb[184].mxu0  ;;  %v6111_v33 = vpop.f32.mrb[216].mxu1 }
0x1bf1   :  { %v6118_v62 = vadd.f32 %v6068_v37, %v6028_v53  ;;  %v6070_v17 = vpop.f32.mrb[185].mxu0  ;;  %v8560_v9 = vpop.f32.mrb[217].mxu1  ;;  %v6146_v51 = vadd.f32 %v12799_v56, %v6111_v33  ;;  %v12940_v33 = vld [vmem:[%s13396_s3 + $0x25c] ss:$12 sps:$4 sm:$0xff]  }
0x1bf2   :  { %v6132_v20 = vadd.f32 %v6070_v17, %v6029_v48  ;;  %v6072_v19 = vpop.f32.mrb[186].mxu0  ;;  %v6114_v31 = vpop.f32.mrb[218].mxu1  ;;  %v12950_v48 = vld [vmem:[%s13396_s3 + $0x258] ss:$12 sps:$4 sm:$0xff]   ;;  %v12962_v17 = vld [vmem:[%s13396_s3 + $0x274] ss:$12 sps:$4 sm:$0xff]  }
0x1bf3   :  { %v7514_v1 = vmul.f32 -1.442695, %v6118_v62  ;;  %v6119_v3 = vadd.f32 %v6072_v19, %v6031_v54  ;;  %v6074_v55 = vpop.f32.mrb[187].mxu0  ;;  %v8561_v49 = vpop.f32.mrb[219].mxu1  ;;  %v6147_v28 = vadd.f32 %v12799_v56, %v6114_v31  ;;  %v12956_v62 = vld [vmem:[%s13396_s3 + $0x260] ss:$12 sps:$4 sm:$0xff]  }
0x1bf4   :  { %v6133_v5 = vadd.f32 %v6074_v55, %v6032_v38  ;;  %v7516_v10 = vmul.f32 -1.442695, %v6132_v20  ;;  %v12969_v9 = vld [vmem:[%s13396_s3 + $0x270] ss:$12 sps:$4 sm:$0xff]   ;;  %v12975_v54 = vld [vmem:[%s13396_s3 + $0x278] ss:$12 sps:$4 sm:$0xff]  }
0x1bf5   :  { %9454 = vpow2.f32 %v7514_v1  ;;  %v7515_v27 = vmul.f32 -1.442695, %v6119_v3  ;;  %v12981_v20 = vld [vmem:[%s13396_s3 + $0x28c] ss:$12 sps:$4 sm:$0xff]   ;;  %v12988_v19 = vld [vmem:[%s13396_s3 + $0x288] ss:$12 sps:$4 sm:$0xff]  }
0x1bf6   :  { %v7517_v43 = vmul.f32 -1.442695, %v6133_v5  ;;  %v12994_v31 = vld [vmem:[%s13396_s3 + $0x290] ss:$12 sps:$4 sm:$0xff]   ;;  %v13007_v1 = vld [vmem:[%s13396_s3 + $0x2a0] ss:$12 sps:$4 sm:$0xff]  }
0x1bf7   :  { %9456 = vpow2.f32 %v7515_v27  ;;  %v13000_v38 = vld [vmem:[%s13396_s3 + $0x2a4] ss:$12 sps:$4 sm:$0xff]   ;;  %v13013_v3 = vld [vmem:[%s13396_s3 + $0x2a8] ss:$12 sps:$4 sm:$0xff]   ;;  %v13032_v5 = vld [vmem:[%s13396_s3 + $0x2c0] ss:$12 sps:$4 sm:$0xff]  }
0x1bf8   :  { %9458 = vpow2.f32 %v7516_v10  ;;  %v13019_v55 = vld [vmem:[%s13396_s3 + $0x2bc] ss:$12 sps:$4 sm:$0xff]   ;;  %v13026_v49 = vld [vmem:[%s13396_s3 + $0x2b8] ss:$12 sps:$4 sm:$0xff]   ;;  %v13038_v27 = vld [vmem:[%s13396_s3 + $0x2d4] ss:$12 sps:$4 sm:$0xff]  }
0x1bf9   :  { %9460 = vpow2.f32 %v7517_v43  ;;  %v13045_v10 = vld [vmem:[%s13396_s3 + $0x2d0] ss:$12 sps:$4 sm:$0xff]   ;;  %v13051_v43 = vld [vmem:[%s13396_s3 + $0x2d8] ss:$12 sps:$4 sm:$0xff]  }
0x1bff   :  { %v9455_v4 = vpop.eup %9454 }
0x1c00   :  { %v6126_v29 = vadd.f32 1.0, %v9455_v4  ;;  %v13057_v4 = vld [vmem:[%s13396_s3 + $0x2ec] ss:$12 sps:$4 sm:$0xff]  }
0x1c01   :  { %v9457_v57 = vpop.eup %9456 }
0x1c02   :  { %9462 = vrcp.f32 %v6126_v29  ;;  %v6127_v47 = vadd.f32 1.0, %v9457_v57  ;;  %v9459_v13 = vpop.eup %9458  ;;  %v13064_v29 = vld [vmem:[%s13396_s3 + $0x2e8] ss:$12 sps:$4 sm:$0xff]   ;;  %v13070_v57 = vld [vmem:[%s13396_s3 + $0x2f0] ss:$12 sps:$4 sm:$0xff]  }
0x1c03   :  { %v9461_v8 = vpop.eup %9460  ;;  %v6140_v11 = vadd.f32 1.0, %v9459_v13  ;;  %v6167_v13 = vunpack.c.l.bf16 %v12713_v34 }
0x1c04   :  { %9464 = vrcp.f32 %v6127_v47  ;;  %v6141_v2 = vadd.f32 1.0, %v9461_v8  ;;  %v13076_v47 = vld [vmem:[%s13396_s3 + $0x244] ss:$12 sps:$4 sm:$0xff]  }
0x1c05   :  { %9466 = vrcp.f32 %v6140_v11 }
0x1c06   :  { %9468 = vrcp.f32 %v6141_v2 }
0x1c0c   :  { %v9463_v45 = vpop.eup %9462 }
0x1c0d   :  { %v6148_v26 = vmul.f32 %v9463_v45, %v6146_v51  ;;  %v6168_v51 = vunpack.c.l.bf16 %v12717_v32 }
0x1c0e   :  { %v9465_v35 = vpop.eup %9464 }
0x1c0f   :  { %v6150_v18 = vadd.f32 %v6148_v26, %v6030_v6  ;;  %v6149_v46 = vmul.f32 %v9465_v35, %v6147_v28  ;;  %v9467_v36 = vpop.eup %9466  ;;  %v6170_v26 = vunpack.c.h.bf16 %v12713_v34 }
0x1c10   :  { %v9469_v50 = vpop.eup %9468  ;;  %v6154_v22 = vsub.f32 1.0, %v9467_v36  ;;  %v6158_v15 = vmul.f32 %v9467_v36, %v12860_v24  ;;  %v12928_v24 = vld [vmem:[%s13396_s3 + $0x240] ss:$12 sps:$4 sm:$0xff]  }
0x1c11   :  { %9470 = vtanh.f32 %v6150_v18  ;;  %v6151_v30 = vadd.f32 %v6149_v46, %v6033_v40  ;;  %v6155_v42 = vsub.f32 1.0, %v9469_v50  ;;  %v6159_v39 = vmul.f32 %v9469_v50, %v12862_v59  ;;  %v12934_v59 = vld [vmem:[%s13396_s3 + $0x248] ss:$12 sps:$4 sm:$0xff]  }
0x1c12   :  { %v6171_v18 = vunpack.c.h.bf16 %v12717_v32 }
0x1c13   :  { %9472 = vtanh.f32 %v6151_v30 }
0x1c1b   :  { %v9471_v41 = vpop.eup %9470 }
0x1c1c   :  { %v6156_v7 = vmul.f32 %v9471_v41, %v6154_v22 }
0x1c1d   :  { %v9473_v12 = vpop.eup %9472 }
0x1c1e   :  { %v6157_v60 = vmul.f32 %v9473_v12, %v6155_v42  ;;  %v12915_v53 = vadd.f32 %v6158_v15, %v6156_v7 }
0x1c20   :  { %v12917_v63 = vadd.f32 %v6159_v39, %v6157_v60 }
0x1c22   :  { %v12921_v37 = vpack.c.bf16 %v12917_v63, %v12915_v53 }
0x1c24   :  { %6206 = vmatmul.mubr.bf16.vlgmr.msra.gmra.mrb[188].mxu0 %v12921_v37  ;;  %8579 = vmatmul.mubr.bf16.vlgmr.msra.gmra.mrb[220].mxu1 %v12921_v37 }
0x1c25   :  { %6313 = vmatpush1.bf16.msra.mxu0 %v12928_v24  ;;  %8583 = vmatpush3.bf16.msra.mxu1 %v12934_v59 }
0x1c26   :  { %6314 = vmatprep.subr.bf16.mxu0 %v12940_v33  ;;  %8584 = vmatprep.subr.bf16.mxu1 %v13450_v23 }
0x1c27   :  { %6344 = vmatprep.mubr.bf16.mxu0 %v13451_v25  ;;  %8598 = vmatprep.mubr.msk.bf16.mxu1 %vm9680_vm2, %v13450_v23 }
0x1c29   :  { %6315 = vmatpush1.bf16.msra.mxu0 %v12950_v48  ;;  %8585 = vmatpush3.bf16.msra.mxu1 %v12956_v62 }
0x1c2a   :  { %6316 = vmatprep.subr.bf16.mxu0 %v12962_v17  ;;  %8586 = vmatprep.subr.bf16.mxu1 %v13450_v23 }
0x1c2d   :  { %6317 = vmatpush1.bf16.msra.mxu0 %v12969_v9  ;;  %8587 = vmatpush3.bf16.msra.mxu1 %v12975_v54 }
0x1c2e   :  { %6318 = vmatprep.subr.bf16.mxu0 %v12981_v20  ;;  %8588 = vmatprep.subr.bf16.mxu1 %v13450_v23 }
0x1c31   :  { %6319 = vmatpush1.bf16.msra.mxu0 %v12988_v19  ;;  %8589 = vmatpush3.bf16.msra.mxu1 %v12994_v31 }
0x1c32   :  { %6320 = vmatprep.subr.bf16.mxu0 %v13000_v38  ;;  %8590 = vmatprep.subr.bf16.mxu1 %v13450_v23 }
0x1c35   :  { %6321 = vmatpush1.bf16.msra.mxu0 %v13007_v1  ;;  %8591 = vmatpush3.bf16.msra.mxu1 %v13013_v3 }
0x1c36   :  { %6322 = vmatprep.subr.bf16.mxu0 %v13019_v55  ;;  %8592 = vmatprep.subr.bf16.mxu1 %v13450_v23 }
0x1c39   :  { %6323 = vmatpush1.bf16.msra.mxu0 %v13026_v49  ;;  %8593 = vmatpush3.bf16.msra.mxu1 %v13032_v5 }
0x1c3a   :  { %6324 = vmatprep.subr.bf16.mxu0 %v13038_v27  ;;  %8594 = vmatprep.subr.bf16.mxu1 %v13450_v23 }
0x1c3d   :  { %6325 = vmatpush1.bf16.msra.mxu0 %v13045_v10  ;;  %8595 = vmatpush3.bf16.msra.mxu1 %v13051_v43 }
0x1c3e   :  { %6326 = vmatprep.subr.bf16.mxu0 %v13057_v4  ;;  %8596 = vmatprep.subr.bf16.mxu1 %v13450_v23 }
0x1c41   :  { %6327 = vmatpush1.bf16.msra.mxu0 %v13064_v29  ;;  %8597 = vmatpush3.bf16.msra.mxu1 %v13070_v57 }
0x1c42   :  { %6451 = vmatprep.subr.bf16.mxu0 %v13076_v47  ;;  %8602 = vmatprep.subr.bf16.mxu1 %v13450_v23 }
0x1cf7   :  { %v6207_v8 = vpop.f32.mrb[188].mxu0  ;;  %v6250_v11 = vpop.f32.mrb[220].mxu1 }
0x1cf8   :  { %v6257_v2 = vadd.f32 %v6207_v8, %v6167_v13  ;;  %v6209_v45 = vpop.f32.mrb[189].mxu0  ;;  %v8580_v6 = vpop.f32.mrb[221].mxu1  ;;  %v6285_v8 = vadd.f32 %v12799_v56, %v6250_v11 }
0x1cf9   :  { %v6271_v28 = vadd.f32 %v6209_v45, %v6168_v51  ;;  %v6211_v35 = vpop.f32.mrb[190].mxu0  ;;  %v6253_v40 = vpop.f32.mrb[222].mxu1  ;;  %v6169_v45 = vunpack.c.l.bf16 %v12681_v58 }
0x1cfa   :  { %v7518_v46 = vmul.f32 -1.442695, %v6257_v2  ;;  %v6258_v30 = vadd.f32 %v6211_v35, %v6170_v26  ;;  %v6213_v36 = vpop.f32.mrb[191].mxu0  ;;  %v8581_v50 = vpop.f32.mrb[223].mxu1  ;;  %v6286_v26 = vadd.f32 %v12799_v56, %v6253_v40  ;;  %v6172_v35 = vunpack.c.h.bf16 %v12681_v58 }
0x1cfb   :  { %v6272_v22 = vadd.f32 %v6213_v36, %v6171_v18  ;;  %v7520_v42 = vmul.f32 -1.442695, %v6271_v28 }
0x1cfc   :  { %9474 = vpow2.f32 %v7518_v46  ;;  %v7519_v41 = vmul.f32 -1.442695, %v6258_v30 }
0x1cfd   :  { %v7521_v7 = vmul.f32 -1.442695, %v6272_v22 }
0x1cfe   :  { %9476 = vpow2.f32 %v7519_v41 }
0x1cff   :  { %9478 = vpow2.f32 %v7520_v42 }
0x1d00   :  { %9480 = vpow2.f32 %v7521_v7 }
0x1d06   :  { %v9475_v15 = vpop.eup %9474 }
0x1d07   :  { %v6265_v12 = vadd.f32 1.0, %v9475_v15 }
0x1d08   :  { %v9477_v34 = vpop.eup %9476 }
0x1d09   :  { %9482 = vrcp.f32 %v6265_v12  ;;  %v6266_v60 = vadd.f32 1.0, %v9477_v34  ;;  %v9479_v39 = vpop.eup %9478 }
0x1d0a   :  { %v9481_v32 = vpop.eup %9480  ;;  %v6279_v13 = vadd.f32 1.0, %v9479_v39 }
0x1d0b   :  { %9484 = vrcp.f32 %v6266_v60  ;;  %v6280_v51 = vadd.f32 1.0, %v9481_v32  ;;  %v6307_v32 = vunpack.c.l.bf16 %v12736_v52 }
0x1d0c   :  { %9486 = vrcp.f32 %v6279_v13 }
0x1d0d   :  { %9488 = vrcp.f32 %v6280_v51 }
0x1d13   :  { %v9483_v2 = vpop.eup %9482 }
0x1d14   :  { %v6287_v6 = vmul.f32 %v9483_v2, %v6285_v8  ;;  %v6309_v2 = vunpack.c.h.bf16 %v12732_v21 }
0x1d15   :  { %v9485_v28 = vpop.eup %9484 }
0x1d16   :  { %v6289_v18 = vadd.f32 %v6287_v6, %v6169_v45  ;;  %v6288_v46 = vmul.f32 %v9485_v28, %v6286_v26  ;;  %v9487_v36 = vpop.eup %9486  ;;  %v6310_v28 = vunpack.c.h.bf16 %v12736_v52 }
0x1d17   :  { %v9489_v50 = vpop.eup %9488  ;;  %v6293_v11 = vsub.f32 1.0, %v9487_v36  ;;  %v6297_v7 = vmul.f32 %v9487_v36, %v12915_v53  ;;  %v6306_v53 = vunpack.c.l.bf16 %v12732_v21 }
0x1d18   :  { %9490 = vtanh.f32 %v6289_v18  ;;  %v6290_v30 = vadd.f32 %v6288_v46, %v6172_v35  ;;  %v6294_v41 = vsub.f32 1.0, %v9489_v50  ;;  %v6298_v40 = vmul.f32 %v9489_v50, %v12917_v63 }
0x1d1a   :  { %9492 = vtanh.f32 %v6290_v30 }
0x1d22   :  { %v9491_v22 = vpop.eup %9490 }
0x1d23   :  { %v6295_v42 = vmul.f32 %v9491_v22, %v6293_v11 }
0x1d24   :  { %v9493_v15 = vpop.eup %9492 }
0x1d25   :  { %v6296_v12 = vmul.f32 %v9493_v15, %v6294_v41  ;;  %v13090_v34 = vadd.f32 %v6297_v7, %v6295_v42 }
0x1d27   :  { %v13092_v58 = vadd.f32 %v6298_v40, %v6296_v12 }
0x1d29   :  { %v13096_v60 = vpack.c.bf16 %v13092_v58, %v13090_v34 }
0x1d2b   :  { %6345 = vmatmul.mubr.bf16.vlgmr.msra.gmra.mrb[192].mxu0 %v13096_v60  ;;  %8599 = vmatmul.mubr.bf16.vlgmr.msra.gmra.mrb[224].mxu1 %v13096_v60 }
0x1d2c   :  { %6452 = vmatpush1.bf16.msra.mxu0 %v12928_v24  ;;  %8603 = vmatpush3.bf16.msra.mxu1 %v12934_v59 }
0x1d2d   :  { %6453 = vmatprep.subr.bf16.mxu0 %v12940_v33  ;;  %8604 = vmatprep.subr.bf16.mxu1 %v13450_v23 }
0x1d2e   :  { %6483 = vmatprep.mubr.bf16.mxu0 %v13451_v25  ;;  %8618 = vmatprep.mubr.msk.bf16.mxu1 %vm9680_vm2, %v13450_v23 }
0x1d30   :  { %6454 = vmatpush1.bf16.msra.mxu0 %v12950_v48  ;;  %8605 = vmatpush3.bf16.msra.mxu1 %v12956_v62 }
0x1d31   :  { %6455 = vmatprep.subr.bf16.mxu0 %v12962_v17  ;;  %8606 = vmatprep.subr.bf16.mxu1 %v13450_v23 }
0x1d34   :  { %6456 = vmatpush1.bf16.msra.mxu0 %v12969_v9  ;;  %8607 = vmatpush3.bf16.msra.mxu1 %v12975_v54 }
0x1d35   :  { %6457 = vmatprep.subr.bf16.mxu0 %v12981_v20  ;;  %8608 = vmatprep.subr.bf16.mxu1 %v13450_v23 }
0x1d38   :  { %6458 = vmatpush1.bf16.msra.mxu0 %v12988_v19  ;;  %8609 = vmatpush3.bf16.msra.mxu1 %v12994_v31 }
0x1d39   :  { %6459 = vmatprep.subr.bf16.mxu0 %v13000_v38  ;;  %8610 = vmatprep.subr.bf16.mxu1 %v13450_v23 }
0x1d3c   :  { %6460 = vmatpush1.bf16.msra.mxu0 %v13007_v1  ;;  %8611 = vmatpush3.bf16.msra.mxu1 %v13013_v3 }
0x1d3d   :  { %6461 = vmatprep.subr.bf16.mxu0 %v13019_v55  ;;  %8612 = vmatprep.subr.bf16.mxu1 %v13450_v23 }
0x1d40   :  { %6462 = vmatpush1.bf16.msra.mxu0 %v13026_v49  ;;  %8613 = vmatpush3.bf16.msra.mxu1 %v13032_v5 }
0x1d41   :  { %6463 = vmatprep.subr.bf16.mxu0 %v13038_v27  ;;  %8614 = vmatprep.subr.bf16.mxu1 %v13450_v23 }
0x1d44   :  { %6464 = vmatpush1.bf16.msra.mxu0 %v13045_v10  ;;  %8615 = vmatpush3.bf16.msra.mxu1 %v13051_v43 }
0x1d45   :  { %6465 = vmatprep.subr.bf16.mxu0 %v13057_v4  ;;  %8616 = vmatprep.subr.bf16.mxu1 %v13450_v23 }
0x1d48   :  { %6466 = vmatpush1.bf16.msra.mxu0 %v13064_v29  ;;  %8617 = vmatpush3.bf16.msra.mxu1 %v13070_v57 }
0x1d49   :  { %6590 = vmatprep.subr.bf16.mxu0 %v13076_v47  ;;  %8622 = vmatprep.subr.bf16.mxu1 %v13450_v23 }
0x1dfe   :  { %v6346_v63 = vpop.f32.mrb[192].mxu0  ;;  %v6389_v39 = vpop.f32.mrb[224].mxu1 }
0x1dff   :  { %v6396_v13 = vadd.f32 %v6346_v63, %v6306_v53  ;;  %v6348_v8 = vpop.f32.mrb[193].mxu0  ;;  %v8600_v51 = vpop.f32.mrb[225].mxu1  ;;  %v6424_v40 = vadd.f32 %v12799_v56, %v6389_v39 }
0x1e00   :  { %v6410_v45 = vadd.f32 %v6348_v8, %v6307_v32  ;;  %v6350_v6 = vpop.f32.mrb[194].mxu0  ;;  %v6392_v26 = vpop.f32.mrb[226].mxu1  ;;  %v6308_v32 = vunpack.c.l.bf16 %v12705_v14 }
0x1e01   :  { %v7522_v35 = vmul.f32 -1.442695, %v6396_v13  ;;  %v6397_v18 = vadd.f32 %v6350_v6, %v6309_v2  ;;  %v6352_v46 = vpop.f32.mrb[195].mxu0  ;;  %v8601_v30 = vpop.f32.mrb[227].mxu1  ;;  %v6425_v8 = vadd.f32 %v12799_v56, %v6392_v26  ;;  %v6311_v2 = vunpack.c.h.bf16 %v12705_v14 }
0x1e02   :  { %v6411_v36 = vadd.f32 %v6352_v46, %v6310_v28  ;;  %v7524_v11 = vmul.f32 -1.442695, %v6410_v45 }
0x1e03   :  { %9494 = vpow2.f32 %v7522_v35  ;;  %v7523_v50 = vmul.f32 -1.442695, %v6397_v18 }
0x1e04   :  { %v7525_v22 = vmul.f32 -1.442695, %v6411_v36 }
0x1e05   :  { %9496 = vpow2.f32 %v7523_v50 }
0x1e06   :  { %9498 = vpow2.f32 %v7524_v11 }
0x1e07   :  { %9500 = vpow2.f32 %v7525_v22 }
0x1e0d   :  { %v9495_v41 = vpop.eup %9494 }
0x1e0e   :  { %v6404_v42 = vadd.f32 1.0, %v9495_v41 }
0x1e0f   :  { %v9497_v21 = vpop.eup %9496 }
0x1e10   :  { %9502 = vrcp.f32 %v6404_v42  ;;  %v6405_v7 = vadd.f32 1.0, %v9497_v21  ;;  %v9499_v15 = vpop.eup %9498 }
0x1e11   :  { %v9501_v52 = vpop.eup %9500  ;;  %v6418_v12 = vadd.f32 1.0, %v9499_v15 }
0x1e12   :  { %9504 = vrcp.f32 %v6405_v7  ;;  %v6419_v53 = vadd.f32 1.0, %v9501_v52  ;;  %v13500_v7 = vld [vmem:[#allocation8_spill] sm:$0xff] }
0x1e13   :  { %9506 = vrcp.f32 %v6418_v12  ;;  %v6446_v15 = vunpack.c.l.bf16 %v13500_v7 }
0x1e14   :  { %9508 = vrcp.f32 %v6419_v53  ;;  %v6448_v53 = vunpack.c.h.bf16 %v12748_v44 }
0x1e1a   :  { %v9503_v63 = vpop.eup %9502 }
0x1e1b   :  { %v6426_v13 = vmul.f32 %v9503_v63, %v6424_v40 }
0x1e1c   :  { %v9505_v51 = vpop.eup %9504 }
0x1e1d   :  { %v6428_v45 = vadd.f32 %v6426_v13, %v6308_v32  ;;  %v6427_v6 = vmul.f32 %v9505_v51, %v6425_v8  ;;  %v9507_v35 = vpop.eup %9506  ;;  %v6449_v8 = vunpack.c.h.bf16 %v13500_v7 }
0x1e1e   :  { %v9509_v18 = vpop.eup %9508  ;;  %v6432_v39 = vsub.f32 1.0, %v9507_v35  ;;  %v6436_v50 = vmul.f32 %v9507_v35, %v13090_v34  ;;  %v6445_v34 = vunpack.c.l.bf16 %v12748_v44 }
0x1e1f   :  { %9510 = vtanh.f32 %v6428_v45  ;;  %v6429_v28 = vadd.f32 %v6427_v6, %v6311_v2  ;;  %v6433_v30 = vsub.f32 1.0, %v9509_v18  ;;  %v6437_v26 = vmul.f32 %v9509_v18, %v13092_v58 }
0x1e21   :  { %9512 = vtanh.f32 %v6429_v28 }
0x1e29   :  { %v9511_v46 = vpop.eup %9510 }
0x1e2a   :  { %v6434_v36 = vmul.f32 %v9511_v46, %v6432_v39 }
0x1e2b   :  { %v9513_v11 = vpop.eup %9512 }
0x1e2c   :  { %v6435_v22 = vmul.f32 %v9513_v11, %v6433_v30  ;;  %v13145_v41 = vadd.f32 %v6436_v50, %v6434_v36 }
0x1e2e   :  { %v13147_v14 = vadd.f32 %v6437_v26, %v6435_v22 }
0x1e30   :  { %v13151_v42 = vpack.c.bf16 %v13147_v14, %v13145_v41 }
0x1e32   :  { %6484 = vmatmul.mubr.bf16.vlgmr.msra.gmra.mrb[196].mxu0 %v13151_v42  ;;  %8619 = vmatmul.mubr.bf16.vlgmr.msra.gmra.mrb[228].mxu1 %v13151_v42 }
0x1e33   :  { %6591 = vmatpush1.bf16.msra.mxu0 %v12928_v24  ;;  %8623 = vmatpush3.bf16.msra.mxu1 %v12934_v59 }
0x1e34   :  { %6592 = vmatprep.subr.bf16.mxu0 %v12940_v33  ;;  %8624 = vmatprep.subr.bf16.mxu1 %v13450_v23 }
0x1e35   :  { %6622 = vmatprep.mubr.bf16.mxu0 %v13451_v25  ;;  %8638 = vmatprep.mubr.msk.bf16.mxu1 %vm9680_vm2, %v13450_v23 }
0x1e37   :  { %6593 = vmatpush1.bf16.msra.mxu0 %v12950_v48  ;;  %8625 = vmatpush3.bf16.msra.mxu1 %v12956_v62 }
0x1e38   :  { %6594 = vmatprep.subr.bf16.mxu0 %v12962_v17  ;;  %8626 = vmatprep.subr.bf16.mxu1 %v13450_v23 }
0x1e3b   :  { %6595 = vmatpush1.bf16.msra.mxu0 %v12969_v9  ;;  %8627 = vmatpush3.bf16.msra.mxu1 %v12975_v54 }
0x1e3c   :  { %6596 = vmatprep.subr.bf16.mxu0 %v12981_v20  ;;  %8628 = vmatprep.subr.bf16.mxu1 %v13450_v23 }
0x1e3f   :  { %6597 = vmatpush1.bf16.msra.mxu0 %v12988_v19  ;;  %8629 = vmatpush3.bf16.msra.mxu1 %v12994_v31 }
0x1e40   :  { %6598 = vmatprep.subr.bf16.mxu0 %v13000_v38  ;;  %8630 = vmatprep.subr.bf16.mxu1 %v13450_v23 }
0x1e43   :  { %6599 = vmatpush1.bf16.msra.mxu0 %v13007_v1  ;;  %8631 = vmatpush3.bf16.msra.mxu1 %v13013_v3 }
0x1e44   :  { %6600 = vmatprep.subr.bf16.mxu0 %v13019_v55  ;;  %8632 = vmatprep.subr.bf16.mxu1 %v13450_v23 }
0x1e47   :  { %6601 = vmatpush1.bf16.msra.mxu0 %v13026_v49  ;;  %8633 = vmatpush3.bf16.msra.mxu1 %v13032_v5 }
0x1e48   :  { %6602 = vmatprep.subr.bf16.mxu0 %v13038_v27  ;;  %8634 = vmatprep.subr.bf16.mxu1 %v13450_v23 }
0x1e4b   :  { %6603 = vmatpush1.bf16.msra.mxu0 %v13045_v10  ;;  %8635 = vmatpush3.bf16.msra.mxu1 %v13051_v43 }
0x1e4c   :  { %6604 = vmatprep.subr.bf16.mxu0 %v13057_v4  ;;  %8636 = vmatprep.subr.bf16.mxu1 %v13450_v23 }
0x1e4f   :  { %6605 = vmatpush1.bf16.msra.mxu0 %v13064_v29  ;;  %8637 = vmatpush3.bf16.msra.mxu1 %v13070_v57 }
0x1e50   :  { %6729 = vmatprep.subr.bf16.mxu0 %v13076_v47  ;;  %8642 = vmatprep.subr.bf16.mxu1 %v13450_v23 }
0x1f05   :  { %v6485_v58 = vpop.f32.mrb[196].mxu0  ;;  %v6528_v21 = vpop.f32.mrb[228].mxu1 }
0x1f06   :  { %v6535_v52 = vadd.f32 %v6485_v58, %v6445_v34  ;;  %v6487_v12 = vpop.f32.mrb[197].mxu0  ;;  %v8620_v40 = vpop.f32.mrb[229].mxu1  ;;  %v6563_v22 = vadd.f32 %v12799_v56, %v6528_v21  ;;  %v13501_v58 = vld [vmem:[#allocation7_spill] sm:$0xff] }
0x1f07   :  { %v6549_v63 = vadd.f32 %v6487_v12, %v6446_v15  ;;  %v6489_v32 = vpop.f32.mrb[198].mxu0  ;;  %v6531_v13 = vpop.f32.mrb[230].mxu1  ;;  %v6447_v7 = vunpack.c.l.bf16 %v13501_v58  ;;  %v6450_v40 = vunpack.c.h.bf16 %v13501_v58 }
0x1f08   :  { %v7526_v51 = vmul.f32 -1.442695, %v6535_v52  ;;  %v6536_v47 = vadd.f32 %v6489_v32, %v6448_v53  ;;  %v6491_v2 = vpop.f32.mrb[199].mxu0  ;;  %v8621_v45 = vpop.f32.mrb[231].mxu1  ;;  %v6564_v52 = vadd.f32 %v12799_v56, %v6531_v13 }
0x1f09   :  { %v6550_v6 = vadd.f32 %v6491_v2, %v6449_v8  ;;  %v7528_v35 = vmul.f32 -1.442695, %v6549_v63 }
0x1f0a   :  { %9514 = vpow2.f32 %v7526_v51  ;;  %v7527_v28 = vmul.f32 -1.442695, %v6536_v47 }
0x1f0b   :  { %v7529_v18 = vmul.f32 -1.442695, %v6550_v6 }
0x1f0c   :  { %9516 = vpow2.f32 %v7527_v28 }
0x1f0d   :  { %9518 = vpow2.f32 %v7528_v35 }
0x1f0e   :  { %9520 = vpow2.f32 %v7529_v18 }
0x1f14   :  { %v9515_v39 = vpop.eup %9514 }
0x1f15   :  { %v6543_v46 = vadd.f32 1.0, %v9515_v39 }
0x1f16   :  { %v9517_v44 = vpop.eup %9516 }
0x1f17   :  { %9522 = vrcp.f32 %v6543_v46  ;;  %v6544_v30 = vadd.f32 1.0, %v9517_v44  ;;  %v9519_v36 = vpop.eup %9518 }
0x1f18   :  { %v9521_v50 = vpop.eup %9520  ;;  %v6557_v11 = vadd.f32 1.0, %v9519_v36  ;;  %v13256_v36 = vld [vmem:[%s13397_s5 + $0x3] ss:$0 sm:$0xff] }
0x1f19   :  { %9524 = vrcp.f32 %v6544_v30  ;;  %v6558_v26 = vadd.f32 1.0, %v9521_v50 }
0x1f1a   :  { %9526 = vrcp.f32 %v6557_v11 }
0x1f1b   :  { %9528 = vrcp.f32 %v6558_v26  ;;  %v6586_v26 = vunpack.c.l.bf16 %v12790_v16 }
0x1f21   :  { %v9523_v34 = vpop.eup %9522 }
0x1f22   :  { %v6565_v15 = vmul.f32 %v9523_v34, %v6563_v22 }
0x1f23   :  { %v9525_v12 = vpop.eup %9524 }
0x1f24   :  { %v6567_v53 = vadd.f32 %v6565_v15, %v6447_v7  ;;  %v6566_v63 = vmul.f32 %v9525_v12, %v6564_v52  ;;  %v9527_v8 = vpop.eup %9526  ;;  %v6589_v15 = vunpack.c.h.bf16 %v12790_v16 }
0x1f25   :  { %v9529_v51 = vpop.eup %9528  ;;  %v6571_v21 = vsub.f32 1.0, %v9527_v8  ;;  %v6575_v6 = vmul.f32 %v9527_v8, %v13145_v41 }
0x1f26   :  { %9530 = vtanh.f32 %v6567_v53  ;;  %v6568_v32 = vadd.f32 %v6566_v63, %v6450_v40  ;;  %v6572_v2 = vsub.f32 1.0, %v9529_v51  ;;  %v6576_v56 = vmul.f32 %v9529_v51, %v13147_v14 }
0x1f28   :  { %9532 = vtanh.f32 %v6568_v32 }
0x1f30   :  { %v9531_v47 = vpop.eup %9530 }
0x1f31   :  { %v6573_v45 = vmul.f32 %v9531_v47, %v6571_v21 }
0x1f32   :  { %v9533_v28 = vpop.eup %9532 }
0x1f33   :  { %v6574_v35 = vmul.f32 %v9533_v28, %v6572_v2  ;;  %v13200_v13 = vadd.f32 %v6575_v6, %v6573_v45 }
0x1f35   :  { %v13202_v18 = vadd.f32 %v6576_v56, %v6574_v35  ;;  %v8927_v56 = vld [vmem:[%s13399_s6 + $0x8] sm:$0xff]  }
0x1f37   :  { %v13206_v39 = vpack.c.bf16 %v13202_v18, %v13200_v13 }
0x1f39   :  { %6623 = vmatmul.mubr.bf16.vlgmr.msra.gmra.mrb[200].mxu0 %v13206_v39  ;;  %8639 = vmatmul.mubr.bf16.vlgmr.msra.gmra.mrb[232].mxu1 %v13206_v39 }
0x1f3a   :  { %6730 = vmatpush1.bf16.msra.mxu0 %v12928_v24  ;;  %8643 = vmatpush3.bf16.msra.mxu1 %v12934_v59  ;;  %v13502_v24 = vld [vmem:[#allocation11_spill] sm:$0xff] }
0x1f3b   :  { %6731 = vmatprep.subr.bf16.mxu0 %v12940_v33  ;;  %8644 = vmatprep.subr.bf16.mxu1 %v13450_v23  ;;  %v6584_v59 = vunpack.c.l.bf16 %v13502_v24 }
0x1f3c   :  { %6761 = vmatprep.mubr.bf16.mxu0 %v13451_v25  ;;  %8658 = vmatprep.mubr.msk.bf16.mxu1 %vm9680_vm2, %v13450_v23  ;;  %v13246_v25 = vld [vmem:[%s13399_s6] sm:$0xff]  }
0x1f3e   :  { %6732 = vmatpush1.bf16.msra.mxu0 %v12950_v48  ;;  %8645 = vmatpush3.bf16.msra.mxu1 %v12956_v62  ;;  %v13503_v62 = vld [vmem:[#allocation13_spill] sm:$0xff] }
0x1f3f   :  { %6733 = vmatprep.subr.bf16.mxu0 %v12962_v17  ;;  %8646 = vmatprep.subr.bf16.mxu1 %v13450_v23  ;;  %v6585_v17 = vunpack.c.l.bf16 %v13503_v62 }
0x1f42   :  { %6734 = vmatpush1.bf16.msra.mxu0 %v12969_v9  ;;  %8647 = vmatpush3.bf16.msra.mxu1 %v12975_v54 }
0x1f43   :  { %6735 = vmatprep.subr.bf16.mxu0 %v12981_v20  ;;  %8648 = vmatprep.subr.bf16.mxu1 %v13450_v23  ;;  %v6587_v20 = vunpack.c.h.bf16 %v13502_v24  ;;  %v8930_v24 = vld [vmem:[%s13399_s6 + $0x20] sm:$0xff]  }
0x1f46   :  { %6736 = vmatpush1.bf16.msra.mxu0 %v12988_v19  ;;  %8649 = vmatpush3.bf16.msra.mxu1 %v12994_v31 }
0x1f47   :  { %6737 = vmatprep.subr.bf16.mxu0 %v13000_v38  ;;  %8650 = vmatprep.subr.bf16.mxu1 %v13450_v23 }
0x1f4a   :  { %6738 = vmatpush1.bf16.msra.mxu0 %v13007_v1  ;;  %8651 = vmatpush3.bf16.msra.mxu1 %v13013_v3  ;;  %v6588_v1 = vunpack.c.h.bf16 %v13503_v62 }
0x1f4b   :  { %6739 = vmatprep.subr.bf16.mxu0 %v13019_v55  ;;  %8652 = vmatprep.subr.bf16.mxu1 %v13450_v23 }
0x1f4e   :  { %6740 = vmatpush1.bf16.msra.mxu0 %v13026_v49  ;;  %8653 = vmatpush3.bf16.msra.mxu1 %v13032_v5 }
0x1f4f   :  { %6741 = vmatprep.subr.bf16.mxu0 %v13038_v27  ;;  %8654 = vmatprep.subr.bf16.mxu1 %v13450_v23 }
0x1f52   :  { %6742 = vmatpush1.bf16.msra.mxu0 %v13045_v10  ;;  %8655 = vmatpush3.bf16.msra.mxu1 %v13051_v43 }
0x1f53   :  { %6743 = vmatprep.subr.bf16.mxu0 %v13057_v4  ;;  %8656 = vmatprep.subr.bf16.mxu1 %v13450_v23 }
0x1f56   :  { %6744 = vmatpush1.bf16.msra.mxu0 %v13064_v29  ;;  %8657 = vmatpush3.bf16.msra.mxu1 %v13070_v57 }
0x1f57   :  { %8662 = vmatprep.subr.bf16.mxu0 %v13246_v25 }
0x200c   :  { %v6624_v33 = vpop.f32.mrb[200].mxu0  ;;  %v6667_v48 = vpop.f32.mrb[232].mxu1 }
0x200d   :  { %v6674_v9 = vadd.f32 %v6624_v33, %v6584_v59  ;;  %v6626_v54 = vpop.f32.mrb[201].mxu0  ;;  %v8640_v23 = vpop.f32.mrb[233].mxu1  ;;  %v6702_v50 = vadd.f32 %v13256_v36, %v6667_v48  ;;  %v8933_v59 = vld [vmem:[%s13399_s6 + $0x38] sm:$0xff]   ;;  %v13504_v33 = vld [vmem:[#allocation14_spill] sm:$0xff] }
0x200e   :  { %v6688_v19 = vadd.f32 %v6626_v54, %v6585_v17  ;;  %v6628_v31 = vpop.f32.mrb[202].mxu0  ;;  %v6670_v38 = vpop.f32.mrb[234].mxu1  ;;  %v6723_v48 = vunpack.c.l.bf16 %v13504_v33 }
0x200f   :  { %v7530_v3 = vmul.f32 -1.442695, %v6674_v9  ;;  %v6675_v55 = vadd.f32 %v6628_v31, %v6587_v20  ;;  %v6630_v49 = vpop.f32.mrb[203].mxu0  ;;  %v8641_v5 = vpop.f32.mrb[235].mxu1  ;;  %v6703_v58 = vadd.f32 %v13256_v36, %v6670_v38  ;;  %v13505_v9 = vld [vmem:[#allocation5_spill] sm:$0xff] }
0x2010   :  { %v6689_v27 = vadd.f32 %v6630_v49, %v6588_v1  ;;  %v7532_v43 = vmul.f32 -1.442695, %v6688_v19  ;;  %v6724_v54 = vunpack.c.l.bf16 %v13505_v9 }
0x2011   :  { %9534 = vpow2.f32 %v7530_v3  ;;  %v7531_v10 = vmul.f32 -1.442695, %v6675_v55 }
0x2012   :  { %v7533_v4 = vmul.f32 -1.442695, %v6689_v27 }
0x2013   :  { %9536 = vpow2.f32 %v7531_v10 }
0x2014   :  { %9538 = vpow2.f32 %v7532_v43 }
0x2015   :  { %9540 = vpow2.f32 %v7533_v4 }
0x201b   :  { %v9535_v29 = vpop.eup %9534 }
0x201c   :  { %v6682_v57 = vadd.f32 1.0, %v9535_v29 }
0x201d   :  { %v9537_v41 = vpop.eup %9536 }
0x201e   :  { %9542 = vrcp.f32 %v6682_v57  ;;  %v6683_v14 = vadd.f32 1.0, %v9537_v41  ;;  %v9539_v46 = vpop.eup %9538 }
0x201f   :  { %v9541_v44 = vpop.eup %9540  ;;  %v6696_v30 = vadd.f32 1.0, %v9539_v46 }
0x2020   :  { %9544 = vrcp.f32 %v6683_v14  ;;  %v6697_v11 = vadd.f32 1.0, %v9541_v44 }
0x2021   :  { %9546 = vrcp.f32 %v6696_v30 }
0x2022   :  { %9548 = vrcp.f32 %v6697_v11 }
0x2028   :  { %v9543_v22 = vpop.eup %9542 }
0x2029   :  { %v6704_v34 = vmul.f32 %v9543_v22, %v6702_v50  ;;  %v13506_v50 = vld [vmem:[#allocation15_spill] sm:$0xff] }
0x202a   :  { %v9545_v7 = vpop.eup %9544  ;;  %v6725_v11 = vunpack.c.l.bf16 %v13506_v50 }
0x202b   :  { %v6706_v52 = vadd.f32 %v6704_v34, %v6586_v26  ;;  %v6705_v12 = vmul.f32 %v9545_v7, %v6703_v58  ;;  %v9547_v53 = vpop.eup %9546  ;;  %v13308_v58 = vld [vmem:[%s13400_s7] ss:$0 sm:$0xff]  ;;  %v6728_v7 = vunpack.c.h.bf16 %v13506_v50 }
0x202c   :  { %v9549_v63 = vpop.eup %9548  ;;  %v6710_v32 = vsub.f32 1.0, %v9547_v53  ;;  %v6714_v47 = vmul.f32 %v9547_v53, %v13200_v13  ;;  %v8928_v13 = vld [vmem:[%s13399_s6 + $0x10] sm:$0xff]  }
0x202d   :  { %9550 = vtanh.f32 %v6706_v52  ;;  %v6707_v40 = vadd.f32 %v6705_v12, %v6589_v15  ;;  %v6711_v51 = vsub.f32 1.0, %v9549_v63  ;;  %v6715_v6 = vmul.f32 %v9549_v63, %v13202_v18  ;;  %v8929_v18 = vld [vmem:[%s13399_s6 + $0x18] sm:$0xff]  }
0x202f   :  { %9552 = vtanh.f32 %v6707_v40 }
0x2037   :  { %v9551_v8 = vpop.eup %9550 }
0x2038   :  { %v6712_v21 = vmul.f32 %v9551_v8, %v6710_v32 }
0x2039   :  { %v9553_v2 = vpop.eup %9552 }
0x203a   :  { %v6713_v45 = vmul.f32 %v9553_v2, %v6711_v51  ;;  %v13264_v28 = vadd.f32 %v6714_v47, %v6712_v21 }
0x203c   :  { %v13266_v16 = vadd.f32 %v6715_v6, %v6713_v45 }
0x203e   :  { %v6718_v35 = vpack.c.bf16 %v13266_v16, %v13264_v28 }
0x2040   :  { %6762 = vmatmul.mubr.bf16.vlgmr.msra.gmra.mrb[204].mxu0 %v6718_v35  ;;  %8659 = vmatmul.mubr.bf16.vlgmr.msra.gmra.mrb[236].mxu1 %v6718_v35 }
0x2041   :  { %8663 = vmatpush3.bf16.msra.mxu0 %v13246_v25  ;;  %8678 = vmatprep.mubr.bf16.mxu0 %v12811_v0  ;;  %v8931_v0 = vld [vmem:[%s13399_s6 + $0x28] sm:$0xff]   ;;  %v8932_v25 = vld [vmem:[%s13399_s6 + $0x30] sm:$0xff]  }
0x2042   :  { %8664 = vmatprep.subr.bf16.mxu0 %v8927_v56 }
0x2045   :  { %8665 = vmatpush3.bf16.msra.mxu0 %v8927_v56 }
0x2046   :  { %8666 = vmatprep.subr.bf16.mxu0 %v8928_v13 }
0x2049   :  { %8667 = vmatpush3.bf16.msra.mxu0 %v8928_v13 }
0x204a   :  { %8668 = vmatprep.subr.bf16.mxu0 %v8929_v18 }
0x204d   :  { %8669 = vmatpush3.bf16.msra.mxu0 %v8929_v18 }
0x204e   :  { %8670 = vmatprep.subr.bf16.mxu0 %v8930_v24 }
0x2051   :  { %8671 = vmatpush3.bf16.msra.mxu0 %v8930_v24 }
0x2052   :  { %8672 = vmatprep.subr.bf16.mxu0 %v8931_v0 }
0x2055   :  { %8673 = vmatpush3.bf16.msra.mxu0 %v8931_v0 }
0x2056   :  { %8674 = vmatprep.subr.bf16.mxu0 %v8932_v25 }
0x2059   :  { %8675 = vmatpush3.bf16.msra.mxu0 %v8932_v25 }
0x205a   :  { %8676 = vmatprep.subr.bf16.mxu0 %v8933_v59 }
0x205d   :  { %8677 = vmatpush3.bf16.msra.mxu0 %v8933_v59 }
0x2060   :  { %8679 = vmatmul.mubr.bf16.vlgmr.msra.gmra.mrb[208].mxu0 %v12866_v61  ;;  %v6726_v61 = vunpack.c.h.bf16 %v13504_v33 }
0x2061   :  { %8682 = vmatprep.mubr.bf16.mxu0 %v12921_v37 }
0x2068   :  { %8683 = vmatmul.mubr.bf16.gmra.mrb[212].mxu0 %v13096_v60  ;;  %v6727_v60 = vunpack.c.h.bf16 %v13505_v9 }
0x2069   :  { %8686 = vmatprep.mubr.bf16.mxu0 %v13151_v42 }
0x2070   :  { %8687 = vmatmul.mubr.bf16.gmra.mrb[216].mxu0 %v13206_v39 }
0x2071   :  { %8690 = vmatprep.mubr.bf16.mxu0 %v6718_v35 }
0x2113   :  { %v6763_v62 = vpop.f32.mrb[204].mxu0  ;;  %v6806_v17 = vpop.f32.mrb[236].mxu1 }
0x2114   :  { %v6813_v23 = vadd.f32 %v6763_v62, %v6723_v48  ;;  %v6765_v20 = vpop.f32.mrb[205].mxu0  ;;  %v8660_v19 = vpop.f32.mrb[237].mxu1  ;;  %v6841_v46 = vadd.f32 %v13256_v36, %v6806_v17 }
0x2115   :  { %v6827_v31 = vadd.f32 %v6765_v20, %v6724_v54  ;;  %v6767_v37 = vpop.f32.mrb[206].mxu0  ;;  %v6809_v38 = vpop.f32.mrb[238].mxu1 }
0x2116   :  { %v7534_v42 = vmul.f32 -1.442695, %v6813_v23  ;;  %v6814_v1 = vadd.f32 %v6767_v37, %v6726_v61  ;;  %v6769_v39 = vpop.f32.mrb[207].mxu0  ;;  %v8661_v3 = vpop.f32.mrb[239].mxu1  ;;  %v6842_v26 = vadd.f32 %v13256_v36, %v6809_v38 }
0x2117   :  { %v6828_v55 = vadd.f32 %v6769_v39, %v6727_v60  ;;  %v7536_v5 = vmul.f32 -1.442695, %v6827_v31 }
0x2118   :  { %9554 = vpow2.f32 %v7534_v42  ;;  %v7535_v49 = vmul.f32 -1.442695, %v6814_v1 }
0x2119   :  { %v7537_v27 = vmul.f32 -1.442695, %v6828_v55 }
0x211a   :  { %9556 = vpow2.f32 %v7535_v49 }
0x211b   :  { %9558 = vpow2.f32 %v7536_v5 }
0x211c   :  { %9560 = vpow2.f32 %v7537_v27 }
0x2122   :  { %v9555_v10 = vpop.eup %9554 }
0x2123   :  { %v6821_v43 = vadd.f32 1.0, %v9555_v10 }
0x2124   :  { %v9557_v4 = vpop.eup %9556 }
0x2125   :  { %9562 = vrcp.f32 %v6821_v43  ;;  %v6822_v29 = vadd.f32 1.0, %v9557_v4  ;;  %v9559_v57 = vpop.eup %9558 }
0x2126   :  { %v9561_v41 = vpop.eup %9560  ;;  %v6835_v14 = vadd.f32 1.0, %v9559_v57 }
0x2127   :  { %9564 = vrcp.f32 %v6822_v29  ;;  %v6836_v44 = vadd.f32 1.0, %v9561_v41 }
0x2128   :  { %9566 = vrcp.f32 %v6835_v14 }
0x2129   :  { %9568 = vrcp.f32 %v6836_v44 }
0x212f   :  { %v9563_v30 = vpop.eup %9562 }
0x2130   :  { %v6843_v22 = vmul.f32 %v9563_v30, %v6841_v46 }
0x2131   :  { %v9565_v34 = vpop.eup %9564 }
0x2132   :  { %v6845_v15 = vadd.f32 %v6843_v22, %v6725_v11  ;;  %v6844_v52 = vmul.f32 %v9565_v34, %v6842_v26  ;;  %v9567_v47 = vpop.eup %9566 }
0x2133   :  { %v8680_v12 = vpop.f32.mrb[208].mxu0  ;;  %v9569_v45 = vpop.eup %9568  ;;  %v6849_v18 = vsub.f32 1.0, %v9567_v47  ;;  %v6853_v62 = vmul.f32 %v9567_v47, %v13264_v28 }
0x2134   :  { %9570 = vtanh.f32 %v6845_v15  ;;  %v6846_v40 = vadd.f32 %v6844_v52, %v6728_v7  ;;  %v6981_v53 = vadd.f32 %v8680_v12, %v13308_v58  ;;  %v6972_v63 = vpop.f32.mrb[209].mxu0  ;;  %v6850_v33 = vsub.f32 1.0, %v9569_v45 }
0x2135   :  { %v6973_v32 = vadd.f32 %v13308_v58, %v6972_v63  ;;  %v8681_v36 = vpop.f32.mrb[210].mxu0  ;;  %v6854_v54 = vmul.f32 %v9569_v45, %v13266_v16 }
0x2136   :  { %9572 = vtanh.f32 %v6846_v40  ;;  %7037 = vst.msk [vmem:[%s13401_s8 + $0x10] sm:$0xff] %vm122_vm1, %v6981_v53  ;;  %v6984_v8 = vadd.f32 %v8681_v36, %v13308_v58  ;;  %v6975_v51 = vpop.f32.mrb[211].mxu0 }
0x2137   :  { %7035 = vst.msk [vmem:[%s13401_s8] sm:$0xff] %vm122_vm1, %v6973_v32  ;;  %v6976_v21 = vadd.f32 %v13308_v58, %v6975_v51 }
0x2138   :  { %7038 = vst.msk [vmem:[%s13401_s8 + $0x18] sm:$0xff] %vm122_vm1, %v6984_v8 }
0x2139   :  { %7036 = vst.msk [vmem:[%s13401_s8 + $0x8] sm:$0xff] %vm122_vm1, %v6976_v21 }
0x213b   :  { %v8684_v2 = vpop.f32.mrb[212].mxu0 }
0x213c   :  { %v6997_v6 = vadd.f32 %v8684_v2, %v13308_v58  ;;  %v6988_v35 = vpop.f32.mrb[213].mxu0 }
0x213d   :  { %v6989_v56 = vadd.f32 %v13308_v58, %v6988_v35  ;;  %v8685_v13 = vpop.f32.mrb[214].mxu0 }
0x213e   :  { %v9571_v24 = vpop.eup %9570  ;;  %7041 = vst.msk [vmem:[%s13401_s8 + $0x30] sm:$0xff] %vm122_vm1, %v6997_v6  ;;  %v7000_v0 = vadd.f32 %v8685_v13, %v13308_v58  ;;  %v6991_v25 = vpop.f32.mrb[215].mxu0 }
0x213f   :  { %7039 = vst.msk [vmem:[%s13401_s8 + $0x20] sm:$0xff] %vm122_vm1, %v6989_v56  ;;  %v6992_v59 = vadd.f32 %v13308_v58, %v6991_v25  ;;  %v6851_v48 = vmul.f32 %v9571_v24, %v6849_v18 }
0x2140   :  { %v9573_v17 = vpop.eup %9572  ;;  %7042 = vst.msk [vmem:[%s13401_s8 + $0x38] sm:$0xff] %vm122_vm1, %v7000_v0 }
0x2141   :  { %7040 = vst.msk [vmem:[%s13401_s8 + $0x28] sm:$0xff] %vm122_vm1, %v6992_v59  ;;  %v6852_v9 = vmul.f32 %v9573_v17, %v6850_v33  ;;  %v6855_v23 = vadd.f32 %v6853_v62, %v6851_v48 }
0x2143   :  { %v8688_v20 = vpop.f32.mrb[216].mxu0  ;;  %v6856_v19 = vadd.f32 %v6854_v54, %v6852_v9 }
0x2144   :  { %v7013_v61 = vadd.f32 %v8688_v20, %v13308_v58  ;;  %v7004_v28 = vpop.f32.mrb[217].mxu0 }
0x2145   :  { %v7005_v31 = vadd.f32 %v13308_v58, %v7004_v28  ;;  %v8689_v37 = vpop.f32.mrb[218].mxu0  ;;  %v6857_v38 = vpack.c.bf16 %v6856_v19, %v6855_v23 }
0x2146   :  { %7045 = vst.msk [vmem:[%s13401_s8 + $0x50] sm:$0xff] %vm122_vm1, %v7013_v61  ;;  %v7016_v60 = vadd.f32 %v8689_v37, %v13308_v58  ;;  %v7007_v42 = vpop.f32.mrb[219].mxu0 }
0x2147   :  { %7043 = vst.msk [vmem:[%s13401_s8 + $0x40] sm:$0xff] %vm122_vm1, %v7005_v31  ;;  %v7008_v16 = vadd.f32 %v13308_v58, %v7007_v42  ;;  %8691 = vmatmul.mubr.bf16.gmra.mrb[220].mxu0 %v6857_v38 }
0x2148   :  { %7046 = vst.msk [vmem:[%s13401_s8 + $0x58] sm:$0xff] %vm122_vm1, %v7016_v60 }
0x2149   :  { %7044 = vst.msk [vmem:[%s13401_s8 + $0x48] sm:$0xff] %vm122_vm1, %v7008_v16 }
0x221a   :  { %v8692_v1 = vpop.f32.mrb[220].mxu0 }
0x221b   :  { %v7029_v39 = vadd.f32 %v8692_v1, %v13308_v58  ;;  %v7020_v3 = vpop.f32.mrb[221].mxu0 }
0x221c   :  { %v7021_v55 = vadd.f32 %v13308_v58, %v7020_v3  ;;  %v8693_v49 = vpop.f32.mrb[222].mxu0 }
0x221d   :  { %7049 = vst.msk [vmem:[%s13401_s8 + $0x70] sm:$0xff] %vm122_vm1, %v7029_v39  ;;  %v7032_v5 = vadd.f32 %v8693_v49, %v13308_v58  ;;  %v7023_v27 = vpop.f32.mrb[223].mxu0 }
0x221e   :  { %7047 = vst.msk [vmem:[%s13401_s8 + $0x60] sm:$0xff] %vm122_vm1, %v7021_v55  ;;  %v7024_v10 = vadd.f32 %v13308_v58, %v7023_v27 }
0x221f   :  { %7050 = vst.msk [vmem:[%s13401_s8 + $0x78] sm:$0xff] %vm122_vm1, %v7032_v5 }
0x2220   :  { %7048 = vst.msk [vmem:[%s13401_s8 + $0x68] sm:$0xff] %vm122_vm1, %v7024_v10 }

</bundles_post_ra>
